<compile_context>
chip_gen: v7x
topology: tpu7x:2x2x1
jax: 0.10.0
libtpu: 0.0.40
codegen_flags: <defaults>
</compile_context>

<pallas_src>
import jax
import jax.numpy as jnp
import numpy as np
from jax.experimental import pallas as pl
from jax.experimental.pallas import tpu as pltpu


# ----------------------------- configuration -------------------------------
B = 4            # batch size
P = 16           # num_pixels (e.g. 4x4 feature map)
E = 32           # encoder_dim
D = 32           # decoder_dim
A = 32           # attention_dim
M = 32           # embed_size
V = 32           # vocab_size
T = 8            # max caption length


# ------------------------------- kernel ------------------------------------
def decoder_att_kernel(
    # inputs
    lens_ref,        # (B, 1) int32
    enc_ref,         # (B, P, E) f32
    emb_ref,         # (T, B, M) f32
    w_enc_att_ref,   # (E, A)
    b_enc_att_ref,   # (1, A)
    w_full_ref,      # (1, A)
    b_full_ref,      # (1, 1)
    w_init_ref,      # (E, 2D)      [w_init_h | w_init_c]
    b_init_ref,      # (1, 2D)
    w_hpre_ref,      # (D, A+E)     [w_dec_att | w_fbeta]
    b_hpre_ref,      # (1, A+E)
    w_lstm_ref,      # (M+E+D, 4D)  [w_ih_e ; w_ih_a ; w_hh]
    b_lstm_ref,      # (1, 4D)      b_ih + b_hh
    w_hzo_ref,       # (D+E, V)     [w_lin_h ; w_lin_z] @ w_lin_o
    w_o_ref,         # (M, V)       w_lin_o
    b_out_ref,       # (1, V)       (b_lin_h + b_lin_z) @ w_lin_o + b_lin_o
    # outputs (lane-dense, written once)
    pred_ref,        # (B, T*V)
    alpha_ref,       # (B, T*P)
):
  enc = enc_ref[...]                                   # (B, P, E)
  lens = lens_ref[...]                                 # (B, 1) int32
  emb_all = emb_ref[...]                               # (T, B, M)

  # --- hoist all loop-invariant weight loads / broadcasts ---
  w_full = w_full_ref[...][None, :, :]                 # (1, 1, A)
  b_full = b_full_ref[...]                             # (1, 1)
  w_hpre = w_hpre_ref[...]
  b_hpre = b_hpre_ref[...]
  w_lstm = w_lstm_ref[...]
  b_lstm = b_lstm_ref[...]
  w_hzo = w_hzo_ref[...]
  w_o = w_o_ref[...]
  b_out = b_out_ref[...]

  # --- t-invariant encoder-side attention projection (computed once) ---
  att1 = (jnp.einsum('bpe,ea->bpa', enc, w_enc_att_ref[...],
                     preferred_element_type=jnp.float32)
          + b_enc_att_ref[...])                        # (B, P, A)

  # --- t-invariant embedding -> vocab projection (computed once, bias folded)
  emb_proj = (jnp.einsum('tbm,mv->tbv', emb_all, w_o,
                         preferred_element_type=jnp.float32)
              + b_out)                                 # (T, B, V)

  # --- init_hidden_states (single fused matmul) ---
  mean_enc = jnp.mean(enc, axis=1)                     # (B, E)
  hc0 = (jnp.dot(mean_enc, w_init_ref[...],
                 preferred_element_type=jnp.float32)
         + b_init_ref[...])                            # (B, 2D)
  h = hc0[:, :D]
  c = hc0[:, D:]

  preds_list = []
  alphas_list = []

  # --- fully unrolled time loop (h, c carried as values) ---
  for t in range(T):
    emb_t = emb_all[t]                                 # (B, M)
    mask = lens > t                                    # (B, 1) bool

    # fused h-consumers: decoder_att and f_beta in one matmul
    hp = jnp.dot(h, w_hpre, preferred_element_type=jnp.float32) + b_hpre
    att2 = hp[:, :A]                                   # (B, A)
    gate = jax.nn.sigmoid(hp[:, A:])                   # (B, E)

    # attention scores + softmax over pixels
    rel = jnp.maximum(att1 + att2[:, None, :], 0.0)    # (B, P, A)
    e = jnp.sum(rel * w_full, axis=-1) + b_full        # (B, P)
    e_max = jnp.max(e, axis=-1, keepdims=True)
    e_exp = jnp.exp(e - e_max)
    denom = jnp.sum(e_exp, axis=-1, keepdims=True)
    alpha = e_exp * pl.reciprocal(denom, approx=True)  # (B, P)
    awe = jnp.sum(enc * alpha[:, :, None], axis=1)     # (B, E)
    att = gate * awe                                   # (B, E)

    # fused LSTMCell: one (B, M+E+D) x (M+E+D, 4D) matmul
    x = jnp.concatenate([emb_t, att, h], axis=-1)      # (B, M+E+D)
    gates = jnp.dot(x, w_lstm, preferred_element_type=jnp.float32) + b_lstm
    i_g = jax.nn.sigmoid(gates[:, 0 * D:1 * D])
    f_g = jax.nn.sigmoid(gates[:, 1 * D:2 * D])
    g_g = jnp.tanh(gates[:, 2 * D:3 * D])
    o_g = jax.nn.sigmoid(gates[:, 3 * D:4 * D])
    c_new = f_g * c + i_g * g_g
    h_new = o_g * jnp.tanh(c_new)

    # folded output projection: emb term precomputed, [h_new|att] @ (W_hz W_o)
    x2 = jnp.concatenate([h_new, att], axis=-1)        # (B, D+E)
    preds = emb_proj[t] + jnp.dot(x2, w_hzo,
                                  preferred_element_type=jnp.float32)

    maskf = mask.astype(jnp.float32)                   # (B, 1)
    preds_list.append(preds * maskf)                   # (B, V)
    alphas_list.append(alpha * maskf)                  # (B, P)
    # rows whose caption has ended keep their previous (frozen) state
    h = jnp.where(mask, h_new, h)
    c = jnp.where(mask, c_new, c)

  # single lane-dense store of all time steps
  pred_ref[...] = jnp.concatenate(preds_list, axis=-1)    # (B, T*V)
  alpha_ref[...] = jnp.concatenate(alphas_list, axis=-1)  # (B, T*P)


# ------------------------------- wrapper ------------------------------------
def decoder_att_forward(encoder_out, captions, caption_lengths, params):
  """encoder_out: (B, P, E) f32; captions: (B, T) int32; caption_lengths: (B,) int32."""
  emb = jnp.take(params['emb_table'], captions, axis=0)        # (B, T, M)
  emb_tbm = jnp.transpose(emb, (1, 0, 2)).astype(jnp.float32)  # (T, B, M)
  lens = caption_lengths.astype(jnp.int32).reshape(B, 1)

  # pre-concatenate / pre-fold weights so the kernel can fuse matmuls
  w_init = jnp.concatenate([params['w_init_h'], params['w_init_c']], axis=1)
  b_init = jnp.concatenate([params['b_init_h'], params['b_init_c']], axis=1)
  w_hpre = jnp.concatenate([params['w_dec_att'], params['w_fbeta']], axis=1)
  b_hpre = jnp.concatenate([params['b_dec_att'], params['b_fbeta']], axis=1)
  w_lstm = jnp.concatenate(
      [params['w_ih_e'], params['w_ih_a'], params['w_hh']], axis=0)
  b_lstm = params['b_ih'] + params['b_hh']
  w_hz = jnp.concatenate([params['w_lin_h'], params['w_lin_z']], axis=0)
  b_hz = params['b_lin_h'] + params['b_lin_z']
  # fold the embed->vocab projection through the h/att path:
  #   preds = emb @ W_o + [h|att] @ (W_hz @ W_o) + (b_hz @ W_o + b_o)
  w_hzo = jnp.dot(w_hz, params['w_lin_o'])                     # (D+E, V)
  b_out = jnp.dot(b_hz, params['w_lin_o']) + params['b_lin_o'] # (1, V)

  inputs = [
      lens, encoder_out.astype(jnp.float32), emb_tbm,
      params['w_enc_att'], params['b_enc_att'],
      params['w_full'], params['b_full'],
      w_init, b_init,
      w_hpre, b_hpre,
      w_lstm, b_lstm,
      w_hzo, params['w_lin_o'], b_out,
  ]

  def full_spec(shape):
    nd = len(shape)
    return pl.BlockSpec(shape, lambda i, _nd=nd: (0,) * _nd)

  in_specs = [full_spec(x.shape) for x in inputs]
  out_specs = [full_spec((B, T * V)), full_spec((B, T * P))]

  preds_flat, alphas_flat = pl.pallas_call(
      decoder_att_kernel,
      out_shape=(jax.ShapeDtypeStruct((B, T * V), jnp.float32),
                 jax.ShapeDtypeStruct((B, T * P), jnp.float32)),
      grid_spec=pltpu.PrefetchScalarGridSpec(
          num_scalar_prefetch=0,
          grid=(1,),                     # single step: whole recurrence in-kernel
          in_specs=in_specs,
          out_specs=out_specs),
      compiler_params=pltpu.CompilerParams(
          dimension_semantics=("arbitrary",)),
  )(*inputs)

  predictions = preds_flat.reshape(B, T, V)
  alphas = alphas_flat.reshape(B, T, P)
  return predictions, alphas


# --------------------------- pure-numpy reference ----------------------------
def decoder_att_reference(encoder_out, captions, caption_lengths, params):
  enc = np.asarray(encoder_out, dtype=np.float64)
  p = {k: np.asarray(v, dtype=np.float64) for k, v in params.items()}
  emb = p['emb_table'][np.asarray(captions)]                 # (B, T, M)
  lens = np.asarray(caption_lengths)

  mean_enc = enc.mean(axis=1)
  h = mean_enc @ p['w_init_h'] + p['b_init_h']
  c = mean_enc @ p['w_init_c'] + p['b_init_c']
  preds_out = np.zeros((B, T, V))
  alphas_out = np.zeros((B, T, P))

  def sigm(x):
    return 1.0 / (1.0 + np.exp(-x))

  for t in range(T):
    mask = (lens > t).astype(np.float64)[:, None]
    att1 = np.einsum('bpe,ea->bpa', enc, p['w_enc_att']) + p['b_enc_att']
    att2 = h @ p['w_dec_att'] + p['b_dec_att']
    rel = np.maximum(att1 + att2[:, None, :], 0.0)
    e = (rel * p['w_full'][None, :, :]).sum(-1) + p['b_full']
    e = e - e.max(-1, keepdims=True)
    alpha = np.exp(e) / np.exp(e).sum(-1, keepdims=True)
    awe = (enc * alpha[:, :, None]).sum(1)
    gate = sigm(h @ p['w_fbeta'] + p['b_fbeta'])
    att = gate * awe
    emb_t = emb[:, t, :]
    gates = (emb_t @ p['w_ih_e'] + att @ p['w_ih_a'] + p['b_ih']
             + h @ p['w_hh'] + p['b_hh'])
    i_g, f_g, g_g, o_g = (sigm(gates[:, :D]), sigm(gates[:, D:2 * D]),
                          np.tanh(gates[:, 2 * D:3 * D]), sigm(gates[:, 3 * D:]))
    c_new = f_g * c + i_g * g_g
    h_new = o_g * np.tanh(c_new)
    h_e = h_new @ p['w_lin_h'] + p['b_lin_h']
    a_e = att @ p['w_lin_z'] + p['b_lin_z']
    pr = (emb_t + h_e + a_e) @ p['w_lin_o'] + p['b_lin_o']
    preds_out[:, t, :] = pr * mask
    alphas_out[:, t, :] = alpha * mask
    h = np.where(mask > 0, h_new, h)
    c = np.where(mask > 0, c_new, c)
  return preds_out, alphas_out


# ------------------------------ parameters ----------------------------------
def make_params(key):
  def nxt():
    nonlocal key
    key, sub = jax.random.split(key)
    return sub

  def w(shape, scale=0.1):
    return (scale * jax.random.normal(nxt(), shape)).astype(jnp.float32)

  params = {
      'emb_table': w((V, M)),
      # all Linear weights stored pre-transposed as (in_dim, out_dim)
      'w_enc_att': w((E, A)), 'b_enc_att': w((1, A)),
      'w_dec_att': w((D, A)), 'b_dec_att': w((1, A)),
      'w_full':    w((1, A)), 'b_full':    w((1, 1)),
      'w_init_h':  w((E, D)), 'b_init_h':  w((1, D)),
      'w_init_c':  w((E, D)), 'b_init_c':  w((1, D)),
      'w_fbeta':   w((D, E)), 'b_fbeta':   w((1, E)),
      'w_ih_e':    w((M, 4 * D)),
      'w_ih_a':    w((E, 4 * D)),
      'b_ih':      w((1, 4 * D)),
      'w_hh':      w((D, 4 * D)), 'b_hh': w((1, 4 * D)),
      'w_lin_h':   w((D, M)), 'b_lin_h': w((1, M)),
      'w_lin_z':   w((E, M)), 'b_lin_z': w((1, M)),
      'w_lin_o':   w((M, V)), 'b_lin_o': w((1, V)),
  }
  return params


# --------------------------------- main --------------------------------------
if __name__ == "__main__":
  key = jax.random.PRNGKey(0)
  key, k_enc, k_cap = jax.random.split(key, 3)

  params = make_params(key)
  encoder_out = jax.random.normal(k_enc, (B, P, E), dtype=jnp.float32)
  captions = jax.random.randint(k_cap, (B, T), 0, V, dtype=jnp.int32)
  # lengths sorted descending, like the PyTorch data pipeline assumes
  caption_lengths = jnp.array([8, 6, 4, 2], dtype=jnp.int32)

  predictions, alphas = decoder_att_forward(
      encoder_out, captions, caption_lengths, params)
  jax.block_until_ready((predictions, alphas))

  ref_preds, ref_alphas = decoder_att_reference(
      encoder_out, captions, caption_lengths, params)
  np.testing.assert_allclose(np.asarray(predictions), ref_preds,
                             rtol=2e-2, atol=2e-3)
  np.testing.assert_allclose(np.asarray(alphas), ref_alphas,
                             rtol=2e-2, atol=2e-3)

  print("KERNEL_OK")
</pallas_src>

<mosaic_0001>
module attributes {stable_mosaic.version = 11 : i64} {
  func.func @decoder_att_kernel(%arg0: i32, %arg1: memref<4x1xi32, #tpu.memory_space<vmem>>, %arg2: memref<4x16x32xf32, #tpu.memory_space<vmem>>, %arg3: memref<8x4x32xf32, #tpu.memory_space<vmem>>, %arg4: memref<32x32xf32, #tpu.memory_space<vmem>>, %arg5: memref<1x32xf32, #tpu.memory_space<vmem>>, %arg6: memref<1x32xf32, #tpu.memory_space<vmem>>, %arg7: memref<1x1xf32, #tpu.memory_space<vmem>>, %arg8: memref<32x64xf32, #tpu.memory_space<vmem>>, %arg9: memref<1x64xf32, #tpu.memory_space<vmem>>, %arg10: memref<32x64xf32, #tpu.memory_space<vmem>>, %arg11: memref<1x64xf32, #tpu.memory_space<vmem>>, %arg12: memref<96x128xf32, #tpu.memory_space<vmem>>, %arg13: memref<1x128xf32, #tpu.memory_space<vmem>>, %arg14: memref<64x32xf32, #tpu.memory_space<vmem>>, %arg15: memref<32x32xf32, #tpu.memory_space<vmem>>, %arg16: memref<1x32xf32, #tpu.memory_space<vmem>>, %arg17: memref<4x256xf32, #tpu.memory_space<vmem>>, %arg18: memref<4x128xf32, #tpu.memory_space<vmem>>) attributes {dimension_semantics = [#tpu.dimension_semantics<arbitrary>], iteration_bounds = array<i64: 1>, scalar_prefetch = 0 : i64, scratch_operands = 0 : i64, tpu.core_type = #tpu.core_type<tc>, window_params = [{pipeline_mode = #tpu.pipeline_mode<synchronous>, transform_indices = @transform_0, window_bounds = array<i64: 4, 1>}, {pipeline_mode = #tpu.pipeline_mode<synchronous>, transform_indices = @transform_1, window_bounds = array<i64: 4, 16, 32>}, {pipeline_mode = #tpu.pipeline_mode<synchronous>, transform_indices = @transform_2, window_bounds = array<i64: 8, 4, 32>}, {pipeline_mode = #tpu.pipeline_mode<synchronous>, transform_indices = @transform_3, window_bounds = array<i64: 32, 32>}, {pipeline_mode = #tpu.pipeline_mode<synchronous>, transform_indices = @transform_4, window_bounds = array<i64: 1, 32>}, {pipeline_mode = #tpu.pipeline_mode<synchronous>, transform_indices = @transform_5, window_bounds = array<i64: 1, 32>}, {pipeline_mode = #tpu.pipeline_mode<synchronous>, transform_indices = @transform_6, window_bounds = array<i64: 1, 1>}, {pipeline_mode = #tpu.pipeline_mode<synchronous>, transform_indices = @transform_7, window_bounds = array<i64: 32, 64>}, {pipeline_mode = #tpu.pipeline_mode<synchronous>, transform_indices = @transform_8, window_bounds = array<i64: 1, 64>}, {pipeline_mode = #tpu.pipeline_mode<synchronous>, transform_indices = @transform_9, window_bounds = array<i64: 32, 64>}, {pipeline_mode = #tpu.pipeline_mode<synchronous>, transform_indices = @transform_10, window_bounds = array<i64: 1, 64>}, {pipeline_mode = #tpu.pipeline_mode<synchronous>, transform_indices = @transform_11, window_bounds = array<i64: 96, 128>}, {pipeline_mode = #tpu.pipeline_mode<synchronous>, transform_indices = @transform_12, window_bounds = array<i64: 1, 128>}, {pipeline_mode = #tpu.pipeline_mode<synchronous>, transform_indices = @transform_13, window_bounds = array<i64: 64, 32>}, {pipeline_mode = #tpu.pipeline_mode<synchronous>, transform_indices = @transform_14, window_bounds = array<i64: 32, 32>}, {pipeline_mode = #tpu.pipeline_mode<synchronous>, transform_indices = @transform_15, window_bounds = array<i64: 1, 32>}, {pipeline_mode = #tpu.pipeline_mode<synchronous>, transform_indices = @transform_16, window_bounds = array<i64: 4, 256>}, {pipeline_mode = #tpu.pipeline_mode<synchronous>, transform_indices = @transform_17, window_bounds = array<i64: 4, 128>}]} {
    %c0 = arith.constant 0 : index
    %c0_0 = arith.constant 0 : index
    %c0_1 = arith.constant 0 : index
    %0 = vector.load %arg2[%c0, %c0_0, %c0_1] : memref<4x16x32xf32, #tpu.memory_space<vmem>>, vector<4x16x32xf32>
    %c0_2 = arith.constant 0 : index
    %c0_3 = arith.constant 0 : index
    %1 = vector.load %arg1[%c0_2, %c0_3] : memref<4x1xi32, #tpu.memory_space<vmem>>, vector<4x1xi32>
    %c0_4 = arith.constant 0 : index
    %c0_5 = arith.constant 0 : index
    %c0_6 = arith.constant 0 : index
    %2 = vector.load %arg3[%c0_4, %c0_5, %c0_6] : memref<8x4x32xf32, #tpu.memory_space<vmem>>, vector<8x4x32xf32>
    %c0_7 = arith.constant 0 : index
    %c0_8 = arith.constant 0 : index
    %3 = vector.load %arg6[%c0_7, %c0_8] : memref<1x32xf32, #tpu.memory_space<vmem>>, vector<1x32xf32>
    %4 = vector.shape_cast %3 : vector<1x32xf32> to vector<1x1x32xf32>
    %c0_9 = arith.constant 0 : index
    %c0_10 = arith.constant 0 : index
    %5 = vector.load %arg7[%c0_9, %c0_10] : memref<1x1xf32, #tpu.memory_space<vmem>>, vector<1x1xf32>
    %c0_11 = arith.constant 0 : index
    %c0_12 = arith.constant 0 : index
    %6 = vector.load %arg10[%c0_11, %c0_12] : memref<32x64xf32, #tpu.memory_space<vmem>>, vector<32x64xf32>
    %c0_13 = arith.constant 0 : index
    %c0_14 = arith.constant 0 : index
    %7 = vector.load %arg11[%c0_13, %c0_14] : memref<1x64xf32, #tpu.memory_space<vmem>>, vector<1x64xf32>
    %c0_15 = arith.constant 0 : index
    %c0_16 = arith.constant 0 : index
    %8 = vector.load %arg12[%c0_15, %c0_16] : memref<96x128xf32, #tpu.memory_space<vmem>>, vector<96x128xf32>
    %c0_17 = arith.constant 0 : index
    %c0_18 = arith.constant 0 : index
    %9 = vector.load %arg13[%c0_17, %c0_18] : memref<1x128xf32, #tpu.memory_space<vmem>>, vector<1x128xf32>
    %c0_19 = arith.constant 0 : index
    %c0_20 = arith.constant 0 : index
    %10 = vector.load %arg14[%c0_19, %c0_20] : memref<64x32xf32, #tpu.memory_space<vmem>>, vector<64x32xf32>
    %c0_21 = arith.constant 0 : index
    %c0_22 = arith.constant 0 : index
    %11 = vector.load %arg15[%c0_21, %c0_22] : memref<32x32xf32, #tpu.memory_space<vmem>>, vector<32x32xf32>
    %c0_23 = arith.constant 0 : index
    %c0_24 = arith.constant 0 : index
    %12 = vector.load %arg16[%c0_23, %c0_24] : memref<1x32xf32, #tpu.memory_space<vmem>>, vector<1x32xf32>
    %c0_25 = arith.constant 0 : index
    %c0_26 = arith.constant 0 : index
    %13 = vector.load %arg4[%c0_25, %c0_26] : memref<32x32xf32, #tpu.memory_space<vmem>>, vector<32x32xf32>
    "tpu.trace_start"() <{level = 10 : i32, message = "bpe,ea->bpa"}> : () -> ()
    %cst = arith.constant dense<0.000000e+00> : vector<4x16x32xf32>
    %14 = tpu.matmul %0, %13, %cst {dimension_numbers = #tpu.dot_dimension_numbers<[2], [0], [0, 1], [1], [0, 0, 0, 1, 1, 1], [], []>} : vector<4x16x32xf32>, vector<32x32xf32>, vector<4x16x32xf32> -> vector<4x16x32xf32>
    "tpu.trace_stop"() : () -> ()
    %c0_27 = arith.constant 0 : index
    %c0_28 = arith.constant 0 : index
    %15 = vector.load %arg5[%c0_27, %c0_28] : memref<1x32xf32, #tpu.memory_space<vmem>>, vector<1x32xf32>
    %16 = vector.shape_cast %15 : vector<1x32xf32> to vector<1x1x32xf32>
    %17 = vector.broadcast %16 : vector<1x1x32xf32> to vector<4x16x32xf32>
    %18 = arith.addf %14, %17 : vector<4x16x32xf32>
    "tpu.trace_start"() <{level = 10 : i32, message = "tbm,mv->tbv"}> : () -> ()
    %cst_29 = arith.constant dense<0.000000e+00> : vector<8x4x32xf32>
    %19 = tpu.matmul %2, %11, %cst_29 {dimension_numbers = #tpu.dot_dimension_numbers<[2], [0], [0, 1], [1], [0, 0, 0, 1, 1, 1], [], []>} : vector<8x4x32xf32>, vector<32x32xf32>, vector<8x4x32xf32> -> vector<8x4x32xf32>
    "tpu.trace_stop"() : () -> ()
    %20 = vector.shape_cast %12 : vector<1x32xf32> to vector<1x1x32xf32>
    %21 = vector.broadcast %20 : vector<1x1x32xf32> to vector<8x4x32xf32>
    %22 = arith.addf %19, %21 : vector<8x4x32xf32>
    %cst_30 = arith.constant dense<0.000000e+00> : vector<4x32xf32>
    %23 = vector.multi_reduction <add>, %0, %cst_30 [1] : vector<4x16x32xf32> to vector<4x32xf32>
    %cst_31 = arith.constant 1.600000e+01 : f32
    %24 = vector.broadcast %cst_31 : f32 to vector<4x32xf32>
    %25 = arith.divf %23, %24 : vector<4x32xf32>
    %c0_32 = arith.constant 0 : index
    %c0_33 = arith.constant 0 : index
    %26 = vector.load %arg8[%c0_32, %c0_33] : memref<32x64xf32, #tpu.memory_space<vmem>>, vector<32x64xf32>
    %cst_34 = arith.constant dense<0.000000e+00> : vector<4x64xf32>
    %27 = tpu.matmul %25, %26, %cst_34 {dimension_numbers = #tpu.dot_dimension_numbers<[1], [0], [0], [1], [0, 0, 1, 1], [], []>} : vector<4x32xf32>, vector<32x64xf32>, vector<4x64xf32> -> vector<4x64xf32>
    %c0_35 = arith.constant 0 : index
    %c0_36 = arith.constant 0 : index
    %28 = vector.load %arg9[%c0_35, %c0_36] : memref<1x64xf32, #tpu.memory_space<vmem>>, vector<1x64xf32>
    %29 = vector.broadcast %28 : vector<1x64xf32> to vector<4x64xf32>
    %30 = arith.addf %27, %29 : vector<4x64xf32>
    %31 = vector.extract_strided_slice %30 {offsets = [0, 0], sizes = [4, 32], strides = [1, 1]} : vector<4x64xf32> to vector<4x32xf32>
    %32 = vector.extract_strided_slice %30 {offsets = [0, 32], sizes = [4, 32], strides = [1, 1]} : vector<4x64xf32> to vector<4x32xf32>
    %33 = vector.extract_strided_slice %2 {offsets = [0, 0, 0], sizes = [1, 4, 32], strides = [1, 1, 1]} : vector<8x4x32xf32> to vector<1x4x32xf32>
    %34 = vector.shape_cast %33 : vector<1x4x32xf32> to vector<4x32xf32>
    %c0_i32 = arith.constant 0 : i32
    %35 = vector.broadcast %c0_i32 : i32 to vector<4x1xi32>
    %36 = arith.cmpi sgt, %1, %35 : vector<4x1xi32>
    %cst_37 = arith.constant dense<0.000000e+00> : vector<4x64xf32>
    %37 = tpu.matmul %31, %6, %cst_37 {dimension_numbers = #tpu.dot_dimension_numbers<[1], [0], [0], [1], [0, 0, 1, 1], [], []>} : vector<4x32xf32>, vector<32x64xf32>, vector<4x64xf32> -> vector<4x64xf32>
    %38 = vector.broadcast %7 : vector<1x64xf32> to vector<4x64xf32>
    %39 = arith.addf %37, %38 : vector<4x64xf32>
    %40 = vector.extract_strided_slice %39 {offsets = [0, 0], sizes = [4, 32], strides = [1, 1]} : vector<4x64xf32> to vector<4x32xf32>
    %41 = vector.extract_strided_slice %39 {offsets = [0, 32], sizes = [4, 32], strides = [1, 1]} : vector<4x64xf32> to vector<4x32xf32>
    %42 = arith.negf %41 : vector<4x32xf32>
    %43 = math.exp %42 : vector<4x32xf32>
    %cst_38 = arith.constant 1.000000e+00 : f32
    %44 = vector.broadcast %cst_38 : f32 to vector<4x32xf32>
    %45 = arith.addf %44, %43 : vector<4x32xf32>
    %46 = arith.divf %44, %45 : vector<4x32xf32>
    %47 = vector.shape_cast %40 : vector<4x32xf32> to vector<4x1x32xf32>
    %48 = vector.broadcast %47 : vector<4x1x32xf32> to vector<4x16x32xf32>
    %49 = arith.addf %18, %48 : vector<4x16x32xf32>
    %cst_39 = arith.constant 0.000000e+00 : f32
    %50 = vector.broadcast %cst_39 : f32 to vector<4x16x32xf32>
    %51 = arith.maximumf %49, %50 : vector<4x16x32xf32>
    %52 = vector.broadcast %4 : vector<1x1x32xf32> to vector<4x16x32xf32>
    %53 = arith.mulf %51, %52 : vector<4x16x32xf32>
    %cst_40 = arith.constant dense<0.000000e+00> : vector<4x16xf32>
    %54 = vector.multi_reduction <add>, %53, %cst_40 [2] : vector<4x16x32xf32> to vector<4x16xf32>
    %55 = vector.broadcast %5 : vector<1x1xf32> to vector<4x16xf32>
    %56 = arith.addf %54, %55 : vector<4x16xf32>
    %cst_41 = arith.constant dense<0xFF800000> : vector<4xf32>
    %57 = vector.multi_reduction <maximumf>, %56, %cst_41 [1] : vector<4x16xf32> to vector<4xf32>
    %58 = vector.shape_cast %57 : vector<4xf32> to vector<4x1xf32>
    %59 = vector.broadcast %58 : vector<4x1xf32> to vector<4x16xf32>
    %60 = arith.subf %56, %59 : vector<4x16xf32>
    %61 = math.exp %60 : vector<4x16xf32>
    %cst_42 = arith.constant dense<0.000000e+00> : vector<4xf32>
    %62 = vector.multi_reduction <add>, %61, %cst_42 [1] : vector<4x16xf32> to vector<4xf32>
    %63 = vector.shape_cast %62 : vector<4xf32> to vector<4x1xf32>
    %64 = tpu.reciprocal %63 {approx = true} : vector<4x1xf32> -> vector<4x1xf32>
    %65 = vector.broadcast %64 : vector<4x1xf32> to vector<4x16xf32>
    %66 = arith.mulf %61, %65 : vector<4x16xf32>
    %67 = vector.shape_cast %66 : vector<4x16xf32> to vector<4x16x1xf32>
    %68 = vector.broadcast %67 : vector<4x16x1xf32> to vector<4x16x32xf32>
    %69 = arith.mulf %0, %68 : vector<4x16x32xf32>
    %cst_43 = arith.constant dense<0.000000e+00> : vector<4x32xf32>
    %70 = vector.multi_reduction <add>, %69, %cst_43 [1] : vector<4x16x32xf32> to vector<4x32xf32>
    %71 = arith.mulf %46, %70 : vector<4x32xf32>
    %72 = tpu.concatenate %34, %71, %31 in 1 : vector<4x32xf32>, vector<4x32xf32>, vector<4x32xf32> -> vector<4x96xf32>
    %cst_44 = arith.constant dense<0.000000e+00> : vector<4x128xf32>
    %73 = tpu.matmul %72, %8, %cst_44 {dimension_numbers = #tpu.dot_dimension_numbers<[1], [0], [0], [1], [0, 0, 1, 1], [], []>} : vector<4x96xf32>, vector<96x128xf32>, vector<4x128xf32> -> vector<4x128xf32>
    %74 = vector.broadcast %9 : vector<1x128xf32> to vector<4x128xf32>
    %75 = arith.addf %73, %74 : vector<4x128xf32>
    %76 = vector.extract_strided_slice %75 {offsets = [0, 0], sizes = [4, 32], strides = [1, 1]} : vector<4x128xf32> to vector<4x32xf32>
    %77 = arith.negf %76 : vector<4x32xf32>
    %78 = math.exp %77 : vector<4x32xf32>
    %cst_45 = arith.constant 1.000000e+00 : f32
    %79 = vector.broadcast %cst_45 : f32 to vector<4x32xf32>
    %80 = arith.addf %79, %78 : vector<4x32xf32>
    %81 = arith.divf %79, %80 : vector<4x32xf32>
    %82 = vector.extract_strided_slice %75 {offsets = [0, 32], sizes = [4, 32], strides = [1, 1]} : vector<4x128xf32> to vector<4x32xf32>
    %83 = arith.negf %82 : vector<4x32xf32>
    %84 = math.exp %83 : vector<4x32xf32>
    %cst_46 = arith.constant 1.000000e+00 : f32
    %85 = vector.broadcast %cst_46 : f32 to vector<4x32xf32>
    %86 = arith.addf %85, %84 : vector<4x32xf32>
    %87 = arith.divf %85, %86 : vector<4x32xf32>
    %88 = vector.extract_strided_slice %75 {offsets = [0, 64], sizes = [4, 32], strides = [1, 1]} : vector<4x128xf32> to vector<4x32xf32>
    %89 = math.tanh %88 : vector<4x32xf32>
    %90 = vector.extract_strided_slice %75 {offsets = [0, 96], sizes = [4, 32], strides = [1, 1]} : vector<4x128xf32> to vector<4x32xf32>
    %91 = arith.negf %90 : vector<4x32xf32>
    %92 = math.exp %91 : vector<4x32xf32>
    %cst_47 = arith.constant 1.000000e+00 : f32
    %93 = vector.broadcast %cst_47 : f32 to vector<4x32xf32>
    %94 = arith.addf %93, %92 : vector<4x32xf32>
    %95 = arith.divf %93, %94 : vector<4x32xf32>
    %96 = arith.mulf %87, %32 : vector<4x32xf32>
    %97 = arith.mulf %81, %89 : vector<4x32xf32>
    %98 = arith.addf %96, %97 : vector<4x32xf32>
    %99 = math.tanh %98 : vector<4x32xf32>
    %100 = arith.mulf %95, %99 : vector<4x32xf32>
    %101 = tpu.concatenate %100, %71 in 1 : vector<4x32xf32>, vector<4x32xf32> -> vector<4x64xf32>
    %102 = vector.extract_strided_slice %22 {offsets = [0, 0, 0], sizes = [1, 4, 32], strides = [1, 1, 1]} : vector<8x4x32xf32> to vector<1x4x32xf32>
    %103 = vector.shape_cast %102 : vector<1x4x32xf32> to vector<4x32xf32>
    %cst_48 = arith.constant dense<0.000000e+00> : vector<4x32xf32>
    %104 = tpu.matmul %101, %10, %cst_48 {dimension_numbers = #tpu.dot_dimension_numbers<[1], [0], [0], [1], [0, 0, 1, 1], [], []>} : vector<4x64xf32>, vector<64x32xf32>, vector<4x32xf32> -> vector<4x32xf32>
    %105 = arith.addf %103, %104 : vector<4x32xf32>
    %106 = arith.extui %36 : vector<4x1xi1> to vector<4x1xi32>
    %107 = arith.sitofp %106 : vector<4x1xi32> to vector<4x1xf32>
    %108 = vector.broadcast %107 : vector<4x1xf32> to vector<4x32xf32>
    %109 = arith.mulf %105, %108 : vector<4x32xf32>
    %110 = vector.broadcast %107 : vector<4x1xf32> to vector<4x16xf32>
    %111 = arith.mulf %66, %110 : vector<4x16xf32>
    %112 = vector.shape_cast %36 : vector<4x1xi1> to vector<4x1xi1>
    %113 = vector.broadcast %112 : vector<4x1xi1> to vector<4x32xi1>
    %114 = arith.select %113, %100, %31 : vector<4x32xi1>, vector<4x32xf32>
    %115 = vector.shape_cast %36 : vector<4x1xi1> to vector<4x1xi1>
    %116 = vector.broadcast %115 : vector<4x1xi1> to vector<4x32xi1>
    %117 = arith.select %116, %98, %32 : vector<4x32xi1>, vector<4x32xf32>
    %118 = vector.extract_strided_slice %2 {offsets = [1, 0, 0], sizes = [1, 4, 32], strides = [1, 1, 1]} : vector<8x4x32xf32> to vector<1x4x32xf32>
    %119 = vector.shape_cast %118 : vector<1x4x32xf32> to vector<4x32xf32>
    %c1_i32 = arith.constant 1 : i32
    %120 = vector.broadcast %c1_i32 : i32 to vector<4x1xi32>
    %121 = arith.cmpi sgt, %1, %120 : vector<4x1xi32>
    %cst_49 = arith.constant dense<0.000000e+00> : vector<4x64xf32>
    %122 = tpu.matmul %114, %6, %cst_49 {dimension_numbers = #tpu.dot_dimension_numbers<[1], [0], [0], [1], [0, 0, 1, 1], [], []>} : vector<4x32xf32>, vector<32x64xf32>, vector<4x64xf32> -> vector<4x64xf32>
    %123 = vector.broadcast %7 : vector<1x64xf32> to vector<4x64xf32>
    %124 = arith.addf %122, %123 : vector<4x64xf32>
    %125 = vector.extract_strided_slice %124 {offsets = [0, 0], sizes = [4, 32], strides = [1, 1]} : vector<4x64xf32> to vector<4x32xf32>
    %126 = vector.extract_strided_slice %124 {offsets = [0, 32], sizes = [4, 32], strides = [1, 1]} : vector<4x64xf32> to vector<4x32xf32>
    %127 = arith.negf %126 : vector<4x32xf32>
    %128 = math.exp %127 : vector<4x32xf32>
    %cst_50 = arith.constant 1.000000e+00 : f32
    %129 = vector.broadcast %cst_50 : f32 to vector<4x32xf32>
    %130 = arith.addf %129, %128 : vector<4x32xf32>
    %131 = arith.divf %129, %130 : vector<4x32xf32>
    %132 = vector.shape_cast %125 : vector<4x32xf32> to vector<4x1x32xf32>
    %133 = vector.broadcast %132 : vector<4x1x32xf32> to vector<4x16x32xf32>
    %134 = arith.addf %18, %133 : vector<4x16x32xf32>
    %cst_51 = arith.constant 0.000000e+00 : f32
    %135 = vector.broadcast %cst_51 : f32 to vector<4x16x32xf32>
    %136 = arith.maximumf %134, %135 : vector<4x16x32xf32>
    %137 = vector.broadcast %4 : vector<1x1x32xf32> to vector<4x16x32xf32>
    %138 = arith.mulf %136, %137 : vector<4x16x32xf32>
    %cst_52 = arith.constant dense<0.000000e+00> : vector<4x16xf32>
    %139 = vector.multi_reduction <add>, %138, %cst_52 [2] : vector<4x16x32xf32> to vector<4x16xf32>
    %140 = vector.broadcast %5 : vector<1x1xf32> to vector<4x16xf32>
    %141 = arith.addf %139, %140 : vector<4x16xf32>
    %cst_53 = arith.constant dense<0xFF800000> : vector<4xf32>
    %142 = vector.multi_reduction <maximumf>, %141, %cst_53 [1] : vector<4x16xf32> to vector<4xf32>
    %143 = vector.shape_cast %142 : vector<4xf32> to vector<4x1xf32>
    %144 = vector.broadcast %143 : vector<4x1xf32> to vector<4x16xf32>
    %145 = arith.subf %141, %144 : vector<4x16xf32>
    %146 = math.exp %145 : vector<4x16xf32>
    %cst_54 = arith.constant dense<0.000000e+00> : vector<4xf32>
    %147 = vector.multi_reduction <add>, %146, %cst_54 [1] : vector<4x16xf32> to vector<4xf32>
    %148 = vector.shape_cast %147 : vector<4xf32> to vector<4x1xf32>
    %149 = tpu.reciprocal %148 {approx = true} : vector<4x1xf32> -> vector<4x1xf32>
    %150 = vector.broadcast %149 : vector<4x1xf32> to vector<4x16xf32>
    %151 = arith.mulf %146, %150 : vector<4x16xf32>
    %152 = vector.shape_cast %151 : vector<4x16xf32> to vector<4x16x1xf32>
    %153 = vector.broadcast %152 : vector<4x16x1xf32> to vector<4x16x32xf32>
    %154 = arith.mulf %0, %153 : vector<4x16x32xf32>
    %cst_55 = arith.constant dense<0.000000e+00> : vector<4x32xf32>
    %155 = vector.multi_reduction <add>, %154, %cst_55 [1] : vector<4x16x32xf32> to vector<4x32xf32>
    %156 = arith.mulf %131, %155 : vector<4x32xf32>
    %157 = tpu.concatenate %119, %156, %114 in 1 : vector<4x32xf32>, vector<4x32xf32>, vector<4x32xf32> -> vector<4x96xf32>
    %cst_56 = arith.constant dense<0.000000e+00> : vector<4x128xf32>
    %158 = tpu.matmul %157, %8, %cst_56 {dimension_numbers = #tpu.dot_dimension_numbers<[1], [0], [0], [1], [0, 0, 1, 1], [], []>} : vector<4x96xf32>, vector<96x128xf32>, vector<4x128xf32> -> vector<4x128xf32>
    %159 = vector.broadcast %9 : vector<1x128xf32> to vector<4x128xf32>
    %160 = arith.addf %158, %159 : vector<4x128xf32>
    %161 = vector.extract_strided_slice %160 {offsets = [0, 0], sizes = [4, 32], strides = [1, 1]} : vector<4x128xf32> to vector<4x32xf32>
    %162 = arith.negf %161 : vector<4x32xf32>
    %163 = math.exp %162 : vector<4x32xf32>
    %cst_57 = arith.constant 1.000000e+00 : f32
    %164 = vector.broadcast %cst_57 : f32 to vector<4x32xf32>
    %165 = arith.addf %164, %163 : vector<4x32xf32>
    %166 = arith.divf %164, %165 : vector<4x32xf32>
    %167 = vector.extract_strided_slice %160 {offsets = [0, 32], sizes = [4, 32], strides = [1, 1]} : vector<4x128xf32> to vector<4x32xf32>
    %168 = arith.negf %167 : vector<4x32xf32>
    %169 = math.exp %168 : vector<4x32xf32>
    %cst_58 = arith.constant 1.000000e+00 : f32
    %170 = vector.broadcast %cst_58 : f32 to vector<4x32xf32>
    %171 = arith.addf %170, %169 : vector<4x32xf32>
    %172 = arith.divf %170, %171 : vector<4x32xf32>
    %173 = vector.extract_strided_slice %160 {offsets = [0, 64], sizes = [4, 32], strides = [1, 1]} : vector<4x128xf32> to vector<4x32xf32>
    %174 = math.tanh %173 : vector<4x32xf32>
    %175 = vector.extract_strided_slice %160 {offsets = [0, 96], sizes = [4, 32], strides = [1, 1]} : vector<4x128xf32> to vector<4x32xf32>
    %176 = arith.negf %175 : vector<4x32xf32>
    %177 = math.exp %176 : vector<4x32xf32>
    %cst_59 = arith.constant 1.000000e+00 : f32
    %178 = vector.broadcast %cst_59 : f32 to vector<4x32xf32>
    %179 = arith.addf %178, %177 : vector<4x32xf32>
    %180 = arith.divf %178, %179 : vector<4x32xf32>
    %181 = arith.mulf %172, %117 : vector<4x32xf32>
    %182 = arith.mulf %166, %174 : vector<4x32xf32>
    %183 = arith.addf %181, %182 : vector<4x32xf32>
    %184 = math.tanh %183 : vector<4x32xf32>
    %185 = arith.mulf %180, %184 : vector<4x32xf32>
    %186 = tpu.concatenate %185, %156 in 1 : vector<4x32xf32>, vector<4x32xf32> -> vector<4x64xf32>
    %187 = vector.extract_strided_slice %22 {offsets = [1, 0, 0], sizes = [1, 4, 32], strides = [1, 1, 1]} : vector<8x4x32xf32> to vector<1x4x32xf32>
    %188 = vector.shape_cast %187 : vector<1x4x32xf32> to vector<4x32xf32>
    %cst_60 = arith.constant dense<0.000000e+00> : vector<4x32xf32>
    %189 = tpu.matmul %186, %10, %cst_60 {dimension_numbers = #tpu.dot_dimension_numbers<[1], [0], [0], [1], [0, 0, 1, 1], [], []>} : vector<4x64xf32>, vector<64x32xf32>, vector<4x32xf32> -> vector<4x32xf32>
    %190 = arith.addf %188, %189 : vector<4x32xf32>
    %191 = arith.extui %121 : vector<4x1xi1> to vector<4x1xi32>
    %192 = arith.sitofp %191 : vector<4x1xi32> to vector<4x1xf32>
    %193 = vector.broadcast %192 : vector<4x1xf32> to vector<4x32xf32>
    %194 = arith.mulf %190, %193 : vector<4x32xf32>
    %195 = vector.broadcast %192 : vector<4x1xf32> to vector<4x16xf32>
    %196 = arith.mulf %151, %195 : vector<4x16xf32>
    %197 = vector.shape_cast %121 : vector<4x1xi1> to vector<4x1xi1>
    %198 = vector.broadcast %197 : vector<4x1xi1> to vector<4x32xi1>
    %199 = arith.select %198, %185, %114 : vector<4x32xi1>, vector<4x32xf32>
    %200 = vector.shape_cast %121 : vector<4x1xi1> to vector<4x1xi1>
    %201 = vector.broadcast %200 : vector<4x1xi1> to vector<4x32xi1>
    %202 = arith.select %201, %183, %117 : vector<4x32xi1>, vector<4x32xf32>
    %203 = vector.extract_strided_slice %2 {offsets = [2, 0, 0], sizes = [1, 4, 32], strides = [1, 1, 1]} : vector<8x4x32xf32> to vector<1x4x32xf32>
    %204 = vector.shape_cast %203 : vector<1x4x32xf32> to vector<4x32xf32>
    %c2_i32 = arith.constant 2 : i32
    %205 = vector.broadcast %c2_i32 : i32 to vector<4x1xi32>
    %206 = arith.cmpi sgt, %1, %205 : vector<4x1xi32>
    %cst_61 = arith.constant dense<0.000000e+00> : vector<4x64xf32>
    %207 = tpu.matmul %199, %6, %cst_61 {dimension_numbers = #tpu.dot_dimension_numbers<[1], [0], [0], [1], [0, 0, 1, 1], [], []>} : vector<4x32xf32>, vector<32x64xf32>, vector<4x64xf32> -> vector<4x64xf32>
    %208 = vector.broadcast %7 : vector<1x64xf32> to vector<4x64xf32>
    %209 = arith.addf %207, %208 : vector<4x64xf32>
    %210 = vector.extract_strided_slice %209 {offsets = [0, 0], sizes = [4, 32], strides = [1, 1]} : vector<4x64xf32> to vector<4x32xf32>
    %211 = vector.extract_strided_slice %209 {offsets = [0, 32], sizes = [4, 32], strides = [1, 1]} : vector<4x64xf32> to vector<4x32xf32>
    %212 = arith.negf %211 : vector<4x32xf32>
    %213 = math.exp %212 : vector<4x32xf32>
    %cst_62 = arith.constant 1.000000e+00 : f32
    %214 = vector.broadcast %cst_62 : f32 to vector<4x32xf32>
    %215 = arith.addf %214, %213 : vector<4x32xf32>
    %216 = arith.divf %214, %215 : vector<4x32xf32>
    %217 = vector.shape_cast %210 : vector<4x32xf32> to vector<4x1x32xf32>
    %218 = vector.broadcast %217 : vector<4x1x32xf32> to vector<4x16x32xf32>
    %219 = arith.addf %18, %218 : vector<4x16x32xf32>
    %cst_63 = arith.constant 0.000000e+00 : f32
    %220 = vector.broadcast %cst_63 : f32 to vector<4x16x32xf32>
    %221 = arith.maximumf %219, %220 : vector<4x16x32xf32>
    %222 = vector.broadcast %4 : vector<1x1x32xf32> to vector<4x16x32xf32>
    %223 = arith.mulf %221, %222 : vector<4x16x32xf32>
    %cst_64 = arith.constant dense<0.000000e+00> : vector<4x16xf32>
    %224 = vector.multi_reduction <add>, %223, %cst_64 [2] : vector<4x16x32xf32> to vector<4x16xf32>
    %225 = vector.broadcast %5 : vector<1x1xf32> to vector<4x16xf32>
    %226 = arith.addf %224, %225 : vector<4x16xf32>
    %cst_65 = arith.constant dense<0xFF800000> : vector<4xf32>
    %227 = vector.multi_reduction <maximumf>, %226, %cst_65 [1] : vector<4x16xf32> to vector<4xf32>
    %228 = vector.shape_cast %227 : vector<4xf32> to vector<4x1xf32>
    %229 = vector.broadcast %228 : vector<4x1xf32> to vector<4x16xf32>
    %230 = arith.subf %226, %229 : vector<4x16xf32>
    %231 = math.exp %230 : vector<4x16xf32>
    %cst_66 = arith.constant dense<0.000000e+00> : vector<4xf32>
    %232 = vector.multi_reduction <add>, %231, %cst_66 [1] : vector<4x16xf32> to vector<4xf32>
    %233 = vector.shape_cast %232 : vector<4xf32> to vector<4x1xf32>
    %234 = tpu.reciprocal %233 {approx = true} : vector<4x1xf32> -> vector<4x1xf32>
    %235 = vector.broadcast %234 : vector<4x1xf32> to vector<4x16xf32>
    %236 = arith.mulf %231, %235 : vector<4x16xf32>
    %237 = vector.shape_cast %236 : vector<4x16xf32> to vector<4x16x1xf32>
    %238 = vector.broadcast %237 : vector<4x16x1xf32> to vector<4x16x32xf32>
    %239 = arith.mulf %0, %238 : vector<4x16x32xf32>
    %cst_67 = arith.constant dense<0.000000e+00> : vector<4x32xf32>
    %240 = vector.multi_reduction <add>, %239, %cst_67 [1] : vector<4x16x32xf32> to vector<4x32xf32>
    %241 = arith.mulf %216, %240 : vector<4x32xf32>
    %242 = tpu.concatenate %204, %241, %199 in 1 : vector<4x32xf32>, vector<4x32xf32>, vector<4x32xf32> -> vector<4x96xf32>
    %cst_68 = arith.constant dense<0.000000e+00> : vector<4x128xf32>
    %243 = tpu.matmul %242, %8, %cst_68 {dimension_numbers = #tpu.dot_dimension_numbers<[1], [0], [0], [1], [0, 0, 1, 1], [], []>} : vector<4x96xf32>, vector<96x128xf32>, vector<4x128xf32> -> vector<4x128xf32>
    %244 = vector.broadcast %9 : vector<1x128xf32> to vector<4x128xf32>
    %245 = arith.addf %243, %244 : vector<4x128xf32>
    %246 = vector.extract_strided_slice %245 {offsets = [0, 0], sizes = [4, 32], strides = [1, 1]} : vector<4x128xf32> to vector<4x32xf32>
    %247 = arith.negf %246 : vector<4x32xf32>
    %248 = math.exp %247 : vector<4x32xf32>
    %cst_69 = arith.constant 1.000000e+00 : f32
    %249 = vector.broadcast %cst_69 : f32 to vector<4x32xf32>
    %250 = arith.addf %249, %248 : vector<4x32xf32>
    %251 = arith.divf %249, %250 : vector<4x32xf32>
    %252 = vector.extract_strided_slice %245 {offsets = [0, 32], sizes = [4, 32], strides = [1, 1]} : vector<4x128xf32> to vector<4x32xf32>
    %253 = arith.negf %252 : vector<4x32xf32>
    %254 = math.exp %253 : vector<4x32xf32>
    %cst_70 = arith.constant 1.000000e+00 : f32
    %255 = vector.broadcast %cst_70 : f32 to vector<4x32xf32>
    %256 = arith.addf %255, %254 : vector<4x32xf32>
    %257 = arith.divf %255, %256 : vector<4x32xf32>
    %258 = vector.extract_strided_slice %245 {offsets = [0, 64], sizes = [4, 32], strides = [1, 1]} : vector<4x128xf32> to vector<4x32xf32>
    %259 = math.tanh %258 : vector<4x32xf32>
    %260 = vector.extract_strided_slice %245 {offsets = [0, 96], sizes = [4, 32], strides = [1, 1]} : vector<4x128xf32> to vector<4x32xf32>
    %261 = arith.negf %260 : vector<4x32xf32>
    %262 = math.exp %261 : vector<4x32xf32>
    %cst_71 = arith.constant 1.000000e+00 : f32
    %263 = vector.broadcast %cst_71 : f32 to vector<4x32xf32>
    %264 = arith.addf %263, %262 : vector<4x32xf32>
    %265 = arith.divf %263, %264 : vector<4x32xf32>
    %266 = arith.mulf %257, %202 : vector<4x32xf32>
    %267 = arith.mulf %251, %259 : vector<4x32xf32>
    %268 = arith.addf %266, %267 : vector<4x32xf32>
    %269 = math.tanh %268 : vector<4x32xf32>
    %270 = arith.mulf %265, %269 : vector<4x32xf32>
    %271 = tpu.concatenate %270, %241 in 1 : vector<4x32xf32>, vector<4x32xf32> -> vector<4x64xf32>
    %272 = vector.extract_strided_slice %22 {offsets = [2, 0, 0], sizes = [1, 4, 32], strides = [1, 1, 1]} : vector<8x4x32xf32> to vector<1x4x32xf32>
    %273 = vector.shape_cast %272 : vector<1x4x32xf32> to vector<4x32xf32>
    %cst_72 = arith.constant dense<0.000000e+00> : vector<4x32xf32>
    %274 = tpu.matmul %271, %10, %cst_72 {dimension_numbers = #tpu.dot_dimension_numbers<[1], [0], [0], [1], [0, 0, 1, 1], [], []>} : vector<4x64xf32>, vector<64x32xf32>, vector<4x32xf32> -> vector<4x32xf32>
    %275 = arith.addf %273, %274 : vector<4x32xf32>
    %276 = arith.extui %206 : vector<4x1xi1> to vector<4x1xi32>
    %277 = arith.sitofp %276 : vector<4x1xi32> to vector<4x1xf32>
    %278 = vector.broadcast %277 : vector<4x1xf32> to vector<4x32xf32>
    %279 = arith.mulf %275, %278 : vector<4x32xf32>
    %280 = vector.broadcast %277 : vector<4x1xf32> to vector<4x16xf32>
    %281 = arith.mulf %236, %280 : vector<4x16xf32>
    %282 = vector.shape_cast %206 : vector<4x1xi1> to vector<4x1xi1>
    %283 = vector.broadcast %282 : vector<4x1xi1> to vector<4x32xi1>
    %284 = arith.select %283, %270, %199 : vector<4x32xi1>, vector<4x32xf32>
    %285 = vector.shape_cast %206 : vector<4x1xi1> to vector<4x1xi1>
    %286 = vector.broadcast %285 : vector<4x1xi1> to vector<4x32xi1>
    %287 = arith.select %286, %268, %202 : vector<4x32xi1>, vector<4x32xf32>
    %288 = vector.extract_strided_slice %2 {offsets = [3, 0, 0], sizes = [1, 4, 32], strides = [1, 1, 1]} : vector<8x4x32xf32> to vector<1x4x32xf32>
    %289 = vector.shape_cast %288 : vector<1x4x32xf32> to vector<4x32xf32>
    %c3_i32 = arith.constant 3 : i32
    %290 = vector.broadcast %c3_i32 : i32 to vector<4x1xi32>
    %291 = arith.cmpi sgt, %1, %290 : vector<4x1xi32>
    %cst_73 = arith.constant dense<0.000000e+00> : vector<4x64xf32>
    %292 = tpu.matmul %284, %6, %cst_73 {dimension_numbers = #tpu.dot_dimension_numbers<[1], [0], [0], [1], [0, 0, 1, 1], [], []>} : vector<4x32xf32>, vector<32x64xf32>, vector<4x64xf32> -> vector<4x64xf32>
    %293 = vector.broadcast %7 : vector<1x64xf32> to vector<4x64xf32>
    %294 = arith.addf %292, %293 : vector<4x64xf32>
    %295 = vector.extract_strided_slice %294 {offsets = [0, 0], sizes = [4, 32], strides = [1, 1]} : vector<4x64xf32> to vector<4x32xf32>
    %296 = vector.extract_strided_slice %294 {offsets = [0, 32], sizes = [4, 32], strides = [1, 1]} : vector<4x64xf32> to vector<4x32xf32>
    %297 = arith.negf %296 : vector<4x32xf32>
    %298 = math.exp %297 : vector<4x32xf32>
    %cst_74 = arith.constant 1.000000e+00 : f32
    %299 = vector.broadcast %cst_74 : f32 to vector<4x32xf32>
    %300 = arith.addf %299, %298 : vector<4x32xf32>
    %301 = arith.divf %299, %300 : vector<4x32xf32>
    %302 = vector.shape_cast %295 : vector<4x32xf32> to vector<4x1x32xf32>
    %303 = vector.broadcast %302 : vector<4x1x32xf32> to vector<4x16x32xf32>
    %304 = arith.addf %18, %303 : vector<4x16x32xf32>
    %cst_75 = arith.constant 0.000000e+00 : f32
    %305 = vector.broadcast %cst_75 : f32 to vector<4x16x32xf32>
    %306 = arith.maximumf %304, %305 : vector<4x16x32xf32>
    %307 = vector.broadcast %4 : vector<1x1x32xf32> to vector<4x16x32xf32>
    %308 = arith.mulf %306, %307 : vector<4x16x32xf32>
    %cst_76 = arith.constant dense<0.000000e+00> : vector<4x16xf32>
    %309 = vector.multi_reduction <add>, %308, %cst_76 [2] : vector<4x16x32xf32> to vector<4x16xf32>
    %310 = vector.broadcast %5 : vector<1x1xf32> to vector<4x16xf32>
    %311 = arith.addf %309, %310 : vector<4x16xf32>
    %cst_77 = arith.constant dense<0xFF800000> : vector<4xf32>
    %312 = vector.multi_reduction <maximumf>, %311, %cst_77 [1] : vector<4x16xf32> to vector<4xf32>
    %313 = vector.shape_cast %312 : vector<4xf32> to vector<4x1xf32>
    %314 = vector.broadcast %313 : vector<4x1xf32> to vector<4x16xf32>
    %315 = arith.subf %311, %314 : vector<4x16xf32>
    %316 = math.exp %315 : vector<4x16xf32>
    %cst_78 = arith.constant dense<0.000000e+00> : vector<4xf32>
    %317 = vector.multi_reduction <add>, %316, %cst_78 [1] : vector<4x16xf32> to vector<4xf32>
    %318 = vector.shape_cast %317 : vector<4xf32> to vector<4x1xf32>
    %319 = tpu.reciprocal %318 {approx = true} : vector<4x1xf32> -> vector<4x1xf32>
    %320 = vector.broadcast %319 : vector<4x1xf32> to vector<4x16xf32>
    %321 = arith.mulf %316, %320 : vector<4x16xf32>
    %322 = vector.shape_cast %321 : vector<4x16xf32> to vector<4x16x1xf32>
    %323 = vector.broadcast %322 : vector<4x16x1xf32> to vector<4x16x32xf32>
    %324 = arith.mulf %0, %323 : vector<4x16x32xf32>
    %cst_79 = arith.constant dense<0.000000e+00> : vector<4x32xf32>
    %325 = vector.multi_reduction <add>, %324, %cst_79 [1] : vector<4x16x32xf32> to vector<4x32xf32>
    %326 = arith.mulf %301, %325 : vector<4x32xf32>
    %327 = tpu.concatenate %289, %326, %284 in 1 : vector<4x32xf32>, vector<4x32xf32>, vector<4x32xf32> -> vector<4x96xf32>
    %cst_80 = arith.constant dense<0.000000e+00> : vector<4x128xf32>
    %328 = tpu.matmul %327, %8, %cst_80 {dimension_numbers = #tpu.dot_dimension_numbers<[1], [0], [0], [1], [0, 0, 1, 1], [], []>} : vector<4x96xf32>, vector<96x128xf32>, vector<4x128xf32> -> vector<4x128xf32>
    %329 = vector.broadcast %9 : vector<1x128xf32> to vector<4x128xf32>
    %330 = arith.addf %328, %329 : vector<4x128xf32>
    %331 = vector.extract_strided_slice %330 {offsets = [0, 0], sizes = [4, 32], strides = [1, 1]} : vector<4x128xf32> to vector<4x32xf32>
    %332 = arith.negf %331 : vector<4x32xf32>
    %333 = math.exp %332 : vector<4x32xf32>
    %cst_81 = arith.constant 1.000000e+00 : f32
    %334 = vector.broadcast %cst_81 : f32 to vector<4x32xf32>
    %335 = arith.addf %334, %333 : vector<4x32xf32>
    %336 = arith.divf %334, %335 : vector<4x32xf32>
    %337 = vector.extract_strided_slice %330 {offsets = [0, 32], sizes = [4, 32], strides = [1, 1]} : vector<4x128xf32> to vector<4x32xf32>
    %338 = arith.negf %337 : vector<4x32xf32>
    %339 = math.exp %338 : vector<4x32xf32>
    %cst_82 = arith.constant 1.000000e+00 : f32
    %340 = vector.broadcast %cst_82 : f32 to vector<4x32xf32>
    %341 = arith.addf %340, %339 : vector<4x32xf32>
    %342 = arith.divf %340, %341 : vector<4x32xf32>
    %343 = vector.extract_strided_slice %330 {offsets = [0, 64], sizes = [4, 32], strides = [1, 1]} : vector<4x128xf32> to vector<4x32xf32>
    %344 = math.tanh %343 : vector<4x32xf32>
    %345 = vector.extract_strided_slice %330 {offsets = [0, 96], sizes = [4, 32], strides = [1, 1]} : vector<4x128xf32> to vector<4x32xf32>
    %346 = arith.negf %345 : vector<4x32xf32>
    %347 = math.exp %346 : vector<4x32xf32>
    %cst_83 = arith.constant 1.000000e+00 : f32
    %348 = vector.broadcast %cst_83 : f32 to vector<4x32xf32>
    %349 = arith.addf %348, %347 : vector<4x32xf32>
    %350 = arith.divf %348, %349 : vector<4x32xf32>
    %351 = arith.mulf %342, %287 : vector<4x32xf32>
    %352 = arith.mulf %336, %344 : vector<4x32xf32>
    %353 = arith.addf %351, %352 : vector<4x32xf32>
    %354 = math.tanh %353 : vector<4x32xf32>
    %355 = arith.mulf %350, %354 : vector<4x32xf32>
    %356 = tpu.concatenate %355, %326 in 1 : vector<4x32xf32>, vector<4x32xf32> -> vector<4x64xf32>
    %357 = vector.extract_strided_slice %22 {offsets = [3, 0, 0], sizes = [1, 4, 32], strides = [1, 1, 1]} : vector<8x4x32xf32> to vector<1x4x32xf32>
    %358 = vector.shape_cast %357 : vector<1x4x32xf32> to vector<4x32xf32>
    %cst_84 = arith.constant dense<0.000000e+00> : vector<4x32xf32>
    %359 = tpu.matmul %356, %10, %cst_84 {dimension_numbers = #tpu.dot_dimension_numbers<[1], [0], [0], [1], [0, 0, 1, 1], [], []>} : vector<4x64xf32>, vector<64x32xf32>, vector<4x32xf32> -> vector<4x32xf32>
    %360 = arith.addf %358, %359 : vector<4x32xf32>
    %361 = arith.extui %291 : vector<4x1xi1> to vector<4x1xi32>
    %362 = arith.sitofp %361 : vector<4x1xi32> to vector<4x1xf32>
    %363 = vector.broadcast %362 : vector<4x1xf32> to vector<4x32xf32>
    %364 = arith.mulf %360, %363 : vector<4x32xf32>
    %365 = vector.broadcast %362 : vector<4x1xf32> to vector<4x16xf32>
    %366 = arith.mulf %321, %365 : vector<4x16xf32>
    %367 = vector.shape_cast %291 : vector<4x1xi1> to vector<4x1xi1>
    %368 = vector.broadcast %367 : vector<4x1xi1> to vector<4x32xi1>
    %369 = arith.select %368, %355, %284 : vector<4x32xi1>, vector<4x32xf32>
    %370 = vector.shape_cast %291 : vector<4x1xi1> to vector<4x1xi1>
    %371 = vector.broadcast %370 : vector<4x1xi1> to vector<4x32xi1>
    %372 = arith.select %371, %353, %287 : vector<4x32xi1>, vector<4x32xf32>
    %373 = vector.extract_strided_slice %2 {offsets = [4, 0, 0], sizes = [1, 4, 32], strides = [1, 1, 1]} : vector<8x4x32xf32> to vector<1x4x32xf32>
    %374 = vector.shape_cast %373 : vector<1x4x32xf32> to vector<4x32xf32>
    %c4_i32 = arith.constant 4 : i32
    %375 = vector.broadcast %c4_i32 : i32 to vector<4x1xi32>
    %376 = arith.cmpi sgt, %1, %375 : vector<4x1xi32>
    %cst_85 = arith.constant dense<0.000000e+00> : vector<4x64xf32>
    %377 = tpu.matmul %369, %6, %cst_85 {dimension_numbers = #tpu.dot_dimension_numbers<[1], [0], [0], [1], [0, 0, 1, 1], [], []>} : vector<4x32xf32>, vector<32x64xf32>, vector<4x64xf32> -> vector<4x64xf32>
    %378 = vector.broadcast %7 : vector<1x64xf32> to vector<4x64xf32>
    %379 = arith.addf %377, %378 : vector<4x64xf32>
    %380 = vector.extract_strided_slice %379 {offsets = [0, 0], sizes = [4, 32], strides = [1, 1]} : vector<4x64xf32> to vector<4x32xf32>
    %381 = vector.extract_strided_slice %379 {offsets = [0, 32], sizes = [4, 32], strides = [1, 1]} : vector<4x64xf32> to vector<4x32xf32>
    %382 = arith.negf %381 : vector<4x32xf32>
    %383 = math.exp %382 : vector<4x32xf32>
    %cst_86 = arith.constant 1.000000e+00 : f32
    %384 = vector.broadcast %cst_86 : f32 to vector<4x32xf32>
    %385 = arith.addf %384, %383 : vector<4x32xf32>
    %386 = arith.divf %384, %385 : vector<4x32xf32>
    %387 = vector.shape_cast %380 : vector<4x32xf32> to vector<4x1x32xf32>
    %388 = vector.broadcast %387 : vector<4x1x32xf32> to vector<4x16x32xf32>
    %389 = arith.addf %18, %388 : vector<4x16x32xf32>
    %cst_87 = arith.constant 0.000000e+00 : f32
    %390 = vector.broadcast %cst_87 : f32 to vector<4x16x32xf32>
    %391 = arith.maximumf %389, %390 : vector<4x16x32xf32>
    %392 = vector.broadcast %4 : vector<1x1x32xf32> to vector<4x16x32xf32>
    %393 = arith.mulf %391, %392 : vector<4x16x32xf32>
    %cst_88 = arith.constant dense<0.000000e+00> : vector<4x16xf32>
    %394 = vector.multi_reduction <add>, %393, %cst_88 [2] : vector<4x16x32xf32> to vector<4x16xf32>
    %395 = vector.broadcast %5 : vector<1x1xf32> to vector<4x16xf32>
    %396 = arith.addf %394, %395 : vector<4x16xf32>
    %cst_89 = arith.constant dense<0xFF800000> : vector<4xf32>
    %397 = vector.multi_reduction <maximumf>, %396, %cst_89 [1] : vector<4x16xf32> to vector<4xf32>
    %398 = vector.shape_cast %397 : vector<4xf32> to vector<4x1xf32>
    %399 = vector.broadcast %398 : vector<4x1xf32> to vector<4x16xf32>
    %400 = arith.subf %396, %399 : vector<4x16xf32>
    %401 = math.exp %400 : vector<4x16xf32>
    %cst_90 = arith.constant dense<0.000000e+00> : vector<4xf32>
    %402 = vector.multi_reduction <add>, %401, %cst_90 [1] : vector<4x16xf32> to vector<4xf32>
    %403 = vector.shape_cast %402 : vector<4xf32> to vector<4x1xf32>
    %404 = tpu.reciprocal %403 {approx = true} : vector<4x1xf32> -> vector<4x1xf32>
    %405 = vector.broadcast %404 : vector<4x1xf32> to vector<4x16xf32>
    %406 = arith.mulf %401, %405 : vector<4x16xf32>
    %407 = vector.shape_cast %406 : vector<4x16xf32> to vector<4x16x1xf32>
    %408 = vector.broadcast %407 : vector<4x16x1xf32> to vector<4x16x32xf32>
    %409 = arith.mulf %0, %408 : vector<4x16x32xf32>
    %cst_91 = arith.constant dense<0.000000e+00> : vector<4x32xf32>
    %410 = vector.multi_reduction <add>, %409, %cst_91 [1] : vector<4x16x32xf32> to vector<4x32xf32>
    %411 = arith.mulf %386, %410 : vector<4x32xf32>
    %412 = tpu.concatenate %374, %411, %369 in 1 : vector<4x32xf32>, vector<4x32xf32>, vector<4x32xf32> -> vector<4x96xf32>
    %cst_92 = arith.constant dense<0.000000e+00> : vector<4x128xf32>
    %413 = tpu.matmul %412, %8, %cst_92 {dimension_numbers = #tpu.dot_dimension_numbers<[1], [0], [0], [1], [0, 0, 1, 1], [], []>} : vector<4x96xf32>, vector<96x128xf32>, vector<4x128xf32> -> vector<4x128xf32>
    %414 = vector.broadcast %9 : vector<1x128xf32> to vector<4x128xf32>
    %415 = arith.addf %413, %414 : vector<4x128xf32>
    %416 = vector.extract_strided_slice %415 {offsets = [0, 0], sizes = [4, 32], strides = [1, 1]} : vector<4x128xf32> to vector<4x32xf32>
    %417 = arith.negf %416 : vector<4x32xf32>
    %418 = math.exp %417 : vector<4x32xf32>
    %cst_93 = arith.constant 1.000000e+00 : f32
    %419 = vector.broadcast %cst_93 : f32 to vector<4x32xf32>
    %420 = arith.addf %419, %418 : vector<4x32xf32>
    %421 = arith.divf %419, %420 : vector<4x32xf32>
    %422 = vector.extract_strided_slice %415 {offsets = [0, 32], sizes = [4, 32], strides = [1, 1]} : vector<4x128xf32> to vector<4x32xf32>
    %423 = arith.negf %422 : vector<4x32xf32>
    %424 = math.exp %423 : vector<4x32xf32>
    %cst_94 = arith.constant 1.000000e+00 : f32
    %425 = vector.broadcast %cst_94 : f32 to vector<4x32xf32>
    %426 = arith.addf %425, %424 : vector<4x32xf32>
    %427 = arith.divf %425, %426 : vector<4x32xf32>
    %428 = vector.extract_strided_slice %415 {offsets = [0, 64], sizes = [4, 32], strides = [1, 1]} : vector<4x128xf32> to vector<4x32xf32>
    %429 = math.tanh %428 : vector<4x32xf32>
    %430 = vector.extract_strided_slice %415 {offsets = [0, 96], sizes = [4, 32], strides = [1, 1]} : vector<4x128xf32> to vector<4x32xf32>
    %431 = arith.negf %430 : vector<4x32xf32>
    %432 = math.exp %431 : vector<4x32xf32>
    %cst_95 = arith.constant 1.000000e+00 : f32
    %433 = vector.broadcast %cst_95 : f32 to vector<4x32xf32>
    %434 = arith.addf %433, %432 : vector<4x32xf32>
    %435 = arith.divf %433, %434 : vector<4x32xf32>
    %436 = arith.mulf %427, %372 : vector<4x32xf32>
    %437 = arith.mulf %421, %429 : vector<4x32xf32>
    %438 = arith.addf %436, %437 : vector<4x32xf32>
    %439 = math.tanh %438 : vector<4x32xf32>
    %440 = arith.mulf %435, %439 : vector<4x32xf32>
    %441 = tpu.concatenate %440, %411 in 1 : vector<4x32xf32>, vector<4x32xf32> -> vector<4x64xf32>
    %442 = vector.extract_strided_slice %22 {offsets = [4, 0, 0], sizes = [1, 4, 32], strides = [1, 1, 1]} : vector<8x4x32xf32> to vector<1x4x32xf32>
    %443 = vector.shape_cast %442 : vector<1x4x32xf32> to vector<4x32xf32>
    %cst_96 = arith.constant dense<0.000000e+00> : vector<4x32xf32>
    %444 = tpu.matmul %441, %10, %cst_96 {dimension_numbers = #tpu.dot_dimension_numbers<[1], [0], [0], [1], [0, 0, 1, 1], [], []>} : vector<4x64xf32>, vector<64x32xf32>, vector<4x32xf32> -> vector<4x32xf32>
    %445 = arith.addf %443, %444 : vector<4x32xf32>
    %446 = arith.extui %376 : vector<4x1xi1> to vector<4x1xi32>
    %447 = arith.sitofp %446 : vector<4x1xi32> to vector<4x1xf32>
    %448 = vector.broadcast %447 : vector<4x1xf32> to vector<4x32xf32>
    %449 = arith.mulf %445, %448 : vector<4x32xf32>
    %450 = vector.broadcast %447 : vector<4x1xf32> to vector<4x16xf32>
    %451 = arith.mulf %406, %450 : vector<4x16xf32>
    %452 = vector.shape_cast %376 : vector<4x1xi1> to vector<4x1xi1>
    %453 = vector.broadcast %452 : vector<4x1xi1> to vector<4x32xi1>
    %454 = arith.select %453, %440, %369 : vector<4x32xi1>, vector<4x32xf32>
    %455 = vector.shape_cast %376 : vector<4x1xi1> to vector<4x1xi1>
    %456 = vector.broadcast %455 : vector<4x1xi1> to vector<4x32xi1>
    %457 = arith.select %456, %438, %372 : vector<4x32xi1>, vector<4x32xf32>
    %458 = vector.extract_strided_slice %2 {offsets = [5, 0, 0], sizes = [1, 4, 32], strides = [1, 1, 1]} : vector<8x4x32xf32> to vector<1x4x32xf32>
    %459 = vector.shape_cast %458 : vector<1x4x32xf32> to vector<4x32xf32>
    %c5_i32 = arith.constant 5 : i32
    %460 = vector.broadcast %c5_i32 : i32 to vector<4x1xi32>
    %461 = arith.cmpi sgt, %1, %460 : vector<4x1xi32>
    %cst_97 = arith.constant dense<0.000000e+00> : vector<4x64xf32>
    %462 = tpu.matmul %454, %6, %cst_97 {dimension_numbers = #tpu.dot_dimension_numbers<[1], [0], [0], [1], [0, 0, 1, 1], [], []>} : vector<4x32xf32>, vector<32x64xf32>, vector<4x64xf32> -> vector<4x64xf32>
    %463 = vector.broadcast %7 : vector<1x64xf32> to vector<4x64xf32>
    %464 = arith.addf %462, %463 : vector<4x64xf32>
    %465 = vector.extract_strided_slice %464 {offsets = [0, 0], sizes = [4, 32], strides = [1, 1]} : vector<4x64xf32> to vector<4x32xf32>
    %466 = vector.extract_strided_slice %464 {offsets = [0, 32], sizes = [4, 32], strides = [1, 1]} : vector<4x64xf32> to vector<4x32xf32>
    %467 = arith.negf %466 : vector<4x32xf32>
    %468 = math.exp %467 : vector<4x32xf32>
    %cst_98 = arith.constant 1.000000e+00 : f32
    %469 = vector.broadcast %cst_98 : f32 to vector<4x32xf32>
    %470 = arith.addf %469, %468 : vector<4x32xf32>
    %471 = arith.divf %469, %470 : vector<4x32xf32>
    %472 = vector.shape_cast %465 : vector<4x32xf32> to vector<4x1x32xf32>
    %473 = vector.broadcast %472 : vector<4x1x32xf32> to vector<4x16x32xf32>
    %474 = arith.addf %18, %473 : vector<4x16x32xf32>
    %cst_99 = arith.constant 0.000000e+00 : f32
    %475 = vector.broadcast %cst_99 : f32 to vector<4x16x32xf32>
    %476 = arith.maximumf %474, %475 : vector<4x16x32xf32>
    %477 = vector.broadcast %4 : vector<1x1x32xf32> to vector<4x16x32xf32>
    %478 = arith.mulf %476, %477 : vector<4x16x32xf32>
    %cst_100 = arith.constant dense<0.000000e+00> : vector<4x16xf32>
    %479 = vector.multi_reduction <add>, %478, %cst_100 [2] : vector<4x16x32xf32> to vector<4x16xf32>
    %480 = vector.broadcast %5 : vector<1x1xf32> to vector<4x16xf32>
    %481 = arith.addf %479, %480 : vector<4x16xf32>
    %cst_101 = arith.constant dense<0xFF800000> : vector<4xf32>
    %482 = vector.multi_reduction <maximumf>, %481, %cst_101 [1] : vector<4x16xf32> to vector<4xf32>
    %483 = vector.shape_cast %482 : vector<4xf32> to vector<4x1xf32>
    %484 = vector.broadcast %483 : vector<4x1xf32> to vector<4x16xf32>
    %485 = arith.subf %481, %484 : vector<4x16xf32>
    %486 = math.exp %485 : vector<4x16xf32>
    %cst_102 = arith.constant dense<0.000000e+00> : vector<4xf32>
    %487 = vector.multi_reduction <add>, %486, %cst_102 [1] : vector<4x16xf32> to vector<4xf32>
    %488 = vector.shape_cast %487 : vector<4xf32> to vector<4x1xf32>
    %489 = tpu.reciprocal %488 {approx = true} : vector<4x1xf32> -> vector<4x1xf32>
    %490 = vector.broadcast %489 : vector<4x1xf32> to vector<4x16xf32>
    %491 = arith.mulf %486, %490 : vector<4x16xf32>
    %492 = vector.shape_cast %491 : vector<4x16xf32> to vector<4x16x1xf32>
    %493 = vector.broadcast %492 : vector<4x16x1xf32> to vector<4x16x32xf32>
    %494 = arith.mulf %0, %493 : vector<4x16x32xf32>
    %cst_103 = arith.constant dense<0.000000e+00> : vector<4x32xf32>
    %495 = vector.multi_reduction <add>, %494, %cst_103 [1] : vector<4x16x32xf32> to vector<4x32xf32>
    %496 = arith.mulf %471, %495 : vector<4x32xf32>
    %497 = tpu.concatenate %459, %496, %454 in 1 : vector<4x32xf32>, vector<4x32xf32>, vector<4x32xf32> -> vector<4x96xf32>
    %cst_104 = arith.constant dense<0.000000e+00> : vector<4x128xf32>
    %498 = tpu.matmul %497, %8, %cst_104 {dimension_numbers = #tpu.dot_dimension_numbers<[1], [0], [0], [1], [0, 0, 1, 1], [], []>} : vector<4x96xf32>, vector<96x128xf32>, vector<4x128xf32> -> vector<4x128xf32>
    %499 = vector.broadcast %9 : vector<1x128xf32> to vector<4x128xf32>
    %500 = arith.addf %498, %499 : vector<4x128xf32>
    %501 = vector.extract_strided_slice %500 {offsets = [0, 0], sizes = [4, 32], strides = [1, 1]} : vector<4x128xf32> to vector<4x32xf32>
    %502 = arith.negf %501 : vector<4x32xf32>
    %503 = math.exp %502 : vector<4x32xf32>
    %cst_105 = arith.constant 1.000000e+00 : f32
    %504 = vector.broadcast %cst_105 : f32 to vector<4x32xf32>
    %505 = arith.addf %504, %503 : vector<4x32xf32>
    %506 = arith.divf %504, %505 : vector<4x32xf32>
    %507 = vector.extract_strided_slice %500 {offsets = [0, 32], sizes = [4, 32], strides = [1, 1]} : vector<4x128xf32> to vector<4x32xf32>
    %508 = arith.negf %507 : vector<4x32xf32>
    %509 = math.exp %508 : vector<4x32xf32>
    %cst_106 = arith.constant 1.000000e+00 : f32
    %510 = vector.broadcast %cst_106 : f32 to vector<4x32xf32>
    %511 = arith.addf %510, %509 : vector<4x32xf32>
    %512 = arith.divf %510, %511 : vector<4x32xf32>
    %513 = vector.extract_strided_slice %500 {offsets = [0, 64], sizes = [4, 32], strides = [1, 1]} : vector<4x128xf32> to vector<4x32xf32>
    %514 = math.tanh %513 : vector<4x32xf32>
    %515 = vector.extract_strided_slice %500 {offsets = [0, 96], sizes = [4, 32], strides = [1, 1]} : vector<4x128xf32> to vector<4x32xf32>
    %516 = arith.negf %515 : vector<4x32xf32>
    %517 = math.exp %516 : vector<4x32xf32>
    %cst_107 = arith.constant 1.000000e+00 : f32
    %518 = vector.broadcast %cst_107 : f32 to vector<4x32xf32>
    %519 = arith.addf %518, %517 : vector<4x32xf32>
    %520 = arith.divf %518, %519 : vector<4x32xf32>
    %521 = arith.mulf %512, %457 : vector<4x32xf32>
    %522 = arith.mulf %506, %514 : vector<4x32xf32>
    %523 = arith.addf %521, %522 : vector<4x32xf32>
    %524 = math.tanh %523 : vector<4x32xf32>
    %525 = arith.mulf %520, %524 : vector<4x32xf32>
    %526 = tpu.concatenate %525, %496 in 1 : vector<4x32xf32>, vector<4x32xf32> -> vector<4x64xf32>
    %527 = vector.extract_strided_slice %22 {offsets = [5, 0, 0], sizes = [1, 4, 32], strides = [1, 1, 1]} : vector<8x4x32xf32> to vector<1x4x32xf32>
    %528 = vector.shape_cast %527 : vector<1x4x32xf32> to vector<4x32xf32>
    %cst_108 = arith.constant dense<0.000000e+00> : vector<4x32xf32>
    %529 = tpu.matmul %526, %10, %cst_108 {dimension_numbers = #tpu.dot_dimension_numbers<[1], [0], [0], [1], [0, 0, 1, 1], [], []>} : vector<4x64xf32>, vector<64x32xf32>, vector<4x32xf32> -> vector<4x32xf32>
    %530 = arith.addf %528, %529 : vector<4x32xf32>
    %531 = arith.extui %461 : vector<4x1xi1> to vector<4x1xi32>
    %532 = arith.sitofp %531 : vector<4x1xi32> to vector<4x1xf32>
    %533 = vector.broadcast %532 : vector<4x1xf32> to vector<4x32xf32>
    %534 = arith.mulf %530, %533 : vector<4x32xf32>
    %535 = vector.broadcast %532 : vector<4x1xf32> to vector<4x16xf32>
    %536 = arith.mulf %491, %535 : vector<4x16xf32>
    %537 = vector.shape_cast %461 : vector<4x1xi1> to vector<4x1xi1>
    %538 = vector.broadcast %537 : vector<4x1xi1> to vector<4x32xi1>
    %539 = arith.select %538, %525, %454 : vector<4x32xi1>, vector<4x32xf32>
    %540 = vector.shape_cast %461 : vector<4x1xi1> to vector<4x1xi1>
    %541 = vector.broadcast %540 : vector<4x1xi1> to vector<4x32xi1>
    %542 = arith.select %541, %523, %457 : vector<4x32xi1>, vector<4x32xf32>
    %543 = vector.extract_strided_slice %2 {offsets = [6, 0, 0], sizes = [1, 4, 32], strides = [1, 1, 1]} : vector<8x4x32xf32> to vector<1x4x32xf32>
    %544 = vector.shape_cast %543 : vector<1x4x32xf32> to vector<4x32xf32>
    %c6_i32 = arith.constant 6 : i32
    %545 = vector.broadcast %c6_i32 : i32 to vector<4x1xi32>
    %546 = arith.cmpi sgt, %1, %545 : vector<4x1xi32>
    %cst_109 = arith.constant dense<0.000000e+00> : vector<4x64xf32>
    %547 = tpu.matmul %539, %6, %cst_109 {dimension_numbers = #tpu.dot_dimension_numbers<[1], [0], [0], [1], [0, 0, 1, 1], [], []>} : vector<4x32xf32>, vector<32x64xf32>, vector<4x64xf32> -> vector<4x64xf32>
    %548 = vector.broadcast %7 : vector<1x64xf32> to vector<4x64xf32>
    %549 = arith.addf %547, %548 : vector<4x64xf32>
    %550 = vector.extract_strided_slice %549 {offsets = [0, 0], sizes = [4, 32], strides = [1, 1]} : vector<4x64xf32> to vector<4x32xf32>
    %551 = vector.extract_strided_slice %549 {offsets = [0, 32], sizes = [4, 32], strides = [1, 1]} : vector<4x64xf32> to vector<4x32xf32>
    %552 = arith.negf %551 : vector<4x32xf32>
    %553 = math.exp %552 : vector<4x32xf32>
    %cst_110 = arith.constant 1.000000e+00 : f32
    %554 = vector.broadcast %cst_110 : f32 to vector<4x32xf32>
    %555 = arith.addf %554, %553 : vector<4x32xf32>
    %556 = arith.divf %554, %555 : vector<4x32xf32>
    %557 = vector.shape_cast %550 : vector<4x32xf32> to vector<4x1x32xf32>
    %558 = vector.broadcast %557 : vector<4x1x32xf32> to vector<4x16x32xf32>
    %559 = arith.addf %18, %558 : vector<4x16x32xf32>
    %cst_111 = arith.constant 0.000000e+00 : f32
    %560 = vector.broadcast %cst_111 : f32 to vector<4x16x32xf32>
    %561 = arith.maximumf %559, %560 : vector<4x16x32xf32>
    %562 = vector.broadcast %4 : vector<1x1x32xf32> to vector<4x16x32xf32>
    %563 = arith.mulf %561, %562 : vector<4x16x32xf32>
    %cst_112 = arith.constant dense<0.000000e+00> : vector<4x16xf32>
    %564 = vector.multi_reduction <add>, %563, %cst_112 [2] : vector<4x16x32xf32> to vector<4x16xf32>
    %565 = vector.broadcast %5 : vector<1x1xf32> to vector<4x16xf32>
    %566 = arith.addf %564, %565 : vector<4x16xf32>
    %cst_113 = arith.constant dense<0xFF800000> : vector<4xf32>
    %567 = vector.multi_reduction <maximumf>, %566, %cst_113 [1] : vector<4x16xf32> to vector<4xf32>
    %568 = vector.shape_cast %567 : vector<4xf32> to vector<4x1xf32>
    %569 = vector.broadcast %568 : vector<4x1xf32> to vector<4x16xf32>
    %570 = arith.subf %566, %569 : vector<4x16xf32>
    %571 = math.exp %570 : vector<4x16xf32>
    %cst_114 = arith.constant dense<0.000000e+00> : vector<4xf32>
    %572 = vector.multi_reduction <add>, %571, %cst_114 [1] : vector<4x16xf32> to vector<4xf32>
    %573 = vector.shape_cast %572 : vector<4xf32> to vector<4x1xf32>
    %574 = tpu.reciprocal %573 {approx = true} : vector<4x1xf32> -> vector<4x1xf32>
    %575 = vector.broadcast %574 : vector<4x1xf32> to vector<4x16xf32>
    %576 = arith.mulf %571, %575 : vector<4x16xf32>
    %577 = vector.shape_cast %576 : vector<4x16xf32> to vector<4x16x1xf32>
    %578 = vector.broadcast %577 : vector<4x16x1xf32> to vector<4x16x32xf32>
    %579 = arith.mulf %0, %578 : vector<4x16x32xf32>
    %cst_115 = arith.constant dense<0.000000e+00> : vector<4x32xf32>
    %580 = vector.multi_reduction <add>, %579, %cst_115 [1] : vector<4x16x32xf32> to vector<4x32xf32>
    %581 = arith.mulf %556, %580 : vector<4x32xf32>
    %582 = tpu.concatenate %544, %581, %539 in 1 : vector<4x32xf32>, vector<4x32xf32>, vector<4x32xf32> -> vector<4x96xf32>
    %cst_116 = arith.constant dense<0.000000e+00> : vector<4x128xf32>
    %583 = tpu.matmul %582, %8, %cst_116 {dimension_numbers = #tpu.dot_dimension_numbers<[1], [0], [0], [1], [0, 0, 1, 1], [], []>} : vector<4x96xf32>, vector<96x128xf32>, vector<4x128xf32> -> vector<4x128xf32>
    %584 = vector.broadcast %9 : vector<1x128xf32> to vector<4x128xf32>
    %585 = arith.addf %583, %584 : vector<4x128xf32>
    %586 = vector.extract_strided_slice %585 {offsets = [0, 0], sizes = [4, 32], strides = [1, 1]} : vector<4x128xf32> to vector<4x32xf32>
    %587 = arith.negf %586 : vector<4x32xf32>
    %588 = math.exp %587 : vector<4x32xf32>
    %cst_117 = arith.constant 1.000000e+00 : f32
    %589 = vector.broadcast %cst_117 : f32 to vector<4x32xf32>
    %590 = arith.addf %589, %588 : vector<4x32xf32>
    %591 = arith.divf %589, %590 : vector<4x32xf32>
    %592 = vector.extract_strided_slice %585 {offsets = [0, 32], sizes = [4, 32], strides = [1, 1]} : vector<4x128xf32> to vector<4x32xf32>
    %593 = arith.negf %592 : vector<4x32xf32>
    %594 = math.exp %593 : vector<4x32xf32>
    %cst_118 = arith.constant 1.000000e+00 : f32
    %595 = vector.broadcast %cst_118 : f32 to vector<4x32xf32>
    %596 = arith.addf %595, %594 : vector<4x32xf32>
    %597 = arith.divf %595, %596 : vector<4x32xf32>
    %598 = vector.extract_strided_slice %585 {offsets = [0, 64], sizes = [4, 32], strides = [1, 1]} : vector<4x128xf32> to vector<4x32xf32>
    %599 = math.tanh %598 : vector<4x32xf32>
    %600 = vector.extract_strided_slice %585 {offsets = [0, 96], sizes = [4, 32], strides = [1, 1]} : vector<4x128xf32> to vector<4x32xf32>
    %601 = arith.negf %600 : vector<4x32xf32>
    %602 = math.exp %601 : vector<4x32xf32>
    %cst_119 = arith.constant 1.000000e+00 : f32
    %603 = vector.broadcast %cst_119 : f32 to vector<4x32xf32>
    %604 = arith.addf %603, %602 : vector<4x32xf32>
    %605 = arith.divf %603, %604 : vector<4x32xf32>
    %606 = arith.mulf %597, %542 : vector<4x32xf32>
    %607 = arith.mulf %591, %599 : vector<4x32xf32>
    %608 = arith.addf %606, %607 : vector<4x32xf32>
    %609 = math.tanh %608 : vector<4x32xf32>
    %610 = arith.mulf %605, %609 : vector<4x32xf32>
    %611 = tpu.concatenate %610, %581 in 1 : vector<4x32xf32>, vector<4x32xf32> -> vector<4x64xf32>
    %612 = vector.extract_strided_slice %22 {offsets = [6, 0, 0], sizes = [1, 4, 32], strides = [1, 1, 1]} : vector<8x4x32xf32> to vector<1x4x32xf32>
    %613 = vector.shape_cast %612 : vector<1x4x32xf32> to vector<4x32xf32>
    %cst_120 = arith.constant dense<0.000000e+00> : vector<4x32xf32>
    %614 = tpu.matmul %611, %10, %cst_120 {dimension_numbers = #tpu.dot_dimension_numbers<[1], [0], [0], [1], [0, 0, 1, 1], [], []>} : vector<4x64xf32>, vector<64x32xf32>, vector<4x32xf32> -> vector<4x32xf32>
    %615 = arith.addf %613, %614 : vector<4x32xf32>
    %616 = arith.extui %546 : vector<4x1xi1> to vector<4x1xi32>
    %617 = arith.sitofp %616 : vector<4x1xi32> to vector<4x1xf32>
    %618 = vector.broadcast %617 : vector<4x1xf32> to vector<4x32xf32>
    %619 = arith.mulf %615, %618 : vector<4x32xf32>
    %620 = vector.broadcast %617 : vector<4x1xf32> to vector<4x16xf32>
    %621 = arith.mulf %576, %620 : vector<4x16xf32>
    %622 = vector.shape_cast %546 : vector<4x1xi1> to vector<4x1xi1>
    %623 = vector.broadcast %622 : vector<4x1xi1> to vector<4x32xi1>
    %624 = arith.select %623, %610, %539 : vector<4x32xi1>, vector<4x32xf32>
    %625 = vector.shape_cast %546 : vector<4x1xi1> to vector<4x1xi1>
    %626 = vector.broadcast %625 : vector<4x1xi1> to vector<4x32xi1>
    %627 = arith.select %626, %608, %542 : vector<4x32xi1>, vector<4x32xf32>
    %628 = vector.extract_strided_slice %2 {offsets = [7, 0, 0], sizes = [1, 4, 32], strides = [1, 1, 1]} : vector<8x4x32xf32> to vector<1x4x32xf32>
    %629 = vector.shape_cast %628 : vector<1x4x32xf32> to vector<4x32xf32>
    %c7_i32 = arith.constant 7 : i32
    %630 = vector.broadcast %c7_i32 : i32 to vector<4x1xi32>
    %631 = arith.cmpi sgt, %1, %630 : vector<4x1xi32>
    %cst_121 = arith.constant dense<0.000000e+00> : vector<4x64xf32>
    %632 = tpu.matmul %624, %6, %cst_121 {dimension_numbers = #tpu.dot_dimension_numbers<[1], [0], [0], [1], [0, 0, 1, 1], [], []>} : vector<4x32xf32>, vector<32x64xf32>, vector<4x64xf32> -> vector<4x64xf32>
    %633 = vector.broadcast %7 : vector<1x64xf32> to vector<4x64xf32>
    %634 = arith.addf %632, %633 : vector<4x64xf32>
    %635 = vector.extract_strided_slice %634 {offsets = [0, 0], sizes = [4, 32], strides = [1, 1]} : vector<4x64xf32> to vector<4x32xf32>
    %636 = vector.extract_strided_slice %634 {offsets = [0, 32], sizes = [4, 32], strides = [1, 1]} : vector<4x64xf32> to vector<4x32xf32>
    %637 = arith.negf %636 : vector<4x32xf32>
    %638 = math.exp %637 : vector<4x32xf32>
    %cst_122 = arith.constant 1.000000e+00 : f32
    %639 = vector.broadcast %cst_122 : f32 to vector<4x32xf32>
    %640 = arith.addf %639, %638 : vector<4x32xf32>
    %641 = arith.divf %639, %640 : vector<4x32xf32>
    %642 = vector.shape_cast %635 : vector<4x32xf32> to vector<4x1x32xf32>
    %643 = vector.broadcast %642 : vector<4x1x32xf32> to vector<4x16x32xf32>
    %644 = arith.addf %18, %643 : vector<4x16x32xf32>
    %cst_123 = arith.constant 0.000000e+00 : f32
    %645 = vector.broadcast %cst_123 : f32 to vector<4x16x32xf32>
    %646 = arith.maximumf %644, %645 : vector<4x16x32xf32>
    %647 = vector.broadcast %4 : vector<1x1x32xf32> to vector<4x16x32xf32>
    %648 = arith.mulf %646, %647 : vector<4x16x32xf32>
    %cst_124 = arith.constant dense<0.000000e+00> : vector<4x16xf32>
    %649 = vector.multi_reduction <add>, %648, %cst_124 [2] : vector<4x16x32xf32> to vector<4x16xf32>
    %650 = vector.broadcast %5 : vector<1x1xf32> to vector<4x16xf32>
    %651 = arith.addf %649, %650 : vector<4x16xf32>
    %cst_125 = arith.constant dense<0xFF800000> : vector<4xf32>
    %652 = vector.multi_reduction <maximumf>, %651, %cst_125 [1] : vector<4x16xf32> to vector<4xf32>
    %653 = vector.shape_cast %652 : vector<4xf32> to vector<4x1xf32>
    %654 = vector.broadcast %653 : vector<4x1xf32> to vector<4x16xf32>
    %655 = arith.subf %651, %654 : vector<4x16xf32>
    %656 = math.exp %655 : vector<4x16xf32>
    %cst_126 = arith.constant dense<0.000000e+00> : vector<4xf32>
    %657 = vector.multi_reduction <add>, %656, %cst_126 [1] : vector<4x16xf32> to vector<4xf32>
    %658 = vector.shape_cast %657 : vector<4xf32> to vector<4x1xf32>
    %659 = tpu.reciprocal %658 {approx = true} : vector<4x1xf32> -> vector<4x1xf32>
    %660 = vector.broadcast %659 : vector<4x1xf32> to vector<4x16xf32>
    %661 = arith.mulf %656, %660 : vector<4x16xf32>
    %662 = vector.shape_cast %661 : vector<4x16xf32> to vector<4x16x1xf32>
    %663 = vector.broadcast %662 : vector<4x16x1xf32> to vector<4x16x32xf32>
    %664 = arith.mulf %0, %663 : vector<4x16x32xf32>
    %cst_127 = arith.constant dense<0.000000e+00> : vector<4x32xf32>
    %665 = vector.multi_reduction <add>, %664, %cst_127 [1] : vector<4x16x32xf32> to vector<4x32xf32>
    %666 = arith.mulf %641, %665 : vector<4x32xf32>
    %667 = tpu.concatenate %629, %666, %624 in 1 : vector<4x32xf32>, vector<4x32xf32>, vector<4x32xf32> -> vector<4x96xf32>
    %cst_128 = arith.constant dense<0.000000e+00> : vector<4x128xf32>
    %668 = tpu.matmul %667, %8, %cst_128 {dimension_numbers = #tpu.dot_dimension_numbers<[1], [0], [0], [1], [0, 0, 1, 1], [], []>} : vector<4x96xf32>, vector<96x128xf32>, vector<4x128xf32> -> vector<4x128xf32>
    %669 = vector.broadcast %9 : vector<1x128xf32> to vector<4x128xf32>
    %670 = arith.addf %668, %669 : vector<4x128xf32>
    %671 = vector.extract_strided_slice %670 {offsets = [0, 0], sizes = [4, 32], strides = [1, 1]} : vector<4x128xf32> to vector<4x32xf32>
    %672 = arith.negf %671 : vector<4x32xf32>
    %673 = math.exp %672 : vector<4x32xf32>
    %cst_129 = arith.constant 1.000000e+00 : f32
    %674 = vector.broadcast %cst_129 : f32 to vector<4x32xf32>
    %675 = arith.addf %674, %673 : vector<4x32xf32>
    %676 = arith.divf %674, %675 : vector<4x32xf32>
    %677 = vector.extract_strided_slice %670 {offsets = [0, 32], sizes = [4, 32], strides = [1, 1]} : vector<4x128xf32> to vector<4x32xf32>
    %678 = arith.negf %677 : vector<4x32xf32>
    %679 = math.exp %678 : vector<4x32xf32>
    %cst_130 = arith.constant 1.000000e+00 : f32
    %680 = vector.broadcast %cst_130 : f32 to vector<4x32xf32>
    %681 = arith.addf %680, %679 : vector<4x32xf32>
    %682 = arith.divf %680, %681 : vector<4x32xf32>
    %683 = vector.extract_strided_slice %670 {offsets = [0, 64], sizes = [4, 32], strides = [1, 1]} : vector<4x128xf32> to vector<4x32xf32>
    %684 = math.tanh %683 : vector<4x32xf32>
    %685 = vector.extract_strided_slice %670 {offsets = [0, 96], sizes = [4, 32], strides = [1, 1]} : vector<4x128xf32> to vector<4x32xf32>
    %686 = arith.negf %685 : vector<4x32xf32>
    %687 = math.exp %686 : vector<4x32xf32>
    %cst_131 = arith.constant 1.000000e+00 : f32
    %688 = vector.broadcast %cst_131 : f32 to vector<4x32xf32>
    %689 = arith.addf %688, %687 : vector<4x32xf32>
    %690 = arith.divf %688, %689 : vector<4x32xf32>
    %691 = arith.mulf %682, %627 : vector<4x32xf32>
    %692 = arith.mulf %676, %684 : vector<4x32xf32>
    %693 = arith.addf %691, %692 : vector<4x32xf32>
    %694 = math.tanh %693 : vector<4x32xf32>
    %695 = arith.mulf %690, %694 : vector<4x32xf32>
    %696 = tpu.concatenate %695, %666 in 1 : vector<4x32xf32>, vector<4x32xf32> -> vector<4x64xf32>
    %697 = vector.extract_strided_slice %22 {offsets = [7, 0, 0], sizes = [1, 4, 32], strides = [1, 1, 1]} : vector<8x4x32xf32> to vector<1x4x32xf32>
    %698 = vector.shape_cast %697 : vector<1x4x32xf32> to vector<4x32xf32>
    %cst_132 = arith.constant dense<0.000000e+00> : vector<4x32xf32>
    %699 = tpu.matmul %696, %10, %cst_132 {dimension_numbers = #tpu.dot_dimension_numbers<[1], [0], [0], [1], [0, 0, 1, 1], [], []>} : vector<4x64xf32>, vector<64x32xf32>, vector<4x32xf32> -> vector<4x32xf32>
    %700 = arith.addf %698, %699 : vector<4x32xf32>
    %701 = arith.extui %631 : vector<4x1xi1> to vector<4x1xi32>
    %702 = arith.sitofp %701 : vector<4x1xi32> to vector<4x1xf32>
    %703 = vector.broadcast %702 : vector<4x1xf32> to vector<4x32xf32>
    %704 = arith.mulf %700, %703 : vector<4x32xf32>
    %705 = vector.broadcast %702 : vector<4x1xf32> to vector<4x16xf32>
    %706 = arith.mulf %661, %705 : vector<4x16xf32>
    %707 = tpu.concatenate %109, %194, %279, %364, %449, %534, %619, %704 in 1 : vector<4x32xf32>, vector<4x32xf32>, vector<4x32xf32>, vector<4x32xf32>, vector<4x32xf32>, vector<4x32xf32>, vector<4x32xf32>, vector<4x32xf32> -> vector<4x256xf32>
    %c0_133 = arith.constant 0 : index
    %c0_134 = arith.constant 0 : index
    %708 = vector.load %arg17[%c0_133, %c0_134] : memref<4x256xf32, #tpu.memory_space<vmem>>, vector<4x256xf32>
    tpu.vector_store %arg17[%c0_133, %c0_134], %707 {strides = array<i32>} : memref<4x256xf32, #tpu.memory_space<vmem>>, vector<4x256xf32>,
    %709 = tpu.concatenate %111, %196, %281, %366, %451, %536, %621, %706 in 1 : vector<4x16xf32>, vector<4x16xf32>, vector<4x16xf32>, vector<4x16xf32>, vector<4x16xf32>, vector<4x16xf32>, vector<4x16xf32>, vector<4x16xf32> -> vector<4x128xf32>
    %c0_135 = arith.constant 0 : index
    %c0_136 = arith.constant 0 : index
    %710 = vector.load %arg18[%c0_135, %c0_136] : memref<4x128xf32, #tpu.memory_space<vmem>>, vector<4x128xf32>
    tpu.vector_store %arg18[%c0_135, %c0_136], %709 {strides = array<i32>} : memref<4x128xf32, #tpu.memory_space<vmem>>, vector<4x128xf32>,
    return
  }
  func.func @transform_0(%arg0: i32) -> (i32, i32) {
    %c0_i32 = arith.constant 0 : i32
    %c0_i32_0 = arith.constant 0 : i32
    %c0_i32_1 = arith.constant 0 : i32
    return %c0_i32, %c0_i32_0 : i32, i32
  }
  func.func @transform_1(%arg0: i32) -> (i32, i32, i32) {
    %c0_i32 = arith.constant 0 : i32
    %c0_i32_0 = arith.constant 0 : i32
    %c0_i32_1 = arith.constant 0 : i32
    %c0_i32_2 = arith.constant 0 : i32
    return %c0_i32, %c0_i32_0, %c0_i32_1 : i32, i32, i32
  }
  func.func @transform_2(%arg0: i32) -> (i32, i32, i32) {
    %c0_i32 = arith.constant 0 : i32
    %c0_i32_0 = arith.constant 0 : i32
    %c0_i32_1 = arith.constant 0 : i32
    %c0_i32_2 = arith.constant 0 : i32
    return %c0_i32, %c0_i32_0, %c0_i32_1 : i32, i32, i32
  }
  func.func @transform_3(%arg0: i32) -> (i32, i32) {
    %c0_i32 = arith.constant 0 : i32
    %c0_i32_0 = arith.constant 0 : i32
    %c0_i32_1 = arith.constant 0 : i32
    return %c0_i32, %c0_i32_0 : i32, i32
  }
  func.func @transform_4(%arg0: i32) -> (i32, i32) {
    %c0_i32 = arith.constant 0 : i32
    %c0_i32_0 = arith.constant 0 : i32
    %c0_i32_1 = arith.constant 0 : i32
    return %c0_i32, %c0_i32_0 : i32, i32
  }
  func.func @transform_5(%arg0: i32) -> (i32, i32) {
    %c0_i32 = arith.constant 0 : i32
    %c0_i32_0 = arith.constant 0 : i32
    %c0_i32_1 = arith.constant 0 : i32
    return %c0_i32, %c0_i32_0 : i32, i32
  }
  func.func @transform_6(%arg0: i32) -> (i32, i32) {
    %c0_i32 = arith.constant 0 : i32
    %c0_i32_0 = arith.constant 0 : i32
    %c0_i32_1 = arith.constant 0 : i32
    return %c0_i32, %c0_i32_0 : i32, i32
  }
  func.func @transform_7(%arg0: i32) -> (i32, i32) {
    %c0_i32 = arith.constant 0 : i32
    %c0_i32_0 = arith.constant 0 : i32
    %c0_i32_1 = arith.constant 0 : i32
    return %c0_i32, %c0_i32_0 : i32, i32
  }
  func.func @transform_8(%arg0: i32) -> (i32, i32) {
    %c0_i32 = arith.constant 0 : i32
    %c0_i32_0 = arith.constant 0 : i32
    %c0_i32_1 = arith.constant 0 : i32
    return %c0_i32, %c0_i32_0 : i32, i32
  }
  func.func @transform_9(%arg0: i32) -> (i32, i32) {
    %c0_i32 = arith.constant 0 : i32
    %c0_i32_0 = arith.constant 0 : i32
    %c0_i32_1 = arith.constant 0 : i32
    return %c0_i32, %c0_i32_0 : i32, i32
  }
  func.func @transform_10(%arg0: i32) -> (i32, i32) {
    %c0_i32 = arith.constant 0 : i32
    %c0_i32_0 = arith.constant 0 : i32
    %c0_i32_1 = arith.constant 0 : i32
    return %c0_i32, %c0_i32_0 : i32, i32
  }
  func.func @transform_11(%arg0: i32) -> (i32, i32) {
    %c0_i32 = arith.constant 0 : i32
    %c0_i32_0 = arith.constant 0 : i32
    %c0_i32_1 = arith.constant 0 : i32
    return %c0_i32, %c0_i32_0 : i32, i32
  }
  func.func @transform_12(%arg0: i32) -> (i32, i32) {
    %c0_i32 = arith.constant 0 : i32
    %c0_i32_0 = arith.constant 0 : i32
    %c0_i32_1 = arith.constant 0 : i32
    return %c0_i32, %c0_i32_0 : i32, i32
  }
  func.func @transform_13(%arg0: i32) -> (i32, i32) {
    %c0_i32 = arith.constant 0 : i32
    %c0_i32_0 = arith.constant 0 : i32
    %c0_i32_1 = arith.constant 0 : i32
    return %c0_i32, %c0_i32_0 : i32, i32
  }
  func.func @transform_14(%arg0: i32) -> (i32, i32) {
    %c0_i32 = arith.constant 0 : i32
    %c0_i32_0 = arith.constant 0 : i32
    %c0_i32_1 = arith.constant 0 : i32
    return %c0_i32, %c0_i32_0 : i32, i32
  }
  func.func @transform_15(%arg0: i32) -> (i32, i32) {
    %c0_i32 = arith.constant 0 : i32
    %c0_i32_0 = arith.constant 0 : i32
    %c0_i32_1 = arith.constant 0 : i32
    return %c0_i32, %c0_i32_0 : i32, i32
  }
  func.func @transform_16(%arg0: i32) -> (i32, i32) {
    %c0_i32 = arith.constant 0 : i32
    %c0_i32_0 = arith.constant 0 : i32
    %c0_i32_1 = arith.constant 0 : i32
    return %c0_i32, %c0_i32_0 : i32, i32
  }
  func.func @transform_17(%arg0: i32) -> (i32, i32) {
    %c0_i32 = arith.constant 0 : i32
    %c0_i32_0 = arith.constant 0 : i32
    %c0_i32_1 = arith.constant 0 : i32
    return %c0_i32, %c0_i32_0 : i32, i32
  }
}

</mosaic_0001>

<bundles_post_ra>
// kernel: tpu_custom_call.1
= control target key start
LH: loop header
LB: loop body
LE: loop exit
PB: predicated region body
PF: predicated region fallthrough
CT: control target
= control target key end

     0   :  { %s11108_s0 = inlined_call_operand.vmem [shape: s32[4,1], index: 0, kind: input, shape index: {}]   ;;  %s11109_s1 = inlined_call_operand.hbm [shape: f32[4,16,32], index: 1, kind: input, shape index: {}]   ;;  %s11110_s2 = inlined_call_operand.hbm [shape: f32[8,4,32], index: 2, kind: input, shape index: {}]   ;;  %s11111_s3 = inlined_call_operand.hbm [shape: f32[32,32], index: 3, kind: input, shape index: {}]   ;;  %s11112_s4 = inlined_call_operand.vmem [shape: f32[1,32], index: 4, kind: input, shape index: {}]   ;;  %s11113_s5 = inlined_call_operand.vmem [shape: f32[1,32], index: 5, kind: input, shape index: {}]   ;;  %s11114_s6 = inlined_call_operand.<no memory space> [shape: f32[1,1], index: 6, kind: input, shape index: {}]   ;;  %s11115_s7 = inlined_call_operand.hbm [shape: f32[32,64], index: 7, kind: input, shape index: {}]   ;;  %s11116_s8 = inlined_call_operand.vmem [shape: f32[1,64], index: 8, kind: input, shape index: {}]   ;;  %s11117_s9 = inlined_call_operand.hbm [shape: f32[32,64], index: 9, kind: input, shape index: {}]   ;;  %s11118_s10 = inlined_call_operand.vmem [shape: f32[1,64], index: 10, kind: input, shape index: {}]   ;;  %s11119_s11 = inlined_call_operand.vmem [shape: f32[96,128], index: 11, kind: input, shape index: {}]   ;;  %s11120_s12 = inlined_call_operand.vmem [shape: f32[1,128], index: 12, kind: input, shape index: {}]   ;;  %s11121_s13 = inlined_call_operand.vmem [shape: f32[64,32], index: 13, kind: input, shape index: {}]   ;;  %s11122_s14 = inlined_call_operand.hbm [shape: f32[32,32], index: 14, kind: input, shape index: {}]   ;;  %s11123_s15 = inlined_call_operand.vmem [shape: f32[1,32], index: 15, kind: input, shape index: {}]   ;;  %s11124_s16 = inlined_call_operand.hbm [shape: f32[4,256], index: 16, kind: output, shape index: {0}]   ;;  %s11125_s17 = inlined_call_operand.hbm [shape: f32[4,128], index: 17, kind: output, shape index: {1}]  }
   0x1   :  { %11234 = sst [smem:[#allocation105_spill]] %s11108_s0  ;;  %v23_v0 = vstv %s11114_s6 }
   0x2   :  { %11235 = sst [smem:[#allocation106_spill]] %s11109_s1  ;;  %24 = vst [vmem:[#allocation2] sm:$0x1] %v23_v0 }
   0x3   :  { %25 = vsyncpa [#allocation4], 0 }
   0x4   :  { %26 = vsyncpa [#allocation7], 0 }
   0x5   :  { %27 = vsyncpa [#allocation10], 0 }
   0x6   :  { %28 = vsyncpa [#allocation13], 0 }
   0x7   :  { %29 = vsyncpa [#allocation5], 0 }
   0x8   :  { %30 = vsyncpa [#allocation16], 0  ;;  %s8555_s26 = smov [#allocation6]   ;;  %s8367_s0 = scalar_lea.hbm %s11110_s2, 512 }
   0x9   :  { %s50_s27 = sshll.u32 %s8555_s26, 4  ;;  %p8368_p0 = scmp.ne.s32.totalorder %s11110_s2, %s8367_s0  ;;  %s51_s27 = int_to_ptr.vmem [resolvable:$true] %s50_s27 }
   0xa   :  { %p8371_p1 = scmp.lt.u32.totalorder %s8367_s0, %s11110_s2 }
   0xc   :  { %p8373_p2 = pnand %p8371_p1, %p8368_p0 }
   0xe   :  { %8376 = shalt.err (!%p8373_p2)
}
   0xf   :  { %s8377_s1 = scalar_lea.vmem %s51_s27, 512  ;;  %p8382_p4 = scmp.lt.s32.totalorder %s51_s27, %s51_s27 }
  0x10   :  { %p8378_p3 = scmp.ne.s32.totalorder %s51_s27, %s8377_s1  ;;  %p8383_p5 = scmp.lt.s32.totalorder %s8377_s1, %s8377_s1 }
  0x12   :  { %p8384_p6 = por %p8383_p5, %p8382_p4 }
  0x14   :  { %p8385_p7 = pnand %p8384_p6, %p8378_p3 }
  0x16   :  { %8388 = shalt.err (!%p8385_p7)
}
  0x17   :  { %s8556_s20 = smov 64   ;;  %s8557_s21 = smov 4  }
  0x18   :  { %56 = dma.hbm_to_vmem [thread:$0]  %s11110_s2, 512, %s51_s27, [#allocation7], %s8556_s20, %s8556_s20, %s8557_s21  }
  0x19   :  { %s8558_s24 = smov [#allocation9]   ;;  %s8559_s26 = smov [#allocation3]  }
  0x1a   :  { %s80_s25 = sshll.u32 %s8558_s24, 4  ;;  %s38_s28 = sshll.u32 %s8559_s26, 4  ;;  %s81_s25 = int_to_ptr.vmem [resolvable:$true] %s80_s25  ;;  %s39_s28 = int_to_ptr.vmem [resolvable:$true] %s38_s28 }
  0x1b   :  { %s8389_s30 = scalar_lea.hbm %s11115_s7, 512 }
  0x1c   :  { %p8390_p8 = scmp.ne.s32.totalorder %s11115_s7, %s8389_s30  ;;  %p8393_p9 = scmp.lt.u32.totalorder %s8389_s30, %s11115_s7 }
  0x1e   :  { %p8395_p10 = pnand %p8393_p9, %p8390_p8 }
  0x20   :  { %8398 = shalt.err (!%p8395_p10)
}
  0x21   :  { %s8399_s2 = scalar_lea.vmem %s81_s25, 512  ;;  %p8404_p12 = scmp.lt.s32.totalorder %s81_s25, %s81_s25 }
  0x22   :  { %p8400_p11 = scmp.ne.s32.totalorder %s81_s25, %s8399_s2  ;;  %p8405_p13 = scmp.lt.s32.totalorder %s8399_s2, %s8399_s2 }
  0x24   :  { %p8406_p0 = por %p8405_p13, %p8404_p12 }
  0x26   :  { %p8407_p1 = pnand %p8406_p0, %p8400_p11 }
  0x28   :  { %8410 = shalt.err (!%p8407_p1)
}
  0x29   :  { %s8560_s27 = smov 128   ;;  %s8561_s21 = smov 8  }
  0x2a   :  { %86 = dma.hbm_to_vmem [thread:$0]  %s11115_s7, 512, %s81_s25, [#allocation10], %s8560_s27, %s8560_s27, %s8561_s21  }
  0x2b   :  { %s11236_s29 = sld [smem:[#allocation106_spill]] }
  0x31   :  { %s8411_s0 = scalar_lea.hbm %s11236_s29, 1024 }
  0x32   :  { %p8412_p2 = scmp.ne.s32.totalorder %s11236_s29, %s8411_s0  ;;  %p8415_p3 = scmp.lt.u32.totalorder %s8411_s0, %s11236_s29 }
  0x34   :  { %p8417_p4 = pnand %p8415_p3, %p8412_p2 }
  0x36   :  { %8420 = shalt.err (!%p8417_p4)
}
  0x37   :  { %s8421_s1 = scalar_lea.vmem %s39_s28, 1024  ;;  %p8426_p6 = scmp.lt.s32.totalorder %s39_s28, %s39_s28 }
  0x38   :  { %p8422_p5 = scmp.ne.s32.totalorder %s39_s28, %s8421_s1  ;;  %p8427_p7 = scmp.lt.s32.totalorder %s8421_s1, %s8421_s1 }
  0x3a   :  { %p8428_p8 = por %p8427_p7, %p8426_p6 }
  0x3c   :  { %p8429_p9 = pnand %p8428_p8, %p8422_p5 }
  0x3e   :  { %8432 = shalt.err (!%p8429_p9)
}
  0x3f   :  { %44 = dma.hbm_to_vmem [thread:$0]  %s11236_s29, 1024, %s39_s28, [#allocation4], %s8560_s27, %s8560_s27, %s8561_s21  }
  0x40   :  { %s8562_s2 = smov [#allocation8]   ;;  %s8563_s23 = smov [#allocation11]  }
  0x41   :  { %s62_s22 = sshll.u32 %s8562_s2, 4  ;;  %s94_s24 = sshll.u32 %s8563_s23, 4  ;;  %s63_s22 = int_to_ptr.vmem [resolvable:$true] %s62_s22  ;;  %s95_s24 = int_to_ptr.vmem [resolvable:$true] %s94_s24 }
  0x42   :  { %s8433_s30 = scalar_lea.hbm %s11111_s3, 512 }
  0x43   :  { %p8434_p10 = scmp.ne.s32.totalorder %s11111_s3, %s8433_s30  ;;  %p8437_p11 = scmp.lt.u32.totalorder %s8433_s30, %s11111_s3 }
  0x45   :  { %p8439_p12 = pnand %p8437_p11, %p8434_p10 }
  0x47   :  { %8442 = shalt.err (!%p8439_p12)
}
  0x48   :  { %s8443_s28 = scalar_lea.vmem %s63_s22, 512  ;;  %p8448_p0 = scmp.lt.s32.totalorder %s63_s22, %s63_s22 }
  0x49   :  { %p8444_p13 = scmp.ne.s32.totalorder %s63_s22, %s8443_s28  ;;  %p8449_p1 = scmp.lt.s32.totalorder %s8443_s28, %s8443_s28 }
  0x4b   :  { %p8450_p2 = por %p8449_p1, %p8448_p0 }
  0x4d   :  { %p8451_p3 = pnand %p8450_p2, %p8444_p13 }
  0x4f   :  { %8454 = shalt.err (!%p8451_p3)
}
  0x50   :  { %68 = dma.hbm_to_vmem [thread:$0]  %s11111_s3, 512, %s63_s22, [#allocation7], %s8560_s27, %s8560_s27, %s8561_s21  }
  0x51   :  { %s8455_s23 = scalar_lea.hbm %s11117_s9, 512 }
  0x52   :  { %p8456_p4 = scmp.ne.s32.totalorder %s11117_s9, %s8455_s23  ;;  %p8459_p5 = scmp.lt.u32.totalorder %s8455_s23, %s11117_s9 }
  0x54   :  { %p8461_p6 = pnand %p8459_p5, %p8456_p4 }
  0x56   :  { %8464 = shalt.err (!%p8461_p6)
}
  0x57   :  { %s8465_s19 = scalar_lea.vmem %s95_s24, 512  ;;  %p8470_p8 = scmp.lt.s32.totalorder %s95_s24, %s95_s24 }
  0x58   :  { %p8466_p7 = scmp.ne.s32.totalorder %s95_s24, %s8465_s19  ;;  %p8471_p9 = scmp.lt.s32.totalorder %s8465_s19, %s8465_s19 }
  0x5a   :  { %p8472_p10 = por %p8471_p9, %p8470_p8 }
  0x5c   :  { %p8473_p11 = pnand %p8472_p10, %p8466_p7 }
  0x5e   :  { %8476 = shalt.err (!%p8473_p11)
}
  0x5f   :  { %100 = dma.hbm_to_vmem [thread:$0]  %s11117_s9, 512, %s95_s24, [#allocation10], %s8560_s27, %s8560_s27, %s8561_s21  }
  0x60   :  { %s8564_s6 = smov [#allocation12]   ;;  %s8477_s7 = scalar_lea.hbm %s11122_s14, 512 }
  0x61   :  { %s114_s1 = sshll.u32 %s8564_s6, 4  ;;  %p8478_p12 = scmp.ne.s32.totalorder %s11122_s14, %s8477_s7  ;;  %s115_s1 = int_to_ptr.vmem [resolvable:$true] %s114_s1 }
  0x62   :  { %p8481_p13 = scmp.lt.u32.totalorder %s8477_s7, %s11122_s14 }
  0x64   :  { %p8483_p0 = pnand %p8481_p13, %p8478_p12 }
  0x66   :  { %8486 = shalt.err (!%p8483_p0)
}
  0x67   :  { %s8487_s0 = scalar_lea.vmem %s115_s1, 512  ;;  %p8492_p2 = scmp.lt.s32.totalorder %s115_s1, %s115_s1 }
  0x68   :  { %p8488_p1 = scmp.ne.s32.totalorder %s115_s1, %s8487_s0  ;;  %p8493_p3 = scmp.lt.s32.totalorder %s8487_s0, %s8487_s0 }
  0x6a   :  { %p8494_p4 = por %p8493_p3, %p8492_p2 }
  0x6c   :  { %p8495_p5 = pnand %p8494_p4, %p8488_p1 }
  0x6e   :  { %8498 = shalt.err (!%p8495_p5)
}
  0x6f   :  { %120 = dma.hbm_to_vmem [thread:$0]  %s11122_s14, 512, %s115_s1, [#allocation13], %s8560_s27, %s8560_s27, %s8561_s21  }
  0x70   :  { %8543 = dma.done.wait [#allocation4], 1024  }
  0x71   :  { %8544 = vsyncadd [#allocation4], 4294966272 }
  0x72   :  { %8545 = dma.done.wait [#allocation7], 1024  }
  0x73   :  { %8546 = vsyncadd [#allocation7], 4294966272 }
  0x74   :  { %8547 = dma.done.wait [#allocation10], 1024  }
  0x75   :  { %8548 = vsyncadd [#allocation10], 4294966272 }
  0x76   :  { %8549 = dma.done.wait [#allocation13], 512  }
  0x77   :  { %8550 = vsyncadd [#allocation13], 4294966784  ;;  %v186_v1 = vld [vmem:[#allocation12] sm:$0xff]  ;;  %v187_v2 = vld [vmem:[#allocation12 + $0x8] sm:$0xff]  ;;  %vm202_vm0 = vcmask 261120   ;;  %v11132_v42 = vmov 0.0|0.0  }
  0x78   :  { %v188_v3 = vld [vmem:[#allocation12 + $0x10] sm:$0xff]  ;;  %v7729_v4 = vpack.c.bf16 %v187_v2, %v186_v1  ;;  %v189_v5 = vld [vmem:[#allocation12 + $0x18] sm:$0xff]  ;;  %v8756_v6 = vld [vmem:[#allocation6] sm:$0xf]  ;;  %vm8566_vm1 = vmmov 0   ;;  %vm512_vm2 = vcmask 1041409  }
  0x79   :  { %v151_v7 = vld [vmem:[#allocation6 + $0x4] sm:$0xf]  ;;  %v7733_v8 = vpack.c.bf16 %v189_v5, %v188_v3  ;;  %v152_v10 = vld [vmem:[#allocation6 + $0x8] sm:$0xf]  ;;  %v153_v11 = vld [vmem:[#allocation6 + $0xc] sm:$0xf] }
  0x7a   :  { %v345_v9 = vcombine.low %v8756_v6, %v151_v7  ;;  %v497_v12 = vld [vmem:[#allocation9] sm:$0xff]  ;;  %7730 = vmatprep.subr.bf16.mxu1 %v7729_v4  ;;  %v498_v13 = vld [vmem:[#allocation9 + $0x8] sm:$0xff]  ;;  %v154_v14 = vld [vmem:[#allocation6 + $0x10] sm:$0xf]  ;;  %v346_v16 = vcombine.low %v152_v10, %v153_v11  ;;  %v11130_v3 = vmov 0.0   ;;  %vm514_vm3 = vcmask 1042434  }
  0x7b   :  { %v155_v15 = vld [vmem:[#allocation6 + $0x14] sm:$0xf]  ;;  %7732 = vmatpush3.bf16.msra.mxu1 %v7729_v4  ;;  %v8760_v17 = vld [vmem:[#allocation3] sm:$0xff]  ;;  %v8762_v18 = vld [vmem:[#allocation3 + $0x8] sm:$0xff]  ;;  %v7738_v19 = vpack.c.bf16 %v498_v13, %v497_v12  ;;  %vm516_vm4 = vcmask 1043459   ;;  %vm811_vm5 = vcmask 130112  }
  0x7c   :  { %7248 = vmatprep.mubr.msk.f32.mxu1 %vm202_vm0, %v345_v9  ;;  %7734 = vmatprep.subr.bf16.mxu1 %v7733_v8  ;;  %v347_v20 = vcombine.low %v154_v14, %v155_v15  ;;  %v156_v21 = vld [vmem:[#allocation6 + $0x18] sm:$0xf]  ;;  %v157_v22 = vld [vmem:[#allocation6 + $0x1c] sm:$0xf]  ;;  %v8764_v23 = vld [vmem:[#allocation3 + $0x10] sm:$0xff]  ;;  %v456_v26 = vsel %vm202_vm0, %v8760_v17, 0.0 }
  0x7d   :  { %v8766_v24 = vld [vmem:[#allocation3 + $0x18] sm:$0xff]  ;;  %v8768_v25 = vld [vmem:[#allocation3 + $0x20] sm:$0xff]  ;;  %v457_v27 = vsel %vm202_vm0, %v8762_v18, 0.0  ;;  %7228 = vmatprep.mubr.msk.f32.mxu0 %vm202_vm0, %v8760_v17  ;;  %v8776_v28 = vld [vmem:[#allocation3 + $0x28] sm:$0xff]  ;;  %v465_v32 = vsel %vm202_vm0, %v8764_v23, 0.0  ;;  %v348_v52 = vcombine.low %v156_v21, %v157_v22  ;;  %vm844_vm6 = vcmask 125952  }
  0x7e   :  { %v8778_v29 = vld [vmem:[#allocation3 + $0x30] sm:$0xff]  ;;  %v8780_v30 = vld [vmem:[#allocation3 + $0x38] sm:$0xff]  ;;  %v458_v31 = vadd.f32 %v457_v27, %v456_v26  ;;  %v466_v33 = vsel %vm202_vm0, %v8766_v24, 0.0  ;;  %v474_v34 = vsel %vm202_vm0, %v8768_v25, 0.0  ;;  %v475_v36 = vsel %vm202_vm0, %v8776_v28, 0.0  ;;  %v191_v39 = vld [vmem:[#allocation8] sm:$0xff] }
  0x7f   :  { %7736 = vmatpush3.bf16.msra.mxu1 %v7733_v8  ;;  %v467_v35 = vadd.f32 %v466_v33, %v465_v32  ;;  %v483_v37 = vsel %vm202_vm0, %v8778_v29, 0.0  ;;  %v484_v38 = vsel %vm202_vm0, %v8780_v30, 0.0  ;;  %v192_v40 = vld [vmem:[#allocation8 + $0x8] sm:$0xff]  ;;  %v193_v41 = vld [vmem:[#allocation8 + $0x10] sm:$0xff]  ;;  %v500_v44 = vld [vmem:[#allocation9 + $0x18] sm:$0xff]  ;;  %v476_v46 = vadd.f32 %v475_v36, %v474_v34  ;;  %s8570_s22 = smov 96  }
  0x80   :  { %7737 = vmatprep.subr.bf16.mxu1 %v11132_v42  ;;  %v499_v43 = vld [vmem:[#allocation9 + $0x10] sm:$0xff]  ;;  %v459_v45 = vrot.slane %v458_v31, 4  ;;  %v485_v47 = vadd.f32 %v484_v38, %v483_v37  ;;  %v7721_v48 = vpack.c.bf16 %v192_v40, %v191_v39  ;;  %v194_v49 = vld [vmem:[#allocation8 + $0x18] sm:$0xff]  ;;  %v160_v62 = vld [vmem:[#allocation11] sm:$0xff]  ;;  %vm1097_vm7 = vcmask 523264   ;;  %s11256_s2 = sld [smem:[#allocation105_spill]] }
  0x81   :  { %v468_v50 = vrot.slane %v467_v35, 4  ;;  %v7725_v51 = vpack.c.bf16 %v194_v49, %v193_v41  ;;  %v477_v54 = vrot.slane %v476_v46, 4  ;;  %v7741_v56 = vpack.c.bf16 %v500_v44, %v499_v43  ;;  %v161_v63 = vld [vmem:[#allocation11 + $0x8] sm:$0xff]  ;;  %v162_v32 = vld [vmem:[#allocation11 + $0x10] sm:$0xff]  ;;  %v163_v33 = vld [vmem:[#allocation11 + $0x18] sm:$0xff] }
  0x82   :  { %7249 = vmatmul.mubr.msk.f32.vlgmr.msra.gmra.mrb[0].mxu1 %vm202_vm0, %v346_v16  ;;  %v460_v53 = vadd.f32 %v459_v45, %v458_v31  ;;  %v486_v55 = vrot.slane %v485_v47, 4  ;;  %7722 = vmatprep.subr.bf16.mxu0 %v7721_v48  ;;  %v8801_v9 = vpack.c.bf16 %v161_v63, %v160_v62  ;;  %v8829_v34 = vpack.c.bf16 %v163_v33, %v162_v32  ;;  %v8866_v63 = vld [vmem:[%s11118_s10] ss:$0 sm:$0xff] }
  0x83   :  { %7739 = vmatpush3.bf16.msra.mxu1 %v7738_v19  ;;  %7251 = vmatprep.mubr.msk.f32.mxu1 %vm202_vm0, %v347_v20  ;;  %v469_v57 = vadd.f32 %v468_v50, %v467_v35  ;;  %v478_v59 = vadd.f32 %v477_v54, %v476_v46  ;;  %v6920_v35 = vld [vmem:[%s11123_s15] ss:$0 sm:$0xff]  ;;  %vm1105_vm8 = vcmask 785408  }
  0x84   :  { %7740 = vmatprep.subr.bf16.mxu1 %v11132_v42  ;;  %v461_v58 = vrot.slane %v460_v53, 2  ;;  %v487_v60 = vadd.f32 %v486_v55, %v485_v47  ;;  %7724 = vmatpush3.bf16.msra.mxu0 %v7721_v48  ;;  %v8836_v36 = vcombine.low %v6920_v35, %v6920_v35  ;;  %v6925_v48 = vld [vmem:[%s11116_s8] ss:$0 sm:$0xff] }
  0x85   :  { %v470_v61 = vrot.slane %v469_v57, 2  ;;  %7726 = vmatprep.subr.bf16.mxu0 %v7725_v51  ;;  %v479_v1 = vrot.slane %v478_v59, 2  ;;  %v8903_v33 = vld [vmem:[%s11113_s5] ss:$0 sm:$0xff] }
  0x86   :  { %7252 = vmatmul.mubr.msk.f32.gmra.mrb[2].mxu1 %vm202_vm0, %v348_v52  ;;  %v462_v0 = vadd.f32 %v461_v58, %v460_v53  ;;  %v488_v2 = vrot.slane %v487_v60, 2  ;;  %11237 = vst [vmem:[#allocation23_spill] sm:$0xff] %v8836_v36  ;;  %v8569_v58 = vmov 1966171168  }
  0x87   :  { %7742 = vmatpush3.bf16.msra.mxu1 %v7741_v56  ;;  %7262 = vmatprep.mubr.msk.f32.mxu1 %vm8566_vm1, %v11130_v3  ;;  %v471_v4 = vadd.f32 %v470_v61, %v469_v57  ;;  %v480_v7 = vadd.f32 %v479_v1, %v478_v59  ;;  %v11128_v57 = vmov 0   ;;  %v678_v59 = vunpack.c.l.s4 %v8569_v58 }
  0x88   :  { %v463_v5 = vrot.slane %v462_v0, 1  ;;  %v489_v8 = vadd.f32 %v488_v2, %v487_v60  ;;  %7728 = vmatpush3.bf16.msra.mxu0 %v7725_v51  ;;  %7749 = vmatprep.subr.bf16.mxu1 %v11132_v42  ;;  %v680_v60 = vlaneseq }
  0x89   :  { %v472_v10 = vrot.slane %v471_v4, 1  ;;  %7743 = vmatprep.subr.bf16.mxu0 %v11132_v42  ;;  %v481_v12 = vrot.slane %v480_v7, 1  ;;  %8050 = vset.pattern.permute.xlu0 %v11128_v57  ;;  %v679_v61 = vunpack.c.0.s8 %v678_v59 }
  0x8a   :  { %v464_v11 = vadd.f32 %v463_v5, %v462_v0  ;;  %v490_v13 = vrot.slane %v489_v8, 1  ;;  %8051 = vset.pattern.permute.xlu1 %v11128_v57  ;;  %v8861_v62 = vshrl.u32 %v680_v60, 7  ;;  %v6911_v5 = vld [vmem:[%s11112_s4] ss:$0 sm:$0xff] }
  0x8b   :  { %v473_v14 = vadd.f32 %v472_v10, %v471_v4  ;;  %7229 = vmatmul.mubr.msk.f32.vlgmr.msra.gmra.mrb[0].mxu0 %vm202_vm0, %v8762_v18  ;;  %v482_v15 = vadd.f32 %v481_v12, %v480_v7 }
  0x8c   :  { %v491_v16 = vadd.f32 %v490_v13, %v489_v8  ;;  %v493_v19 = vmul.f32 0.0625, %v464_v11  ;;  %7745 = vmatpush3.bf16.msra.mxu0 %v8801_v9  ;;  %7231 = vmatprep.mubr.msk.f32.mxu0 %vm202_vm0, %v8764_v23  ;;  %11242 = vst [vmem:[#allocation28_spill] sm:$0xff] %v8861_v62  ;;  %v8869_v0 = vsub.s32 %v679_v61, %v8861_v62  ;;  %v8880_v8 = vsub.s32 0, %v8861_v62 }
  0x8d   :  { %v494_v20 = vmul.f32 0.0625, %v473_v14  ;;  %7746 = vmatprep.subr.bf16.mxu0 %v11132_v42  ;;  %v495_v21 = vmul.f32 0.0625, %v482_v15 }
  0x8e   :  { %v496_v22 = vmul.f32 0.0625, %v491_v16 }
  0x8f   :  { %v513_v26 = vsel %vm512_vm2, %v494_v20, %v493_v19  ;;  %7232 = vmatmul.mubr.msk.f32.gmra.mrb[2].mxu0 %vm202_vm0, %v8766_v24 }
  0x90   :  { %v515_v27 = vsel %vm514_vm3, %v495_v21, %v513_v26  ;;  %7234 = vmatprep.mubr.msk.f32.mxu0 %vm202_vm0, %v8768_v25  ;;  %7748 = vmatpush3.bf16.msra.mxu0 %v8829_v34 }
  0x91   :  { %v517_v31 = vsel %vm516_vm4, %v496_v22, %v515_v27  ;;  %7767 = vmatprep.subr.bf16.mxu0 %v11132_v42 }
  0x92   :  { %7263 = vmatmul.mubr.msk.f32.vlgmr.msra.gmra.mrb[4].mxu1 %vm202_vm0, %v517_v31 }
  0x93   :  { %7235 = vmatmul.mubr.msk.f32.gmra.mrb[4].mxu0 %vm202_vm0, %v8776_v28  ;;  %7300 = vmatprep.mubr.msk.f32.mxu1 %vm8566_vm1, %v11130_v3 }
  0x94   :  { %7237 = vmatprep.mubr.msk.f32.mxu0 %vm202_vm0, %v8778_v29 }
  0x97   :  { %7238 = vmatmul.mubr.msk.f32.gmra.mrb[6].mxu0 %vm202_vm0, %v8780_v30 }
  0x98   :  { %7273 = vmatprep.mubr.msk.f32.mxu0 %vm8566_vm1, %v11130_v3 }
 0x155   :  { %v7250_v37 = vpop.f32.mrb[0].mxu1 }
 0x156   :  { %v8839_v38 = vadd.f32 %v7250_v37, %v8836_v36  ;;  %v8841_v39 = vpop.f32.mrb[1].mxu1 }
 0x157   :  { %11239 = vst [vmem:[#allocation25_spill] sm:$0xff] %v8841_v39 }
 0x158   :  { %11238 = vst [vmem:[#allocation24_spill] sm:$0xff] %v8839_v38 }
 0x159   :  { %v7253_v40 = vpop.f32.mrb[2].mxu1 }
 0x15a   :  { %v8844_v41 = vadd.f32 %v7253_v40, %v8836_v36  ;;  %v435_v43 = vpop.f32.mrb[3].mxu1 }
 0x15b   :  { %v8847_v44 = vadd.f32 %v435_v43, %v8836_v36 }
 0x15c   :  { %11240 = vst [vmem:[#allocation26_spill] sm:$0xff] %v8844_v41 }
 0x15d   :  { %11241 = vst [vmem:[#allocation27_spill] sm:$0xff] %v8847_v44 }
 0x15e   :  { %v7230_v45 = vpop.f32.mrb[0].mxu0 }
 0x15f   :  { %v293_v46 = vpop.f32.mrb[1].mxu0  ;;  %v8883_v12 = vadd.f32 %v7230_v45, %v6911_v5 }
 0x160   :  { %v8885_v13 = vadd.f32 %v6911_v5, %v293_v46 }
 0x162   :  { %v7233_v47 = vpop.f32.mrb[2].mxu0 }
 0x163   :  { %v303_v49 = vpop.f32.mrb[3].mxu0  ;;  %v8889_v19 = vadd.f32 %v7233_v47, %v6911_v5 }
 0x164   :  { %v8891_v20 = vadd.f32 %v6911_v5, %v303_v49 }
 0x165   :  { %v586_v50 = vpop.f32.mrb[4].mxu1 }
 0x166   :  { %v8852_v51 = vadd.f32 %v6925_v48, %v586_v50  ;;  %v7264_v52 = vpop.f32.mrb[5].mxu1  ;;  %v7236_v53 = vpop.f32.mrb[4].mxu0 }
 0x167   :  { %v313_v54 = vpop.f32.mrb[5].mxu0  ;;  %v8896_v31 = vadd.f32 %v7236_v53, %v6911_v5 }
 0x168   :  { %7274 = vmatmul.mubr.msk.f32.vlgmr.msra.gmra.mrb[8].mxu0 %vm202_vm0, %v8852_v51  ;;  %v8898_v32 = vadd.f32 %v6911_v5, %v313_v54 }
 0x169   :  { %7319 = vmatprep.mubr.msk.f32.mxu0 %vm8566_vm1, %v11130_v3 }
 0x16a   :  { %v7239_v55 = vpop.f32.mrb[6].mxu0 }
 0x16b   :  { %v323_v56 = vpop.f32.mrb[7].mxu0  ;;  %v8914_v54 = vadd.f32 %v7239_v55, %v6911_v5 }
 0x16c   :  { %v8908_v46 = vadd.f32 %v6911_v5, %v323_v56 }
 0x16d   :  { %11243 = vst [vmem:[#allocation29_spill] sm:$0xff] %v8914_v54 }
 0x23b   :  { %v666_v1 = vpop.f32.mrb[8].mxu0 }
 0x23c   :  { %v8872_v2 = vadd.f32 %v8866_v63, %v666_v1  ;;  %v7275_v4 = vpop.f32.mrb[9].mxu0 }
 0x23e   :  { %v683_v7 = vrot.slane %v8872_v2, %v8869_v0 }
 0x240   :  { %v684_v10 = vcombine.high %v683_v7, %v683_v7  ;;  %v691_v11 = vrot.slane %v683_v7, %v8869_v0 }
 0x242   :  { %v698_v14 = vrot.slane %v684_v10, %v8869_v0  ;;  %v699_v15 = vcombine.high %v691_v11, %v691_v11  ;;  %v704_v16 = vrot.slane %v691_v11, %v8880_v8 }
 0x244   :  { %v700_v21 = vcombine.high %v698_v14, %v698_v14  ;;  %v721_v22 = vadd.f32 %v704_v16, %v8885_v13  ;;  %v708_v26 = vrot.slane %v698_v14, %v8880_v8  ;;  %v722_v27 = vadd.f32 %v704_v16, %v8883_v12 }
 0x245   :  { %v712_v35 = vrot.slane %v699_v15, %v8880_v8 }
 0x246   :  { %v729_v37 = vmax.f32 %v721_v22, 0.0  ;;  %v723_v40 = vadd.f32 %v708_v26, %v8891_v20  ;;  %v730_v43 = vmax.f32 %v722_v27, 0.0  ;;  %v724_v45 = vadd.f32 %v708_v26, %v8889_v19 }
 0x247   :  { %v725_v47 = vadd.f32 %v712_v35, %v8898_v32  ;;  %v716_v48 = vrot.slane %v700_v21, %v8880_v8  ;;  %v726_v53 = vadd.f32 %v712_v35, %v8896_v31 }
 0x248   :  { %v743_v49 = vmul.f32 %v8903_v33, %v729_v37  ;;  %v731_v50 = vmax.f32 %v723_v40, 0.0  ;;  %v732_v52 = vmax.f32 %v724_v45, 0.0  ;;  %v744_v58 = vmul.f32 %v8903_v33, %v730_v43  ;;  %v6931_v43 = vld [vmem:[#allocation2] ss:$0 sm:$0xff] }
 0x249   :  { %v733_v56 = vmax.f32 %v725_v47, 0.0  ;;  %v727_v1 = vadd.f32 %v716_v48, %v8908_v46  ;;  %v734_v10 = vmax.f32 %v726_v53, 0.0  ;;  %v728_v11 = vadd.f32 %v716_v48, %v8914_v54 }
 0x24a   :  { %v751_v59 = vsel %vm202_vm0, %v743_v49, 0.0  ;;  %v745_v61 = vmul.f32 %v8903_v33, %v731_v50  ;;  %v746_v7 = vmul.f32 %v8903_v33, %v732_v52  ;;  %v754_v55 = vsel %vm202_vm0, %v744_v58, 0.0 }
 0x24b   :  { %752 = vadd.xlane.f32.xlu0 %v751_v59  ;;  %v747_v5 = vmul.f32 %v8903_v33, %v733_v56  ;;  %v735_v14 = vmax.f32 %v727_v1, 0.0  ;;  %v748_v16 = vmul.f32 %v8903_v33, %v734_v10  ;;  %v736_v21 = vmax.f32 %v728_v11, 0.0 }
 0x24c   :  { %v757_v4 = vsel %vm202_vm0, %v745_v61, 0.0  ;;  %v760_v15 = vsel %vm202_vm0, %v746_v7, 0.0  ;;  %v8934_v52 = vand.u32 127, %v680_v60 }
 0x24d   :  { %758 = vadd.xlane.f32.xlu1 %v757_v4  ;;  %v763_v22 = vsel %vm202_vm0, %v747_v5, 0.0  ;;  %v749_v26 = vmul.f32 %v8903_v33, %v735_v14  ;;  %v766_v27 = vsel %vm202_vm0, %v748_v16, 0.0  ;;  %v750_v35 = vmul.f32 %v8903_v33, %v736_v21 }
 0x24e   :  { %11244 = vst [vmem:[#allocation30_spill] sm:$0xff] %v8934_v52  ;;  %v806_v58 = vadd.s32 4294967288, %v8934_v52  ;;  %v8939_v61 = vsub.s32 %v8934_v52, %v8861_v62 }
 0x24f   :  { %755 = vadd.xlane.f32.xlu0 %v754_v55  ;;  %v769_v37 = vsel %vm202_vm0, %v749_v26, 0.0  ;;  %v772_v40 = vsel %vm202_vm0, %v750_v35, 0.0 }
 0x250   :  { %v8942_v56 = vsub.s32 %v806_v58, %v8861_v62 }
 0x251   :  { %761 = vadd.xlane.f32.xlu1 %v760_v15 }
 0x253   :  { %764 = vadd.xlane.f32.xlu0 %v763_v22 }
 0x255   :  { %767 = vadd.xlane.f32.xlu1 %v766_v27 }
 0x257   :  { %770 = vadd.xlane.f32.xlu0 %v769_v37 }
 0x259   :  { %773 = vadd.xlane.f32.xlu1 %v772_v40 }
 0x26d   :  { %781 = vperm.xlu0 %8050, %v6931_v43  }
 0x2d8   :  { %v753_v45 = vpop.xlane.xlu0 %752 }
 0x2da   :  { %v759_v47 = vpop.xlane.xlu1 %758 }
 0x2dc   :  { %v756_v48 = vpop.xlane.xlu0 %755 }
 0x2de   :  { %v762_v49 = vpop.xlane.xlu1 %761 }
 0x2e0   :  { %v765_v50 = vpop.xlane.xlu0 %764 }
 0x2e2   :  { %v768_v53 = vpop.xlane.xlu1 %767 }
 0x2e4   :  { %v771_v59 = vpop.xlane.xlu0 %770 }
 0x2e6   :  { %v774_v4 = vpop.xlane.xlu1 %773 }
 0x2ec   :  { %v8944_v1 = vpop.permute.xlu0 %781 }
 0x2ed   :  { %11245 = vst [vmem:[#allocation31_spill] sm:$0xff] %v8944_v1  ;;  %v784_v7 = vadd.f32 %v8944_v1, %v753_v45  ;;  %v785_v60 = vadd.f32 %v8944_v1, %v756_v48  ;;  %v786_v10 = vadd.f32 %v8944_v1, %v759_v47  ;;  %v787_v11 = vadd.f32 %v8944_v1, %v762_v49 }
 0x2ee   :  { %v788_v55 = vadd.f32 %v8944_v1, %v765_v50  ;;  %v789_v5 = vadd.f32 %v8944_v1, %v768_v53  ;;  %v790_v14 = vadd.f32 %v8944_v1, %v771_v59  ;;  %v791_v15 = vadd.f32 %v8944_v1, %v774_v4 }
 0x2ef   :  { %v805_v16 = vrot.slane %v784_v7, %v8939_v61  ;;  %v810_v21 = vrot.slane %v785_v60, %v8942_v56  ;;  %v816_v22 = vrot.slane %v786_v10, %v8939_v61  ;;  %v820_v26 = vrot.slane %v787_v11, %v8942_v56 }
 0x2f0   :  { %v825_v27 = vrot.slane %v788_v55, %v8939_v61  ;;  %v829_v35 = vrot.slane %v789_v5, %v8942_v56  ;;  %v834_v37 = vrot.slane %v790_v14, %v8939_v61  ;;  %v838_v40 = vrot.slane %v791_v15, %v8942_v56 }
 0x2f1   :  { %v812_v43 = vsel %vm811_vm5, %v810_v21, %v805_v16  ;;  %v821_v45 = vsel %vm811_vm5, %v820_v26, %v816_v22  ;;  %v8971_v59 = vsub.s32 3, %v8861_v62  ;;  %v8974_v4 = vsub.s32 1, %v8861_v62 }
 0x2f2   :  { %v830_v47 = vsel %vm811_vm5, %v829_v35, %v825_v27  ;;  %v840_v48 = vsel %vm512_vm2, %v821_v45, %v812_v43  ;;  %v839_v49 = vsel %vm811_vm5, %v838_v40, %v834_v37  ;;  %v8980_v43 = vsub.s32 2, %v8861_v62 }
 0x2f3   :  { %v841_v50 = vsel %vm514_vm3, %v830_v47, %v840_v48 }
 0x2f4   :  { %v842_v53 = vsel %vm516_vm4, %v839_v49, %v841_v50 }
 0x2f5   :  { %v845_v58 = vsel %vm844_vm6, %v842_v53, -inf }
 0x2f6   :  { %846 = vmax.xlane.f32.xlu1 %v845_v58 }
 0x383   :  { %v847_v16 = vpop.xlane.xlu1 %846 }
 0x384   :  { %v852_v21 = vrot.slane %v847_v16, %v8880_v8  ;;  %v864_v22 = vrot.slane %v847_v16, %v8971_v59  ;;  %v856_v26 = vrot.slane %v847_v16, %v8974_v4  ;;  %v860_v49 = vrot.slane %v847_v16, %v8980_v43 }
 0x386   :  { %v869_v27 = vsub.f32 %v784_v7, %v852_v21  ;;  %v870_v35 = vsub.f32 %v785_v60, %v852_v21  ;;  %v876_v40 = vsub.f32 %v791_v15, %v864_v22  ;;  %v871_v45 = vsub.f32 %v786_v10, %v856_v26 }
 0x387   :  { %v872_v50 = vsub.f32 %v787_v11, %v856_v26  ;;  %v873_v58 = vsub.f32 %v788_v55, %v860_v49  ;;  %v874_v60 = vsub.f32 %v789_v5, %v860_v49  ;;  %v875_v10 = vsub.f32 %v790_v14, %v864_v22 }
 0x388   :  { %v877_v37 = vmul.f32 1.442695, %v869_v27  ;;  %v879_v47 = vmul.f32 1.442695, %v870_v35  ;;  %v891_v48 = vmul.f32 1.442695, %v876_v40 }
 0x389   :  { %v881_v53 = vmul.f32 1.442695, %v871_v45  ;;  %v883_v57 = vmul.f32 1.442695, %v872_v50  ;;  %v885_v15 = vmul.f32 1.442695, %v873_v58 }
 0x38a   :  { %8076 = vpow2.f32 %v877_v37  ;;  %v887_v27 = vmul.f32 1.442695, %v874_v60  ;;  %v889_v11 = vmul.f32 1.442695, %v875_v10 }
 0x38b   :  { %8078 = vpow2.f32 %v879_v47 }
 0x38c   :  { %8080 = vpow2.f32 %v891_v48 }
 0x38d   :  { %8082 = vpow2.f32 %v881_v53 }
 0x38e   :  { %8084 = vpow2.f32 %v883_v57 }
 0x38f   :  { %8086 = vpow2.f32 %v885_v15 }
 0x390   :  { %8088 = vpow2.f32 %v887_v27 }
 0x391   :  { %8090 = vpow2.f32 %v889_v11 }
 0x394   :  { %v8077_v7 = vpop.eup %8076 }
 0x395   :  { %902 = vperm.xlu1 %8051, %v8077_v7   ;;  %v8079_v21 = vpop.eup %8078 }
 0x396   :  { %v8983_v35 = vpop.eup %8080 }
 0x397   :  { %v8083_v16 = vpop.eup %8082  ;;  %923 = vperm.xlu0 %8050, %v8983_v35  }
 0x398   :  { %v8085_v55 = vpop.eup %8084 }
 0x399   :  { %905 = vperm.xlu1 %8051, %v8079_v21   ;;  %v8087_v26 = vpop.eup %8086 }
 0x39a   :  { %v8089_v57 = vpop.eup %8088 }
 0x39b   :  { %v8091_v5 = vpop.eup %8090 }
 0x39d   :  { %908 = vperm.xlu1 %8051, %v8083_v16  }
 0x3a1   :  { %911 = vperm.xlu1 %8051, %v8085_v55  }
 0x3a5   :  { %914 = vperm.xlu1 %8051, %v8087_v26  }
 0x3a9   :  { %917 = vperm.xlu1 %8051, %v8089_v57  }
 0x3ad   :  { %920 = vperm.xlu1 %8051, %v8091_v5  }
 0x414   :  { %v903_v14 = vpop.permute.xlu1 %902 }
 0x415   :  { %v928_v15 = vrot.slane %v903_v14, %v8939_v61 }
 0x416   :  { %v924_v58 = vpop.permute.xlu0 %923 }
 0x417   :  { %v959_v3 = vrot.slane %v924_v58, %v8942_v56 }
 0x418   :  { %v906_v22 = vpop.permute.xlu1 %905 }
 0x419   :  { %v932_v49 = vrot.slane %v906_v22, %v8942_v56 }
 0x41c   :  { %v909_v37 = vpop.permute.xlu1 %908 }
 0x41d   :  { %v937_v50 = vrot.slane %v909_v37, %v8939_v61 }
 0x420   :  { %v912_v40 = vpop.permute.xlu1 %911 }
 0x421   :  { %v941_v47 = vrot.slane %v912_v40, %v8942_v56  ;;  %v933_v40 = vsel %vm811_vm5, %v932_v49, %v928_v15 }
 0x423   :  { %v942_v10 = vsel %vm811_vm5, %v941_v47, %v937_v50 }
 0x424   :  { %v915_v45 = vpop.permute.xlu1 %914  ;;  %v961_v37 = vsel %vm512_vm2, %v942_v10, %v933_v40  ;;  %v11254_v40 = vmov 0.0|0.0  }
 0x425   :  { %v946_v60 = vrot.slane %v915_v45, %v8939_v61 }
 0x428   :  { %v918_v48 = vpop.permute.xlu1 %917 }
 0x429   :  { %v950_v53 = vrot.slane %v918_v48, %v8942_v56 }
 0x42b   :  { %v951_v11 = vsel %vm811_vm5, %v950_v53, %v946_v60 }
 0x42c   :  { %v921_v27 = vpop.permute.xlu1 %920  ;;  %v962_v42 = vsel %vm514_vm3, %v951_v11, %v961_v37  ;;  %v170_v37 = vld [vmem:[%s11119_s11 + $0x28] sm:$0xff] }
 0x42d   :  { %v955_v22 = vrot.slane %v921_v27, %v8939_v61 }
 0x42f   :  { %v960_v48 = vsel %vm811_vm5, %v959_v3, %v955_v22  ;;  %v169_v22 = vld [vmem:[%s11119_s11 + $0x20] sm:$0xff] }
 0x430   :  { %v963_v45 = vsel %vm516_vm4, %v960_v48, %v962_v42  ;;  %v9060_v48 = vpack.c.bf16 %v170_v37, %v169_v22 }
 0x431   :  { %v965_v14 = vsel %vm844_vm6, %v963_v45, 0.0  ;;  %v171_v45 = vld [vmem:[%s11119_s11 + $0x30] sm:$0xff] }
 0x432   :  { %966 = vadd.xlane.f32.xlu1 %v965_v14  ;;  %v172_v14 = vld [vmem:[%s11119_s11 + $0x38] sm:$0xff] }
 0x443   :  { %1093 = vrot.lane.b32.xlu1 %v8852_v51, %s8556_s20 }
 0x447   :  { %1322 = vrot.lane.b32.xlu1 %v8852_v51, %s8570_s22 }
 0x4bf   :  { %v967_v47 = vpop.xlane.xlu1 %966 }
 0x4c0   :  { %8092 = vrcp.f32 %v967_v47  ;;  %v9070_v47 = vpack.c.bf16 %v172_v14, %v171_v45 }
 0x4ca   :  { %v8093_v49 = vpop.eup %8092 }
 0x4cb   :  { %v973_v50 = vrot.slane %v8093_v49, %v8880_v8  ;;  %v977_v53 = vrot.slane %v8093_v49, %v8974_v4  ;;  %v981_v15 = vrot.slane %v8093_v49, %v8980_v43  ;;  %v985_v10 = vrot.slane %v8093_v49, %v8971_v59  ;;  %v173_v49 = vld [vmem:[%s11119_s11 + $0x40] sm:$0xff] }
 0x4cd   :  { %v9007_v3 = vmul.f32 %v8077_v7, %v973_v50  ;;  %v9010_v42 = vmul.f32 %v8079_v21, %v973_v50  ;;  %v9014_v58 = vmul.f32 %v8083_v16, %v977_v53  ;;  %v9017_v60 = vmul.f32 %v8085_v55, %v977_v53  ;;  %v174_v50 = vld [vmem:[%s11119_s11 + $0x48] sm:$0xff] }
 0x4ce   :  { %v9021_v7 = vmul.f32 %v8087_v26, %v981_v15  ;;  %v9024_v21 = vmul.f32 %v8089_v57, %v981_v15  ;;  %v9028_v16 = vmul.f32 %v8091_v5, %v985_v10  ;;  %v9032_v55 = vmul.f32 %v8983_v35, %v985_v10  ;;  %v165_v26 = vld [vmem:[%s11119_s11] sm:$0xff]  ;;  %v166_v57 = vld [vmem:[%s11119_s11 + $0x8] sm:$0xff]  ;;  %v167_v5 = vld [vmem:[%s11119_s11 + $0x10] sm:$0xff] }
 0x4cf   :  { %11246 = vst [vmem:[#allocation32_spill] sm:$0xff] %v9007_v3  ;;  %1000 = vperm.xlu0 %8050, %v9007_v3   ;;  %11247 = vst [vmem:[#allocation33_spill] sm:$0xff] %v9010_v42  ;;  %v9044_v27 = vpack.c.bf16 %v166_v57, %v165_v26  ;;  %v168_v35 = vld [vmem:[%s11119_s11 + $0x18] sm:$0xff]  ;;  %v9080_v53 = vpack.c.bf16 %v174_v50, %v173_v49 }
 0x4d0   :  { %11248 = vst [vmem:[#allocation34_spill] sm:$0xff] %v9014_v58  ;;  %11249 = vst [vmem:[#allocation35_spill] sm:$0xff] %v9017_v60  ;;  %v9050_v11 = vpack.c.bf16 %v168_v35, %v167_v5 }
 0x4d1   :  { %11250 = vst [vmem:[#allocation36_spill] sm:$0xff] %v9021_v7  ;;  %11251 = vst [vmem:[#allocation37_spill] sm:$0xff] %v9024_v21  ;;  %7751 = vmatpush3.bf16.msra.mxu1 %v9044_v27 }
 0x4d2   :  { %11252 = vst [vmem:[#allocation38_spill] sm:$0xff] %v9028_v16  ;;  %11253 = vst [vmem:[#allocation39_spill] sm:$0xff] %v9032_v55  ;;  %7752 = vmatprep.subr.bf16.mxu1 %v11254_v40 }
 0x4d3   :  { %1005 = vperm.xlu0 %8050, %v9010_v42  }
 0x4d5   :  { %7754 = vmatpush3.bf16.msra.mxu1 %v9050_v11 }
 0x4d6   :  { %7755 = vmatprep.subr.bf16.mxu1 %v11254_v40 }
 0x4d7   :  { %1010 = vperm.xlu0 %8050, %v9014_v58  }
 0x4d9   :  { %7757 = vmatpush3.bf16.msra.mxu1 %v9060_v48 }
 0x4da   :  { %7758 = vmatprep.subr.bf16.mxu1 %v11254_v40 }
 0x4db   :  { %1015 = vperm.xlu0 %8050, %v9017_v60  }
 0x4dd   :  { %7760 = vmatpush3.bf16.msra.mxu1 %v9070_v47 }
 0x4de   :  { %7761 = vmatprep.subr.bf16.mxu1 %v11254_v40 }
 0x4df   :  { %1020 = vperm.xlu0 %8050, %v9021_v7  }
 0x4e1   :  { %7763 = vmatpush3.bf16.msra.mxu1 %v9080_v53 }
 0x4e2   :  { %7764 = vmatprep.subr.bf16.mxu1 %v11254_v40 }
 0x4e3   :  { %1025 = vperm.xlu0 %8050, %v9024_v21  }
 0x4e7   :  { %1030 = vperm.xlu0 %8050, %v9028_v16  }
 0x4eb   :  { %1035 = vperm.xlu0 %8050, %v9032_v55  }
 0x54e   :  { %v1001_v15 = vpop.permute.xlu0 %1000 }
 0x54f   :  { %v1038_v22 = vmul.f32 %v1001_v15, %v8760_v17 }
 0x551   :  { %v1046_v52 = vsel %vm202_vm0, %v1038_v22, 0.0 }
 0x552   :  { %v1006_v10 = vpop.permute.xlu0 %1005 }
 0x553   :  { %v1039_v57 = vmul.f32 %v1006_v10, %v8762_v18 }
 0x555   :  { %v1047_v45 = vsel %vm202_vm0, %v1039_v57, 0.0 }
 0x556   :  { %v1011_v26 = vpop.permute.xlu0 %1010  ;;  %v1048_v55 = vadd.f32 %v1047_v45, %v1046_v52 }
 0x557   :  { %v1040_v5 = vmul.f32 %v1011_v26, %v8764_v23 }
 0x558   :  { %v1049_v17 = vrot.slane %v1048_v55, 4 }
 0x559   :  { %v1055_v14 = vsel %vm202_vm0, %v1040_v5, 0.0 }
 0x55a   :  { %v1016_v35 = vpop.permute.xlu0 %1015 }
 0x55b   :  { %v1041_v37 = vmul.f32 %v1016_v35, %v8766_v24 }
 0x55d   :  { %v1056_v49 = vsel %vm202_vm0, %v1041_v37, 0.0  ;;  %v1050_v37 = vadd.f32 %v1049_v17, %v1048_v55 }
 0x55e   :  { %v1057_v50 = vadd.f32 %v1056_v49, %v1055_v14  ;;  %v1021_v62 = vpop.permute.xlu0 %1020 }
 0x55f   :  { %v1042_v18 = vmul.f32 %v1021_v62, %v8768_v25  ;;  %v1051_v62 = vrot.slane %v1050_v37, 2 }
 0x560   :  { %v1058_v10 = vrot.slane %v1057_v50, 4 }
 0x561   :  { %v1064_v24 = vsel %vm202_vm0, %v1042_v18, 0.0 }
 0x562   :  { %v1026_v23 = vpop.permute.xlu0 %1025  ;;  %v1059_v57 = vadd.f32 %v1058_v10, %v1057_v50  ;;  %v1052_v10 = vadd.f32 %v1051_v62, %v1050_v37 }
 0x563   :  { %v1043_v26 = vmul.f32 %v1026_v23, %v8776_v28 }
 0x564   :  { %v1060_v22 = vrot.slane %v1059_v57, 2 }
 0x565   :  { %v1065_v15 = vsel %vm202_vm0, %v1043_v26, 0.0 }
 0x566   :  { %v1066_v5 = vadd.f32 %v1065_v15, %v1064_v24  ;;  %v1031_v35 = vpop.permute.xlu0 %1030  ;;  %v1061_v23 = vadd.f32 %v1060_v22, %v1059_v57 }
 0x567   :  { %v1044_v49 = vmul.f32 %v1031_v35, %v8778_v29  ;;  %v175_v29 = vld [vmem:[%s11119_s11 + $0x50] sm:$0xff]  ;;  %v1053_v35 = vrot.slane %v1052_v10, 1 }
 0x568   :  { %v1067_v14 = vrot.slane %v1066_v5, 4  ;;  %v1062_v55 = vrot.slane %v1061_v23, 1 }
 0x569   :  { %v1073_v28 = vsel %vm202_vm0, %v1044_v49, 0.0  ;;  %v1054_v49 = vadd.f32 %v1053_v35, %v1052_v10 }
 0x56a   :  { %v1068_v52 = vadd.f32 %v1067_v14, %v1066_v5  ;;  %v1036_v45 = vpop.permute.xlu0 %1035 }
 0x56b   :  { %v1045_v25 = vmul.f32 %v1036_v45, %v8780_v30  ;;  %v176_v30 = vld [vmem:[%s11119_s11 + $0x58] sm:$0xff]  ;;  %s8571_s11 = smov 32  }
 0x56c   :  { %v1069_v16 = vrot.slane %v1068_v52, 2  ;;  %v9107_v5 = vpack.c.bf16 %v176_v30, %v175_v29 }
 0x56d   :  { %v1074_v18 = vsel %vm202_vm0, %v1045_v25, 0.0 }
 0x56e   :  { %v1075_v26 = vadd.f32 %v1074_v18, %v1073_v28  ;;  %v1070_v50 = vadd.f32 %v1069_v16, %v1068_v52  ;;  %7766 = vmatpush3.bf16.msra.mxu1 %v9107_v5  ;;  %v1063_v16 = vadd.f32 %v1062_v55, %v1061_v23  ;;  %v6929_v28 = vmul.f32 -1.442695, %v8872_v2 }
 0x56f   :  { %7785 = vmatprep.subr.bf16.mxu1 %v11254_v40  ;;  %v11255_v2 = vmov 0.0  }
 0x570   :  { %v1076_v24 = vrot.slane %v1075_v26, 4  ;;  %v1071_v15 = vrot.slane %v1070_v50, 1  ;;  %v1086_v45 = vsel %vm512_vm2, %v1063_v16, %v1054_v49  ;;  %8094 = vpow2.f32 %v6929_v28 }
 0x572   :  { %v1077_v17 = vadd.f32 %v1076_v24, %v1075_v26  ;;  %v1072_v37 = vadd.f32 %v1071_v15, %v1070_v50  ;;  %v1094_v24 = vpop.permute.xlu1 %1093 }
 0x574   :  { %v1078_v14 = vrot.slane %v1077_v17, 2  ;;  %v1087_v25 = vsel %vm514_vm3, %v1072_v37, %v1086_v45 }
 0x576   :  { %v1079_v57 = vadd.f32 %v1078_v14, %v1077_v17 }
 0x578   :  { %v1080_v22 = vrot.slane %v1079_v57, 1 }
 0x57a   :  { %v1081_v52 = vadd.f32 %v1080_v22, %v1079_v57  ;;  %v8095_v18 = vpop.eup %8094 }
 0x57b   :  { %v673_v23 = vadd.f32 1.0, %v8095_v18  ;;  %v11257_v18 = vmov 0  }
 0x57c   :  { %v1088_v62 = vsel %vm516_vm4, %v1081_v52, %v1087_v25 }
 0x57d   :  { %1089 = vrot.lane.b32.xlu0 %v1088_v62, %s8571_s11  ;;  %8096 = vrcp.f32 %v673_v23  ;;  %v9152_v62 = vld [vmem:[%s11256_s2] sm:$0xf] }
 0x57e   :  { %vm590_vm9 = vcmp.gt.s32.totalorder %v9152_v62, 0  ;;  %vm1327_vm11 = vcmp.gt.s32.totalorder %v9152_v62, 1 }
 0x57f   :  { %v1282_v23 = vsel %vm590_vm9, 1, %v11257_v18 }
 0x587   :  { %v8097_v26 = vpop.eup %8096 }
 0x5ef   :  { %v1090_v50 = vpop.permute.xlu0 %1089 }
 0x5f0   :  { %v9116_v10 = vmul.f32 %v8097_v26, %v1090_v50  ;;  %v178_v26 = vld [vmem:[%s11121_s13] sm:$0xff]  ;;  %v179_v50 = vld [vmem:[%s11121_s13 + $0x8] sm:$0xff] }
 0x5f2   :  { %v1096_v55 = vsel %vm202_vm0, %v8756_v6, %v9116_v10  ;;  %v9140_v6 = vld [vmem:[%s11120_s12] ss:$0 sm:$0xff] }
 0x5f3   :  { %v1098_v17 = vsel %vm1097_vm7, %v1096_v55, %v1094_v24  ;;  %v180_v24 = vld [vmem:[%s11121_s13 + $0x10] sm:$0xff]  ;;  %v9168_v55 = vpack.c.bf16 %v179_v50, %v178_v26 }
 0x5f4   :  { %7301 = vmatmul.mubr.msk.f32.vlgmr.msra.gmra.mrb[6].mxu1 %vm1105_vm8, %v1098_v17  ;;  %v181_v17 = vld [vmem:[%s11121_s13 + $0x18] sm:$0xff] }
 0x5f5   :  { %7787 = vmatpush3.bf16.msra.mxu1 %v9044_v27  ;;  %7357 = vmatprep.mubr.msk.f32.mxu1 %vm8566_vm1, %v11255_v2 }
 0x5f6   :  { %7788 = vmatprep.subr.bf16.mxu1 %v11254_v40  ;;  %7769 = vmatpush3.bf16.msra.mxu0 %v9168_v55 }
 0x5f7   :  { %7770 = vmatprep.subr.bf16.mxu0 %v11254_v40 }
 0x5f9   :  { %7790 = vmatpush3.bf16.msra.mxu1 %v9050_v11 }
 0x5fa   :  { %7791 = vmatprep.subr.bf16.mxu1 %v11254_v40 }
 0x5fd   :  { %7793 = vmatpush3.bf16.msra.mxu1 %v9060_v48 }
 0x5fe   :  { %7794 = vmatprep.subr.bf16.mxu1 %v11254_v40 }
 0x601   :  { %7796 = vmatpush3.bf16.msra.mxu1 %v9070_v47 }
 0x602   :  { %7797 = vmatprep.subr.bf16.mxu1 %v11254_v40 }
 0x605   :  { %7799 = vmatpush3.bf16.msra.mxu1 %v9080_v53 }
 0x606   :  { %7800 = vmatprep.subr.bf16.mxu1 %v11254_v40 }
 0x609   :  { %7802 = vmatpush3.bf16.msra.mxu1 %v9107_v5 }
 0x60a   :  { %7821 = vmatprep.subr.bf16.mxu1 %v11254_v40 }
 0x6c7   :  { %v1175_v29 = vpop.f32.mrb[6].mxu1 }
 0x6c8   :  { %v1176_v30 = vadd.f32 %v9140_v6, %v1175_v29  ;;  %v7302_v15 = vpop.f32.mrb[7].mxu1  ;;  %v9174_v29 = vpack.c.bf16 %v181_v17, %v180_v24 }
 0x6c9   :  { %v183_v15 = vld [vmem:[%s11121_s13 + $0x28] sm:$0xff] }
 0x6ca   :  { %8098 = vtanh.f32 %v1176_v30  ;;  %v6934_v14 = vmul.f32 -1.442695, %v1176_v30  ;;  %v182_v30 = vld [vmem:[%s11121_s13 + $0x20] sm:$0xff]  ;;  %7772 = vmatpush3.bf16.msra.mxu0 %v9174_v29 }
 0x6cb   :  { %7773 = vmatprep.subr.bf16.mxu0 %v11254_v40 }
 0x6cc   :  { %8100 = vpow2.f32 %v6934_v14  ;;  %v184_v14 = vld [vmem:[%s11121_s13 + $0x30] sm:$0xff] }
 0x6d4   :  { %v8099_v35 = vpop.eup %8098 }
 0x6d5   :  { %1188 = vrot.lane.b32.xlu0 %v8099_v35, %s8556_s20  ;;  %v9184_v35 = vpack.c.bf16 %v183_v15, %v182_v30 }
 0x6d6   :  { %v8101_v16 = vpop.eup %8100 }
 0x6d7   :  { %v1182_v57 = vadd.f32 1.0, %v8101_v16  ;;  %v185_v16 = vld [vmem:[%s11121_s13 + $0x38] sm:$0xff]  ;;  %7775 = vmatpush3.bf16.msra.mxu0 %v9184_v35 }
 0x6d8   :  { %7776 = vmatprep.subr.bf16.mxu0 %v11254_v40 }
 0x6d9   :  { %8102 = vrcp.f32 %v1182_v57  ;;  %v9194_v57 = vpack.c.bf16 %v185_v16, %v184_v14 }
 0x6db   :  { %7778 = vmatpush3.bf16.msra.mxu0 %v9194_v57 }
 0x6dc   :  { %7779 = vmatprep.subr.bf16.mxu0 %v11254_v40 }
 0x6e3   :  { %v8103_v37 = vpop.eup %8102 }
 0x6e4   :  { %v1186_v52 = vmul.f32 %v8103_v37, %v8852_v51 }
 0x747   :  { %v1189_v49 = vpop.permute.xlu0 %1188 }
 0x748   :  { %v1191_v22 = vmul.f32 %v8103_v37, %v1189_v49 }
 0x74a   :  { %1193 = vrot.lane.b32.xlu0 %v1191_v22, %s8571_s11 }
 0x7bc   :  { %v1194_v45 = vpop.permute.xlu0 %1193 }
 0x7bd   :  { %v9146_v25 = vadd.f32 %v1194_v45, %v1186_v52  ;;  %v1323_v45 = vpop.permute.xlu1 %1322 }
 0x7bf   :  { %8104 = vtanh.f32 %v9146_v25 }
 0x7c9   :  { %v8105_v28 = vpop.eup %8104 }
 0x7ca   :  { %1199 = vrot.lane.b32.xlu0 %v8105_v28, %s8556_s20 }
 0x7ce   :  { %1319 = vperm.xlu0 %8050, %v1282_v23  }
 0x83c   :  { %v1200_v49 = vpop.permute.xlu0 %1199 }
 0x83d   :  { %v1202_v22 = vmul.f32 %v8103_v37, %v1200_v49 }
 0x83f   :  { %1204 = vrot.lane.b32.xlu0 %v1202_v22, %s8571_s11 }
 0x84d   :  { %v9200_v52 = vpop.permute.xlu0 %1319 }
 0x84e   :  { %vm1321_vm10 = vcmp.eq.s32.totalorder %v9200_v52, 1 }
 0x84f   :  { %v9205_v28 = vsel %vm1321_vm10, %v1202_v22, %v1323_v45 }
 0x850   :  { %1329 = vrot.lane.b32.xlu1 %v9205_v28, %s8571_s11 }
 0x8b1   :  { %v1205_v23 = vpop.permute.xlu0 %1204 }
 0x8b2   :  { %v1207_v26 = vsel %vm202_vm0, %v1205_v23, %v9116_v10 }
 0x8b3   :  { %7320 = vmatmul.mubr.msk.f32.vlgmr.msra.gmra.mrb[10].mxu0 %vm1097_vm7, %v1207_v26 }
 0x8b4   :  { %7781 = vmatpush3.bf16.msra.mxu0 %v8801_v9  ;;  %7330 = vmatprep.mubr.msk.f32.mxu0 %vm8566_vm1, %v11255_v2 }
 0x8b5   :  { %7782 = vmatprep.subr.bf16.mxu0 %v11254_v40 }
 0x8b8   :  { %7784 = vmatpush3.bf16.msra.mxu0 %v8829_v34 }
 0x8b9   :  { %7803 = vmatprep.subr.bf16.mxu0 %v11254_v40 }
 0x8c2   :  { %v1330_v37 = vpop.permute.xlu1 %1329 }
 0x8c3   :  { %7331 = vmatmul.mubr.msk.f32.vlgmr.msra.gmra.mrb[12].mxu0 %vm202_vm0, %v1330_v37 }
 0x8c4   :  { %7805 = vmatpush3.bf16.msra.mxu0 %v9168_v55  ;;  %7376 = vmatprep.mubr.msk.f32.mxu0 %vm8566_vm1, %v11255_v2 }
 0x8c5   :  { %7806 = vmatprep.subr.bf16.mxu0 %v11254_v40 }
 0x8c8   :  { %7808 = vmatpush3.bf16.msra.mxu0 %v9174_v29 }
 0x8c9   :  { %7809 = vmatprep.subr.bf16.mxu0 %v11254_v40 }
 0x8cc   :  { %7811 = vmatpush3.bf16.msra.mxu0 %v9184_v35 }
 0x8cd   :  { %7812 = vmatprep.subr.bf16.mxu0 %v11254_v40 }
 0x8d0   :  { %7814 = vmatpush3.bf16.msra.mxu0 %v9194_v57 }
 0x8d1   :  { %7815 = vmatprep.subr.bf16.mxu0 %v11254_v40 }
 0x986   :  { %v9229_v10 = vpop.f32.mrb[10].mxu0 }
 0x987   :  { %11258 = vst [vmem:[#allocation40_spill] sm:$0xff] %v9229_v10  ;;  %v7321_v50 = vpop.f32.mrb[11].mxu0 }
 0x996   :  { %v1399_v24 = vpop.f32.mrb[12].mxu0 }
 0x997   :  { %v9232_v17 = vadd.f32 %v8866_v63, %v1399_v24  ;;  %v7332_v30 = vpop.f32.mrb[13].mxu0 }
 0x999   :  { %v1416_v15 = vrot.slane %v9232_v17, %v8869_v0 }
 0x99b   :  { %v1417_v14 = vcombine.high %v1416_v15, %v1416_v15  ;;  %v1424_v16 = vrot.slane %v1416_v15, %v8869_v0 }
 0x99d   :  { %v1431_v49 = vrot.slane %v1417_v14, %v8869_v0  ;;  %v1432_v22 = vcombine.high %v1424_v16, %v1424_v16  ;;  %v1437_v45 = vrot.slane %v1424_v16, %v8880_v8 }
 0x99f   :  { %v1433_v23 = vcombine.high %v1431_v49, %v1431_v49  ;;  %v1455_v26 = vadd.f32 %v1437_v45, %v8883_v12  ;;  %v1454_v37 = vadd.f32 %v1437_v45, %v8885_v13  ;;  %v1445_v63 = vrot.slane %v1432_v22, %v8880_v8 }
 0x9a0   :  { %v1441_v50 = vrot.slane %v1431_v49, %v8880_v8 }
 0x9a1   :  { %v1463_v24 = vmax.f32 %v1455_v26, 0.0  ;;  %v1462_v30 = vmax.f32 %v1454_v37, 0.0  ;;  %v1458_v21 = vadd.f32 %v1445_v63, %v8898_v32  ;;  %v1449_v15 = vrot.slane %v1433_v23, %v8880_v8 }
 0x9a2   :  { %v1456_v14 = vadd.f32 %v1441_v50, %v8891_v20  ;;  %v1457_v7 = vadd.f32 %v1441_v50, %v8889_v19  ;;  %v1459_v49 = vadd.f32 %v1445_v63, %v8896_v31 }
 0x9a3   :  { %v1471_v16 = vmul.f32 %v8903_v33, %v1463_v24  ;;  %v1470_v60 = vmul.f32 %v8903_v33, %v1462_v30  ;;  %v1466_v58 = vmax.f32 %v1458_v21, 0.0  ;;  %v1460_v45 = vadd.f32 %v1449_v15, %v8908_v46 }
 0x9a4   :  { %v1464_v22 = vmax.f32 %v1456_v14, 0.0  ;;  %v1465_v42 = vmax.f32 %v1457_v7, 0.0  ;;  %v1467_v24 = vmax.f32 %v1459_v49, 0.0  ;;  %v1461_v21 = vadd.f32 %v1449_v15, %v8914_v54 }
 0x9a5   :  { %v1481_v26 = vsel %vm202_vm0, %v1471_v16, 0.0  ;;  %v1478_v37 = vsel %vm202_vm0, %v1470_v60, 0.0  ;;  %v1474_v23 = vmul.f32 %v8903_v33, %v1466_v58  ;;  %v1468_v3 = vmax.f32 %v1460_v45, 0.0 }
 0x9a6   :  { %1482 = vadd.xlane.f32.xlu1 %v1481_v26  ;;  %1479 = vadd.xlane.f32.xlu0 %v1478_v37  ;;  %v1472_v50 = vmul.f32 %v8903_v33, %v1464_v22  ;;  %v1473_v63 = vmul.f32 %v8903_v33, %v1465_v42  ;;  %v1475_v16 = vmul.f32 %v8903_v33, %v1467_v24  ;;  %v1469_v45 = vmax.f32 %v1461_v21, 0.0 }
 0x9a7   :  { %v1490_v30 = vsel %vm202_vm0, %v1474_v23, 0.0  ;;  %v1476_v14 = vmul.f32 %v8903_v33, %v1468_v3 }
 0x9a8   :  { %v1484_v7 = vsel %vm202_vm0, %v1472_v50, 0.0  ;;  %v1487_v58 = vsel %vm202_vm0, %v1473_v63, 0.0  ;;  %v1493_v15 = vsel %vm202_vm0, %v1475_v16, 0.0  ;;  %v1477_v22 = vmul.f32 %v8903_v33, %v1469_v45 }
 0x9a9   :  { %v1496_v60 = vsel %vm202_vm0, %v1476_v14, 0.0 }
 0x9aa   :  { %1491 = vadd.xlane.f32.xlu1 %v1490_v30  ;;  %1485 = vadd.xlane.f32.xlu0 %v1484_v7  ;;  %v1499_v42 = vsel %vm202_vm0, %v1477_v22, 0.0 }
 0x9ae   :  { %1488 = vadd.xlane.f32.xlu0 %v1487_v58  ;;  %1497 = vadd.xlane.f32.xlu1 %v1496_v60 }
 0x9b2   :  { %1494 = vadd.xlane.f32.xlu0 %v1493_v15 }
 0x9b6   :  { %1500 = vadd.xlane.f32.xlu0 %v1499_v42 }
 0xa33   :  { %v1483_v3 = vpop.xlane.xlu1 %1482  ;;  %v1480_v49 = vpop.xlane.xlu0 %1479 }
 0xa34   :  { %v1503_v24 = vadd.f32 %v1483_v3, %v8944_v1  ;;  %v1502_v21 = vadd.f32 %v1480_v49, %v8944_v1 }
 0xa36   :  { %v1525_v60 = vrot.slane %v1503_v24, %v8942_v56  ;;  %v1521_v16 = vrot.slane %v1502_v21, %v8939_v61 }
 0xa37   :  { %v1486_v26 = vpop.xlane.xlu0 %1485  ;;  %v1492_v37 = vpop.xlane.xlu1 %1491 }
 0xa38   :  { %v1504_v30 = vadd.f32 %v1486_v26, %v8944_v1  ;;  %v1506_v7 = vadd.f32 %v1492_v37, %v8944_v1  ;;  %v1526_v41 = vsel %vm811_vm5, %v1525_v60, %v1521_v16 }
 0xa3a   :  { %v1530_v45 = vrot.slane %v1504_v30, %v8939_v61  ;;  %v1539_v42 = vrot.slane %v1506_v7, %v8939_v61 }
 0xa3b   :  { %v1489_v23 = vpop.xlane.xlu0 %1488  ;;  %v1498_v33 = vpop.xlane.xlu1 %1497 }
 0xa3c   :  { %v1505_v50 = vadd.f32 %v1489_v23, %v8944_v1  ;;  %v1508_v15 = vadd.f32 %v1498_v33, %v8944_v1 }
 0xa3e   :  { %v1534_v14 = vrot.slane %v1505_v50, %v8942_v56  ;;  %v1548_v23 = vrot.slane %v1508_v15, %v8939_v61 }
 0xa3f   :  { %v1495_v63 = vpop.xlane.xlu0 %1494 }
 0xa40   :  { %v1507_v58 = vadd.f32 %v1495_v63, %v8944_v1  ;;  %v1535_v26 = vsel %vm811_vm5, %v1534_v14, %v1530_v45 }
 0xa41   :  { %v1554_v44 = vsel %vm512_vm2, %v1535_v26, %v1526_v41 }
 0xa42   :  { %v1543_v22 = vrot.slane %v1507_v58, %v8942_v56 }
 0xa43   :  { %v1501_v3 = vpop.xlane.xlu0 %1500 }
 0xa44   :  { %v1509_v49 = vadd.f32 %v1501_v3, %v8944_v1  ;;  %v1544_v37 = vsel %vm811_vm5, %v1543_v22, %v1539_v42 }
 0xa45   :  { %v1555_v10 = vsel %vm514_vm3, %v1544_v37, %v1554_v44 }
 0xa46   :  { %v1552_v63 = vrot.slane %v1509_v49, %v8942_v56 }
 0xa48   :  { %v1553_v33 = vsel %vm811_vm5, %v1552_v63, %v1548_v23 }
 0xa49   :  { %v1556_v39 = vsel %vm516_vm4, %v1553_v33, %v1555_v10 }
 0xa4a   :  { %v1558_v3 = vsel %vm844_vm6, %v1556_v39, -inf }
 0xa4b   :  { %1559 = vmax.xlane.f32.xlu1 %v1558_v3 }
 0xad8   :  { %v1560_v14 = vpop.xlane.xlu1 %1559 }
 0xad9   :  { %v1565_v45 = vrot.slane %v1560_v14, %v8880_v8  ;;  %v1569_v22 = vrot.slane %v1560_v14, %v8974_v4  ;;  %v1573_v42 = vrot.slane %v1560_v14, %v8980_v43  ;;  %v1577_v44 = vrot.slane %v1560_v14, %v8971_v59 }
 0xadb   :  { %v1582_v36 = vsub.f32 %v1502_v21, %v1565_v45  ;;  %v1583_v60 = vsub.f32 %v1503_v24, %v1565_v45  ;;  %v1585_v16 = vsub.f32 %v1505_v50, %v1569_v22  ;;  %v1584_v41 = vsub.f32 %v1504_v30, %v1569_v22 }
 0xadc   :  { %v1587_v37 = vsub.f32 %v1507_v58, %v1573_v42  ;;  %v1586_v39 = vsub.f32 %v1506_v7, %v1573_v42  ;;  %v1589_v33 = vsub.f32 %v1509_v49, %v1577_v44  ;;  %v1588_v38 = vsub.f32 %v1508_v15, %v1577_v44 }
 0xadd   :  { %v1590_v26 = vmul.f32 1.442695, %v1582_v36  ;;  %v1592_v23 = vmul.f32 1.442695, %v1583_v60  ;;  %v1596_v10 = vmul.f32 1.442695, %v1585_v16 }
 0xade   :  { %v1594_v63 = vmul.f32 1.442695, %v1584_v41  ;;  %v1600_v3 = vmul.f32 1.442695, %v1587_v37  ;;  %v1598_v1 = vmul.f32 1.442695, %v1586_v39 }
 0xadf   :  { %8106 = vpow2.f32 %v1590_v26  ;;  %v1604_v24 = vmul.f32 1.442695, %v1589_v33  ;;  %v1602_v50 = vmul.f32 1.442695, %v1588_v38 }
 0xae0   :  { %8108 = vpow2.f32 %v1592_v23 }
 0xae1   :  { %8110 = vpow2.f32 %v1596_v10 }
 0xae2   :  { %8112 = vpow2.f32 %v1594_v63 }
 0xae3   :  { %8114 = vpow2.f32 %v1600_v3 }
 0xae4   :  { %8116 = vpow2.f32 %v1598_v1 }
 0xae5   :  { %8118 = vpow2.f32 %v1604_v24 }
 0xae6   :  { %8120 = vpow2.f32 %v1602_v50 }
 0xae9   :  { %v8107_v36 = vpop.eup %8106 }
 0xaea   :  { %v8109_v21 = vpop.eup %8108  ;;  %1615 = vperm.xlu0 %8050, %v8107_v36  }
 0xaeb   :  { %1618 = vperm.xlu1 %8051, %v8109_v21   ;;  %v8111_v30 = vpop.eup %8110 }
 0xaec   :  { %v8113_v7 = vpop.eup %8112 }
 0xaed   :  { %v8115_v58 = vpop.eup %8114 }
 0xaee   :  { %1624 = vperm.xlu0 %8050, %v8111_v30   ;;  %v8117_v49 = vpop.eup %8116 }
 0xaef   :  { %1621 = vperm.xlu1 %8051, %v8113_v7   ;;  %v8119_v15 = vpop.eup %8118 }
 0xaf0   :  { %v8121_v14 = vpop.eup %8120 }
 0xaf2   :  { %1630 = vperm.xlu0 %8050, %v8115_v58  }
 0xaf3   :  { %1627 = vperm.xlu1 %8051, %v8117_v49  }
 0xaf6   :  { %1636 = vperm.xlu0 %8050, %v8119_v15  }
 0xaf7   :  { %1633 = vperm.xlu1 %8051, %v8121_v14  }
 0xb69   :  { %v1616_v1 = vpop.permute.xlu0 %1615 }
 0xb6a   :  { %v1619_v38 = vpop.permute.xlu1 %1618  ;;  %v1641_v44 = vrot.slane %v1616_v1, %v8939_v61 }
 0xb6b   :  { %v1645_v23 = vrot.slane %v1619_v38, %v8942_v56 }
 0xb6d   :  { %v1625_v45 = vpop.permute.xlu0 %1624  ;;  %v1646_v24 = vsel %vm811_vm5, %v1645_v23, %v1641_v44 }
 0xb6e   :  { %v1622_v22 = vpop.permute.xlu1 %1621  ;;  %v1654_v60 = vrot.slane %v1625_v45, %v8942_v56 }
 0xb6f   :  { %v1650_v42 = vrot.slane %v1622_v22, %v8939_v61 }
 0xb71   :  { %v1631_v16 = vpop.permute.xlu0 %1630  ;;  %v1655_v10 = vsel %vm811_vm5, %v1654_v60, %v1650_v42 }
 0xb72   :  { %v1628_v41 = vpop.permute.xlu1 %1627  ;;  %v1663_v26 = vrot.slane %v1631_v16, %v8942_v56  ;;  %v1674_v45 = vsel %vm512_vm2, %v1655_v10, %v1646_v24  ;;  %v9340_v24 = vld [vmem:[#allocation3 + $0x8] sm:$0xff] }
 0xb73   :  { %v1659_v37 = vrot.slane %v1628_v41, %v8939_v61 }
 0xb75   :  { %v1637_v39 = vpop.permute.xlu0 %1636  ;;  %v1664_v3 = vsel %vm811_vm5, %v1663_v26, %v1659_v37 }
 0xb76   :  { %v1634_v63 = vpop.permute.xlu1 %1633  ;;  %v1672_v33 = vrot.slane %v1637_v39, %v8942_v56  ;;  %v1675_v1 = vsel %vm514_vm3, %v1664_v3, %v1674_v45 }
 0xb77   :  { %v1668_v50 = vrot.slane %v1634_v63, %v8939_v61 }
 0xb79   :  { %v1673_v38 = vsel %vm811_vm5, %v1672_v33, %v1668_v50  ;;  %v9343_v50 = vld [vmem:[#allocation3 + $0x10] sm:$0xff] }
 0xb7a   :  { %v1676_v22 = vsel %vm516_vm4, %v1673_v38, %v1675_v1  ;;  %11267 = vst [vmem:[#allocation49_spill] sm:$0xff] %v9343_v50 }
 0xb7b   :  { %v1678_v42 = vsel %vm844_vm6, %v1676_v22, 0.0 }
 0xb7c   :  { %1679 = vadd.xlane.f32.xlu1 %v1678_v42 }
 0xb8d   :  { %1806 = vrot.lane.b32.xlu1 %v9205_v28, %s8570_s22 }
 0xc09   :  { %v1680_v60 = vpop.xlane.xlu1 %1679 }
 0xc0a   :  { %8122 = vrcp.f32 %v1680_v60 }
 0xc14   :  { %v8123_v16 = vpop.eup %8122 }
 0xc15   :  { %v1686_v41 = vrot.slane %v8123_v16, %v8880_v8  ;;  %v1690_v44 = vrot.slane %v8123_v16, %v8974_v4  ;;  %v1694_v39 = vrot.slane %v8123_v16, %v8980_v43  ;;  %v1698_v63 = vrot.slane %v8123_v16, %v8971_v59 }
 0xc17   :  { %v9313_v26 = vmul.f32 %v8107_v36, %v1686_v41  ;;  %v9316_v23 = vmul.f32 %v8109_v21, %v1686_v41  ;;  %v9320_v37 = vmul.f32 %v8113_v7, %v1690_v44  ;;  %v9323_v10 = vmul.f32 %v8111_v30, %v1690_v44 }
 0xc18   :  { %v9327_v36 = vmul.f32 %v8117_v49, %v1694_v39  ;;  %v9330_v21 = vmul.f32 %v8115_v58, %v1694_v39  ;;  %v9334_v7 = vmul.f32 %v8121_v14, %v1698_v63  ;;  %v9337_v30 = vmul.f32 %v8119_v15, %v1698_v63  ;;  %v9346_v14 = vld [vmem:[#allocation3] sm:$0xff]  ;;  %v9349_v15 = vld [vmem:[#allocation3 + $0x18] sm:$0xff] }
 0xc19   :  { %11259 = vst [vmem:[#allocation41_spill] sm:$0xff] %v9313_v26  ;;  %1713 = vperm.xlu0 %8050, %v9313_v26   ;;  %11260 = vst [vmem:[#allocation42_spill] sm:$0xff] %v9316_v23 }
 0xc1a   :  { %11261 = vst [vmem:[#allocation43_spill] sm:$0xff] %v9320_v37  ;;  %11262 = vst [vmem:[#allocation44_spill] sm:$0xff] %v9323_v10 }
 0xc1b   :  { %11263 = vst [vmem:[#allocation45_spill] sm:$0xff] %v9327_v36  ;;  %11264 = vst [vmem:[#allocation46_spill] sm:$0xff] %v9330_v21 }
 0xc1c   :  { %11265 = vst [vmem:[#allocation47_spill] sm:$0xff] %v9334_v7  ;;  %11266 = vst [vmem:[#allocation48_spill] sm:$0xff] %v9337_v30 }
 0xc1d   :  { %1718 = vperm.xlu0 %8050, %v9316_v23   ;;  %11268 = vst [vmem:[#allocation50_spill] sm:$0xff] %v9346_v14  ;;  %11269 = vst [vmem:[#allocation51_spill] sm:$0xff] %v9349_v15  ;;  %v9367_v23 = vld [vmem:[#allocation3 + $0x38] sm:$0xff] }
 0xc1e   :  { %11273 = vst [vmem:[#allocation55_spill] sm:$0xff] %v9367_v23 }
 0xc21   :  { %1723 = vperm.xlu0 %8050, %v9320_v37  }
 0xc25   :  { %1728 = vperm.xlu0 %8050, %v9323_v10  }
 0xc29   :  { %1733 = vperm.xlu0 %8050, %v9327_v36  }
 0xc2d   :  { %1738 = vperm.xlu0 %8050, %v9330_v21  }
 0xc31   :  { %1743 = vperm.xlu0 %8050, %v9334_v7   ;;  %v9359_v7 = vld [vmem:[#allocation3 + $0x28] sm:$0xff] }
 0xc32   :  { %11271 = vst [vmem:[#allocation53_spill] sm:$0xff] %v9359_v7 }
 0xc35   :  { %1748 = vperm.xlu0 %8050, %v9337_v30  }
 0xc98   :  { %v1714_v33 = vpop.permute.xlu0 %1713 }
 0xc99   :  { %v1751_v1 = vmul.f32 %v9346_v14, %v1714_v33 }
 0xc9b   :  { %v1759_v39 = vsel %vm202_vm0, %v1751_v1, 0.0 }
 0xc9c   :  { %v1719_v3 = vpop.permute.xlu0 %1718 }
 0xc9d   :  { %v1752_v58 = vmul.f32 %v9340_v24, %v1719_v3  ;;  %v9356_v3 = vld [vmem:[#allocation3 + $0x20] sm:$0xff] }
 0xc9e   :  { %11270 = vst [vmem:[#allocation52_spill] sm:$0xff] %v9356_v3 }
 0xc9f   :  { %v1760_v42 = vsel %vm202_vm0, %v1752_v58, 0.0 }
 0xca0   :  { %v1724_v49 = vpop.permute.xlu0 %1723  ;;  %v1761_v63 = vadd.f32 %v1760_v42, %v1759_v39  ;;  %v9364_v39 = vld [vmem:[#allocation3 + $0x30] sm:$0xff] }
 0xca1   :  { %v1753_v45 = vmul.f32 %v9343_v50, %v1724_v49  ;;  %11272 = vst [vmem:[#allocation54_spill] sm:$0xff] %v9364_v39 }
 0xca2   :  { %v1762_v58 = vrot.slane %v1761_v63, 4 }
 0xca3   :  { %v1768_v60 = vsel %vm202_vm0, %v1753_v45, 0.0 }
 0xca4   :  { %v1729_v38 = vpop.permute.xlu0 %1728  ;;  %v1763_v1 = vadd.f32 %v1762_v58, %v1761_v63 }
 0xca5   :  { %v1754_v22 = vmul.f32 %v9349_v15, %v1729_v38 }
 0xca6   :  { %v1764_v26 = vrot.slane %v1763_v1, 2 }
 0xca7   :  { %v1769_v16 = vsel %vm202_vm0, %v1754_v22, 0.0 }
 0xca8   :  { %v1770_v41 = vadd.f32 %v1769_v16, %v1768_v60  ;;  %v1734_v44 = vpop.permute.xlu0 %1733 }
 0xca9   :  { %v1755_v49 = vmul.f32 %v9356_v3, %v1734_v44 }
 0xcaa   :  { %v1771_v33 = vrot.slane %v1770_v41, 4 }
 0xcab   :  { %v1777_v45 = vsel %vm202_vm0, %v1755_v49, 0.0 }
 0xcac   :  { %v1739_v30 = vpop.permute.xlu0 %1738  ;;  %v1772_v60 = vadd.f32 %v1771_v33, %v1770_v41 }
 0xcad   :  { %v1756_v38 = vmul.f32 %v9359_v7, %v1739_v30 }
 0xcae   :  { %v1773_v36 = vrot.slane %v1772_v60, 2 }
 0xcaf   :  { %v1778_v22 = vsel %vm202_vm0, %v1756_v38, 0.0 }
 0xcb0   :  { %v1779_v16 = vadd.f32 %v1778_v22, %v1777_v45  ;;  %v1744_v21 = vpop.permute.xlu0 %1743  ;;  %v1774_v33 = vadd.f32 %v1773_v36, %v1772_v60  ;;  %v1765_v45 = vadd.f32 %v1764_v26, %v1763_v1  ;;  %v6938_v26 = vmul.f32 -1.442695, %v9232_v17 }
 0xcb1   :  { %v1757_v44 = vmul.f32 %v9364_v39, %v1744_v21 }
 0xcb2   :  { %v1780_v42 = vrot.slane %v1779_v16, 4  ;;  %v1775_v7 = vrot.slane %v1774_v33, 1  ;;  %8124 = vpow2.f32 %v6938_v26 }
 0xcb3   :  { %v1786_v38 = vsel %vm202_vm0, %v1757_v44, 0.0 }
 0xcb4   :  { %v1781_v10 = vadd.f32 %v1780_v42, %v1779_v16  ;;  %v1749_v37 = vpop.permute.xlu0 %1748  ;;  %v1766_v16 = vrot.slane %v1765_v45, 1  ;;  %v1776_v3 = vadd.f32 %v1775_v7, %v1774_v33 }
 0xcb5   :  { %v1758_v30 = vmul.f32 %v9367_v23, %v1749_v37 }
 0xcb6   :  { %v1782_v49 = vrot.slane %v1781_v10, 2  ;;  %v1767_v37 = vadd.f32 %v1766_v16, %v1765_v45 }
 0xcb7   :  { %v1787_v41 = vsel %vm202_vm0, %v1758_v30, 0.0 }
 0xcb8   :  { %v1788_v63 = vadd.f32 %v1787_v41, %v1786_v38  ;;  %v1783_v58 = vadd.f32 %v1782_v49, %v1781_v10  ;;  %v1799_v44 = vsel %vm512_vm2, %v1776_v3, %v1767_v37  ;;  %v1807_v49 = vpop.permute.xlu1 %1806  ;;  %v8324_v38 = vld [vmem:[#allocation6 + $0x4] sm:$0xf] }
 0xcba   :  { %v1789_v22 = vrot.slane %v1788_v63, 4  ;;  %v1784_v39 = vrot.slane %v1783_v58, 1 }
 0xcbc   :  { %v1790_v21 = vadd.f32 %v1789_v22, %v1788_v63  ;;  %v1785_v50 = vadd.f32 %v1784_v39, %v1783_v58  ;;  %v8125_v10 = vpop.eup %8124 }
 0xcbd   :  { %v1406_v60 = vadd.f32 1.0, %v8125_v10 }
 0xcbe   :  { %v1791_v42 = vrot.slane %v1790_v21, 2  ;;  %v1800_v30 = vsel %vm514_vm3, %v1785_v50, %v1799_v44 }
 0xcbf   :  { %8126 = vrcp.f32 %v1406_v60 }
 0xcc0   :  { %v1792_v15 = vadd.f32 %v1791_v42, %v1790_v21  ;;  %v9399_v21 = vsel %vm590_vm9, 1.0, %v11255_v2  ;;  %v9412_v42 = vsel %vm1321_vm10, %v9146_v25, %v8852_v51 }
 0xcc1   :  { %11274 = vst [vmem:[#allocation56_spill] sm:$0xff] %v9399_v21 }
 0xcc2   :  { %v1793_v23 = vrot.slane %v1792_v15, 1 }
 0xcc4   :  { %v1794_v14 = vadd.f32 %v1793_v23, %v1792_v15 }
 0xcc6   :  { %v1801_v36 = vsel %vm516_vm4, %v1794_v14, %v1800_v30 }
 0xcc7   :  { %1802 = vrot.lane.b32.xlu0 %v1801_v36, %s8571_s11  ;;  %v1987_v36 = vsel %vm1327_vm11, 1, %v11257_v18 }
 0xcc9   :  { %v8127_v7 = vpop.eup %8126 }
 0xd39   :  { %v1803_v1 = vpop.permute.xlu0 %1802 }
 0xd3a   :  { %v1805_v39 = vmul.f32 %v8127_v7, %v1803_v1 }
 0xd3c   :  { %v1809_v23 = vsel %vm202_vm0, %v8324_v38, %v1805_v39 }
 0xd3d   :  { %v1810_v15 = vsel %vm1097_vm7, %v1809_v23, %v1807_v49  ;;  %v9455_v49 = vld [vmem:[%s11118_s10] ss:$0 sm:$0xff] }
 0xd3e   :  { %7358 = vmatmul.mubr.msk.f32.vlgmr.msra.gmra.mrb[8].mxu1 %vm1105_vm8, %v1810_v15 }
 0xd3f   :  { %7823 = vmatpush3.bf16.msra.mxu1 %v9044_v27  ;;  %7414 = vmatprep.mubr.msk.f32.mxu1 %vm8566_vm1, %v11255_v2 }
 0xd40   :  { %7824 = vmatprep.subr.bf16.mxu1 %v11254_v40 }
 0xd43   :  { %7826 = vmatpush3.bf16.msra.mxu1 %v9050_v11 }
 0xd44   :  { %7827 = vmatprep.subr.bf16.mxu1 %v11254_v40 }
 0xd47   :  { %7829 = vmatpush3.bf16.msra.mxu1 %v9060_v48 }
 0xd48   :  { %7830 = vmatprep.subr.bf16.mxu1 %v11254_v40 }
 0xd4b   :  { %7832 = vmatpush3.bf16.msra.mxu1 %v9070_v47 }
 0xd4c   :  { %7833 = vmatprep.subr.bf16.mxu1 %v11254_v40 }
 0xd4f   :  { %7835 = vmatpush3.bf16.msra.mxu1 %v9080_v53 }
 0xd50   :  { %7836 = vmatprep.subr.bf16.mxu1 %v11254_v40 }
 0xd53   :  { %7838 = vmatpush3.bf16.msra.mxu1 %v9107_v5 }
 0xd54   :  { %7857 = vmatprep.subr.bf16.mxu1 %v11254_v40 }
 0xe11   :  { %v1880_v17 = vpop.f32.mrb[8].mxu1 }
 0xe12   :  { %v1881_v50 = vadd.f32 %v9140_v6, %v1880_v17  ;;  %v7359_v14 = vpop.f32.mrb[9].mxu1  ;;  %v9404_v6 = vsel %vm1327_vm11, 1.0, %v11255_v2 }
 0xe13   :  { %11275 = vst [vmem:[#allocation57_spill] sm:$0xff] %v9404_v6 }
 0xe14   :  { %8128 = vtanh.f32 %v1881_v50  ;;  %v6940_v41 = vmul.f32 -1.442695, %v1881_v50 }
 0xe16   :  { %8130 = vpow2.f32 %v6940_v41 }
 0xe1e   :  { %v8129_v3 = vpop.eup %8128 }
 0xe1f   :  { %1893 = vrot.lane.b32.xlu0 %v8129_v3, %s8556_s20 }
 0xe20   :  { %v8131_v33 = vpop.eup %8130 }
 0xe21   :  { %v1887_v63 = vadd.f32 1.0, %v8131_v33 }
 0xe23   :  { %8132 = vrcp.f32 %v1887_v63 }
 0xe2d   :  { %v8133_v58 = vpop.eup %8132 }
 0xe2e   :  { %v1891_v37 = vmul.f32 %v8133_v58, %v9412_v42 }
 0xe91   :  { %v1894_v45 = vpop.permute.xlu0 %1893 }
 0xe92   :  { %v1896_v22 = vmul.f32 %v8133_v58, %v1894_v45 }
 0xe94   :  { %1898 = vrot.lane.b32.xlu0 %v1896_v22, %s8571_s11 }
 0xf06   :  { %v1899_v44 = vpop.permute.xlu0 %1898 }
 0xf07   :  { %v9415_v30 = vadd.f32 %v1899_v44, %v1891_v37 }
 0xf09   :  { %8134 = vtanh.f32 %v9415_v30 }
 0xf13   :  { %v8135_v62 = vpop.eup %8134 }
 0xf14   :  { %1904 = vrot.lane.b32.xlu0 %v8135_v62, %s8556_s20 }
 0xf18   :  { %2024 = vperm.xlu0 %8050, %v1987_v36  }
 0xf86   :  { %v1905_v26 = vpop.permute.xlu0 %1904 }
 0xf87   :  { %v1907_v10 = vmul.f32 %v8133_v58, %v1905_v26 }
 0xf89   :  { %1909 = vrot.lane.b32.xlu1 %v1907_v10, %s8571_s11 }
 0xf97   :  { %v9421_v52 = vpop.permute.xlu0 %2024 }
 0xf98   :  { %vm2026_vm12 = vcmp.eq.s32.totalorder %v9421_v52, 1 }
 0xf99   :  { %v9427_v51 = vsel %vm2026_vm12, %v1907_v10, %v9205_v28 }
 0xf9a   :  { %2031 = vrot.lane.b32.xlu0 %v9427_v51, %s8571_s11 }
 0xffb   :  { %v1910_v25 = vpop.permute.xlu1 %1909 }
 0xffc   :  { %v1912_v60 = vsel %vm202_vm0, %v1910_v25, %v1805_v39  ;;  %v9476_v25 = vld [vmem:[%s11113_s5] ss:$0 sm:$0xff] }
 0xffd   :  { %7377 = vmatmul.mubr.msk.f32.vlgmr.msra.gmra.mrb[14].mxu0 %vm1097_vm7, %v1912_v60 }
 0xffe   :  { %7817 = vmatpush3.bf16.msra.mxu0 %v8801_v9  ;;  %7387 = vmatprep.mubr.msk.f32.mxu0 %vm8566_vm1, %v11255_v2 }
 0xfff   :  { %7818 = vmatprep.subr.bf16.mxu0 %v11254_v40 }
0x1002   :  { %7820 = vmatpush3.bf16.msra.mxu0 %v8829_v34 }
0x1003   :  { %7839 = vmatprep.subr.bf16.mxu0 %v11254_v40 }
0x100c   :  { %v2032_v28 = vpop.permute.xlu0 %2031 }
0x100d   :  { %7388 = vmatmul.mubr.msk.f32.vlgmr.msra.gmra.mrb[16].mxu0 %vm202_vm0, %v2032_v28 }
0x100e   :  { %7841 = vmatpush3.bf16.msra.mxu0 %v9168_v55  ;;  %7433 = vmatprep.mubr.msk.f32.mxu0 %vm8566_vm1, %v11255_v2 }
0x100f   :  { %7842 = vmatprep.subr.bf16.mxu0 %v11254_v40 }
0x1012   :  { %7844 = vmatpush3.bf16.msra.mxu0 %v9174_v29 }
0x1013   :  { %7845 = vmatprep.subr.bf16.mxu0 %v11254_v40 }
0x1016   :  { %7847 = vmatpush3.bf16.msra.mxu0 %v9184_v35 }
0x1017   :  { %7848 = vmatprep.subr.bf16.mxu0 %v11254_v40 }
0x101a   :  { %7850 = vmatpush3.bf16.msra.mxu0 %v9194_v57 }
0x101b   :  { %7851 = vmatprep.subr.bf16.mxu0 %v11254_v40 }
0x10d0   :  { %v9450_v7 = vpop.f32.mrb[14].mxu0 }
0x10d1   :  { %11276 = vst [vmem:[#allocation58_spill] sm:$0xff] %v9450_v7  ;;  %v7378_v1 = vpop.f32.mrb[15].mxu0 }
0x10e0   :  { %v2101_v39 = vpop.f32.mrb[16].mxu0 }
0x10e1   :  { %v9458_v38 = vadd.f32 %v9455_v49, %v2101_v39  ;;  %v7389_v23 = vpop.f32.mrb[17].mxu0 }
0x10e3   :  { %v2118_v15 = vrot.slane %v9458_v38, %v8869_v0 }
0x10e5   :  { %v2119_v17 = vcombine.high %v2118_v15, %v2118_v15  ;;  %v2126_v50 = vrot.slane %v2118_v15, %v8869_v0 }
0x10e7   :  { %v2133_v14 = vrot.slane %v2119_v17, %v8869_v0  ;;  %v2134_v3 = vcombine.high %v2126_v50, %v2126_v50  ;;  %v2139_v41 = vrot.slane %v2126_v50, %v8880_v8 }
0x10e9   :  { %v2135_v33 = vcombine.high %v2133_v14, %v2133_v14  ;;  %v2157_v63 = vadd.f32 %v2139_v41, %v8883_v12  ;;  %v2156_v58 = vadd.f32 %v2139_v41, %v8885_v13  ;;  %v2147_v45 = vrot.slane %v2134_v3, %v8880_v8 }
0x10ea   :  { %v2143_v22 = vrot.slane %v2133_v14, %v8880_v8 }
0x10eb   :  { %v2165_v37 = vmax.f32 %v2157_v63, 0.0  ;;  %v2164_v44 = vmax.f32 %v2156_v58, 0.0  ;;  %v2160_v62 = vadd.f32 %v2147_v45, %v8898_v32  ;;  %v2151_v36 = vrot.slane %v2135_v33, %v8880_v8 }
0x10ec   :  { %v2158_v26 = vadd.f32 %v2143_v22, %v8891_v20  ;;  %v2159_v10 = vadd.f32 %v2143_v22, %v8889_v19  ;;  %v2161_v17 = vadd.f32 %v2147_v45, %v8896_v31 }
0x10ed   :  { %v2173_v60 = vmul.f32 %v9476_v25, %v2165_v37  ;;  %v2172_v28 = vmul.f32 %v9476_v25, %v2164_v44  ;;  %v2168_v1 = vmax.f32 %v2160_v62, 0.0  ;;  %v2162_v39 = vadd.f32 %v2151_v36, %v8908_v46 }
0x10ee   :  { %v2166_v23 = vmax.f32 %v2158_v26, 0.0  ;;  %v2167_v15 = vmax.f32 %v2159_v10, 0.0  ;;  %v2169_v63 = vmax.f32 %v2161_v17, 0.0  ;;  %v2163_v58 = vadd.f32 %v2151_v36, %v8914_v54 }
0x10ef   :  { %v2183_v50 = vsel %vm202_vm0, %v2173_v60, 0.0  ;;  %v2180_v14 = vsel %vm202_vm0, %v2172_v28, 0.0  ;;  %v2176_v3 = vmul.f32 %v9476_v25, %v2168_v1  ;;  %v2170_v41 = vmax.f32 %v2162_v39, 0.0 }
0x10f0   :  { %2184 = vadd.xlane.f32.xlu0 %v2183_v50  ;;  %2181 = vadd.xlane.f32.xlu1 %v2180_v14  ;;  %v2174_v33 = vmul.f32 %v9476_v25, %v2166_v23  ;;  %v2175_v45 = vmul.f32 %v9476_v25, %v2167_v15  ;;  %v2177_v10 = vmul.f32 %v9476_v25, %v2169_v63  ;;  %v2171_v60 = vmax.f32 %v2163_v58, 0.0  ;;  %v11277_v14 = vld [vmem:[#allocation31_spill] sm:$0xff] }
0x10f1   :  { %v2192_v22 = vsel %vm202_vm0, %v2176_v3, 0.0  ;;  %v2178_v44 = vmul.f32 %v9476_v25, %v2170_v41 }
0x10f2   :  { %v2186_v37 = vsel %vm202_vm0, %v2174_v33, 0.0  ;;  %v2189_v62 = vsel %vm202_vm0, %v2175_v45, 0.0  ;;  %v2195_v36 = vsel %vm202_vm0, %v2177_v10, 0.0  ;;  %v2179_v28 = vmul.f32 %v9476_v25, %v2171_v60 }
0x10f3   :  { %v2198_v26 = vsel %vm202_vm0, %v2178_v44, 0.0 }
0x10f4   :  { %2193 = vadd.xlane.f32.xlu1 %v2192_v22  ;;  %2187 = vadd.xlane.f32.xlu0 %v2186_v37  ;;  %v2201_v1 = vsel %vm202_vm0, %v2179_v28, 0.0 }
0x10f8   :  { %2190 = vadd.xlane.f32.xlu0 %v2189_v62  ;;  %2199 = vadd.xlane.f32.xlu1 %v2198_v26 }
0x10fc   :  { %2196 = vadd.xlane.f32.xlu0 %v2195_v36 }
0x1100   :  { %2202 = vadd.xlane.f32.xlu0 %v2201_v1 }
0x117d   :  { %v2185_v39 = vpop.xlane.xlu0 %2184  ;;  %v2182_v23 = vpop.xlane.xlu1 %2181 }
0x117e   :  { %v2205_v41 = vadd.f32 %v2185_v39, %v11277_v14  ;;  %v2204_v33 = vadd.f32 %v2182_v23, %v11277_v14 }
0x1180   :  { %v2227_v62 = vrot.slane %v2205_v41, %v8942_v56  ;;  %v2223_v26 = vrot.slane %v2204_v33, %v8939_v61 }
0x1181   :  { %v2188_v15 = vpop.xlane.xlu0 %2187  ;;  %v2194_v17 = vpop.xlane.xlu1 %2193 }
0x1182   :  { %v2206_v63 = vadd.f32 %v2188_v15, %v11277_v14  ;;  %v2208_v58 = vadd.f32 %v2194_v17, %v11277_v14 }
0x1184   :  { %v2232_v10 = vrot.slane %v2206_v63, %v8939_v61  ;;  %v2241_v28 = vrot.slane %v2208_v58, %v8939_v61 }
0x1185   :  { %v2191_v50 = vpop.xlane.xlu0 %2190  ;;  %v2200_v22 = vpop.xlane.xlu1 %2199 }
0x1186   :  { %v2207_v3 = vadd.f32 %v2191_v50, %v11277_v14  ;;  %v2210_v60 = vadd.f32 %v2200_v22, %v11277_v14 }
0x1188   :  { %v2236_v45 = vrot.slane %v2207_v3, %v8942_v56  ;;  %v2250_v17 = vrot.slane %v2210_v60, %v8939_v61 }
0x1189   :  { %v2197_v37 = vpop.xlane.xlu0 %2196 }
0x118a   :  { %v2209_v44 = vadd.f32 %v2197_v37, %v11277_v14  ;;  %v2237_v23 = vsel %vm811_vm5, %v2236_v45, %v2232_v10  ;;  %v2228_v37 = vsel %vm811_vm5, %v2227_v62, %v2223_v26 }
0x118b   :  { %v2256_v16 = vsel %vm512_vm2, %v2237_v23, %v2228_v37 }
0x118c   :  { %v2245_v36 = vrot.slane %v2209_v44, %v8942_v56 }
0x118d   :  { %v2203_v1 = vpop.xlane.xlu0 %2202 }
0x118e   :  { %v2211_v39 = vadd.f32 %v2203_v1, %v11277_v14  ;;  %v2246_v15 = vsel %vm811_vm5, %v2245_v36, %v2241_v28 }
0x118f   :  { %v2257_v7 = vsel %vm514_vm3, %v2246_v15, %v2256_v16 }
0x1190   :  { %v2254_v50 = vrot.slane %v2211_v39, %v8942_v56 }
0x1192   :  { %v2255_v22 = vsel %vm811_vm5, %v2254_v50, %v2250_v17 }
0x1193   :  { %v2258_v21 = vsel %vm516_vm4, %v2255_v22, %v2257_v7 }
0x1194   :  { %v2260_v1 = vsel %vm844_vm6, %v2258_v21, -inf }
0x1195   :  { %2261 = vmax.xlane.f32.xlu1 %v2260_v1 }
0x1222   :  { %v2262_v45 = vpop.xlane.xlu1 %2261 }
0x1223   :  { %v2267_v10 = vrot.slane %v2262_v45, %v8880_v8  ;;  %v2271_v36 = vrot.slane %v2262_v45, %v8974_v4  ;;  %v2275_v28 = vrot.slane %v2262_v45, %v8980_v43  ;;  %v2279_v62 = vrot.slane %v2262_v45, %v8971_v59 }
0x1225   :  { %v2284_v26 = vsub.f32 %v2204_v33, %v2267_v10  ;;  %v2285_v23 = vsub.f32 %v2205_v41, %v2267_v10  ;;  %v2286_v37 = vsub.f32 %v2206_v63, %v2271_v36  ;;  %v2288_v17 = vsub.f32 %v2208_v58, %v2275_v28 }
0x1226   :  { %v2290_v15 = vsub.f32 %v2210_v60, %v2279_v62  ;;  %v2287_v21 = vsub.f32 %v2207_v3, %v2271_v36  ;;  %v2289_v6 = vsub.f32 %v2209_v44, %v2275_v28  ;;  %v2291_v54 = vsub.f32 %v2211_v39, %v2279_v62 }
0x1227   :  { %v2292_v50 = vmul.f32 1.442695, %v2284_v26  ;;  %v2294_v16 = vmul.f32 1.442695, %v2285_v23  ;;  %v2300_v7 = vmul.f32 1.442695, %v2288_v17 }
0x1228   :  { %v2296_v22 = vmul.f32 1.442695, %v2286_v37  ;;  %v2304_v1 = vmul.f32 1.442695, %v2290_v15  ;;  %v2298_v14 = vmul.f32 1.442695, %v2287_v21 }
0x1229   :  { %8136 = vpow2.f32 %v2292_v50  ;;  %v2302_v33 = vmul.f32 1.442695, %v2289_v6  ;;  %v2306_v58 = vmul.f32 1.442695, %v2291_v54 }
0x122a   :  { %8138 = vpow2.f32 %v2294_v16 }
0x122b   :  { %8140 = vpow2.f32 %v2300_v7 }
0x122c   :  { %8142 = vpow2.f32 %v2296_v22 }
0x122d   :  { %8144 = vpow2.f32 %v2304_v1 }
0x122e   :  { %8146 = vpow2.f32 %v2298_v14 }
0x122f   :  { %8148 = vpow2.f32 %v2302_v33 }
0x1230   :  { %8150 = vpow2.f32 %v2306_v58 }
0x1233   :  { %v8137_v41 = vpop.eup %8136 }
0x1234   :  { %v8139_v63 = vpop.eup %8138  ;;  %2317 = vperm.xlu0 %8050, %v8137_v41  }
0x1235   :  { %2320 = vperm.xlu1 %8051, %v8139_v63   ;;  %v8141_v60 = vpop.eup %8140 }
0x1236   :  { %v8143_v45 = vpop.eup %8142 }
0x1237   :  { %v8145_v3 = vpop.eup %8144 }
0x1238   :  { %2329 = vperm.xlu0 %8050, %v8141_v60   ;;  %v8147_v10 = vpop.eup %8146 }
0x1239   :  { %2323 = vperm.xlu1 %8051, %v8143_v45   ;;  %v8149_v44 = vpop.eup %8148 }
0x123a   :  { %v8151_v39 = vpop.eup %8150 }
0x123c   :  { %2335 = vperm.xlu0 %8050, %v8145_v3  }
0x123d   :  { %2326 = vperm.xlu1 %8051, %v8147_v10  }
0x1241   :  { %2332 = vperm.xlu1 %8051, %v8149_v44  }
0x1245   :  { %2338 = vperm.xlu1 %8051, %v8151_v39  }
0x12b3   :  { %v2318_v14 = vpop.permute.xlu0 %2317 }
0x12b4   :  { %v2321_v6 = vpop.permute.xlu1 %2320  ;;  %v2343_v37 = vrot.slane %v2318_v14, %v8939_v61 }
0x12b5   :  { %v2347_v23 = vrot.slane %v2321_v6, %v8942_v56 }
0x12b7   :  { %v2330_v28 = vpop.permute.xlu0 %2329  ;;  %v2348_v1 = vsel %vm811_vm5, %v2347_v23, %v2343_v37 }
0x12b8   :  { %v2324_v36 = vpop.permute.xlu1 %2323  ;;  %v2361_v16 = vrot.slane %v2330_v28, %v8939_v61 }
0x12b9   :  { %v2352_v17 = vrot.slane %v2324_v36, %v8939_v61 }
0x12bb   :  { %v2336_v15 = vpop.permute.xlu0 %2335 }
0x12bc   :  { %v2327_v62 = vpop.permute.xlu1 %2326  ;;  %v2370_v33 = vrot.slane %v2336_v15, %v8939_v61 }
0x12bd   :  { %v2356_v54 = vrot.slane %v2327_v62, %v8942_v56 }
0x12bf   :  { %v2357_v7 = vsel %vm811_vm5, %v2356_v54, %v2352_v17 }
0x12c0   :  { %v2333_v26 = vpop.permute.xlu1 %2332  ;;  %v2376_v6 = vsel %vm512_vm2, %v2357_v7, %v2348_v1 }
0x12c1   :  { %v2365_v50 = vrot.slane %v2333_v26, %v8942_v56 }
0x12c3   :  { %v2366_v21 = vsel %vm811_vm5, %v2365_v50, %v2361_v16 }
0x12c4   :  { %v2339_v22 = vpop.permute.xlu1 %2338  ;;  %v2377_v36 = vsel %vm514_vm3, %v2366_v21, %v2376_v6 }
0x12c5   :  { %v2374_v58 = vrot.slane %v2339_v22, %v8942_v56 }
0x12c7   :  { %v2375_v14 = vsel %vm811_vm5, %v2374_v58, %v2370_v33  ;;  %v11286_v58 = vld [vmem:[#allocation50_spill] sm:$0xff] }
0x12c8   :  { %v2378_v28 = vsel %vm516_vm4, %v2375_v14, %v2377_v36  ;;  %v11287_v14 = vld [vmem:[#allocation49_spill] sm:$0xff] }
0x12c9   :  { %v2380_v62 = vsel %vm844_vm6, %v2378_v28, 0.0 }
0x12ca   :  { %2381 = vadd.xlane.f32.xlu0 %v2380_v62  ;;  %v11288_v62 = vld [vmem:[#allocation51_spill] sm:$0xff] }
0x1357   :  { %v2382_v54 = vpop.xlane.xlu0 %2381 }
0x1358   :  { %8152 = vrcp.f32 %v2382_v54 }
0x1362   :  { %v8153_v26 = vpop.eup %8152 }
0x1363   :  { %v2400_v23 = vrot.slane %v8153_v26, %v8971_v59  ;;  %v2388_v37 = vrot.slane %v8153_v26, %v8880_v8  ;;  %v2392_v15 = vrot.slane %v8153_v26, %v8974_v4 }
0x1365   :  { %v9543_v17 = vmul.f32 %v8151_v39, %v2400_v23  ;;  %v9545_v50 = vmul.f32 %v8137_v41, %v2388_v37  ;;  %v9549_v16 = vmul.f32 %v8139_v63, %v2388_v37  ;;  %v9553_v7 = vmul.f32 %v8143_v45, %v2392_v15 }
0x1366   :  { %v9556_v21 = vmul.f32 %v8147_v10, %v2392_v15  ;;  %v2396_v39 = vrot.slane %v8153_v26, %v8980_v43  ;;  %v9566_v22 = vmul.f32 %v8145_v3, %v2400_v23 }
0x1367   :  { %11278 = vst [vmem:[#allocation59_spill] sm:$0xff] %v9543_v17  ;;  %11279 = vst [vmem:[#allocation60_spill] sm:$0xff] %v9545_v50  ;;  %2450 = vperm.xlu0 %8050, %v9543_v17   ;;  %2415 = vperm.xlu1 %8051, %v9545_v50  }
0x1368   :  { %11280 = vst [vmem:[#allocation61_spill] sm:$0xff] %v9549_v16  ;;  %11281 = vst [vmem:[#allocation62_spill] sm:$0xff] %v9553_v7  ;;  %v9560_v41 = vmul.f32 %v8141_v60, %v2396_v39  ;;  %v9563_v63 = vmul.f32 %v8149_v44, %v2396_v39 }
0x1369   :  { %11282 = vst [vmem:[#allocation63_spill] sm:$0xff] %v9556_v21  ;;  %11285 = vst [vmem:[#allocation66_spill] sm:$0xff] %v9566_v22 }
0x136a   :  { %11283 = vst [vmem:[#allocation64_spill] sm:$0xff] %v9560_v41  ;;  %11284 = vst [vmem:[#allocation65_spill] sm:$0xff] %v9563_v63 }
0x136b   :  { %2420 = vperm.xlu1 %8051, %v9549_v16  }
0x136f   :  { %2425 = vperm.xlu1 %8051, %v9553_v7  }
0x1373   :  { %2430 = vperm.xlu1 %8051, %v9556_v21  }
0x1377   :  { %2435 = vperm.xlu1 %8051, %v9560_v41  }
0x137b   :  { %2440 = vperm.xlu1 %8051, %v9563_v63  }
0x137f   :  { %2445 = vperm.xlu1 %8051, %v9566_v22  }
0x13e6   :  { %v2416_v45 = vpop.permute.xlu1 %2415 }
0x13e7   :  { %v2453_v6 = vmul.f32 %v11286_v58, %v2416_v45  ;;  %v2451_v58 = vpop.permute.xlu0 %2450 }
0x13e9   :  { %v2461_v44 = vsel %vm202_vm0, %v2453_v6, 0.0  ;;  %v11291_v6 = vld [vmem:[#allocation55_spill] sm:$0xff] }
0x13ea   :  { %v2421_v1 = vpop.permute.xlu1 %2420  ;;  %v2460_v41 = vmul.f32 %v11291_v6, %v2451_v58 }
0x13eb   :  { %v2454_v10 = vmul.f32 %v9340_v24, %v2421_v1  ;;  %v11289_v1 = vld [vmem:[#allocation52_spill] sm:$0xff] }
0x13ed   :  { %v2462_v60 = vsel %vm202_vm0, %v2454_v10, 0.0 }
0x13ee   :  { %v2426_v33 = vpop.permute.xlu1 %2425  ;;  %v2463_v3 = vadd.f32 %v2462_v60, %v2461_v44 }
0x13ef   :  { %v2455_v36 = vmul.f32 %v11287_v14, %v2426_v33  ;;  %v11290_v33 = vld [vmem:[#allocation53_spill] sm:$0xff] }
0x13f0   :  { %v2464_v24 = vrot.slane %v2463_v3, 4 }
0x13f1   :  { %v2470_v26 = vsel %vm202_vm0, %v2455_v36, 0.0 }
0x13f2   :  { %v2431_v28 = vpop.permute.xlu1 %2430  ;;  %v2465_v17 = vadd.f32 %v2464_v24, %v2463_v3 }
0x13f3   :  { %v2456_v54 = vmul.f32 %v11288_v62, %v2431_v28 }
0x13f5   :  { %v2471_v23 = vsel %vm202_vm0, %v2456_v54, 0.0  ;;  %v11292_v54 = vld [vmem:[#allocation54_spill] sm:$0xff] }
0x13f6   :  { %v2472_v37 = vadd.f32 %v2471_v23, %v2470_v26  ;;  %v2436_v15 = vpop.permute.xlu1 %2435  ;;  %v2466_v23 = vrot.slane %v2465_v17, 2 }
0x13f7   :  { %v2457_v45 = vmul.f32 %v11289_v1, %v2436_v15  ;;  %v2489_v15 = vsel %vm202_vm0, %v2460_v41, 0.0 }
0x13f8   :  { %v2473_v39 = vrot.slane %v2472_v37, 4  ;;  %v2467_v24 = vadd.f32 %v2466_v23, %v2465_v17 }
0x13f9   :  { %v2479_v60 = vsel %vm202_vm0, %v2457_v45, 0.0 }
0x13fa   :  { %v2474_v10 = vadd.f32 %v2473_v39, %v2472_v37  ;;  %v2441_v22 = vpop.permute.xlu1 %2440  ;;  %v2468_v6 = vrot.slane %v2467_v24, 1 }
0x13fb   :  { %v2458_v14 = vmul.f32 %v11290_v33, %v2441_v22 }
0x13fc   :  { %v2475_v28 = vrot.slane %v2474_v10, 2  ;;  %v2469_v21 = vadd.f32 %v2468_v6, %v2467_v24 }
0x13fd   :  { %v2480_v36 = vsel %vm202_vm0, %v2458_v14, 0.0 }
0x13fe   :  { %v2481_v44 = vadd.f32 %v2480_v36, %v2479_v60  ;;  %v2446_v62 = vpop.permute.xlu1 %2445  ;;  %v2476_v39 = vadd.f32 %v2475_v28, %v2474_v10  ;;  %v6944_v10 = vmul.f32 -1.442695, %v9458_v38 }
0x13ff   :  { %v2459_v26 = vmul.f32 %v11292_v54, %v2446_v62 }
0x1400   :  { %v2482_v63 = vrot.slane %v2481_v44, 4  ;;  %v2477_v45 = vrot.slane %v2476_v39, 1  ;;  %8154 = vpow2.f32 %v6944_v10 }
0x1401   :  { %v2488_v37 = vsel %vm202_vm0, %v2459_v26, 0.0 }
0x1402   :  { %v2483_v22 = vadd.f32 %v2482_v63, %v2481_v44  ;;  %v2490_v3 = vadd.f32 %v2489_v15, %v2488_v37  ;;  %v2478_v7 = vadd.f32 %v2477_v45, %v2476_v39  ;;  %v8327_v37 = vld [vmem:[#allocation6 + $0x8] sm:$0xf] }
0x1404   :  { %v2484_v1 = vrot.slane %v2483_v22, 2  ;;  %v2491_v58 = vrot.slane %v2490_v3, 4  ;;  %v2501_v26 = vsel %vm512_vm2, %v2478_v7, %v2469_v21 }
0x1406   :  { %v2485_v33 = vadd.f32 %v2484_v1, %v2483_v22  ;;  %v2492_v14 = vadd.f32 %v2491_v58, %v2490_v3  ;;  %v9612_v22 = vld [vmem:[%s11120_s12] ss:$0 sm:$0xff] }
0x1408   :  { %v2493_v60 = vrot.slane %v2492_v14, 2  ;;  %v2486_v36 = vrot.slane %v2485_v33, 1 }
0x140a   :  { %v2494_v62 = vadd.f32 %v2493_v60, %v2492_v14  ;;  %v2487_v54 = vadd.f32 %v2486_v36, %v2485_v33  ;;  %v8155_v28 = vpop.eup %8154  ;;  %v9621_v36 = vsel %vm2026_vm12, %v9415_v30, %v9412_v42 }
0x140b   :  { %v2108_v44 = vadd.f32 1.0, %v8155_v28 }
0x140c   :  { %v2495_v50 = vrot.slane %v2494_v62, 1  ;;  %v2502_v63 = vsel %vm514_vm3, %v2487_v54, %v2501_v26  ;;  %v9630_v26 = vld [vmem:[%s11256_s2] sm:$0xf] }
0x140d   :  { %8156 = vrcp.f32 %v2108_v44  ;;  %vm2029_vm13 = vcmp.gt.s32.totalorder %v9630_v26, 2  ;;  %vm2731_vm15 = vcmp.gt.s32.totalorder %v9630_v26, 3 }
0x140e   :  { %v2496_v41 = vadd.f32 %v2495_v50, %v2494_v62  ;;  %v2689_v42 = vsel %vm2029_vm13, 1, %v11257_v18 }
0x1410   :  { %v2503_v17 = vsel %vm516_vm4, %v2496_v41, %v2502_v63 }
0x1411   :  { %2504 = vrot.lane.b32.xlu1 %v2503_v17, %s8571_s11 }
0x1415   :  { %2508 = vrot.lane.b32.xlu1 %v9427_v51, %s8570_s22 }
0x1417   :  { %v8157_v23 = vpop.eup %8156 }
0x1483   :  { %v2505_v15 = vpop.permute.xlu1 %2504 }
0x1484   :  { %v2507_v50 = vmul.f32 %v8157_v23, %v2505_v15  ;;  %v11293_v15 = vld [vmem:[#allocation24_spill] sm:$0xff] }
0x1486   :  { %v2511_v7 = vsel %vm202_vm0, %v8327_v37, %v2507_v50 }
0x1487   :  { %v2509_v21 = vpop.permute.xlu1 %2508 }
0x1488   :  { %v2512_v39 = vsel %vm1097_vm7, %v2511_v7, %v2509_v21 }
0x1489   :  { %7415 = vmatmul.mubr.msk.f32.vlgmr.msra.gmra.mrb[10].mxu1 %vm1105_vm8, %v2512_v39 }
0x148a   :  { %7859 = vmatpush3.bf16.msra.mxu1 %v9044_v27  ;;  %7471 = vmatprep.mubr.msk.f32.mxu1 %vm8566_vm1, %v11255_v2 }
0x148b   :  { %7860 = vmatprep.subr.bf16.mxu1 %v11254_v40 }
0x148e   :  { %7862 = vmatpush3.bf16.msra.mxu1 %v9050_v11 }
0x148f   :  { %7863 = vmatprep.subr.bf16.mxu1 %v11254_v40 }
0x1492   :  { %7865 = vmatpush3.bf16.msra.mxu1 %v9060_v48 }
0x1493   :  { %7866 = vmatprep.subr.bf16.mxu1 %v11254_v40 }
0x1496   :  { %7868 = vmatpush3.bf16.msra.mxu1 %v9070_v47 }
0x1497   :  { %7869 = vmatprep.subr.bf16.mxu1 %v11254_v40 }
0x149a   :  { %7871 = vmatpush3.bf16.msra.mxu1 %v9080_v53 }
0x149b   :  { %7872 = vmatprep.subr.bf16.mxu1 %v11254_v40 }
0x149e   :  { %7874 = vmatpush3.bf16.msra.mxu1 %v9107_v5 }
0x149f   :  { %7893 = vmatprep.subr.bf16.mxu1 %v11254_v40 }
0x155c   :  { %v2582_v38 = vpop.f32.mrb[10].mxu1 }
0x155d   :  { %v2583_v3 = vadd.f32 %v9612_v22, %v2582_v38  ;;  %v7416_v24 = vpop.f32.mrb[11].mxu1 }
0x155f   :  { %8158 = vtanh.f32 %v2583_v3  ;;  %v6946_v58 = vmul.f32 -1.442695, %v2583_v3 }
0x1561   :  { %8160 = vpow2.f32 %v6946_v58 }
0x1569   :  { %v8159_v1 = vpop.eup %8158 }
0x156a   :  { %2595 = vrot.lane.b32.xlu1 %v8159_v1, %s8556_s20 }
0x156b   :  { %v8161_v45 = vpop.eup %8160 }
0x156c   :  { %v2589_v33 = vadd.f32 1.0, %v8161_v45 }
0x156e   :  { %8162 = vrcp.f32 %v2589_v33 }
0x1578   :  { %v8163_v14 = vpop.eup %8162 }
0x1579   :  { %v2593_v62 = vmul.f32 %v8163_v14, %v9621_v36 }
0x15dc   :  { %v2596_v6 = vpop.permute.xlu1 %2595 }
0x15dd   :  { %v2598_v60 = vmul.f32 %v8163_v14, %v2596_v6 }
0x15df   :  { %2600 = vrot.lane.b32.xlu1 %v2598_v60, %s8571_s11 }
0x1651   :  { %v2601_v54 = vpop.permute.xlu1 %2600 }
0x1652   :  { %v9624_v41 = vadd.f32 %v2601_v54, %v2593_v62 }
0x1654   :  { %8164 = vtanh.f32 %v9624_v41 }
0x165e   :  { %v8165_v63 = vpop.eup %8164 }
0x165f   :  { %2606 = vrot.lane.b32.xlu1 %v8165_v63, %s8556_s20 }
0x1663   :  { %2726 = vperm.xlu1 %8051, %v2689_v42  }
0x16d1   :  { %v2607_v30 = vpop.permute.xlu1 %2606 }
0x16d2   :  { %v2609_v52 = vmul.f32 %v8163_v14, %v2607_v30 }
0x16d4   :  { %2611 = vrot.lane.b32.xlu0 %v2609_v52, %s8571_s11 }
0x16e2   :  { %v9638_v17 = vpop.permute.xlu1 %2726 }
0x16e3   :  { %vm2728_vm14 = vcmp.eq.s32.totalorder %v9638_v17, 1 }
0x16e4   :  { %v9644_v10 = vsel %vm2728_vm14, %v2609_v52, %v9427_v51 }
0x16e5   :  { %2733 = vrot.lane.b32.xlu1 %v9644_v10, %s8571_s11 }
0x1746   :  { %v2612_v28 = vpop.permute.xlu0 %2611 }
0x1747   :  { %v2614_v44 = vsel %vm202_vm0, %v2612_v28, %v2507_v50 }
0x1748   :  { %7434 = vmatmul.mubr.msk.f32.vlgmr.msra.gmra.mrb[18].mxu0 %vm1097_vm7, %v2614_v44 }
0x1749   :  { %7853 = vmatpush3.bf16.msra.mxu0 %v8801_v9  ;;  %7444 = vmatprep.mubr.msk.f32.mxu0 %vm8566_vm1, %v11255_v2 }
0x174a   :  { %7854 = vmatprep.subr.bf16.mxu0 %v11254_v40 }
0x174d   :  { %7856 = vmatpush3.bf16.msra.mxu0 %v8829_v34 }
0x174e   :  { %7875 = vmatprep.subr.bf16.mxu0 %v11254_v40 }
0x1757   :  { %v2734_v51 = vpop.permute.xlu1 %2733 }
0x1758   :  { %7445 = vmatmul.mubr.msk.f32.vlgmr.msra.gmra.mrb[20].mxu0 %vm202_vm0, %v2734_v51 }
0x1759   :  { %7877 = vmatpush3.bf16.msra.mxu0 %v9168_v55  ;;  %7490 = vmatprep.mubr.msk.f32.mxu0 %vm8566_vm1, %v11255_v2 }
0x175a   :  { %7878 = vmatprep.subr.bf16.mxu0 %v11254_v40 }
0x175d   :  { %7880 = vmatpush3.bf16.msra.mxu0 %v9174_v29 }
0x175e   :  { %7881 = vmatprep.subr.bf16.mxu0 %v11254_v40 }
0x1761   :  { %7883 = vmatpush3.bf16.msra.mxu0 %v9184_v35 }
0x1762   :  { %7884 = vmatprep.subr.bf16.mxu0 %v11254_v40 }
0x1765   :  { %7886 = vmatpush3.bf16.msra.mxu0 %v9194_v57 }
0x1766   :  { %7887 = vmatprep.subr.bf16.mxu0 %v11254_v40 }
0x181b   :  { %v2684_v23 = vpop.f32.mrb[18].mxu0 }
0x181c   :  { %v9668_v50 = vadd.f32 %v2684_v23, %v11293_v15  ;;  %v7435_v37 = vpop.f32.mrb[19].mxu0 }
0x181e   :  { %11294 = vst [vmem:[#allocation50_spill] sm:$0xff] %v9668_v50 }
0x182b   :  { %v2803_v7 = vpop.f32.mrb[20].mxu0 }
0x182c   :  { %v9671_v21 = vadd.f32 %v9455_v49, %v2803_v7  ;;  %v7446_v39 = vpop.f32.mrb[21].mxu0 }
0x182e   :  { %v2820_v38 = vrot.slane %v9671_v21, %v8869_v0 }
0x1830   :  { %v2821_v3 = vcombine.high %v2820_v38, %v2820_v38  ;;  %v2828_v24 = vrot.slane %v2820_v38, %v8869_v0 }
0x1832   :  { %v2835_v1 = vrot.slane %v2821_v3, %v8869_v0  ;;  %v2836_v58 = vcombine.high %v2828_v24, %v2828_v24  ;;  %v2841_v45 = vrot.slane %v2828_v24, %v8880_v8 }
0x1834   :  { %v2837_v33 = vcombine.high %v2835_v1, %v2835_v1  ;;  %v2859_v14 = vadd.f32 %v2841_v45, %v8883_v12  ;;  %v2858_v6 = vadd.f32 %v2841_v45, %v8885_v13  ;;  %v2849_v49 = vrot.slane %v2836_v58, %v8880_v8 }
0x1835   :  { %v2845_v60 = vrot.slane %v2835_v1, %v8880_v8 }
0x1836   :  { %v2867_v62 = vmax.f32 %v2859_v14, 0.0  ;;  %v2866_v54 = vmax.f32 %v2858_v6, 0.0  ;;  %v2862_v63 = vadd.f32 %v2849_v49, %v8898_v32  ;;  %v2853_v42 = vrot.slane %v2837_v33, %v8880_v8  ;;  %v11295_v33 = vld [vmem:[#allocation29_spill] sm:$0xff] }
0x1837   :  { %v2860_v30 = vadd.f32 %v2845_v60, %v8891_v20  ;;  %v2861_v52 = vadd.f32 %v2845_v60, %v8889_v19  ;;  %v2863_v39 = vadd.f32 %v2849_v49, %v8896_v31 }
0x1838   :  { %v2875_v28 = vmul.f32 %v9476_v25, %v2867_v62  ;;  %v2874_v44 = vmul.f32 %v9476_v25, %v2866_v54  ;;  %v2870_v51 = vmax.f32 %v2862_v63, 0.0  ;;  %v2864_v23 = vadd.f32 %v2853_v42, %v8908_v46 }
0x1839   :  { %v2868_v37 = vmax.f32 %v2860_v30, 0.0  ;;  %v2869_v7 = vmax.f32 %v2861_v52, 0.0  ;;  %v2871_v45 = vmax.f32 %v2863_v39, 0.0  ;;  %v2865_v14 = vadd.f32 %v2853_v42, %v11295_v33 }
0x183a   :  { %v2885_v38 = vsel %vm202_vm0, %v2875_v28, 0.0  ;;  %v2882_v3 = vsel %vm202_vm0, %v2874_v44, 0.0  ;;  %v2878_v24 = vmul.f32 %v9476_v25, %v2870_v51  ;;  %v2872_v1 = vmax.f32 %v2864_v23, 0.0 }
0x183b   :  { %2886 = vadd.xlane.f32.xlu1 %v2885_v38  ;;  %2883 = vadd.xlane.f32.xlu0 %v2882_v3  ;;  %v2876_v58 = vmul.f32 %v9476_v25, %v2868_v37  ;;  %v2877_v49 = vmul.f32 %v9476_v25, %v2869_v7  ;;  %v2879_v30 = vmul.f32 %v9476_v25, %v2871_v45  ;;  %v2873_v52 = vmax.f32 %v2865_v14, 0.0  ;;  %v11296_v38 = vld [vmem:[#allocation31_spill] sm:$0xff] }
0x183c   :  { %v2894_v6 = vsel %vm202_vm0, %v2878_v24, 0.0  ;;  %v2880_v62 = vmul.f32 %v9476_v25, %v2872_v1 }
0x183d   :  { %v2888_v60 = vsel %vm202_vm0, %v2876_v58, 0.0  ;;  %v2891_v54 = vsel %vm202_vm0, %v2877_v49, 0.0  ;;  %v2897_v42 = vsel %vm202_vm0, %v2879_v30, 0.0  ;;  %v2881_v28 = vmul.f32 %v9476_v25, %v2873_v52 }
0x183e   :  { %v2900_v63 = vsel %vm202_vm0, %v2880_v62, 0.0 }
0x183f   :  { %2895 = vadd.xlane.f32.xlu1 %v2894_v6  ;;  %2889 = vadd.xlane.f32.xlu0 %v2888_v60  ;;  %v2903_v44 = vsel %vm202_vm0, %v2881_v28, 0.0 }
0x1843   :  { %2892 = vadd.xlane.f32.xlu0 %v2891_v54  ;;  %2901 = vadd.xlane.f32.xlu1 %v2900_v63 }
0x1847   :  { %2898 = vadd.xlane.f32.xlu0 %v2897_v42 }
0x184b   :  { %2904 = vadd.xlane.f32.xlu0 %v2903_v44 }
0x18c8   :  { %v2887_v51 = vpop.xlane.xlu1 %2886  ;;  %v2884_v23 = vpop.xlane.xlu0 %2883 }
0x18c9   :  { %v2907_v24 = vadd.f32 %v2887_v51, %v11296_v38  ;;  %v2906_v1 = vadd.f32 %v2884_v23, %v11296_v38 }
0x18cb   :  { %v2929_v49 = vrot.slane %v2907_v24, %v8942_v56  ;;  %v2925_v62 = vrot.slane %v2906_v1, %v8939_v61 }
0x18cc   :  { %v2890_v37 = vpop.xlane.xlu0 %2889  ;;  %v2896_v7 = vpop.xlane.xlu1 %2895 }
0x18cd   :  { %v2908_v58 = vadd.f32 %v2890_v37, %v11296_v38  ;;  %v2910_v45 = vadd.f32 %v2896_v7, %v11296_v38  ;;  %v2930_v23 = vsel %vm811_vm5, %v2929_v49, %v2925_v62 }
0x18cf   :  { %v2934_v54 = vrot.slane %v2908_v58, %v8939_v61  ;;  %v2943_v52 = vrot.slane %v2910_v45, %v8939_v61 }
0x18d0   :  { %v2893_v39 = vpop.xlane.xlu0 %2892  ;;  %v2902_v25 = vpop.xlane.xlu1 %2901 }
0x18d1   :  { %v2909_v3 = vadd.f32 %v2893_v39, %v11296_v38  ;;  %v2912_v63 = vadd.f32 %v2902_v25, %v11296_v38 }
0x18d3   :  { %v2938_v6 = vrot.slane %v2909_v3, %v8942_v56  ;;  %v2952_v37 = vrot.slane %v2912_v63, %v8939_v61 }
0x18d4   :  { %v2899_v14 = vpop.xlane.xlu0 %2898 }
0x18d5   :  { %v2911_v60 = vadd.f32 %v2899_v14, %v11296_v38  ;;  %v2939_v28 = vsel %vm811_vm5, %v2938_v6, %v2934_v54 }
0x18d6   :  { %v2958_v39 = vsel %vm512_vm2, %v2939_v28, %v2930_v23 }
0x18d7   :  { %v2947_v30 = vrot.slane %v2911_v60, %v8942_v56 }
0x18d8   :  { %v2905_v42 = vpop.xlane.xlu0 %2904 }
0x18d9   :  { %v2913_v44 = vadd.f32 %v2905_v42, %v11296_v38  ;;  %v2948_v51 = vsel %vm811_vm5, %v2947_v30, %v2943_v52 }
0x18da   :  { %v2959_v14 = vsel %vm514_vm3, %v2948_v51, %v2958_v39 }
0x18db   :  { %v2956_v7 = vrot.slane %v2913_v44, %v8942_v56 }
0x18dd   :  { %v2957_v25 = vsel %vm811_vm5, %v2956_v7, %v2952_v37 }
0x18de   :  { %v2960_v16 = vsel %vm516_vm4, %v2957_v25, %v2959_v14 }
0x18df   :  { %v2962_v6 = vsel %vm844_vm6, %v2960_v16, -inf }
0x18e0   :  { %2963 = vmax.xlane.f32.xlu1 %v2962_v6 }
0x196d   :  { %v2964_v54 = vpop.xlane.xlu1 %2963 }
0x196e   :  { %v2969_v30 = vrot.slane %v2964_v54, %v8880_v8  ;;  %v2973_v49 = vrot.slane %v2964_v54, %v8974_v4  ;;  %v2977_v62 = vrot.slane %v2964_v54, %v8980_v43  ;;  %v2981_v51 = vrot.slane %v2964_v54, %v8971_v59 }
0x1970   :  { %v2986_v52 = vsub.f32 %v2906_v1, %v2969_v30  ;;  %v2987_v42 = vsub.f32 %v2907_v24, %v2969_v30  ;;  %v2989_v50 = vsub.f32 %v2909_v3, %v2973_v49  ;;  %v2988_v28 = vsub.f32 %v2908_v58, %v2973_v49 }
0x1971   :  { %v2991_v7 = vsub.f32 %v2911_v60, %v2977_v62  ;;  %v2990_v16 = vsub.f32 %v2910_v45, %v2977_v62  ;;  %v2993_v14 = vsub.f32 %v2913_v44, %v2981_v51  ;;  %v2992_v38 = vsub.f32 %v2912_v63, %v2981_v51 }
0x1972   :  { %v2994_v23 = vmul.f32 1.442695, %v2986_v52  ;;  %v2996_v37 = vmul.f32 1.442695, %v2987_v42  ;;  %v3000_v39 = vmul.f32 1.442695, %v2989_v50 }
0x1973   :  { %v2998_v25 = vmul.f32 1.442695, %v2988_v28  ;;  %v3004_v6 = vmul.f32 1.442695, %v2991_v7  ;;  %v3002_v33 = vmul.f32 1.442695, %v2990_v16 }
0x1974   :  { %8166 = vpow2.f32 %v2994_v23  ;;  %v3008_v24 = vmul.f32 1.442695, %v2993_v14  ;;  %v3006_v3 = vmul.f32 1.442695, %v2992_v38 }
0x1975   :  { %8168 = vpow2.f32 %v2996_v37 }
0x1976   :  { %8170 = vpow2.f32 %v3000_v39 }
0x1977   :  { %8172 = vpow2.f32 %v2998_v25 }
0x1978   :  { %8174 = vpow2.f32 %v3004_v6 }
0x1979   :  { %8176 = vpow2.f32 %v3002_v33 }
0x197a   :  { %8178 = vpow2.f32 %v3008_v24 }
0x197b   :  { %8180 = vpow2.f32 %v3006_v3 }
0x197e   :  { %v8167_v1 = vpop.eup %8166 }
0x197f   :  { %v8169_v58 = vpop.eup %8168  ;;  %3019 = vperm.xlu0 %8050, %v8167_v1  }
0x1980   :  { %3022 = vperm.xlu1 %8051, %v8169_v58   ;;  %v8171_v50 = vpop.eup %8170 }
0x1981   :  { %v8173_v45 = vpop.eup %8172 }
0x1982   :  { %v8175_v60 = vpop.eup %8174 }
0x1983   :  { %3028 = vperm.xlu0 %8050, %v8171_v50   ;;  %v8177_v44 = vpop.eup %8176 }
0x1984   :  { %3025 = vperm.xlu1 %8051, %v8173_v45   ;;  %v8179_v63 = vpop.eup %8178 }
0x1985   :  { %v8181_v54 = vpop.eup %8180 }
0x1987   :  { %3034 = vperm.xlu0 %8050, %v8175_v60  }
0x1988   :  { %3031 = vperm.xlu1 %8051, %v8177_v44  }
0x198b   :  { %3040 = vperm.xlu0 %8050, %v8179_v63  }
0x198c   :  { %3037 = vperm.xlu1 %8051, %v8181_v54  }
0x19fe   :  { %v3020_v33 = vpop.permute.xlu0 %3019 }
0x19ff   :  { %v3023_v38 = vpop.permute.xlu1 %3022  ;;  %v3045_v51 = vrot.slane %v3020_v33, %v8939_v61 }
0x1a00   :  { %v3049_v37 = vrot.slane %v3023_v38, %v8942_v56 }
0x1a02   :  { %v3029_v30 = vpop.permute.xlu0 %3028  ;;  %v3050_v24 = vsel %vm811_vm5, %v3049_v37, %v3045_v51 }
0x1a03   :  { %v3026_v49 = vpop.permute.xlu1 %3025  ;;  %v3058_v52 = vrot.slane %v3029_v30, %v8942_v56 }
0x1a04   :  { %v3054_v62 = vrot.slane %v3026_v49, %v8939_v61 }
0x1a06   :  { %v3035_v42 = vpop.permute.xlu0 %3034  ;;  %v3059_v39 = vsel %vm811_vm5, %v3058_v52, %v3054_v62 }
0x1a07   :  { %v3032_v28 = vpop.permute.xlu1 %3031  ;;  %v3067_v23 = vrot.slane %v3035_v42, %v8942_v56  ;;  %v3078_v30 = vsel %vm512_vm2, %v3059_v39, %v3050_v24  ;;  %v9779_v24 = vld [vmem:[#allocation3 + $0x8] sm:$0xff] }
0x1a08   :  { %v3063_v7 = vrot.slane %v3032_v28, %v8939_v61 }
0x1a0a   :  { %v3041_v16 = vpop.permute.xlu0 %3040  ;;  %v3068_v25 = vsel %vm811_vm5, %v3067_v23, %v3063_v7 }
0x1a0b   :  { %v3038_v14 = vpop.permute.xlu1 %3037  ;;  %v3076_v6 = vrot.slane %v3041_v16, %v8942_v56  ;;  %v3079_v33 = vsel %vm514_vm3, %v3068_v25, %v3078_v30 }
0x1a0c   :  { %v3072_v3 = vrot.slane %v3038_v14, %v8939_v61 }
0x1a0e   :  { %v3077_v38 = vsel %vm811_vm5, %v3076_v6, %v3072_v3  ;;  %v9782_v3 = vld [vmem:[#allocation3 + $0x10] sm:$0xff] }
0x1a0f   :  { %v3080_v49 = vsel %vm516_vm4, %v3077_v38, %v3079_v33  ;;  %11305 = vst [vmem:[#allocation68_spill] sm:$0xff] %v9782_v3 }
0x1a10   :  { %v3082_v62 = vsel %vm844_vm6, %v3080_v49, 0.0 }
0x1a11   :  { %3083 = vadd.xlane.f32.xlu1 %v3082_v62 }
0x1a22   :  { %3210 = vrot.lane.b32.xlu1 %v9644_v10, %s8570_s22 }
0x1a9e   :  { %v3084_v52 = vpop.xlane.xlu1 %3083 }
0x1a9f   :  { %8182 = vrcp.f32 %v3084_v52 }
0x1aa9   :  { %v8183_v42 = vpop.eup %8182 }
0x1aaa   :  { %v3090_v28 = vrot.slane %v8183_v42, %v8880_v8  ;;  %v3094_v51 = vrot.slane %v8183_v42, %v8974_v4  ;;  %v3098_v16 = vrot.slane %v8183_v42, %v8980_v43  ;;  %v3102_v25 = vrot.slane %v8183_v42, %v8971_v59 }
0x1aac   :  { %v9752_v23 = vmul.f32 %v8167_v1, %v3090_v28  ;;  %v9755_v37 = vmul.f32 %v8169_v58, %v3090_v28  ;;  %v9759_v7 = vmul.f32 %v8173_v45, %v3094_v51  ;;  %v9762_v39 = vmul.f32 %v8171_v50, %v3094_v51 }
0x1aad   :  { %v9766_v1 = vmul.f32 %v8177_v44, %v3098_v16  ;;  %v9769_v58 = vmul.f32 %v8175_v60, %v3098_v16  ;;  %v9773_v45 = vmul.f32 %v8181_v54, %v3102_v25  ;;  %v9776_v50 = vmul.f32 %v8179_v63, %v3102_v25  ;;  %v9785_v54 = vld [vmem:[#allocation3] sm:$0xff]  ;;  %v9788_v63 = vld [vmem:[#allocation3 + $0x18] sm:$0xff] }
0x1aae   :  { %11297 = vst [vmem:[#allocation49_spill] sm:$0xff] %v9752_v23  ;;  %3117 = vperm.xlu0 %8050, %v9752_v23   ;;  %11298 = vst [vmem:[#allocation51_spill] sm:$0xff] %v9755_v37  ;;  %v9806_v23 = vld [vmem:[#allocation3 + $0x38] sm:$0xff] }
0x1aaf   :  { %11299 = vst [vmem:[#allocation52_spill] sm:$0xff] %v9759_v7  ;;  %11300 = vst [vmem:[#allocation53_spill] sm:$0xff] %v9762_v39 }
0x1ab0   :  { %11301 = vst [vmem:[#allocation55_spill] sm:$0xff] %v9766_v1  ;;  %11302 = vst [vmem:[#allocation54_spill] sm:$0xff] %v9769_v58 }
0x1ab1   :  { %11303 = vst [vmem:[#allocation24_spill] sm:$0xff] %v9773_v45  ;;  %11304 = vst [vmem:[#allocation67_spill] sm:$0xff] %v9776_v50 }
0x1ab2   :  { %3122 = vperm.xlu0 %8050, %v9755_v37   ;;  %11306 = vst [vmem:[#allocation69_spill] sm:$0xff] %v9785_v54  ;;  %11307 = vst [vmem:[#allocation70_spill] sm:$0xff] %v9788_v63 }
0x1ab3   :  { %11311 = vst [vmem:[#allocation74_spill] sm:$0xff] %v9806_v23 }
0x1ab6   :  { %3127 = vperm.xlu0 %8050, %v9759_v7  }
0x1aba   :  { %3132 = vperm.xlu0 %8050, %v9762_v39  }
0x1abe   :  { %3137 = vperm.xlu0 %8050, %v9766_v1  }
0x1ac2   :  { %3142 = vperm.xlu0 %8050, %v9769_v58  }
0x1ac6   :  { %3147 = vperm.xlu0 %8050, %v9773_v45  }
0x1aca   :  { %3152 = vperm.xlu0 %8050, %v9776_v50   ;;  %v9798_v50 = vld [vmem:[#allocation3 + $0x28] sm:$0xff] }
0x1acb   :  { %11309 = vst [vmem:[#allocation72_spill] sm:$0xff] %v9798_v50 }
0x1b2d   :  { %v3118_v14 = vpop.permute.xlu0 %3117 }
0x1b2e   :  { %v3155_v33 = vmul.f32 %v9785_v54, %v3118_v14 }
0x1b30   :  { %v3163_v16 = vsel %vm202_vm0, %v3155_v33, 0.0 }
0x1b31   :  { %v3123_v6 = vpop.permute.xlu0 %3122 }
0x1b32   :  { %v3156_v60 = vmul.f32 %v9779_v24, %v3123_v6  ;;  %v9795_v6 = vld [vmem:[#allocation3 + $0x20] sm:$0xff] }
0x1b33   :  { %11308 = vst [vmem:[#allocation71_spill] sm:$0xff] %v9795_v6 }
0x1b34   :  { %v3164_v62 = vsel %vm202_vm0, %v3156_v60, 0.0 }
0x1b35   :  { %v3128_v44 = vpop.permute.xlu0 %3127  ;;  %v3165_v25 = vadd.f32 %v3164_v62, %v3163_v16  ;;  %v9803_v16 = vld [vmem:[#allocation3 + $0x30] sm:$0xff] }
0x1b36   :  { %v3157_v30 = vmul.f32 %v9782_v3, %v3128_v44  ;;  %11310 = vst [vmem:[#allocation73_spill] sm:$0xff] %v9803_v16 }
0x1b37   :  { %v3166_v60 = vrot.slane %v3165_v25, 4 }
0x1b38   :  { %v3172_v52 = vsel %vm202_vm0, %v3157_v30, 0.0 }
0x1b39   :  { %v3133_v38 = vpop.permute.xlu0 %3132  ;;  %v3167_v33 = vadd.f32 %v3166_v60, %v3165_v25 }
0x1b3a   :  { %v3158_v49 = vmul.f32 %v9788_v63, %v3133_v38 }
0x1b3b   :  { %v3168_v37 = vrot.slane %v3167_v33, 2 }
0x1b3c   :  { %v3173_v42 = vsel %vm202_vm0, %v3158_v49, 0.0 }
0x1b3d   :  { %v3174_v28 = vadd.f32 %v3173_v42, %v3172_v52  ;;  %v3138_v51 = vpop.permute.xlu0 %3137 }
0x1b3e   :  { %v3159_v44 = vmul.f32 %v9795_v6, %v3138_v51 }
0x1b3f   :  { %v3175_v14 = vrot.slane %v3174_v28, 4 }
0x1b40   :  { %v3181_v30 = vsel %vm202_vm0, %v3159_v44, 0.0 }
0x1b41   :  { %v3143_v45 = vpop.permute.xlu0 %3142  ;;  %v3176_v52 = vadd.f32 %v3175_v14, %v3174_v28 }
0x1b42   :  { %v3160_v38 = vmul.f32 %v9798_v50, %v3143_v45 }
0x1b43   :  { %v3177_v58 = vrot.slane %v3176_v52, 2 }
0x1b44   :  { %v3182_v49 = vsel %vm202_vm0, %v3160_v38, 0.0 }
0x1b45   :  { %v3183_v42 = vadd.f32 %v3182_v49, %v3181_v30  ;;  %v3148_v1 = vpop.permute.xlu0 %3147  ;;  %v3178_v14 = vadd.f32 %v3177_v58, %v3176_v52  ;;  %v3169_v30 = vadd.f32 %v3168_v37, %v3167_v33  ;;  %v6950_v37 = vmul.f32 -1.442695, %v9671_v21 }
0x1b46   :  { %v3161_v51 = vmul.f32 %v9803_v16, %v3148_v1 }
0x1b47   :  { %v3184_v62 = vrot.slane %v3183_v42, 4  ;;  %v3179_v50 = vrot.slane %v3178_v14, 1  ;;  %8184 = vpow2.f32 %v6950_v37 }
0x1b48   :  { %v3190_v38 = vsel %vm202_vm0, %v3161_v51, 0.0 }
0x1b49   :  { %v3185_v7 = vadd.f32 %v3184_v62, %v3183_v42  ;;  %v3153_v39 = vpop.permute.xlu0 %3152  ;;  %v3170_v42 = vrot.slane %v3169_v30, 1  ;;  %v3180_v6 = vadd.f32 %v3179_v50, %v3178_v14 }
0x1b4a   :  { %v3162_v45 = vmul.f32 %v9806_v23, %v3153_v39 }
0x1b4b   :  { %v3186_v44 = vrot.slane %v3185_v7, 2  ;;  %v3171_v39 = vadd.f32 %v3170_v42, %v3169_v30 }
0x1b4c   :  { %v3191_v28 = vsel %vm202_vm0, %v3162_v45, 0.0 }
0x1b4d   :  { %v3192_v25 = vadd.f32 %v3191_v28, %v3190_v38  ;;  %v3187_v60 = vadd.f32 %v3186_v44, %v3185_v7  ;;  %v3203_v51 = vsel %vm512_vm2, %v3180_v6, %v3171_v39  ;;  %v3211_v44 = vpop.permute.xlu1 %3210  ;;  %v8338_v38 = vld [vmem:[#allocation6 + $0xc] sm:$0xf] }
0x1b4f   :  { %v3193_v49 = vrot.slane %v3192_v25, 4  ;;  %v3188_v16 = vrot.slane %v3187_v60, 1 }
0x1b51   :  { %v3194_v1 = vadd.f32 %v3193_v49, %v3192_v25  ;;  %v3189_v3 = vadd.f32 %v3188_v16, %v3187_v60  ;;  %v8185_v7 = vpop.eup %8184 }
0x1b52   :  { %v2810_v52 = vadd.f32 1.0, %v8185_v7 }
0x1b53   :  { %v3195_v62 = vrot.slane %v3194_v1, 2  ;;  %v3204_v45 = vsel %vm514_vm3, %v3189_v3, %v3203_v51 }
0x1b54   :  { %8186 = vrcp.f32 %v2810_v52 }
0x1b55   :  { %v3196_v63 = vadd.f32 %v3195_v62, %v3194_v1  ;;  %v9838_v1 = vsel %vm2029_vm13, 1.0, %v11255_v2  ;;  %v9851_v62 = vsel %vm2728_vm14, %v9624_v41, %v9621_v36 }
0x1b56   :  { %11312 = vst [vmem:[#allocation75_spill] sm:$0xff] %v9838_v1 }
0x1b57   :  { %v3197_v23 = vrot.slane %v3196_v63, 1 }
0x1b59   :  { %v3198_v54 = vadd.f32 %v3197_v23, %v3196_v63 }
0x1b5b   :  { %v3205_v58 = vsel %vm516_vm4, %v3198_v54, %v3204_v45 }
0x1b5c   :  { %3206 = vrot.lane.b32.xlu0 %v3205_v58, %s8571_s11  ;;  %v3391_v58 = vsel %vm2731_vm15, 1, %v11257_v18 }
0x1b5e   :  { %v8187_v50 = vpop.eup %8186 }
0x1bce   :  { %v3207_v33 = vpop.permute.xlu0 %3206 }
0x1bcf   :  { %v3209_v16 = vmul.f32 %v8187_v50, %v3207_v33  ;;  %v449_v50 = vcombine.high %v11293_v15, %v11293_v15 }
0x1bd1   :  { %v3213_v23 = vsel %vm202_vm0, %v8338_v38, %v3209_v16 }
0x1bd2   :  { %v3214_v63 = vsel %vm1097_vm7, %v3213_v23, %v3211_v44  ;;  %v9896_v23 = vld [vmem:[%s11118_s10] ss:$0 sm:$0xff] }
0x1bd3   :  { %7472 = vmatmul.mubr.msk.f32.vlgmr.msra.gmra.mrb[12].mxu1 %vm1105_vm8, %v3214_v63 }
0x1bd4   :  { %7895 = vmatpush3.bf16.msra.mxu1 %v9044_v27  ;;  %7528 = vmatprep.mubr.msk.f32.mxu1 %vm8566_vm1, %v11255_v2 }
0x1bd5   :  { %7896 = vmatprep.subr.bf16.mxu1 %v11254_v40 }
0x1bd8   :  { %7898 = vmatpush3.bf16.msra.mxu1 %v9050_v11 }
0x1bd9   :  { %7899 = vmatprep.subr.bf16.mxu1 %v11254_v40 }
0x1bdc   :  { %7901 = vmatpush3.bf16.msra.mxu1 %v9060_v48 }
0x1bdd   :  { %7902 = vmatprep.subr.bf16.mxu1 %v11254_v40 }
0x1be0   :  { %7904 = vmatpush3.bf16.msra.mxu1 %v9070_v47 }
0x1be1   :  { %7905 = vmatprep.subr.bf16.mxu1 %v11254_v40 }
0x1be4   :  { %7907 = vmatpush3.bf16.msra.mxu1 %v9080_v53 }
0x1be5   :  { %7908 = vmatprep.subr.bf16.mxu1 %v11254_v40 }
0x1be8   :  { %7910 = vmatpush3.bf16.msra.mxu1 %v9107_v5 }
0x1be9   :  { %7929 = vmatprep.subr.bf16.mxu1 %v11254_v40 }
0x1ca6   :  { %v3284_v21 = vpop.f32.mrb[12].mxu1 }
0x1ca7   :  { %v3285_v3 = vadd.f32 %v9612_v22, %v3284_v21  ;;  %v7473_v54 = vpop.f32.mrb[13].mxu1  ;;  %v9843_v22 = vsel %vm2731_vm15, 1.0, %v11255_v2 }
0x1ca8   :  { %11313 = vst [vmem:[#allocation76_spill] sm:$0xff] %v9843_v22 }
0x1ca9   :  { %8188 = vtanh.f32 %v3285_v3  ;;  %v6952_v28 = vmul.f32 -1.442695, %v3285_v3 }
0x1cab   :  { %8190 = vpow2.f32 %v6952_v28 }
0x1cb3   :  { %v8189_v6 = vpop.eup %8188 }
0x1cb4   :  { %3297 = vrot.lane.b32.xlu0 %v8189_v6, %s8556_s20 }
0x1cb5   :  { %v8191_v14 = vpop.eup %8190 }
0x1cb6   :  { %v3291_v25 = vadd.f32 1.0, %v8191_v14 }
0x1cb8   :  { %8192 = vrcp.f32 %v3291_v25 }
0x1cc2   :  { %v8193_v60 = vpop.eup %8192 }
0x1cc3   :  { %v3295_v39 = vmul.f32 %v8193_v60, %v9851_v62 }
0x1d26   :  { %v3298_v30 = vpop.permute.xlu0 %3297 }
0x1d27   :  { %v3300_v49 = vmul.f32 %v8193_v60, %v3298_v30 }
0x1d29   :  { %3302 = vrot.lane.b32.xlu0 %v3300_v49, %s8571_s11 }
0x1d9b   :  { %v3303_v51 = vpop.permute.xlu0 %3302 }
0x1d9c   :  { %v9854_v45 = vadd.f32 %v3303_v51, %v3295_v39 }
0x1d9e   :  { %8194 = vtanh.f32 %v9854_v45 }
0x1da8   :  { %v8195_v26 = vpop.eup %8194 }
0x1da9   :  { %3308 = vrot.lane.b32.xlu0 %v8195_v26, %s8556_s20 }
0x1dad   :  { %3428 = vperm.xlu0 %8050, %v3391_v58  }
0x1e1b   :  { %v3309_v37 = vpop.permute.xlu0 %3308 }
0x1e1c   :  { %v3311_v7 = vmul.f32 %v8193_v60, %v3309_v37 }
0x1e1e   :  { %3313 = vrot.lane.b32.xlu1 %v3311_v7, %s8571_s11 }
0x1e2c   :  { %v9860_v17 = vpop.permute.xlu0 %3428 }
0x1e2d   :  { %vm3430_vm9 = vcmp.eq.s32.totalorder %v9860_v17, 1 }
0x1e2e   :  { %v9866_v36 = vsel %vm3430_vm9, %v3311_v7, %v9644_v10 }
0x1e2f   :  { %3435 = vrot.lane.b32.xlu0 %v9866_v36, %s8571_s11 }
0x1e90   :  { %v3314_v41 = vpop.permute.xlu1 %3313 }
0x1e91   :  { %v3316_v52 = vsel %vm202_vm0, %v3314_v41, %v3209_v16 }
0x1e92   :  { %7491 = vmatmul.mubr.msk.f32.vlgmr.msra.gmra.mrb[22].mxu0 %vm1097_vm7, %v3316_v52  ;;  %v9917_v52 = vld [vmem:[%s11113_s5] ss:$0 sm:$0xff] }
0x1e93   :  { %7889 = vmatpush3.bf16.msra.mxu0 %v8801_v9  ;;  %7501 = vmatprep.mubr.msk.f32.mxu0 %vm8566_vm1, %v11255_v2 }
0x1e94   :  { %7890 = vmatprep.subr.bf16.mxu0 %v11254_v40 }
0x1e97   :  { %7892 = vmatpush3.bf16.msra.mxu0 %v8829_v34 }
0x1e98   :  { %7911 = vmatprep.subr.bf16.mxu0 %v11254_v40 }
0x1ea1   :  { %v3436_v10 = vpop.permute.xlu0 %3435 }
0x1ea2   :  { %7502 = vmatmul.mubr.msk.f32.vlgmr.msra.gmra.mrb[24].mxu0 %vm202_vm0, %v3436_v10 }
0x1ea3   :  { %7913 = vmatpush3.bf16.msra.mxu0 %v9168_v55  ;;  %7547 = vmatprep.mubr.msk.f32.mxu0 %vm8566_vm1, %v11255_v2 }
0x1ea4   :  { %7914 = vmatprep.subr.bf16.mxu0 %v11254_v40 }
0x1ea7   :  { %7916 = vmatpush3.bf16.msra.mxu0 %v9174_v29 }
0x1ea8   :  { %7917 = vmatprep.subr.bf16.mxu0 %v11254_v40 }
0x1eab   :  { %7919 = vmatpush3.bf16.msra.mxu0 %v9184_v35 }
0x1eac   :  { %7920 = vmatprep.subr.bf16.mxu0 %v11254_v40 }
0x1eaf   :  { %7922 = vmatpush3.bf16.msra.mxu0 %v9194_v57 }
0x1eb0   :  { %7923 = vmatprep.subr.bf16.mxu0 %v11254_v40 }
0x1f65   :  { %v3386_v33 = vpop.f32.mrb[22].mxu0 }
0x1f66   :  { %v9891_v16 = vadd.f32 %v3386_v33, %v449_v50  ;;  %v7492_v44 = vpop.f32.mrb[23].mxu0 }
0x1f68   :  { %11314 = vst [vmem:[#allocation77_spill] sm:$0xff] %v9891_v16 }
0x1f75   :  { %v3505_v38 = vpop.f32.mrb[24].mxu0 }
0x1f76   :  { %v9899_v63 = vadd.f32 %v9896_v23, %v3505_v38  ;;  %v7503_v21 = vpop.f32.mrb[25].mxu0 }
0x1f78   :  { %v3522_v3 = vrot.slane %v9899_v63, %v8869_v0 }
0x1f7a   :  { %v3523_v54 = vcombine.high %v3522_v3, %v3522_v3  ;;  %v3530_v15 = vrot.slane %v3522_v3, %v8869_v0 }
0x1f7c   :  { %v3537_v6 = vrot.slane %v3523_v54, %v8869_v0  ;;  %v3538_v28 = vcombine.high %v3530_v15, %v3530_v15  ;;  %v3543_v14 = vrot.slane %v3530_v15, %v8880_v8 }
0x1f7e   :  { %v3539_v25 = vcombine.high %v3537_v6, %v3537_v6  ;;  %v3561_v60 = vadd.f32 %v3543_v14, %v8883_v12  ;;  %v3560_v30 = vadd.f32 %v3543_v14, %v8885_v13  ;;  %v3551_v49 = vrot.slane %v3538_v28, %v8880_v8 }
0x1f7f   :  { %v3547_v39 = vrot.slane %v3537_v6, %v8880_v8 }
0x1f80   :  { %v3569_v51 = vmax.f32 %v3561_v60, 0.0  ;;  %v3568_v26 = vmax.f32 %v3560_v30, 0.0  ;;  %v3564_v58 = vadd.f32 %v3551_v49, %v8898_v32  ;;  %v3555_v37 = vrot.slane %v3539_v25, %v8880_v8  ;;  %v11315_v60 = vld [vmem:[#allocation29_spill] sm:$0xff] }
0x1f81   :  { %v3562_v7 = vadd.f32 %v3547_v39, %v8891_v20  ;;  %v3563_v41 = vadd.f32 %v3547_v39, %v8889_v19  ;;  %v3565_v3 = vadd.f32 %v3551_v49, %v8896_v31 }
0x1f82   :  { %v3577_v10 = vmul.f32 %v9917_v52, %v3569_v51  ;;  %v3576_v50 = vmul.f32 %v9917_v52, %v3568_v26  ;;  %v3572_v33 = vmax.f32 %v3564_v58, 0.0  ;;  %v3566_v44 = vadd.f32 %v3555_v37, %v8908_v46 }
0x1f83   :  { %v3570_v38 = vmax.f32 %v3562_v7, 0.0  ;;  %v3571_v21 = vmax.f32 %v3563_v41, 0.0  ;;  %v3573_v25 = vmax.f32 %v3565_v3, 0.0  ;;  %v3567_v30 = vadd.f32 %v3555_v37, %v11315_v60 }
0x1f84   :  { %v3587_v54 = vsel %vm202_vm0, %v3577_v10, 0.0  ;;  %v3584_v15 = vsel %vm202_vm0, %v3576_v50, 0.0  ;;  %v3580_v6 = vmul.f32 %v9917_v52, %v3572_v33  ;;  %v3574_v28 = vmax.f32 %v3566_v44, 0.0 }
0x1f85   :  { %3588 = vadd.xlane.f32.xlu0 %v3587_v54  ;;  %3585 = vadd.xlane.f32.xlu1 %v3584_v15  ;;  %v3578_v14 = vmul.f32 %v9917_v52, %v3570_v38  ;;  %v3579_v49 = vmul.f32 %v9917_v52, %v3571_v21  ;;  %v3581_v41 = vmul.f32 %v9917_v52, %v3573_v25  ;;  %v3575_v10 = vmax.f32 %v3567_v30, 0.0  ;;  %v11316_v15 = vld [vmem:[#allocation31_spill] sm:$0xff] }
0x1f86   :  { %v3596_v39 = vsel %vm202_vm0, %v3580_v6, 0.0  ;;  %v3582_v26 = vmul.f32 %v9917_v52, %v3574_v28 }
0x1f87   :  { %v3590_v51 = vsel %vm202_vm0, %v3578_v14, 0.0  ;;  %v3593_v58 = vsel %vm202_vm0, %v3579_v49, 0.0  ;;  %v3599_v37 = vsel %vm202_vm0, %v3581_v41, 0.0  ;;  %v3583_v50 = vmul.f32 %v9917_v52, %v3575_v10 }
0x1f88   :  { %v3602_v7 = vsel %vm202_vm0, %v3582_v26, 0.0 }
0x1f89   :  { %3597 = vadd.xlane.f32.xlu1 %v3596_v39  ;;  %3591 = vadd.xlane.f32.xlu0 %v3590_v51  ;;  %v3605_v33 = vsel %vm202_vm0, %v3583_v50, 0.0 }
0x1f8d   :  { %3594 = vadd.xlane.f32.xlu0 %v3593_v58  ;;  %3603 = vadd.xlane.f32.xlu1 %v3602_v7 }
0x1f91   :  { %3600 = vadd.xlane.f32.xlu0 %v3599_v37 }
0x1f95   :  { %3606 = vadd.xlane.f32.xlu0 %v3605_v33 }
0x2012   :  { %v3589_v44 = vpop.xlane.xlu0 %3588  ;;  %v3586_v38 = vpop.xlane.xlu1 %3585 }
0x2013   :  { %v3609_v28 = vadd.f32 %v3589_v44, %v11316_v15  ;;  %v3608_v14 = vadd.f32 %v3586_v38, %v11316_v15 }
0x2015   :  { %v3631_v58 = vrot.slane %v3609_v28, %v8942_v56  ;;  %v3627_v7 = vrot.slane %v3608_v14, %v8939_v61 }
0x2016   :  { %v3592_v21 = vpop.xlane.xlu0 %3591  ;;  %v3598_v3 = vpop.xlane.xlu1 %3597 }
0x2017   :  { %v3610_v25 = vadd.f32 %v3592_v21, %v11316_v15  ;;  %v3612_v30 = vadd.f32 %v3598_v3, %v11316_v15  ;;  %v3632_v3 = vsel %vm811_vm5, %v3631_v58, %v3627_v7 }
0x2019   :  { %v3636_v41 = vrot.slane %v3610_v25, %v8939_v61  ;;  %v3645_v50 = vrot.slane %v3612_v30, %v8939_v61 }
0x201a   :  { %v3595_v54 = vpop.xlane.xlu0 %3594  ;;  %v3604_v39 = vpop.xlane.xlu1 %3603 }
0x201b   :  { %v3611_v6 = vadd.f32 %v3595_v54, %v11316_v15  ;;  %v3614_v10 = vadd.f32 %v3604_v39, %v11316_v15 }
0x201d   :  { %v3640_v49 = vrot.slane %v3611_v6, %v8942_v56  ;;  %v3654_v54 = vrot.slane %v3614_v10, %v8939_v61 }
0x201e   :  { %v3601_v51 = vpop.xlane.xlu0 %3600 }
0x201f   :  { %v3613_v26 = vadd.f32 %v3601_v51, %v11316_v15  ;;  %v3641_v44 = vsel %vm811_vm5, %v3640_v49, %v3636_v41 }
0x2020   :  { %v3660_v42 = vsel %vm512_vm2, %v3641_v44, %v3632_v3 }
0x2021   :  { %v3649_v37 = vrot.slane %v3613_v26, %v8942_v56 }
0x2022   :  { %v3607_v33 = vpop.xlane.xlu0 %3606 }
0x2023   :  { %v3615_v38 = vadd.f32 %v3607_v33, %v11316_v15  ;;  %v3650_v21 = vsel %vm811_vm5, %v3649_v37, %v3645_v50 }
0x2024   :  { %v3661_v16 = vsel %vm514_vm3, %v3650_v21, %v3660_v42 }
0x2025   :  { %v3658_v51 = vrot.slane %v3615_v38, %v8942_v56 }
0x2027   :  { %v3659_v39 = vsel %vm811_vm5, %v3658_v51, %v3654_v54 }
0x2028   :  { %v3662_v1 = vsel %vm516_vm4, %v3659_v39, %v3661_v16 }
0x2029   :  { %v3664_v49 = vsel %vm844_vm6, %v3662_v1, -inf }
0x202a   :  { %3665 = vmax.xlane.f32.xlu1 %v3664_v49 }
0x20b7   :  { %v3666_v41 = vpop.xlane.xlu1 %3665 }
0x20b8   :  { %v3671_v37 = vrot.slane %v3666_v41, %v8880_v8  ;;  %v3675_v58 = vrot.slane %v3666_v41, %v8974_v4  ;;  %v3679_v7 = vrot.slane %v3666_v41, %v8980_v43  ;;  %v3683_v50 = vrot.slane %v3666_v41, %v8971_v59 }
0x20ba   :  { %v3688_v33 = vsub.f32 %v3608_v14, %v3671_v37  ;;  %v3689_v44 = vsub.f32 %v3609_v28, %v3671_v37  ;;  %v3690_v3 = vsub.f32 %v3610_v25, %v3675_v58  ;;  %v3692_v54 = vsub.f32 %v3612_v30, %v3679_v7 }
0x20bb   :  { %v3694_v21 = vsub.f32 %v3614_v10, %v3683_v50  ;;  %v3691_v1 = vsub.f32 %v3611_v6, %v3675_v58  ;;  %v3693_v22 = vsub.f32 %v3613_v26, %v3679_v7  ;;  %v3695_v60 = vsub.f32 %v3615_v38, %v3683_v50 }
0x20bc   :  { %v3696_v51 = vmul.f32 1.442695, %v3688_v33  ;;  %v3698_v42 = vmul.f32 1.442695, %v3689_v44  ;;  %v3704_v16 = vmul.f32 1.442695, %v3692_v54 }
0x20bd   :  { %v3700_v39 = vmul.f32 1.442695, %v3690_v3  ;;  %v3708_v49 = vmul.f32 1.442695, %v3694_v21  ;;  %v3702_v15 = vmul.f32 1.442695, %v3691_v1 }
0x20be   :  { %8196 = vpow2.f32 %v3696_v51  ;;  %v3706_v14 = vmul.f32 1.442695, %v3693_v22  ;;  %v3710_v30 = vmul.f32 1.442695, %v3695_v60 }
0x20bf   :  { %8198 = vpow2.f32 %v3698_v42 }
0x20c0   :  { %8200 = vpow2.f32 %v3704_v16 }
0x20c1   :  { %8202 = vpow2.f32 %v3700_v39 }
0x20c2   :  { %8204 = vpow2.f32 %v3708_v49 }
0x20c3   :  { %8206 = vpow2.f32 %v3702_v15 }
0x20c4   :  { %8208 = vpow2.f32 %v3706_v14 }
0x20c5   :  { %8210 = vpow2.f32 %v3710_v30 }
0x20c8   :  { %v8197_v28 = vpop.eup %8196 }
0x20c9   :  { %v8199_v25 = vpop.eup %8198  ;;  %3721 = vperm.xlu0 %8050, %v8197_v28  }
0x20ca   :  { %3724 = vperm.xlu1 %8051, %v8199_v25   ;;  %v8201_v10 = vpop.eup %8200 }
0x20cb   :  { %v8203_v41 = vpop.eup %8202 }
0x20cc   :  { %v8205_v6 = vpop.eup %8204 }
0x20cd   :  { %3733 = vperm.xlu0 %8050, %v8201_v10   ;;  %v8207_v37 = vpop.eup %8206 }
0x20ce   :  { %3727 = vperm.xlu1 %8051, %v8203_v41   ;;  %v8209_v26 = vpop.eup %8208 }
0x20cf   :  { %v8211_v38 = vpop.eup %8210 }
0x20d1   :  { %3739 = vperm.xlu0 %8050, %v8205_v6  }
0x20d2   :  { %3730 = vperm.xlu1 %8051, %v8207_v37  }
0x20d6   :  { %3736 = vperm.xlu1 %8051, %v8209_v26  }
0x20da   :  { %3742 = vperm.xlu1 %8051, %v8211_v38  }
0x2148   :  { %v3722_v15 = vpop.permute.xlu0 %3721 }
0x2149   :  { %v3725_v22 = vpop.permute.xlu1 %3724  ;;  %v3747_v3 = vrot.slane %v3722_v15, %v8939_v61 }
0x214a   :  { %v3751_v44 = vrot.slane %v3725_v22, %v8942_v56 }
0x214c   :  { %v3734_v7 = vpop.permute.xlu0 %3733  ;;  %v3752_v49 = vsel %vm811_vm5, %v3751_v44, %v3747_v3 }
0x214d   :  { %v3728_v58 = vpop.permute.xlu1 %3727  ;;  %v3765_v42 = vrot.slane %v3734_v7, %v8939_v61 }
0x214e   :  { %v3756_v54 = vrot.slane %v3728_v58, %v8939_v61 }
0x2150   :  { %v3740_v21 = vpop.permute.xlu0 %3739 }
0x2151   :  { %v3731_v50 = vpop.permute.xlu1 %3730  ;;  %v3774_v14 = vrot.slane %v3740_v21, %v8939_v61 }
0x2152   :  { %v3760_v60 = vrot.slane %v3731_v50, %v8942_v56 }
0x2154   :  { %v3761_v16 = vsel %vm811_vm5, %v3760_v60, %v3756_v54 }
0x2155   :  { %v3737_v33 = vpop.permute.xlu1 %3736  ;;  %v3780_v22 = vsel %vm512_vm2, %v3761_v16, %v3752_v49 }
0x2156   :  { %v3769_v51 = vrot.slane %v3737_v33, %v8942_v56 }
0x2158   :  { %v3770_v1 = vsel %vm811_vm5, %v3769_v51, %v3765_v42 }
0x2159   :  { %v3743_v39 = vpop.permute.xlu1 %3742  ;;  %v3781_v58 = vsel %vm514_vm3, %v3770_v1, %v3780_v22 }
0x215a   :  { %v3778_v30 = vrot.slane %v3743_v39, %v8942_v56 }
0x215c   :  { %v3779_v15 = vsel %vm811_vm5, %v3778_v30, %v3774_v14  ;;  %v11325_v30 = vld [vmem:[#allocation69_spill] sm:$0xff] }
0x215d   :  { %v3782_v7 = vsel %vm516_vm4, %v3779_v15, %v3781_v58  ;;  %v11326_v15 = vld [vmem:[#allocation68_spill] sm:$0xff] }
0x215e   :  { %v3784_v50 = vsel %vm844_vm6, %v3782_v7, 0.0 }
0x215f   :  { %3785 = vadd.xlane.f32.xlu0 %v3784_v50  ;;  %v11327_v50 = vld [vmem:[#allocation70_spill] sm:$0xff] }
0x21ec   :  { %v3786_v60 = vpop.xlane.xlu0 %3785 }
0x21ed   :  { %8212 = vrcp.f32 %v3786_v60 }
0x21f7   :  { %v8213_v33 = vpop.eup %8212 }
0x21f8   :  { %v3804_v44 = vrot.slane %v8213_v33, %v8971_v59  ;;  %v3792_v3 = vrot.slane %v8213_v33, %v8880_v8  ;;  %v3796_v21 = vrot.slane %v8213_v33, %v8974_v4 }
0x21fa   :  { %v9984_v54 = vmul.f32 %v8211_v38, %v3804_v44  ;;  %v9986_v51 = vmul.f32 %v8197_v28, %v3792_v3  ;;  %v9990_v42 = vmul.f32 %v8199_v25, %v3792_v3  ;;  %v9994_v16 = vmul.f32 %v8203_v41, %v3796_v21 }
0x21fb   :  { %v9997_v1 = vmul.f32 %v8207_v37, %v3796_v21  ;;  %v3800_v38 = vrot.slane %v8213_v33, %v8980_v43  ;;  %v10007_v39 = vmul.f32 %v8205_v6, %v3804_v44 }
0x21fc   :  { %11317 = vst [vmem:[#allocation78_spill] sm:$0xff] %v9984_v54  ;;  %11318 = vst [vmem:[#allocation79_spill] sm:$0xff] %v9986_v51  ;;  %3854 = vperm.xlu0 %8050, %v9984_v54   ;;  %3819 = vperm.xlu1 %8051, %v9986_v51  }
0x21fd   :  { %11319 = vst [vmem:[#allocation80_spill] sm:$0xff] %v9990_v42  ;;  %11320 = vst [vmem:[#allocation81_spill] sm:$0xff] %v9994_v16  ;;  %v10001_v28 = vmul.f32 %v8201_v10, %v3800_v38  ;;  %v10004_v25 = vmul.f32 %v8209_v26, %v3800_v38 }
0x21fe   :  { %11321 = vst [vmem:[#allocation82_spill] sm:$0xff] %v9997_v1  ;;  %11324 = vst [vmem:[#allocation85_spill] sm:$0xff] %v10007_v39 }
0x21ff   :  { %11322 = vst [vmem:[#allocation83_spill] sm:$0xff] %v10001_v28  ;;  %11323 = vst [vmem:[#allocation84_spill] sm:$0xff] %v10004_v25 }
0x2200   :  { %3824 = vperm.xlu1 %8051, %v9990_v42  }
0x2204   :  { %3829 = vperm.xlu1 %8051, %v9994_v16  }
0x2208   :  { %3834 = vperm.xlu1 %8051, %v9997_v1  }
0x220c   :  { %3839 = vperm.xlu1 %8051, %v10001_v28  }
0x2210   :  { %3844 = vperm.xlu1 %8051, %v10004_v25  }
0x2214   :  { %3849 = vperm.xlu1 %8051, %v10007_v39  }
0x227b   :  { %v3820_v41 = vpop.permute.xlu1 %3819 }
0x227c   :  { %v3857_v22 = vmul.f32 %v11325_v30, %v3820_v41  ;;  %v3855_v30 = vpop.permute.xlu0 %3854 }
0x227e   :  { %v3865_v26 = vsel %vm202_vm0, %v3857_v22, 0.0  ;;  %v11330_v22 = vld [vmem:[#allocation74_spill] sm:$0xff] }
0x227f   :  { %v3825_v49 = vpop.permute.xlu1 %3824  ;;  %v3864_v28 = vmul.f32 %v11330_v22, %v3855_v30 }
0x2280   :  { %v3858_v37 = vmul.f32 %v9779_v24, %v3825_v49  ;;  %v11328_v49 = vld [vmem:[#allocation71_spill] sm:$0xff] }
0x2282   :  { %v3866_v10 = vsel %vm202_vm0, %v3858_v37, 0.0 }
0x2283   :  { %v3830_v14 = vpop.permute.xlu1 %3829  ;;  %v3867_v6 = vadd.f32 %v3866_v10, %v3865_v26 }
0x2284   :  { %v3859_v58 = vmul.f32 %v11326_v15, %v3830_v14  ;;  %v11329_v14 = vld [vmem:[#allocation72_spill] sm:$0xff] }
0x2285   :  { %v3868_v24 = vrot.slane %v3867_v6, 4 }
0x2286   :  { %v3874_v33 = vsel %vm202_vm0, %v3859_v58, 0.0 }
0x2287   :  { %v3835_v7 = vpop.permute.xlu1 %3834  ;;  %v3869_v54 = vadd.f32 %v3868_v24, %v3867_v6 }
0x2288   :  { %v3860_v60 = vmul.f32 %v11327_v50, %v3835_v7 }
0x228a   :  { %v3875_v44 = vsel %vm202_vm0, %v3860_v60, 0.0  ;;  %v11331_v60 = vld [vmem:[#allocation73_spill] sm:$0xff] }
0x228b   :  { %v3876_v3 = vadd.f32 %v3875_v44, %v3874_v33  ;;  %v3840_v21 = vpop.permute.xlu1 %3839  ;;  %v3870_v44 = vrot.slane %v3869_v54, 2 }
0x228c   :  { %v3861_v41 = vmul.f32 %v11328_v49, %v3840_v21  ;;  %v3893_v21 = vsel %vm202_vm0, %v3864_v28, 0.0 }
0x228d   :  { %v3877_v38 = vrot.slane %v3876_v3, 4  ;;  %v3871_v24 = vadd.f32 %v3870_v44, %v3869_v54 }
0x228e   :  { %v3883_v10 = vsel %vm202_vm0, %v3861_v41, 0.0 }
0x228f   :  { %v3878_v37 = vadd.f32 %v3877_v38, %v3876_v3  ;;  %v3845_v39 = vpop.permute.xlu1 %3844  ;;  %v3872_v22 = vrot.slane %v3871_v24, 1 }
0x2290   :  { %v3862_v15 = vmul.f32 %v11329_v14, %v3845_v39 }
0x2291   :  { %v3879_v7 = vrot.slane %v3878_v37, 2  ;;  %v3873_v1 = vadd.f32 %v3872_v22, %v3871_v24 }
0x2292   :  { %v3884_v58 = vsel %vm202_vm0, %v3862_v15, 0.0 }
0x2293   :  { %v3885_v26 = vadd.f32 %v3884_v58, %v3883_v10  ;;  %v3850_v50 = vpop.permute.xlu1 %3849  ;;  %v3880_v38 = vadd.f32 %v3879_v7, %v3878_v37  ;;  %v6956_v37 = vmul.f32 -1.442695, %v9899_v63 }
0x2294   :  { %v3863_v33 = vmul.f32 %v11331_v60, %v3850_v50 }
0x2295   :  { %v3886_v25 = vrot.slane %v3885_v26, 4  ;;  %v3881_v41 = vrot.slane %v3880_v38, 1  ;;  %8214 = vpow2.f32 %v6956_v37 }
0x2296   :  { %v3892_v3 = vsel %vm202_vm0, %v3863_v33, 0.0 }
0x2297   :  { %v3887_v39 = vadd.f32 %v3886_v25, %v3885_v26  ;;  %v3894_v6 = vadd.f32 %v3893_v21, %v3892_v3  ;;  %v3882_v16 = vadd.f32 %v3881_v41, %v3880_v38  ;;  %v8341_v3 = vld [vmem:[#allocation6 + $0x10] sm:$0xf] }
0x2299   :  { %v3888_v49 = vrot.slane %v3887_v39, 2  ;;  %v3895_v30 = vrot.slane %v3894_v6, 4  ;;  %v3905_v33 = vsel %vm512_vm2, %v3882_v16, %v3873_v1 }
0x229b   :  { %v3889_v14 = vadd.f32 %v3888_v49, %v3887_v39  ;;  %v3896_v15 = vadd.f32 %v3895_v30, %v3894_v6  ;;  %v10053_v39 = vld [vmem:[%s11120_s12] ss:$0 sm:$0xff] }
0x229d   :  { %v3890_v10 = vrot.slane %v3889_v14, 1  ;;  %v3897_v58 = vrot.slane %v3896_v15, 2 }
0x229f   :  { %v3898_v50 = vadd.f32 %v3897_v58, %v3896_v15  ;;  %v3891_v60 = vadd.f32 %v3890_v10, %v3889_v14  ;;  %v8215_v7 = vpop.eup %8214  ;;  %v10062_v58 = vsel %vm3430_vm9, %v9854_v45, %v9851_v62  ;;  %vm6459_vm9 = vcmask 392512  }
0x22a0   :  { %v3512_v26 = vadd.f32 1.0, %v8215_v7 }
0x22a1   :  { %v3899_v51 = vrot.slane %v3898_v50, 1  ;;  %v3906_v25 = vsel %vm514_vm3, %v3891_v60, %v3905_v33  ;;  %v10071_v33 = vld [vmem:[%s11256_s2] sm:$0xf] }
0x22a2   :  { %8216 = vrcp.f32 %v3512_v26  ;;  %vm3433_vm10 = vcmp.gt.s32.totalorder %v10071_v33, 4  ;;  %vm4135_vm12 = vcmp.gt.s32.totalorder %v10071_v33, 5 }
0x22a3   :  { %v3900_v28 = vadd.f32 %v3899_v51, %v3898_v50  ;;  %v4093_v62 = vsel %vm3433_vm10, 1, %v11257_v18 }
0x22a5   :  { %v3907_v54 = vsel %vm516_vm4, %v3900_v28, %v3906_v25 }
0x22a6   :  { %3908 = vrot.lane.b32.xlu1 %v3907_v54, %s8571_s11 }
0x22aa   :  { %3912 = vrot.lane.b32.xlu1 %v9866_v36, %s8570_s22 }
0x22ac   :  { %v8217_v44 = vpop.eup %8216 }
0x2318   :  { %v3909_v21 = vpop.permute.xlu1 %3908 }
0x2319   :  { %v3911_v51 = vmul.f32 %v8217_v44, %v3909_v21 }
0x231b   :  { %v3915_v16 = vsel %vm202_vm0, %v8341_v3, %v3911_v51 }
0x231c   :  { %v3913_v1 = vpop.permute.xlu1 %3912 }
0x231d   :  { %v3916_v38 = vsel %vm1097_vm7, %v3915_v16, %v3913_v1 }
0x231e   :  { %7529 = vmatmul.mubr.msk.f32.vlgmr.msra.gmra.mrb[14].mxu1 %vm1105_vm8, %v3916_v38 }
0x231f   :  { %7931 = vmatpush3.bf16.msra.mxu1 %v9044_v27  ;;  %7585 = vmatprep.mubr.msk.f32.mxu1 %vm8566_vm1, %v11255_v2 }
0x2320   :  { %7932 = vmatprep.subr.bf16.mxu1 %v11254_v40 }
0x2323   :  { %7934 = vmatpush3.bf16.msra.mxu1 %v9050_v11 }
0x2324   :  { %7935 = vmatprep.subr.bf16.mxu1 %v11254_v40 }
0x2327   :  { %7937 = vmatpush3.bf16.msra.mxu1 %v9060_v48 }
0x2328   :  { %7938 = vmatprep.subr.bf16.mxu1 %v11254_v40 }
0x232b   :  { %7940 = vmatpush3.bf16.msra.mxu1 %v9070_v47 }
0x232c   :  { %7941 = vmatprep.subr.bf16.mxu1 %v11254_v40 }
0x232f   :  { %7943 = vmatpush3.bf16.msra.mxu1 %v9080_v53 }
0x2330   :  { %7944 = vmatprep.subr.bf16.mxu1 %v11254_v40 }
0x2333   :  { %7946 = vmatpush3.bf16.msra.mxu1 %v9107_v5 }
0x2334   :  { %7965 = vmatprep.subr.bf16.mxu1 %v11254_v40 }
0x23f1   :  { %v3986_v63 = vpop.f32.mrb[14].mxu1 }
0x23f2   :  { %v3987_v6 = vadd.f32 %v10053_v39, %v3986_v63  ;;  %v7530_v24 = vpop.f32.mrb[15].mxu1 }
0x23f4   :  { %8218 = vtanh.f32 %v3987_v6  ;;  %v6958_v30 = vmul.f32 -1.442695, %v3987_v6 }
0x23f6   :  { %8220 = vpow2.f32 %v6958_v30 }
0x23fe   :  { %v8219_v49 = vpop.eup %8218 }
0x23ff   :  { %3999 = vrot.lane.b32.xlu1 %v8219_v49, %s8556_s20 }
0x2400   :  { %v8221_v41 = vpop.eup %8220 }
0x2401   :  { %v3993_v14 = vadd.f32 1.0, %v8221_v41 }
0x2403   :  { %8222 = vrcp.f32 %v3993_v14 }
0x240d   :  { %v8223_v15 = vpop.eup %8222 }
0x240e   :  { %v3997_v50 = vmul.f32 %v8223_v15, %v10062_v58 }
0x2471   :  { %v4000_v22 = vpop.permute.xlu1 %3999 }
0x2472   :  { %v4002_v10 = vmul.f32 %v8223_v15, %v4000_v22 }
0x2474   :  { %4004 = vrot.lane.b32.xlu1 %v4002_v10, %s8571_s11 }
0x24e6   :  { %v4005_v60 = vpop.permute.xlu1 %4004 }
0x24e7   :  { %v10065_v28 = vadd.f32 %v4005_v60, %v3997_v50 }
0x24e9   :  { %8224 = vtanh.f32 %v10065_v28 }
0x24f3   :  { %v8225_v25 = vpop.eup %8224 }
0x24f4   :  { %4010 = vrot.lane.b32.xlu1 %v8225_v25, %s8556_s20 }
0x24f8   :  { %4130 = vperm.xlu1 %8051, %v4093_v62  }
0x2566   :  { %v4011_v45 = vpop.permute.xlu1 %4010 }
0x2567   :  { %v4013_v17 = vmul.f32 %v8223_v15, %v4011_v45 }
0x2569   :  { %4015 = vrot.lane.b32.xlu0 %v4013_v17, %s8571_s11 }
0x2577   :  { %v10079_v54 = vpop.permute.xlu1 %4130 }
0x2578   :  { %vm4132_vm11 = vcmp.eq.s32.totalorder %v10079_v54, 1 }
0x2579   :  { %v10085_v37 = vsel %vm4132_vm11, %v4013_v17, %v9866_v36 }
0x257a   :  { %4137 = vrot.lane.b32.xlu1 %v10085_v37, %s8571_s11 }
0x25db   :  { %v4016_v7 = vpop.permute.xlu0 %4015 }
0x25dc   :  { %v4018_v26 = vsel %vm202_vm0, %v4016_v7, %v3911_v51 }
0x25dd   :  { %7548 = vmatmul.mubr.msk.f32.vlgmr.msra.gmra.mrb[26].mxu0 %vm1097_vm7, %v4018_v26 }
0x25de   :  { %7925 = vmatpush3.bf16.msra.mxu0 %v8801_v9  ;;  %7558 = vmatprep.mubr.msk.f32.mxu0 %vm8566_vm1, %v11255_v2 }
0x25df   :  { %7926 = vmatprep.subr.bf16.mxu0 %v11254_v40 }
0x25e2   :  { %7928 = vmatpush3.bf16.msra.mxu0 %v8829_v34 }
0x25e3   :  { %7947 = vmatprep.subr.bf16.mxu0 %v11254_v40 }
0x25ec   :  { %v4138_v36 = vpop.permute.xlu1 %4137 }
0x25ed   :  { %7559 = vmatmul.mubr.msk.f32.vlgmr.msra.gmra.mrb[28].mxu0 %vm202_vm0, %v4138_v36 }
0x25ee   :  { %7949 = vmatpush3.bf16.msra.mxu0 %v9168_v55  ;;  %7604 = vmatprep.mubr.msk.f32.mxu0 %vm8566_vm1, %v11255_v2 }
0x25ef   :  { %7950 = vmatprep.subr.bf16.mxu0 %v11254_v40 }
0x25f2   :  { %7952 = vmatpush3.bf16.msra.mxu0 %v9174_v29 }
0x25f3   :  { %7953 = vmatprep.subr.bf16.mxu0 %v11254_v40 }
0x25f6   :  { %7955 = vmatpush3.bf16.msra.mxu0 %v9184_v35 }
0x25f7   :  { %7956 = vmatprep.subr.bf16.mxu0 %v11254_v40 }
0x25fa   :  { %7958 = vmatpush3.bf16.msra.mxu0 %v9194_v57 }
0x25fb   :  { %7959 = vmatprep.subr.bf16.mxu0 %v11254_v40 }
0x26b0   :  { %v10108_v44 = vpop.f32.mrb[26].mxu0 }
0x26b1   :  { %11332 = vst [vmem:[#allocation69_spill] sm:$0xff] %v10108_v44  ;;  %v7549_v21 = vpop.f32.mrb[27].mxu0 }
0x26c0   :  { %v4207_v51 = vpop.f32.mrb[28].mxu0 }
0x26c1   :  { %v10111_v3 = vadd.f32 %v9896_v23, %v4207_v51  ;;  %v7560_v16 = vpop.f32.mrb[29].mxu0 }
0x26c3   :  { %v4224_v1 = vrot.slane %v10111_v3, %v8869_v0 }
0x26c5   :  { %v4225_v38 = vcombine.high %v4224_v1, %v4224_v1  ;;  %v4232_v63 = vrot.slane %v4224_v1, %v8869_v0 }
0x26c7   :  { %v4239_v6 = vrot.slane %v4225_v38, %v8869_v0  ;;  %v4240_v24 = vcombine.high %v4232_v63, %v4232_v63  ;;  %v4245_v49 = vrot.slane %v4232_v63, %v8880_v8 }
0x26c9   :  { %v4241_v30 = vcombine.high %v4239_v6, %v4239_v6  ;;  %v4263_v41 = vadd.f32 %v4245_v49, %v8883_v12  ;;  %v4262_v14 = vadd.f32 %v4245_v49, %v8885_v13  ;;  %v4253_v23 = vrot.slane %v4240_v24, %v8880_v8  ;;  %v11333_v49 = vld [vmem:[#allocation29_spill] sm:$0xff] }
0x26ca   :  { %v4249_v15 = vrot.slane %v4239_v6, %v8880_v8 }
0x26cb   :  { %v4271_v22 = vmax.f32 %v4263_v41, 0.0  ;;  %v4270_v10 = vmax.f32 %v4262_v14, 0.0  ;;  %v4266_v50 = vadd.f32 %v4253_v23, %v8898_v32  ;;  %v4257_v60 = vrot.slane %v4241_v30, %v8880_v8 }
0x26cc   :  { %v4264_v25 = vadd.f32 %v4249_v15, %v8891_v20  ;;  %v4265_v62 = vadd.f32 %v4249_v15, %v8889_v19  ;;  %v4267_v51 = vadd.f32 %v4253_v23, %v8896_v31 }
0x26cd   :  { %v4279_v45 = vmul.f32 %v9917_v52, %v4271_v22  ;;  %v4278_v17 = vmul.f32 %v9917_v52, %v4270_v10  ;;  %v4274_v7 = vmax.f32 %v4266_v50, 0.0  ;;  %v4268_v26 = vadd.f32 %v4257_v60, %v8908_v46 }
0x26ce   :  { %v4272_v36 = vmax.f32 %v4264_v25, 0.0  ;;  %v4273_v21 = vmax.f32 %v4265_v62, 0.0  ;;  %v4275_v24 = vmax.f32 %v4267_v51, 0.0  ;;  %v4269_v30 = vadd.f32 %v4257_v60, %v11333_v49  ;;  %v11334_v51 = vld [vmem:[#allocation31_spill] sm:$0xff] }
0x26cf   :  { %v4289_v16 = vsel %vm202_vm0, %v4279_v45, 0.0  ;;  %v4286_v1 = vsel %vm202_vm0, %v4278_v17, 0.0  ;;  %v4282_v38 = vmul.f32 %v9917_v52, %v4274_v7  ;;  %v4276_v63 = vmax.f32 %v4268_v26, 0.0 }
0x26d0   :  { %4290 = vadd.xlane.f32.xlu1 %v4289_v16  ;;  %4287 = vadd.xlane.f32.xlu0 %v4286_v1  ;;  %v4280_v6 = vmul.f32 %v9917_v52, %v4272_v36  ;;  %v4281_v23 = vmul.f32 %v9917_v52, %v4273_v21  ;;  %v4283_v50 = vmul.f32 %v9917_v52, %v4275_v24  ;;  %v4277_v25 = vmax.f32 %v4269_v30, 0.0 }
0x26d1   :  { %v4298_v41 = vsel %vm202_vm0, %v4282_v38, 0.0  ;;  %v4284_v15 = vmul.f32 %v9917_v52, %v4276_v63 }
0x26d2   :  { %v4292_v14 = vsel %vm202_vm0, %v4280_v6, 0.0  ;;  %v4295_v22 = vsel %vm202_vm0, %v4281_v23, 0.0  ;;  %v4301_v60 = vsel %vm202_vm0, %v4283_v50, 0.0  ;;  %v4285_v62 = vmul.f32 %v9917_v52, %v4277_v25 }
0x26d3   :  { %v4304_v10 = vsel %vm202_vm0, %v4284_v15, 0.0 }
0x26d4   :  { %4299 = vadd.xlane.f32.xlu1 %v4298_v41  ;;  %4293 = vadd.xlane.f32.xlu0 %v4292_v14  ;;  %v4307_v45 = vsel %vm202_vm0, %v4285_v62, 0.0 }
0x26d8   :  { %4296 = vadd.xlane.f32.xlu0 %v4295_v22  ;;  %4305 = vadd.xlane.f32.xlu1 %v4304_v10 }
0x26dc   :  { %4302 = vadd.xlane.f32.xlu0 %v4301_v60 }
0x26e0   :  { %4308 = vadd.xlane.f32.xlu0 %v4307_v45 }
0x275d   :  { %v4291_v17 = vpop.xlane.xlu1 %4290  ;;  %v4288_v7 = vpop.xlane.xlu0 %4287 }
0x275e   :  { %v4311_v1 = vadd.f32 %v4291_v17, %v11334_v51  ;;  %v4310_v38 = vadd.f32 %v4288_v7, %v11334_v51 }
0x2760   :  { %v4333_v14 = vrot.slane %v4311_v1, %v8942_v56  ;;  %v4329_v23 = vrot.slane %v4310_v38, %v8939_v61 }
0x2761   :  { %v4294_v26 = vpop.xlane.xlu0 %4293  ;;  %v4300_v36 = vpop.xlane.xlu1 %4299 }
0x2762   :  { %v4312_v63 = vadd.f32 %v4294_v26, %v11334_v51  ;;  %v4314_v6 = vadd.f32 %v4300_v36, %v11334_v51  ;;  %v4334_v17 = vsel %vm811_vm5, %v4333_v14, %v4329_v23 }
0x2764   :  { %v4338_v15 = vrot.slane %v4312_v63, %v8939_v61  ;;  %v4347_v50 = vrot.slane %v4314_v6, %v8939_v61 }
0x2765   :  { %v4297_v21 = vpop.xlane.xlu0 %4296  ;;  %v4306_v52 = vpop.xlane.xlu1 %4305 }
0x2766   :  { %v4313_v16 = vadd.f32 %v4297_v21, %v11334_v51  ;;  %v4316_v22 = vadd.f32 %v4306_v52, %v11334_v51 }
0x2768   :  { %v4342_v30 = vrot.slane %v4313_v16, %v8942_v56  ;;  %v4356_v7 = vrot.slane %v4316_v22, %v8939_v61 }
0x2769   :  { %v4303_v24 = vpop.xlane.xlu0 %4302 }
0x276a   :  { %v4315_v41 = vadd.f32 %v4303_v24, %v11334_v51  ;;  %v4343_v60 = vsel %vm811_vm5, %v4342_v30, %v4338_v15 }
0x276b   :  { %v4362_v36 = vsel %vm512_vm2, %v4343_v60, %v4334_v17 }
0x276c   :  { %v4351_v10 = vrot.slane %v4315_v41, %v8942_v56 }
0x276d   :  { %v4309_v25 = vpop.xlane.xlu0 %4308 }
0x276e   :  { %v4317_v62 = vadd.f32 %v4309_v25, %v11334_v51  ;;  %v4352_v45 = vsel %vm811_vm5, %v4351_v10, %v4347_v50 }
0x276f   :  { %v4363_v52 = vsel %vm514_vm3, %v4352_v45, %v4362_v36 }
0x2770   :  { %v4360_v26 = vrot.slane %v4317_v62, %v8942_v56 }
0x2772   :  { %v4361_v21 = vsel %vm811_vm5, %v4360_v26, %v4356_v7 }
0x2773   :  { %v4364_v24 = vsel %vm516_vm4, %v4361_v21, %v4363_v52 }
0x2774   :  { %v4366_v30 = vsel %vm844_vm6, %v4364_v24, -inf }
0x2775   :  { %4367 = vmax.xlane.f32.xlu1 %v4366_v30 }
0x2802   :  { %v4368_v15 = vpop.xlane.xlu1 %4367 }
0x2803   :  { %v4373_v10 = vrot.slane %v4368_v15, %v8880_v8  ;;  %v4377_v14 = vrot.slane %v4368_v15, %v8974_v4  ;;  %v4381_v23 = vrot.slane %v4368_v15, %v8980_v43  ;;  %v4385_v45 = vrot.slane %v4368_v15, %v8971_v59 }
0x2805   :  { %v4390_v50 = vsub.f32 %v4310_v38, %v4373_v10  ;;  %v4391_v25 = vsub.f32 %v4311_v1, %v4373_v10  ;;  %v4393_v42 = vsub.f32 %v4313_v16, %v4377_v14  ;;  %v4392_v60 = vsub.f32 %v4312_v63, %v4377_v14 }
0x2806   :  { %v4395_v26 = vsub.f32 %v4315_v41, %v4381_v23  ;;  %v4394_v21 = vsub.f32 %v4314_v6, %v4381_v23  ;;  %v4397_v24 = vsub.f32 %v4317_v62, %v4385_v45  ;;  %v4396_v44 = vsub.f32 %v4316_v22, %v4385_v45 }
0x2807   :  { %v4398_v17 = vmul.f32 1.442695, %v4390_v50  ;;  %v4400_v7 = vmul.f32 1.442695, %v4391_v25  ;;  %v4404_v36 = vmul.f32 1.442695, %v4393_v42 }
0x2808   :  { %v4402_v52 = vmul.f32 1.442695, %v4392_v60  ;;  %v4408_v30 = vmul.f32 1.442695, %v4395_v26  ;;  %v4406_v51 = vmul.f32 1.442695, %v4394_v21 }
0x2809   :  { %8226 = vpow2.f32 %v4398_v17  ;;  %v4412_v1 = vmul.f32 1.442695, %v4397_v24  ;;  %v4410_v16 = vmul.f32 1.442695, %v4396_v44 }
0x280a   :  { %8228 = vpow2.f32 %v4400_v7 }
0x280b   :  { %8230 = vpow2.f32 %v4404_v36 }
0x280c   :  { %8232 = vpow2.f32 %v4402_v52 }
0x280d   :  { %8234 = vpow2.f32 %v4408_v30 }
0x280e   :  { %8236 = vpow2.f32 %v4406_v51 }
0x280f   :  { %8238 = vpow2.f32 %v4412_v1 }
0x2810   :  { %8240 = vpow2.f32 %v4410_v16 }
0x2813   :  { %v8227_v38 = vpop.eup %8226 }
0x2814   :  { %v8229_v63 = vpop.eup %8228  ;;  %4423 = vperm.xlu0 %8050, %v8227_v38  }
0x2815   :  { %4426 = vperm.xlu1 %8051, %v8229_v63   ;;  %v8231_v42 = vpop.eup %8230 }
0x2816   :  { %v8233_v6 = vpop.eup %8232 }
0x2817   :  { %v8235_v41 = vpop.eup %8234 }
0x2818   :  { %4432 = vperm.xlu0 %8050, %v8231_v42   ;;  %v8237_v62 = vpop.eup %8236 }
0x2819   :  { %4429 = vperm.xlu1 %8051, %v8233_v6   ;;  %v8239_v22 = vpop.eup %8238 }
0x281a   :  { %v8241_v15 = vpop.eup %8240 }
0x281c   :  { %4438 = vperm.xlu0 %8050, %v8235_v41  }
0x281d   :  { %4435 = vperm.xlu1 %8051, %v8237_v62  }
0x2820   :  { %4444 = vperm.xlu0 %8050, %v8239_v22  }
0x2821   :  { %4441 = vperm.xlu1 %8051, %v8241_v15  }
0x2893   :  { %v4424_v51 = vpop.permute.xlu0 %4423 }
0x2894   :  { %v4427_v44 = vpop.permute.xlu1 %4426  ;;  %v4449_v45 = vrot.slane %v4424_v51, %v8939_v61 }
0x2895   :  { %v4453_v7 = vrot.slane %v4427_v44, %v8942_v56 }
0x2897   :  { %v4433_v10 = vpop.permute.xlu0 %4432  ;;  %v4454_v1 = vsel %vm811_vm5, %v4453_v7, %v4449_v45 }
0x2898   :  { %v4430_v14 = vpop.permute.xlu1 %4429  ;;  %v4462_v50 = vrot.slane %v4433_v10, %v8942_v56 }
0x2899   :  { %v4458_v23 = vrot.slane %v4430_v14, %v8939_v61 }
0x289b   :  { %v4439_v25 = vpop.permute.xlu0 %4438  ;;  %v4463_v36 = vsel %vm811_vm5, %v4462_v50, %v4458_v23 }
0x289c   :  { %v4436_v60 = vpop.permute.xlu1 %4435  ;;  %v4471_v17 = vrot.slane %v4439_v25, %v8942_v56  ;;  %v4482_v10 = vsel %vm512_vm2, %v4463_v36, %v4454_v1  ;;  %v10219_v1 = vld [vmem:[#allocation3 + $0x8] sm:$0xff] }
0x289d   :  { %v4467_v26 = vrot.slane %v4436_v60, %v8939_v61 }
0x289f   :  { %v4445_v21 = vpop.permute.xlu0 %4444  ;;  %v4472_v52 = vsel %vm811_vm5, %v4471_v17, %v4467_v26 }
0x28a0   :  { %v4442_v24 = vpop.permute.xlu1 %4441  ;;  %v4480_v30 = vrot.slane %v4445_v21, %v8942_v56  ;;  %v4483_v51 = vsel %vm514_vm3, %v4472_v52, %v4482_v10 }
0x28a1   :  { %v4476_v16 = vrot.slane %v4442_v24, %v8939_v61 }
0x28a3   :  { %v4481_v44 = vsel %vm811_vm5, %v4480_v30, %v4476_v16  ;;  %v10222_v16 = vld [vmem:[#allocation3 + $0x10] sm:$0xff] }
0x28a4   :  { %v4484_v14 = vsel %vm516_vm4, %v4481_v44, %v4483_v51  ;;  %11343 = vst [vmem:[#allocation88_spill] sm:$0xff] %v10222_v16 }
0x28a5   :  { %v4486_v23 = vsel %vm844_vm6, %v4484_v14, 0.0 }
0x28a6   :  { %4487 = vadd.xlane.f32.xlu1 %v4486_v23 }
0x28b7   :  { %4614 = vrot.lane.b32.xlu1 %v10085_v37, %s8570_s22 }
0x2933   :  { %v4488_v50 = vpop.xlane.xlu1 %4487 }
0x2934   :  { %8242 = vrcp.f32 %v4488_v50 }
0x293e   :  { %v8243_v25 = vpop.eup %8242 }
0x293f   :  { %v4494_v60 = vrot.slane %v8243_v25, %v8880_v8  ;;  %v4498_v45 = vrot.slane %v8243_v25, %v8974_v4  ;;  %v4502_v21 = vrot.slane %v8243_v25, %v8980_v43  ;;  %v4506_v52 = vrot.slane %v8243_v25, %v8971_v59 }
0x2941   :  { %v10192_v17 = vmul.f32 %v8227_v38, %v4494_v60  ;;  %v10195_v7 = vmul.f32 %v8229_v63, %v4494_v60  ;;  %v10199_v26 = vmul.f32 %v8233_v6, %v4498_v45  ;;  %v10202_v36 = vmul.f32 %v8231_v42, %v4498_v45 }
0x2942   :  { %v10206_v38 = vmul.f32 %v8237_v62, %v4502_v21  ;;  %v10209_v63 = vmul.f32 %v8235_v41, %v4502_v21  ;;  %v10213_v6 = vmul.f32 %v8241_v15, %v4506_v52  ;;  %v10216_v42 = vmul.f32 %v8239_v22, %v4506_v52  ;;  %v10225_v15 = vld [vmem:[#allocation3] sm:$0xff]  ;;  %v10228_v22 = vld [vmem:[#allocation3 + $0x18] sm:$0xff] }
0x2943   :  { %11335 = vst [vmem:[#allocation68_spill] sm:$0xff] %v10192_v17  ;;  %4521 = vperm.xlu0 %8050, %v10192_v17   ;;  %11336 = vst [vmem:[#allocation70_spill] sm:$0xff] %v10195_v7  ;;  %v10246_v17 = vld [vmem:[#allocation3 + $0x38] sm:$0xff] }
0x2944   :  { %11337 = vst [vmem:[#allocation71_spill] sm:$0xff] %v10199_v26  ;;  %11338 = vst [vmem:[#allocation72_spill] sm:$0xff] %v10202_v36 }
0x2945   :  { %11339 = vst [vmem:[#allocation74_spill] sm:$0xff] %v10206_v38  ;;  %11340 = vst [vmem:[#allocation73_spill] sm:$0xff] %v10209_v63 }
0x2946   :  { %11341 = vst [vmem:[#allocation86_spill] sm:$0xff] %v10213_v6  ;;  %11342 = vst [vmem:[#allocation87_spill] sm:$0xff] %v10216_v42 }
0x2947   :  { %4526 = vperm.xlu0 %8050, %v10195_v7   ;;  %11344 = vst [vmem:[#allocation89_spill] sm:$0xff] %v10225_v15  ;;  %11345 = vst [vmem:[#allocation90_spill] sm:$0xff] %v10228_v22 }
0x2948   :  { %11349 = vst [vmem:[#allocation94_spill] sm:$0xff] %v10246_v17 }
0x294b   :  { %4531 = vperm.xlu0 %8050, %v10199_v26  }
0x294f   :  { %4536 = vperm.xlu0 %8050, %v10202_v36  }
0x2953   :  { %4541 = vperm.xlu0 %8050, %v10206_v38  }
0x2957   :  { %4546 = vperm.xlu0 %8050, %v10209_v63  }
0x295b   :  { %4551 = vperm.xlu0 %8050, %v10213_v6  }
0x295f   :  { %4556 = vperm.xlu0 %8050, %v10216_v42   ;;  %v10238_v42 = vld [vmem:[#allocation3 + $0x28] sm:$0xff] }
0x2960   :  { %11347 = vst [vmem:[#allocation92_spill] sm:$0xff] %v10238_v42 }
0x29c2   :  { %v4522_v24 = vpop.permute.xlu0 %4521 }
0x29c3   :  { %v4559_v51 = vmul.f32 %v10225_v15, %v4522_v24 }
0x29c5   :  { %v4567_v21 = vsel %vm202_vm0, %v4559_v51, 0.0 }
0x29c6   :  { %v4527_v30 = vpop.permute.xlu0 %4526 }
0x29c7   :  { %v4560_v41 = vmul.f32 %v10219_v1, %v4527_v30  ;;  %v10235_v30 = vld [vmem:[#allocation3 + $0x20] sm:$0xff] }
0x29c8   :  { %11346 = vst [vmem:[#allocation91_spill] sm:$0xff] %v10235_v30 }
0x29c9   :  { %v4568_v23 = vsel %vm202_vm0, %v4560_v41, 0.0 }
0x29ca   :  { %v4532_v62 = vpop.permute.xlu0 %4531  ;;  %v4569_v52 = vadd.f32 %v4568_v23, %v4567_v21  ;;  %v10243_v21 = vld [vmem:[#allocation3 + $0x30] sm:$0xff] }
0x29cb   :  { %v4561_v10 = vmul.f32 %v10222_v16, %v4532_v62  ;;  %11348 = vst [vmem:[#allocation93_spill] sm:$0xff] %v10243_v21 }
0x29cc   :  { %v4570_v41 = vrot.slane %v4569_v52, 4 }
0x29cd   :  { %v4576_v50 = vsel %vm202_vm0, %v4561_v10, 0.0 }
0x29ce   :  { %v4537_v44 = vpop.permute.xlu0 %4536  ;;  %v4571_v51 = vadd.f32 %v4570_v41, %v4569_v52 }
0x29cf   :  { %v4562_v14 = vmul.f32 %v10228_v22, %v4537_v44 }
0x29d0   :  { %v4572_v7 = vrot.slane %v4571_v51, 2 }
0x29d1   :  { %v4577_v25 = vsel %vm202_vm0, %v4562_v14, 0.0 }
0x29d2   :  { %v4578_v60 = vadd.f32 %v4577_v25, %v4576_v50  ;;  %v4542_v45 = vpop.permute.xlu0 %4541 }
0x29d3   :  { %v4563_v62 = vmul.f32 %v10235_v30, %v4542_v45 }
0x29d4   :  { %v4579_v24 = vrot.slane %v4578_v60, 4 }
0x29d5   :  { %v4585_v10 = vsel %vm202_vm0, %v4563_v62, 0.0 }
0x29d6   :  { %v4547_v6 = vpop.permute.xlu0 %4546  ;;  %v4580_v50 = vadd.f32 %v4579_v24, %v4578_v60 }
0x29d7   :  { %v4564_v44 = vmul.f32 %v10238_v42, %v4547_v6 }
0x29d8   :  { %v4581_v63 = vrot.slane %v4580_v50, 2 }
0x29d9   :  { %v4586_v14 = vsel %vm202_vm0, %v4564_v44, 0.0 }
0x29da   :  { %v4587_v25 = vadd.f32 %v4586_v14, %v4585_v10  ;;  %v4552_v38 = vpop.permute.xlu0 %4551  ;;  %v4582_v24 = vadd.f32 %v4581_v63, %v4580_v50  ;;  %v4573_v10 = vadd.f32 %v4572_v7, %v4571_v51  ;;  %v6962_v7 = vmul.f32 -1.442695, %v10111_v3 }
0x29db   :  { %v4565_v45 = vmul.f32 %v10243_v21, %v4552_v38 }
0x29dc   :  { %v4588_v23 = vrot.slane %v4587_v25, 4  ;;  %v4583_v42 = vrot.slane %v4582_v24, 1  ;;  %8244 = vpow2.f32 %v6962_v7 }
0x29dd   :  { %v4594_v44 = vsel %vm202_vm0, %v4565_v45, 0.0 }
0x29de   :  { %v4589_v26 = vadd.f32 %v4588_v23, %v4587_v25  ;;  %v4557_v36 = vpop.permute.xlu0 %4556  ;;  %v4574_v25 = vrot.slane %v4573_v10, 1  ;;  %v4584_v30 = vadd.f32 %v4583_v42, %v4582_v24 }
0x29df   :  { %v4566_v6 = vmul.f32 %v10246_v17, %v4557_v36 }
0x29e0   :  { %v4590_v62 = vrot.slane %v4589_v26, 2  ;;  %v4575_v36 = vadd.f32 %v4574_v25, %v4573_v10 }
0x29e1   :  { %v4595_v60 = vsel %vm202_vm0, %v4566_v6, 0.0 }
0x29e2   :  { %v4596_v52 = vadd.f32 %v4595_v60, %v4594_v44  ;;  %v4591_v41 = vadd.f32 %v4590_v62, %v4589_v26  ;;  %v4607_v45 = vsel %vm512_vm2, %v4584_v30, %v4575_v36  ;;  %v4615_v62 = vpop.permute.xlu1 %4614  ;;  %v8352_v44 = vld [vmem:[#allocation6 + $0x14] sm:$0xf] }
0x29e4   :  { %v4597_v14 = vrot.slane %v4596_v52, 4  ;;  %v4592_v21 = vrot.slane %v4591_v41, 1 }
0x29e6   :  { %v4598_v38 = vadd.f32 %v4597_v14, %v4596_v52  ;;  %v4593_v16 = vadd.f32 %v4592_v21, %v4591_v41  ;;  %v8245_v26 = vpop.eup %8244 }
0x29e7   :  { %v4214_v50 = vadd.f32 1.0, %v8245_v26 }
0x29e8   :  { %v4599_v23 = vrot.slane %v4598_v38, 2  ;;  %v4608_v6 = vsel %vm514_vm3, %v4593_v16, %v4607_v45 }
0x29e9   :  { %8246 = vrcp.f32 %v4214_v50 }
0x29ea   :  { %v4600_v22 = vadd.f32 %v4599_v23, %v4598_v38  ;;  %v10278_v38 = vsel %vm3433_vm10, 1.0, %v11255_v2  ;;  %v10291_v23 = vsel %vm4132_vm11, %v10065_v28, %v10062_v58  ;;  %vm6534_vm10 = vcmask 523712  }
0x29eb   :  { %11350 = vst [vmem:[#allocation95_spill] sm:$0xff] %v10278_v38  ;;  %vm6609_vm11 = vcmask 654912  }
0x29ec   :  { %v4601_v17 = vrot.slane %v4600_v22, 1 }
0x29ee   :  { %v4602_v15 = vadd.f32 %v4601_v17, %v4600_v22 }
0x29f0   :  { %v4609_v63 = vsel %vm516_vm4, %v4602_v15, %v4608_v6 }
0x29f1   :  { %4610 = vrot.lane.b32.xlu0 %v4609_v63, %s8571_s11  ;;  %v4795_v63 = vsel %vm4135_vm12, 1, %v11257_v18 }
0x29f3   :  { %v8247_v42 = vpop.eup %8246 }
0x2a63   :  { %v4611_v51 = vpop.permute.xlu0 %4610 }
0x2a64   :  { %v4613_v21 = vmul.f32 %v8247_v42, %v4611_v51 }
0x2a66   :  { %v4617_v17 = vsel %vm202_vm0, %v8352_v44, %v4613_v21 }
0x2a67   :  { %v4618_v22 = vsel %vm1097_vm7, %v4617_v17, %v4615_v62  ;;  %v10334_v62 = vld [vmem:[%s11118_s10] ss:$0 sm:$0xff] }
0x2a68   :  { %7586 = vmatmul.mubr.msk.f32.vlgmr.msra.gmra.mrb[16].mxu1 %vm1105_vm8, %v4618_v22 }
0x2a69   :  { %7967 = vmatpush3.bf16.msra.mxu1 %v9044_v27  ;;  %7642 = vmatprep.mubr.msk.f32.mxu1 %vm8566_vm1, %v11255_v2 }
0x2a6a   :  { %7968 = vmatprep.subr.bf16.mxu1 %v11254_v40 }
0x2a6d   :  { %7970 = vmatpush3.bf16.msra.mxu1 %v9050_v11 }
0x2a6e   :  { %7971 = vmatprep.subr.bf16.mxu1 %v11254_v40 }
0x2a71   :  { %7973 = vmatpush3.bf16.msra.mxu1 %v9060_v48 }
0x2a72   :  { %7974 = vmatprep.subr.bf16.mxu1 %v11254_v40 }
0x2a75   :  { %7976 = vmatpush3.bf16.msra.mxu1 %v9070_v47 }
0x2a76   :  { %7977 = vmatprep.subr.bf16.mxu1 %v11254_v40 }
0x2a79   :  { %7979 = vmatpush3.bf16.msra.mxu1 %v9080_v53 }
0x2a7a   :  { %7980 = vmatprep.subr.bf16.mxu1 %v11254_v40 }
0x2a7d   :  { %7982 = vmatpush3.bf16.msra.mxu1 %v9107_v5 }
0x2a7e   :  { %8001 = vmatprep.subr.bf16.mxu1 %v11254_v40 }
0x2b3b   :  { %v4688_v3 = vpop.f32.mrb[16].mxu1 }
0x2b3c   :  { %v4689_v16 = vadd.f32 %v10053_v39, %v4688_v3  ;;  %v7587_v15 = vpop.f32.mrb[17].mxu1  ;;  %v10283_v39 = vsel %vm4135_vm12, 1.0, %v11255_v2 }
0x2b3d   :  { %11351 = vst [vmem:[#allocation96_spill] sm:$0xff] %v10283_v39 }
0x2b3e   :  { %8248 = vtanh.f32 %v4689_v16  ;;  %v6964_v60 = vmul.f32 -1.442695, %v4689_v16 }
0x2b40   :  { %8250 = vpow2.f32 %v6964_v60 }
0x2b48   :  { %v8249_v30 = vpop.eup %8248 }
0x2b49   :  { %4701 = vrot.lane.b32.xlu0 %v8249_v30, %s8556_s20 }
0x2b4a   :  { %v8251_v24 = vpop.eup %8250 }
0x2b4b   :  { %v4695_v52 = vadd.f32 1.0, %v8251_v24 }
0x2b4d   :  { %8252 = vrcp.f32 %v4695_v52 }
0x2b57   :  { %v8253_v41 = vpop.eup %8252 }
0x2b58   :  { %v4699_v36 = vmul.f32 %v8253_v41, %v10291_v23 }
0x2bbb   :  { %v4702_v10 = vpop.permute.xlu0 %4701 }
0x2bbc   :  { %v4704_v14 = vmul.f32 %v8253_v41, %v4702_v10 }
0x2bbe   :  { %4706 = vrot.lane.b32.xlu0 %v4704_v14, %s8571_s11 }
0x2c30   :  { %v4707_v45 = vpop.permute.xlu0 %4706 }
0x2c31   :  { %v10294_v6 = vadd.f32 %v4707_v45, %v4699_v36 }
0x2c33   :  { %8254 = vtanh.f32 %v10294_v6 }
0x2c3d   :  { %v8255_v33 = vpop.eup %8254 }
0x2c3e   :  { %4712 = vrot.lane.b32.xlu0 %v8255_v33, %s8556_s20 }
0x2c42   :  { %4832 = vperm.xlu0 %8050, %v4795_v63  }
0x2cb0   :  { %v4713_v7 = vpop.permute.xlu0 %4712 }
0x2cb1   :  { %v4715_v26 = vmul.f32 %v8253_v41, %v4713_v7 }
0x2cb3   :  { %4717 = vrot.lane.b32.xlu1 %v4715_v26, %s8571_s11 }
0x2cc1   :  { %v10300_v54 = vpop.permute.xlu0 %4832 }
0x2cc2   :  { %vm4834_vm13 = vcmp.eq.s32.totalorder %v10300_v54, 1 }
0x2cc3   :  { %v10306_v58 = vsel %vm4834_vm13, %v4715_v26, %v10085_v37 }
0x2cc4   :  { %4839 = vrot.lane.b32.xlu0 %v10306_v58, %s8571_s11 }
0x2d25   :  { %v4718_v28 = vpop.permute.xlu1 %4717 }
0x2d26   :  { %v4720_v50 = vsel %vm202_vm0, %v4718_v28, %v4613_v21  ;;  %v10355_v28 = vld [vmem:[%s11113_s5] ss:$0 sm:$0xff] }
0x2d27   :  { %7605 = vmatmul.mubr.msk.f32.vlgmr.msra.gmra.mrb[30].mxu0 %vm1097_vm7, %v4720_v50 }
0x2d28   :  { %7961 = vmatpush3.bf16.msra.mxu0 %v8801_v9  ;;  %7615 = vmatprep.mubr.msk.f32.mxu0 %vm8566_vm1, %v11255_v2 }
0x2d29   :  { %7962 = vmatprep.subr.bf16.mxu0 %v11254_v40 }
0x2d2c   :  { %7964 = vmatpush3.bf16.msra.mxu0 %v8829_v34 }
0x2d2d   :  { %7983 = vmatprep.subr.bf16.mxu0 %v11254_v40 }
0x2d36   :  { %v4840_v37 = vpop.permute.xlu0 %4839 }
0x2d37   :  { %7616 = vmatmul.mubr.msk.f32.vlgmr.msra.gmra.mrb[32].mxu0 %vm202_vm0, %v4840_v37 }
0x2d38   :  { %7985 = vmatpush3.bf16.msra.mxu0 %v9168_v55  ;;  %7661 = vmatprep.mubr.msk.f32.mxu0 %vm8566_vm1, %v11255_v2 }
0x2d39   :  { %7986 = vmatprep.subr.bf16.mxu0 %v11254_v40 }
0x2d3c   :  { %7988 = vmatpush3.bf16.msra.mxu0 %v9174_v29 }
0x2d3d   :  { %7989 = vmatprep.subr.bf16.mxu0 %v11254_v40 }
0x2d40   :  { %7991 = vmatpush3.bf16.msra.mxu0 %v9184_v35 }
0x2d41   :  { %7992 = vmatprep.subr.bf16.mxu0 %v11254_v40 }
0x2d44   :  { %7994 = vmatpush3.bf16.msra.mxu0 %v9194_v57 }
0x2d45   :  { %7995 = vmatprep.subr.bf16.mxu0 %v11254_v40 }
0x2dfa   :  { %v10329_v42 = vpop.f32.mrb[30].mxu0 }
0x2dfb   :  { %11352 = vst [vmem:[#allocation97_spill] sm:$0xff] %v10329_v42  ;;  %v7606_v51 = vpop.f32.mrb[31].mxu0 }
0x2e0a   :  { %v4909_v21 = vpop.f32.mrb[32].mxu0 }
0x2e0b   :  { %v10337_v44 = vadd.f32 %v10334_v62, %v4909_v21  ;;  %v7617_v17 = vpop.f32.mrb[33].mxu0 }
0x2e0d   :  { %v4926_v22 = vrot.slane %v10337_v44, %v8869_v0 }
0x2e0f   :  { %v4927_v3 = vcombine.high %v4926_v22, %v4926_v22  ;;  %v4934_v16 = vrot.slane %v4926_v22, %v8869_v0 }
0x2e11   :  { %v4941_v15 = vrot.slane %v4927_v3, %v8869_v0  ;;  %v4942_v30 = vcombine.high %v4934_v16, %v4934_v16  ;;  %v4947_v60 = vrot.slane %v4934_v16, %v8880_v8 }
0x2e13   :  { %v4943_v24 = vcombine.high %v4941_v15, %v4941_v15  ;;  %v4965_v52 = vadd.f32 %v4947_v60, %v8883_v12  ;;  %v4964_v41 = vadd.f32 %v4947_v60, %v8885_v13  ;;  %v4955_v10 = vrot.slane %v4942_v30, %v8880_v8 }
0x2e14   :  { %v4951_v14 = vrot.slane %v4941_v15, %v8880_v8 }
0x2e15   :  { %v4973_v36 = vmax.f32 %v4965_v52, 0.0  ;;  %v4972_v45 = vmax.f32 %v4964_v41, 0.0  ;;  %v4968_v33 = vadd.f32 %v4955_v10, %v8898_v32  ;;  %v4959_v63 = vrot.slane %v4943_v24, %v8880_v8 }
0x2e16   :  { %v4966_v7 = vadd.f32 %v4951_v14, %v8891_v20  ;;  %v4967_v26 = vadd.f32 %v4951_v14, %v8889_v19  ;;  %v4969_v3 = vadd.f32 %v4955_v10, %v8896_v31 }
0x2e17   :  { %v4981_v50 = vmul.f32 %v10355_v28, %v4973_v36  ;;  %v4980_v37 = vmul.f32 %v10355_v28, %v4972_v45  ;;  %v4976_v51 = vmax.f32 %v4968_v33, 0.0  ;;  %v4970_v21 = vadd.f32 %v4959_v63, %v8908_v46 }
0x2e18   :  { %v4974_v17 = vmax.f32 %v4966_v7, 0.0  ;;  %v4975_v22 = vmax.f32 %v4967_v26, 0.0  ;;  %v4977_v52 = vmax.f32 %v4969_v3, 0.0  ;;  %v4971_v41 = vadd.f32 %v4959_v63, %v11333_v49 }
0x2e19   :  { %v4991_v16 = vsel %vm202_vm0, %v4981_v50, 0.0  ;;  %v4988_v15 = vsel %vm202_vm0, %v4980_v37, 0.0  ;;  %v4984_v30 = vmul.f32 %v10355_v28, %v4976_v51  ;;  %v4978_v60 = vmax.f32 %v4970_v21, 0.0 }
0x2e1a   :  { %4992 = vadd.xlane.f32.xlu0 %v4991_v16  ;;  %4989 = vadd.xlane.f32.xlu1 %v4988_v15  ;;  %v4982_v24 = vmul.f32 %v10355_v28, %v4974_v17  ;;  %v4983_v10 = vmul.f32 %v10355_v28, %v4975_v22  ;;  %v4985_v26 = vmul.f32 %v10355_v28, %v4977_v52  ;;  %v4979_v50 = vmax.f32 %v4971_v41, 0.0  ;;  %v11353_v15 = vld [vmem:[#allocation31_spill] sm:$0xff] }
0x2e1b   :  { %v5000_v14 = vsel %vm202_vm0, %v4984_v30, 0.0  ;;  %v4986_v45 = vmul.f32 %v10355_v28, %v4978_v60 }
0x2e1c   :  { %v4994_v36 = vsel %vm202_vm0, %v4982_v24, 0.0  ;;  %v4997_v33 = vsel %vm202_vm0, %v4983_v10, 0.0  ;;  %v5003_v63 = vsel %vm202_vm0, %v4985_v26, 0.0  ;;  %v4987_v37 = vmul.f32 %v10355_v28, %v4979_v50 }
0x2e1d   :  { %v5006_v7 = vsel %vm202_vm0, %v4986_v45, 0.0 }
0x2e1e   :  { %5001 = vadd.xlane.f32.xlu1 %v5000_v14  ;;  %4995 = vadd.xlane.f32.xlu0 %v4994_v36  ;;  %v5009_v51 = vsel %vm202_vm0, %v4987_v37, 0.0 }
0x2e22   :  { %4998 = vadd.xlane.f32.xlu0 %v4997_v33  ;;  %5007 = vadd.xlane.f32.xlu1 %v5006_v7 }
0x2e26   :  { %5004 = vadd.xlane.f32.xlu0 %v5003_v63 }
0x2e2a   :  { %5010 = vadd.xlane.f32.xlu0 %v5009_v51 }
0x2ea7   :  { %v4993_v21 = vpop.xlane.xlu0 %4992  ;;  %v4990_v17 = vpop.xlane.xlu1 %4989 }
0x2ea8   :  { %v5013_v60 = vadd.f32 %v4993_v21, %v11353_v15  ;;  %v5012_v24 = vadd.f32 %v4990_v17, %v11353_v15 }
0x2eaa   :  { %v5035_v33 = vrot.slane %v5013_v60, %v8942_v56  ;;  %v5031_v7 = vrot.slane %v5012_v24, %v8939_v61 }
0x2eab   :  { %v4996_v22 = vpop.xlane.xlu0 %4995  ;;  %v5002_v3 = vpop.xlane.xlu1 %5001 }
0x2eac   :  { %v5014_v52 = vadd.f32 %v4996_v22, %v11353_v15  ;;  %v5016_v41 = vadd.f32 %v5002_v3, %v11353_v15  ;;  %v5036_v3 = vsel %vm811_vm5, %v5035_v33, %v5031_v7 }
0x2eae   :  { %v5040_v26 = vrot.slane %v5014_v52, %v8939_v61  ;;  %v5049_v37 = vrot.slane %v5016_v41, %v8939_v61 }
0x2eaf   :  { %v4999_v16 = vpop.xlane.xlu0 %4998  ;;  %v5008_v14 = vpop.xlane.xlu1 %5007 }
0x2eb0   :  { %v5015_v30 = vadd.f32 %v4999_v16, %v11353_v15  ;;  %v5018_v50 = vadd.f32 %v5008_v14, %v11353_v15 }
0x2eb2   :  { %v5044_v10 = vrot.slane %v5015_v30, %v8942_v56  ;;  %v5058_v16 = vrot.slane %v5018_v50, %v8939_v61 }
0x2eb3   :  { %v5005_v36 = vpop.xlane.xlu0 %5004 }
0x2eb4   :  { %v5017_v45 = vadd.f32 %v5005_v36, %v11353_v15  ;;  %v5045_v21 = vsel %vm811_vm5, %v5044_v10, %v5040_v26 }
0x2eb5   :  { %v5064_v25 = vsel %vm512_vm2, %v5045_v21, %v5036_v3 }
0x2eb6   :  { %v5053_v63 = vrot.slane %v5017_v45, %v8942_v56 }
0x2eb7   :  { %v5011_v51 = vpop.xlane.xlu0 %5010 }
0x2eb8   :  { %v5019_v17 = vadd.f32 %v5011_v51, %v11353_v15  ;;  %v5054_v22 = vsel %vm811_vm5, %v5053_v63, %v5049_v37 }
0x2eb9   :  { %v5065_v42 = vsel %vm514_vm3, %v5054_v22, %v5064_v25 }
0x2eba   :  { %v5062_v36 = vrot.slane %v5019_v17, %v8942_v56 }
0x2ebc   :  { %v5063_v14 = vsel %vm811_vm5, %v5062_v36, %v5058_v16 }
0x2ebd   :  { %v5066_v38 = vsel %vm516_vm4, %v5063_v14, %v5065_v42 }
0x2ebe   :  { %v5068_v10 = vsel %vm844_vm6, %v5066_v38, -inf }
0x2ebf   :  { %5069 = vmax.xlane.f32.xlu1 %v5068_v10 }
0x2f4c   :  { %v5070_v26 = vpop.xlane.xlu1 %5069 }
0x2f4d   :  { %v5075_v63 = vrot.slane %v5070_v26, %v8880_v8  ;;  %v5079_v33 = vrot.slane %v5070_v26, %v8974_v4  ;;  %v5083_v7 = vrot.slane %v5070_v26, %v8980_v43  ;;  %v5087_v37 = vrot.slane %v5070_v26, %v8971_v59 }
0x2f4f   :  { %v5092_v51 = vsub.f32 %v5012_v24, %v5075_v63  ;;  %v5093_v21 = vsub.f32 %v5013_v60, %v5075_v63  ;;  %v5094_v3 = vsub.f32 %v5014_v52, %v5079_v33  ;;  %v5096_v16 = vsub.f32 %v5016_v41, %v5083_v7 }
0x2f50   :  { %v5098_v22 = vsub.f32 %v5018_v50, %v5087_v37  ;;  %v5095_v38 = vsub.f32 %v5015_v30, %v5079_v33  ;;  %v5097_v39 = vsub.f32 %v5017_v45, %v5083_v7  ;;  %v5099_v49 = vsub.f32 %v5019_v17, %v5087_v37 }
0x2f51   :  { %v5100_v36 = vmul.f32 1.442695, %v5092_v51  ;;  %v5102_v25 = vmul.f32 1.442695, %v5093_v21  ;;  %v5108_v42 = vmul.f32 1.442695, %v5096_v16 }
0x2f52   :  { %v5104_v14 = vmul.f32 1.442695, %v5094_v3  ;;  %v5112_v10 = vmul.f32 1.442695, %v5098_v22  ;;  %v5106_v15 = vmul.f32 1.442695, %v5095_v38 }
0x2f53   :  { %8256 = vpow2.f32 %v5100_v36  ;;  %v5110_v24 = vmul.f32 1.442695, %v5097_v39  ;;  %v5114_v41 = vmul.f32 1.442695, %v5099_v49 }
0x2f54   :  { %8258 = vpow2.f32 %v5102_v25 }
0x2f55   :  { %8260 = vpow2.f32 %v5108_v42 }
0x2f56   :  { %8262 = vpow2.f32 %v5104_v14 }
0x2f57   :  { %8264 = vpow2.f32 %v5112_v10 }
0x2f58   :  { %8266 = vpow2.f32 %v5106_v15 }
0x2f59   :  { %8268 = vpow2.f32 %v5110_v24 }
0x2f5a   :  { %8270 = vpow2.f32 %v5114_v41 }
0x2f5d   :  { %v8257_v60 = vpop.eup %8256 }
0x2f5e   :  { %v8259_v52 = vpop.eup %8258  ;;  %5125 = vperm.xlu0 %8050, %v8257_v60  }
0x2f5f   :  { %5128 = vperm.xlu1 %8051, %v8259_v52   ;;  %v8261_v50 = vpop.eup %8260 }
0x2f60   :  { %v8263_v26 = vpop.eup %8262 }
0x2f61   :  { %v8265_v30 = vpop.eup %8264 }
0x2f62   :  { %5137 = vperm.xlu0 %8050, %v8261_v50   ;;  %v8267_v63 = vpop.eup %8266 }
0x2f63   :  { %5131 = vperm.xlu1 %8051, %v8263_v26   ;;  %v8269_v45 = vpop.eup %8268 }
0x2f64   :  { %v8271_v17 = vpop.eup %8270 }
0x2f66   :  { %5143 = vperm.xlu0 %8050, %v8265_v30  }
0x2f67   :  { %5134 = vperm.xlu1 %8051, %v8267_v63  }
0x2f6b   :  { %5140 = vperm.xlu1 %8051, %v8269_v45  }
0x2f6f   :  { %5146 = vperm.xlu1 %8051, %v8271_v17  }
0x2fdd   :  { %v5126_v15 = vpop.permute.xlu0 %5125 }
0x2fde   :  { %v5129_v39 = vpop.permute.xlu1 %5128  ;;  %v5151_v3 = vrot.slane %v5126_v15, %v8939_v61 }
0x2fdf   :  { %v5155_v21 = vrot.slane %v5129_v39, %v8942_v56 }
0x2fe1   :  { %v5138_v7 = vpop.permute.xlu0 %5137  ;;  %v5156_v10 = vsel %vm811_vm5, %v5155_v21, %v5151_v3 }
0x2fe2   :  { %v5132_v33 = vpop.permute.xlu1 %5131  ;;  %v5169_v25 = vrot.slane %v5138_v7, %v8939_v61 }
0x2fe3   :  { %v5160_v16 = vrot.slane %v5132_v33, %v8939_v61 }
0x2fe5   :  { %v5144_v22 = vpop.permute.xlu0 %5143 }
0x2fe6   :  { %v5135_v37 = vpop.permute.xlu1 %5134  ;;  %v5178_v24 = vrot.slane %v5144_v22, %v8939_v61 }
0x2fe7   :  { %v5164_v49 = vrot.slane %v5135_v37, %v8942_v56 }
0x2fe9   :  { %v5165_v42 = vsel %vm811_vm5, %v5164_v49, %v5160_v16 }
0x2fea   :  { %v5141_v51 = vpop.permute.xlu1 %5140  ;;  %v5184_v39 = vsel %vm512_vm2, %v5165_v42, %v5156_v10 }
0x2feb   :  { %v5173_v36 = vrot.slane %v5141_v51, %v8942_v56 }
0x2fed   :  { %v5174_v38 = vsel %vm811_vm5, %v5173_v36, %v5169_v25 }
0x2fee   :  { %v5147_v14 = vpop.permute.xlu1 %5146  ;;  %v5185_v33 = vsel %vm514_vm3, %v5174_v38, %v5184_v39 }
0x2fef   :  { %v5182_v41 = vrot.slane %v5147_v14, %v8942_v56 }
0x2ff1   :  { %v5183_v15 = vsel %vm811_vm5, %v5182_v41, %v5178_v24  ;;  %v11361_v41 = vld [vmem:[#allocation89_spill] sm:$0xff] }
0x2ff2   :  { %v5186_v7 = vsel %vm516_vm4, %v5183_v15, %v5185_v33  ;;  %v11362_v15 = vld [vmem:[#allocation88_spill] sm:$0xff] }
0x2ff3   :  { %v5188_v37 = vsel %vm844_vm6, %v5186_v7, 0.0 }
0x2ff4   :  { %5189 = vadd.xlane.f32.xlu0 %v5188_v37  ;;  %v11363_v37 = vld [vmem:[#allocation90_spill] sm:$0xff] }
0x3081   :  { %v5190_v49 = vpop.xlane.xlu0 %5189 }
0x3082   :  { %8272 = vrcp.f32 %v5190_v49 }
0x308c   :  { %v8273_v51 = vpop.eup %8272 }
0x308d   :  { %v5208_v21 = vrot.slane %v8273_v51, %v8971_v59  ;;  %v5196_v3 = vrot.slane %v8273_v51, %v8880_v8  ;;  %v5200_v22 = vrot.slane %v8273_v51, %v8974_v4 }
0x308f   :  { %v10422_v16 = vmul.f32 %v8271_v17, %v5208_v21  ;;  %v10424_v36 = vmul.f32 %v8257_v60, %v5196_v3  ;;  %v10428_v25 = vmul.f32 %v8259_v52, %v5196_v3  ;;  %v10432_v42 = vmul.f32 %v8263_v26, %v5200_v22 }
0x3090   :  { %v10435_v38 = vmul.f32 %v8267_v63, %v5200_v22  ;;  %v5204_v17 = vrot.slane %v8273_v51, %v8980_v43  ;;  %v10445_v14 = vmul.f32 %v8265_v30, %v5208_v21 }
0x3091   :  { %11354 = vst [vmem:[#allocation98_spill] sm:$0xff] %v10422_v16  ;;  %11355 = vst [vmem:[#allocation99_spill] sm:$0xff] %v10424_v36  ;;  %5258 = vperm.xlu0 %8050, %v10422_v16   ;;  %5223 = vperm.xlu1 %8051, %v10424_v36  }
0x3092   :  { %11356 = vst [vmem:[#allocation100_spill] sm:$0xff] %v10432_v42  ;;  %11357 = vst [vmem:[#allocation101_spill] sm:$0xff] %v10435_v38  ;;  %v10439_v60 = vmul.f32 %v8261_v50, %v5204_v17  ;;  %v10442_v52 = vmul.f32 %v8269_v45, %v5204_v17 }
0x3093   :  { %11360 = vst [vmem:[#allocation104_spill] sm:$0xff] %v10445_v14 }
0x3094   :  { %11358 = vst [vmem:[#allocation102_spill] sm:$0xff] %v10439_v60  ;;  %11359 = vst [vmem:[#allocation103_spill] sm:$0xff] %v10442_v52 }
0x3095   :  { %5228 = vperm.xlu1 %8051, %v10428_v25  }
0x3099   :  { %5233 = vperm.xlu1 %8051, %v10432_v42  }
0x309d   :  { %5238 = vperm.xlu1 %8051, %v10435_v38  }
0x30a1   :  { %5243 = vperm.xlu1 %8051, %v10439_v60  }
0x30a5   :  { %5248 = vperm.xlu1 %8051, %v10442_v52  }
0x30a9   :  { %5253 = vperm.xlu1 %8051, %v10445_v14  }
0x3110   :  { %v5224_v26 = vpop.permute.xlu1 %5223 }
0x3111   :  { %v5261_v39 = vmul.f32 %v11361_v41, %v5224_v26  ;;  %v5259_v41 = vpop.permute.xlu0 %5258 }
0x3113   :  { %v5269_v45 = vsel %vm202_vm0, %v5261_v39, 0.0  ;;  %v11366_v39 = vld [vmem:[#allocation94_spill] sm:$0xff] }
0x3114   :  { %v5229_v10 = vpop.permute.xlu1 %5228  ;;  %v5268_v60 = vmul.f32 %v11366_v39, %v5259_v41 }
0x3115   :  { %v5262_v63 = vmul.f32 %v10219_v1, %v5229_v10  ;;  %v11364_v10 = vld [vmem:[#allocation91_spill] sm:$0xff] }
0x3117   :  { %v5270_v50 = vsel %vm202_vm0, %v5262_v63, 0.0 }
0x3118   :  { %v5234_v24 = vpop.permute.xlu1 %5233  ;;  %v5271_v30 = vadd.f32 %v5270_v50, %v5269_v45 }
0x3119   :  { %v5263_v33 = vmul.f32 %v11362_v15, %v5234_v24  ;;  %v11365_v24 = vld [vmem:[#allocation92_spill] sm:$0xff] }
0x311a   :  { %v5272_v1 = vrot.slane %v5271_v30, 4 }
0x311b   :  { %v5278_v51 = vsel %vm202_vm0, %v5263_v33, 0.0 }
0x311c   :  { %v5239_v7 = vpop.permute.xlu1 %5238  ;;  %v5273_v16 = vadd.f32 %v5272_v1, %v5271_v30 }
0x311d   :  { %v5264_v49 = vmul.f32 %v11363_v37, %v5239_v7 }
0x311f   :  { %v5279_v21 = vsel %vm202_vm0, %v5264_v49, 0.0  ;;  %v11367_v49 = vld [vmem:[#allocation93_spill] sm:$0xff] }
0x3120   :  { %v5280_v3 = vadd.f32 %v5279_v21, %v5278_v51  ;;  %v5244_v22 = vpop.permute.xlu1 %5243  ;;  %v5274_v21 = vrot.slane %v5273_v16, 2 }
0x3121   :  { %v5265_v26 = vmul.f32 %v11364_v10, %v5244_v22  ;;  %v5297_v22 = vsel %vm202_vm0, %v5268_v60, 0.0 }
0x3122   :  { %v5281_v17 = vrot.slane %v5280_v3, 4  ;;  %v5275_v1 = vadd.f32 %v5274_v21, %v5273_v16 }
0x3123   :  { %v5287_v50 = vsel %vm202_vm0, %v5265_v26, 0.0 }
0x3124   :  { %v5282_v63 = vadd.f32 %v5281_v17, %v5280_v3  ;;  %v5249_v14 = vpop.permute.xlu1 %5248  ;;  %v5276_v39 = vrot.slane %v5275_v1, 1 }
0x3125   :  { %v5266_v15 = vmul.f32 %v11365_v24, %v5249_v14 }
0x3126   :  { %v5283_v7 = vrot.slane %v5282_v63, 2  ;;  %v5277_v38 = vadd.f32 %v5276_v39, %v5275_v1  ;;  %v10508_v39 = vld [vmem:[%s11256_s2] sm:$0xf] }
0x3127   :  { %v5288_v33 = vsel %vm202_vm0, %v5266_v15, 0.0  ;;  %vm4837_vm14 = vcmp.gt.s32.totalorder %v10508_v39, 6 }
0x3128   :  { %v5289_v45 = vadd.f32 %v5288_v33, %v5287_v50  ;;  %v5254_v37 = vpop.permute.xlu1 %5253  ;;  %v5284_v17 = vadd.f32 %v5283_v7, %v5282_v63  ;;  %v6968_v63 = vmul.f32 -1.442695, %v10337_v44 }
0x3129   :  { %v5267_v51 = vmul.f32 %v11367_v49, %v5254_v37 }
0x312a   :  { %v5290_v52 = vrot.slane %v5289_v45, 4  ;;  %v5285_v26 = vrot.slane %v5284_v17, 1  ;;  %8274 = vpow2.f32 %v6968_v63 }
0x312b   :  { %v5296_v3 = vsel %vm202_vm0, %v5267_v51, 0.0 }
0x312c   :  { %v5291_v14 = vadd.f32 %v5290_v52, %v5289_v45  ;;  %v5298_v30 = vadd.f32 %v5297_v22, %v5296_v3  ;;  %v5286_v42 = vadd.f32 %v5285_v26, %v5284_v17  ;;  %v8355_v3 = vld [vmem:[#allocation6 + $0x18] sm:$0xf] }
0x312e   :  { %v5292_v10 = vrot.slane %v5291_v14, 2  ;;  %v5299_v41 = vrot.slane %v5298_v30, 4  ;;  %v5309_v51 = vsel %vm512_vm2, %v5286_v42, %v5277_v38 }
0x3130   :  { %v5293_v24 = vadd.f32 %v5292_v10, %v5291_v14  ;;  %v5300_v15 = vadd.f32 %v5299_v41, %v5298_v30  ;;  %v10499_v41 = vsel %vm4834_vm13, %v10294_v6, %v10291_v23  ;;  %v5497_v23 = vsel %vm4837_vm14, 1, %v11257_v18 }
0x3132   :  { %v5294_v50 = vrot.slane %v5293_v24, 1  ;;  %v5301_v33 = vrot.slane %v5300_v15, 2 }
0x3134   :  { %v5302_v37 = vadd.f32 %v5301_v33, %v5300_v15  ;;  %v5295_v49 = vadd.f32 %v5294_v50, %v5293_v24  ;;  %v8275_v7 = vpop.eup %8274 }
0x3135   :  { %v4916_v45 = vadd.f32 1.0, %v8275_v7 }
0x3136   :  { %v5303_v36 = vrot.slane %v5302_v37, 1  ;;  %v5310_v52 = vsel %vm514_vm3, %v5295_v49, %v5309_v51 }
0x3137   :  { %8276 = vrcp.f32 %v4916_v45 }
0x3138   :  { %v5304_v60 = vadd.f32 %v5303_v36, %v5302_v37 }
0x313a   :  { %v5311_v16 = vsel %vm516_vm4, %v5304_v60, %v5310_v52 }
0x313b   :  { %5312 = vrot.lane.b32.xlu1 %v5311_v16, %s8571_s11 }
0x313f   :  { %5316 = vrot.lane.b32.xlu1 %v10306_v58, %s8570_s22 }
0x3141   :  { %v8277_v21 = vpop.eup %8276 }
0x31ad   :  { %v5313_v22 = vpop.permute.xlu1 %5312 }
0x31ae   :  { %v5315_v36 = vmul.f32 %v8277_v21, %v5313_v22 }
0x31b0   :  { %v5319_v42 = vsel %vm202_vm0, %v8355_v3, %v5315_v36 }
0x31b1   :  { %v5317_v38 = vpop.permute.xlu1 %5316 }
0x31b2   :  { %v5320_v17 = vsel %vm1097_vm7, %v5319_v42, %v5317_v38 }
0x31b3   :  { %7643 = vmatmul.mubr.msk.f32.vlgmr.msra.gmra.mrb[18].mxu1 %vm1105_vm8, %v5320_v17 }
0x31b4   :  { %8003 = vmatpush3.bf16.msra.mxu1 %v9044_v27  ;;  %7699 = vmatprep.mubr.msk.f32.mxu1 %vm8566_vm1, %v11255_v2 }
0x31b5   :  { %8004 = vmatprep.subr.bf16.mxu1 %v11254_v40 }
0x31b8   :  { %8006 = vmatpush3.bf16.msra.mxu1 %v9050_v11  ;;  %v10490_v11 = vld [vmem:[%s11120_s12] ss:$0 sm:$0xff] }
0x31b9   :  { %8007 = vmatprep.subr.bf16.mxu1 %v11254_v40 }
0x31bc   :  { %8009 = vmatpush3.bf16.msra.mxu1 %v9060_v48 }
0x31bd   :  { %8010 = vmatprep.subr.bf16.mxu1 %v11254_v40 }
0x31c0   :  { %8012 = vmatpush3.bf16.msra.mxu1 %v9070_v47 }
0x31c1   :  { %8013 = vmatprep.subr.bf16.mxu1 %v11254_v40 }
0x31c4   :  { %8015 = vmatpush3.bf16.msra.mxu1 %v9080_v53 }
0x31c5   :  { %8016 = vmatprep.subr.bf16.mxu1 %v11254_v40 }
0x31c8   :  { %8018 = vmatpush3.bf16.msra.mxu1 %v9107_v5 }
0x3286   :  { %v5390_v27 = vpop.f32.mrb[18].mxu1 }
0x3287   :  { %v5391_v48 = vadd.f32 %v10490_v11, %v5390_v27  ;;  %v7644_v44 = vpop.f32.mrb[19].mxu1 }
0x3289   :  { %8278 = vtanh.f32 %v5391_v48  ;;  %v6970_v47 = vmul.f32 -1.442695, %v5391_v48 }
0x328b   :  { %8280 = vpow2.f32 %v6970_v47 }
0x3293   :  { %v8279_v14 = vpop.eup %8278 }
0x3294   :  { %5403 = vrot.lane.b32.xlu1 %v8279_v14, %s8556_s20 }
0x3295   :  { %v8281_v53 = vpop.eup %8280 }
0x3296   :  { %v5397_v30 = vadd.f32 1.0, %v8281_v53 }
0x3298   :  { %8282 = vrcp.f32 %v5397_v30 }
0x32a2   :  { %v8283_v1 = vpop.eup %8282 }
0x32a3   :  { %v5401_v26 = vmul.f32 %v8283_v1, %v10499_v41 }
0x3306   :  { %v5404_v5 = vpop.permute.xlu1 %5403 }
0x3307   :  { %v5406_v10 = vmul.f32 %v8283_v1, %v5404_v5 }
0x3309   :  { %5408 = vrot.lane.b32.xlu1 %v5406_v10, %s8571_s11 }
0x337b   :  { %v5409_v24 = vpop.permute.xlu1 %5408 }
0x337c   :  { %v10502_v15 = vadd.f32 %v5409_v24, %v5401_v26 }
0x337e   :  { %8284 = vtanh.f32 %v10502_v15 }
0x3388   :  { %v8285_v50 = vpop.eup %8284 }
0x3389   :  { %5414 = vrot.lane.b32.xlu1 %v8285_v50, %s8556_s20 }
0x338d   :  { %5534 = vperm.xlu1 %8051, %v5497_v23  }
0x33fb   :  { %v5415_v6 = vpop.permute.xlu1 %5414 }
0x33fc   :  { %v5417_v54 = vmul.f32 %v8283_v1, %v5415_v6  ;;  %v11368_v1 = vld [vmem:[#allocation29_spill] sm:$0xff] }
0x33fe   :  { %5419 = vrot.lane.b32.xlu0 %v5417_v54, %s8571_s11 }
0x340c   :  { %v10516_v33 = vpop.permute.xlu1 %5534 }
0x340d   :  { %vm5536_vm15 = vcmp.eq.s32.totalorder %v10516_v33, 1 }
0x340e   :  { %v10522_v37 = vsel %vm5536_vm15, %v5417_v54, %v10306_v58 }
0x340f   :  { %5541 = vrot.lane.b32.xlu1 %v10522_v37, %s8571_s11 }
0x3470   :  { %v5420_v49 = vpop.permute.xlu0 %5419 }
0x3471   :  { %v5422_v18 = vsel %vm202_vm0, %v5420_v49, %v5315_v36 }
0x3472   :  { %7662 = vmatmul.mubr.msk.f32.vlgmr.msra.gmra.mrb[34].mxu0 %vm1097_vm7, %v5422_v18 }
0x3473   :  { %7997 = vmatpush3.bf16.msra.mxu0 %v8801_v9  ;;  %7672 = vmatprep.mubr.msk.f32.mxu0 %vm8566_vm1, %v11255_v2 }
0x3474   :  { %7998 = vmatprep.subr.bf16.mxu0 %v11254_v40 }
0x3477   :  { %8000 = vmatpush3.bf16.msra.mxu0 %v8829_v34 }
0x3478   :  { %8019 = vmatprep.subr.bf16.mxu0 %v11254_v40 }
0x3481   :  { %v5542_v58 = vpop.permute.xlu1 %5541 }
0x3482   :  { %7673 = vmatmul.mubr.msk.f32.vlgmr.msra.gmra.mrb[36].mxu0 %vm202_vm0, %v5542_v58 }
0x3483   :  { %8021 = vmatpush3.bf16.msra.mxu0 %v9168_v55  ;;  %7718 = vmatprep.mubr.msk.f32.mxu0 %vm8566_vm1, %v11255_v2  ;;  %vm5539_vm1 = vcmp.gt.s32.totalorder %v10508_v39, 7 }
0x3484   :  { %8022 = vmatprep.subr.bf16.mxu0 %v11254_v40  ;;  %v6978_v33 = vsel %vm5539_vm1, 1.0, %v11255_v2 }
0x3487   :  { %8024 = vmatpush3.bf16.msra.mxu0 %v9174_v29 }
0x3488   :  { %8025 = vmatprep.subr.bf16.mxu0 %v11254_v40 }
0x348b   :  { %8027 = vmatpush3.bf16.msra.mxu0 %v9184_v35 }
0x348c   :  { %8028 = vmatprep.subr.bf16.mxu0 %v11254_v40 }
0x348f   :  { %8030 = vmatpush3.bf16.msra.mxu0 %v9194_v57 }
0x3545   :  { %v10544_v9 = vpop.f32.mrb[34].mxu0 }
0x3546   :  { %v7663_v34 = vpop.f32.mrb[35].mxu0 }
0x3555   :  { %v5611_v60 = vpop.f32.mrb[36].mxu0 }
0x3556   :  { %v10547_v55 = vadd.f32 %v10334_v62, %v5611_v60  ;;  %v7674_v51 = vpop.f32.mrb[37].mxu0 }
0x3558   :  { %v5628_v52 = vrot.slane %v10547_v55, %v8869_v0 }
0x355a   :  { %v5629_v29 = vcombine.high %v5628_v52, %v5628_v52  ;;  %v5636_v16 = vrot.slane %v5628_v52, %v8869_v0 }
0x355c   :  { %v5643_v35 = vrot.slane %v5629_v29, %v8869_v0  ;;  %v5644_v63 = vcombine.high %v5636_v16, %v5636_v16  ;;  %v5649_v40 = vrot.slane %v5636_v16, %v8880_v8  ;;  %v11369_v29 = vld [vmem:[#allocation31_spill] sm:$0xff] }
0x355e   :  { %v5645_v57 = vcombine.high %v5643_v35, %v5643_v35  ;;  %v5667_v7 = vadd.f32 %v5649_v40, %v8883_v12  ;;  %v5666_v45 = vadd.f32 %v5649_v40, %v8885_v13  ;;  %v5657_v62 = vrot.slane %v5644_v63, %v8880_v8 }
0x355f   :  { %v5653_v21 = vrot.slane %v5643_v35, %v8880_v8 }
0x3560   :  { %v5675_v22 = vmax.f32 %v5667_v7, 0.0  ;;  %v5674_v36 = vmax.f32 %v5666_v45, 0.0  ;;  %v5670_v3 = vadd.f32 %v5657_v62, %v8898_v32  ;;  %v5661_v42 = vrot.slane %v5645_v57, %v8880_v8 }
0x3561   :  { %v5668_v0 = vadd.f32 %v5653_v21, %v8891_v20  ;;  %v5669_v38 = vadd.f32 %v5653_v21, %v8889_v19  ;;  %v5671_v14 = vadd.f32 %v5657_v62, %v8896_v31 }
0x3562   :  { %v5683_v17 = vmul.f32 %v10355_v28, %v5675_v22  ;;  %v5682_v12 = vmul.f32 %v10355_v28, %v5674_v36  ;;  %v5678_v27 = vmax.f32 %v5670_v3, 0.0  ;;  %v5672_v13 = vadd.f32 %v5661_v42, %v8908_v46 }
0x3563   :  { %v5676_v48 = vmax.f32 %v5668_v0, 0.0  ;;  %v5677_v44 = vmax.f32 %v5669_v38, 0.0  ;;  %v5679_v30 = vmax.f32 %v5671_v14, 0.0  ;;  %v5673_v5 = vadd.f32 %v5661_v42, %v11368_v1 }
0x3564   :  { %v5693_v47 = vsel %vm202_vm0, %v5683_v17, 0.0  ;;  %v5690_v32 = vsel %vm202_vm0, %v5682_v12, 0.0  ;;  %v5686_v53 = vmul.f32 %v10355_v28, %v5678_v27  ;;  %v5680_v20 = vmax.f32 %v5672_v13, 0.0 }
0x3565   :  { %5694 = vadd.xlane.f32.xlu1 %v5693_v47  ;;  %5691 = vadd.xlane.f32.xlu0 %v5690_v32  ;;  %v5684_v19 = vmul.f32 %v10355_v28, %v5676_v48  ;;  %v5685_v31 = vmul.f32 %v10355_v28, %v5677_v44  ;;  %v5687_v23 = vmul.f32 %v10355_v28, %v5679_v30  ;;  %v5681_v6 = vmax.f32 %v5673_v5, 0.0 }
0x3566   :  { %v5702_v46 = vsel %vm202_vm0, %v5686_v53, 0.0  ;;  %v5688_v26 = vmul.f32 %v10355_v28, %v5680_v20 }
0x3567   :  { %v5696_v10 = vsel %vm202_vm0, %v5684_v19, 0.0  ;;  %v5699_v24 = vsel %vm202_vm0, %v5685_v31, 0.0  ;;  %v5705_v54 = vsel %vm202_vm0, %v5687_v23, 0.0  ;;  %v5689_v49 = vmul.f32 %v10355_v28, %v5681_v6 }
0x3568   :  { %v5708_v50 = vsel %vm202_vm0, %v5688_v26, 0.0 }
0x3569   :  { %5703 = vadd.xlane.f32.xlu1 %v5702_v46  ;;  %5697 = vadd.xlane.f32.xlu0 %v5696_v10  ;;  %v5711_v18 = vsel %vm202_vm0, %v5689_v49, 0.0 }
0x356d   :  { %5700 = vadd.xlane.f32.xlu0 %v5699_v24  ;;  %5709 = vadd.xlane.f32.xlu1 %v5708_v50 }
0x3571   :  { %5706 = vadd.xlane.f32.xlu0 %v5705_v54 }
0x3575   :  { %5712 = vadd.xlane.f32.xlu0 %v5711_v18 }
0x35f2   :  { %v5695_v58 = vpop.xlane.xlu1 %5694  ;;  %v5692_v34 = vpop.xlane.xlu0 %5691 }
0x35f3   :  { %v5715_v35 = vadd.f32 %v5695_v58, %v11369_v29  ;;  %v5714_v63 = vadd.f32 %v5692_v34, %v11369_v29 }
0x35f5   :  { %v5737_v21 = vrot.slane %v5715_v35, %v8942_v56  ;;  %v5733_v22 = vrot.slane %v5714_v63, %v8939_v61 }
0x35f6   :  { %v5698_v60 = vpop.xlane.xlu0 %5697  ;;  %v5704_v51 = vpop.xlane.xlu1 %5703 }
0x35f7   :  { %v5716_v40 = vadd.f32 %v5698_v60, %v11369_v29  ;;  %v5718_v57 = vadd.f32 %v5704_v51, %v11369_v29  ;;  %v5738_v13 = vsel %vm811_vm5, %v5737_v21, %v5733_v22 }
0x35f9   :  { %v5742_v36 = vrot.slane %v5716_v40, %v8939_v61  ;;  %v5751_v0 = vrot.slane %v5718_v57, %v8939_v61 }
0x35fa   :  { %v5701_v52 = vpop.xlane.xlu0 %5700  ;;  %v5710_v28 = vpop.xlane.xlu1 %5709 }
0x35fb   :  { %v5717_v16 = vadd.f32 %v5701_v52, %v11369_v29  ;;  %v5720_v3 = vadd.f32 %v5710_v28, %v11369_v29 }
0x35fd   :  { %v5746_v45 = vrot.slane %v5717_v16, %v8942_v56  ;;  %v5760_v48 = vrot.slane %v5720_v3, %v8939_v61 }
0x35fe   :  { %v5707_v7 = vpop.xlane.xlu0 %5706 }
0x35ff   :  { %v5719_v62 = vadd.f32 %v5707_v7, %v11369_v29  ;;  %v5747_v17 = vsel %vm811_vm5, %v5746_v45, %v5742_v36 }
0x3600   :  { %v5766_v14 = vsel %vm512_vm2, %v5747_v17, %v5738_v13 }
0x3601   :  { %v5755_v42 = vrot.slane %v5719_v62, %v8942_v56 }
0x3602   :  { %v5713_v38 = vpop.xlane.xlu0 %5712 }
0x3603   :  { %v5721_v12 = vadd.f32 %v5713_v38, %v11369_v29  ;;  %v5756_v27 = vsel %vm811_vm5, %v5755_v42, %v5751_v0 }
0x3604   :  { %v5767_v32 = vsel %vm514_vm3, %v5756_v27, %v5766_v14 }
0x3605   :  { %v5764_v44 = vrot.slane %v5721_v12, %v8942_v56 }
0x3607   :  { %v5765_v47 = vsel %vm811_vm5, %v5764_v44, %v5760_v48 }
0x3608   :  { %v5768_v53 = vsel %vm516_vm4, %v5765_v47, %v5767_v32 }
0x3609   :  { %v5770_v20 = vsel %vm844_vm6, %v5768_v53, -inf }
0x360a   :  { %5771 = vmax.xlane.f32.xlu1 %v5770_v20 }
0x3697   :  { %v5772_v19 = vpop.xlane.xlu1 %5771 }
0x3698   :  { %v5777_v30 = vrot.slane %v5772_v19, %v8880_v8  ;;  %v5781_v1 = vrot.slane %v5772_v19, %v8974_v4  ;;  %v5785_v5 = vrot.slane %v5772_v19, %v8980_v43  ;;  %v5789_v23 = vrot.slane %v5772_v19, %v8971_v59 }
0x369a   :  { %v5794_v46 = vsub.f32 %v5714_v63, %v5777_v30  ;;  %v5795_v10 = vsub.f32 %v5715_v35, %v5777_v30  ;;  %v5797_v31 = vsub.f32 %v5717_v16, %v5781_v1  ;;  %v5796_v26 = vsub.f32 %v5716_v40, %v5781_v1 }
0x369b   :  { %v5799_v6 = vsub.f32 %v5719_v62, %v5785_v5  ;;  %v5798_v49 = vsub.f32 %v5718_v57, %v5785_v5  ;;  %v5801_v58 = vsub.f32 %v5721_v12, %v5789_v23  ;;  %v5800_v60 = vsub.f32 %v5720_v3, %v5789_v23 }
0x369c   :  { %v5802_v24 = vmul.f32 1.442695, %v5794_v46  ;;  %v5804_v50 = vmul.f32 1.442695, %v5795_v10  ;;  %v5808_v54 = vmul.f32 1.442695, %v5797_v31 }
0x369d   :  { %v5806_v18 = vmul.f32 1.442695, %v5796_v26  ;;  %v5812_v34 = vmul.f32 1.442695, %v5799_v6  ;;  %v5810_v51 = vmul.f32 1.442695, %v5798_v49 }
0x369e   :  { %8286 = vpow2.f32 %v5802_v24  ;;  %v5816_v52 = vmul.f32 1.442695, %v5801_v58  ;;  %v5814_v29 = vmul.f32 1.442695, %v5800_v60  ;;  %v11370_v10 = vld [vmem:[#allocation57_spill] sm:$0xff]  ;;  %v11371_v31 = vld [vmem:[#allocation56_spill] sm:$0xff] }
0x369f   :  { %8288 = vpow2.f32 %v5804_v50  ;;  %v11372_v26 = vpack.i.bf16 %v11370_v10, %v11371_v31  ;;  %v11373_v24 = vld [vmem:[#allocation96_spill] sm:$0xff]  ;;  %v11374_v50 = vld [vmem:[#allocation95_spill] sm:$0xff]  ;;  %v11377_v49 = vld [vmem:[#allocation25_spill] sm:$0xff] }
0x36a0   :  { %8290 = vpow2.f32 %v5808_v54  ;;  %v11375_v23 = vpack.i.bf16 %v11373_v24, %v11374_v50  ;;  %v11376_v54 = vld [vmem:[#allocation23_spill] sm:$0xff]  ;;  %v8360_v31 = vld [vmem:[#allocation3] sm:$0xff]  ;;  %v8361_v24 = vld [vmem:[#allocation3 + $0x18] sm:$0xff] }
0x36a1   :  { %8292 = vpow2.f32 %v5806_v18  ;;  %v426_v18 = vadd.f32 %v11377_v49, %v11376_v54 }
0x36a2   :  { %8294 = vpow2.f32 %v5812_v34 }
0x36a3   :  { %8296 = vpow2.f32 %v5810_v51  ;;  %v448_v34 = vcombine.high %v426_v18, %v426_v18  ;;  %v11378_v51 = vld [vmem:[#allocation40_spill] sm:$0xff] }
0x36a4   :  { %8298 = vpow2.f32 %v5816_v52  ;;  %v1281_v52 = vadd.f32 %v11378_v51, %v426_v18 }
0x36a5   :  { %8300 = vpow2.f32 %v5814_v29 }
0x36a8   :  { %v8287_v16 = vpop.eup %8286 }
0x36a9   :  { %v10609_v35 = vpop.eup %8288  ;;  %5827 = vperm.xlu0 %8050, %v8287_v16  }
0x36aa   :  { %5830 = vperm.xlu1 %8051, %v10609_v35   ;;  %v10612_v63 = vpop.eup %8290 }
0x36ab   :  { %v8293_v40 = vpop.eup %8292 }
0x36ac   :  { %v10615_v57 = vpop.eup %8294 }
0x36ad   :  { %5836 = vperm.xlu0 %8050, %v10612_v63   ;;  %v10617_v28 = vpop.eup %8296 }
0x36ae   :  { %5833 = vperm.xlu1 %8051, %v8293_v40   ;;  %v10621_v7 = vpop.eup %8298 }
0x36af   :  { %v10623_v45 = vpop.eup %8300 }
0x36b1   :  { %5842 = vperm.xlu0 %8050, %v10615_v57  }
0x36b2   :  { %5839 = vperm.xlu1 %8051, %v10617_v28  }
0x36b5   :  { %5848 = vperm.xlu0 %8050, %v10621_v7  }
0x36b6   :  { %5845 = vperm.xlu1 %8051, %v10623_v45  }
0x3728   :  { %v5828_v62 = vpop.permute.xlu0 %5827 }
0x3729   :  { %v5831_v21 = vpop.permute.xlu1 %5830  ;;  %v5853_v27 = vrot.slane %v5828_v62, %v8939_v61 }
0x372a   :  { %v5857_v12 = vrot.slane %v5831_v21, %v8942_v56 }
0x372c   :  { %v5837_v22 = vpop.permute.xlu0 %5836  ;;  %v5858_v53 = vsel %vm811_vm5, %v5857_v12, %v5853_v27 }
0x372d   :  { %v5834_v36 = vpop.permute.xlu1 %5833  ;;  %v5866_v42 = vrot.slane %v5837_v22, %v8942_v56 }
0x372e   :  { %v5862_v3 = vrot.slane %v5834_v36, %v8939_v61 }
0x3730   :  { %v5843_v0 = vpop.permute.xlu0 %5842  ;;  %v5867_v48 = vsel %vm811_vm5, %v5866_v42, %v5862_v3 }
0x3731   :  { %v5840_v38 = vpop.permute.xlu1 %5839  ;;  %v5875_v17 = vrot.slane %v5843_v0, %v8942_v56  ;;  %v5886_v19 = vsel %vm512_vm2, %v5867_v48, %v5858_v53  ;;  %v11381_v48 = vld [vmem:[#allocation69_spill] sm:$0xff] }
0x3732   :  { %v5871_v13 = vrot.slane %v5840_v38, %v8939_v61 }
0x3734   :  { %v5849_v44 = vpop.permute.xlu0 %5848  ;;  %v5876_v14 = vsel %vm811_vm5, %v5875_v17, %v5871_v13  ;;  %v11380_v13 = vld [vmem:[#allocation27_spill] sm:$0xff] }
0x3735   :  { %v5846_v47 = vpop.permute.xlu1 %5845  ;;  %v5884_v32 = vrot.slane %v5849_v44, %v8942_v56  ;;  %v5887_v1 = vsel %vm514_vm3, %v5876_v14, %v5886_v19  ;;  %v4092_v44 = vadd.f32 %v11381_v48, %v11380_v13  ;;  %v450_v39 = vcombine.high %v11380_v13, %v11380_v13 }
0x3736   :  { %v5880_v20 = vrot.slane %v5846_v47, %v8939_v61 }
0x3738   :  { %v5885_v30 = vsel %vm811_vm5, %v5884_v32, %v5880_v20 }
0x3739   :  { %v5888_v5 = vsel %vm516_vm4, %v5885_v30, %v5887_v1  ;;  %v8358_v1 = vld [vmem:[#allocation3 + $0x8] sm:$0xff] }
0x373a   :  { %v5890_v46 = vsel %vm844_vm6, %v5888_v5, 0.0  ;;  %v8359_v5 = vld [vmem:[#allocation3 + $0x10] sm:$0xff]  ;;  %vm6384_vm6 = vcmask 261312  }
0x373b   :  { %5891 = vadd.xlane.f32.xlu1 %v5890_v46 }
0x374c   :  { %6018 = vrot.lane.b32.xlu1 %v10522_v37, %s8570_s22  ;;  %v11379_v37 = vld [vmem:[#allocation58_spill] sm:$0xff] }
0x374d   :  { %v1986_v29 = vadd.f32 %v11379_v37, %v448_v34  ;;  %v8362_v34 = vld [vmem:[#allocation3 + $0x20] sm:$0xff]  ;;  %v8363_v37 = vld [vmem:[#allocation3 + $0x28] sm:$0xff] }
0x3750   :  { %8053 = vperm.xlu1 %8051, %v11372_v26  }
0x3754   :  { %8063 = vperm.xlu1 %8051, %v11375_v23  }
0x37c8   :  { %v5892_v6 = vpop.xlane.xlu1 %5891 }
0x37c9   :  { %8302 = vrcp.f32 %v5892_v6 }
0x37cc   :  { %v10653_v58 = vpop.permute.xlu1 %6018 }
0x37d0   :  { %v8054_v60 = vpop.permute.xlu1 %8053 }
0x37d1   :  { %v10657_v62 = vunpack.i.h.bf16 %v8054_v60  ;;  %v10659_v21 = vunpack.i.l.bf16 %v8054_v60 }
0x37d3   :  { %v8303_v22 = vpop.eup %8302  ;;  %v1994_v36 = vmul.f32 %v10657_v62, %v1986_v29  ;;  %v10663_v3 = vmul.f32 %v10659_v21, %v1281_v52 }
0x37d4   :  { %v5898_v42 = vrot.slane %v8303_v22, %v8880_v8  ;;  %v10669_v38 = vpop.permute.xlu1 %8063  ;;  %v5902_v12 = vrot.slane %v8303_v22, %v8974_v4  ;;  %v5906_v47 = vrot.slane %v8303_v22, %v8980_v43  ;;  %v5910_v53 = vrot.slane %v8303_v22, %v8971_v59 }
0x37d5   :  { %6236 = vrot.lane.b32.xlu1 %v1994_v36, %s8571_s11  ;;  %v10677_v27 = vunpack.i.l.bf16 %v10669_v38 }
0x37d6   :  { %v10667_v0 = vmul.f32 %v8287_v16, %v5898_v42  ;;  %v10673_v17 = vmul.f32 %v10609_v35, %v5898_v42  ;;  %v10682_v14 = vmul.f32 %v8293_v40, %v5902_v12  ;;  %v10689_v35 = vmul.f32 %v10612_v63, %v5902_v12 }
0x37d7   :  { %v10685_v16 = vmul.f32 %v10677_v27, %v4092_v44  ;;  %v10694_v32 = vmul.f32 %v10617_v28, %v5906_v47  ;;  %v10698_v40 = vmul.f32 %v10615_v57, %v5906_v47  ;;  %v10703_v20 = vmul.f32 %v10623_v45, %v5910_v53 }
0x37d8   :  { %5925 = vperm.xlu0 %8050, %v10667_v0   ;;  %v10707_v63 = vmul.f32 %v10621_v7, %v5910_v53 }
0x37dc   :  { %5930 = vperm.xlu0 %8050, %v10673_v17  }
0x37e0   :  { %5935 = vperm.xlu0 %8050, %v10682_v14  }
0x37e4   :  { %5940 = vperm.xlu0 %8050, %v10689_v35  }
0x37e8   :  { %5945 = vperm.xlu0 %8050, %v10694_v32  }
0x37ec   :  { %5950 = vperm.xlu0 %8050, %v10698_v40  }
0x37f0   :  { %5955 = vperm.xlu0 %8050, %v10703_v20  }
0x37f4   :  { %5960 = vperm.xlu0 %8050, %v10707_v63  }
0x3857   :  { %v5926_v28 = vpop.permute.xlu0 %5925 }
0x3858   :  { %v5963_v26 = vmul.f32 %v8360_v31, %v5926_v28  ;;  %v8364_v28 = vld [vmem:[#allocation3 + $0x30] sm:$0xff] }
0x385a   :  { %v5971_v49 = vsel %vm202_vm0, %v5963_v26, 0.0 }
0x385b   :  { %v5931_v19 = vpop.permute.xlu0 %5930 }
0x385c   :  { %v5964_v57 = vmul.f32 %v8358_v1, %v5931_v19 }
0x385e   :  { %v5972_v50 = vsel %vm202_vm0, %v5964_v57, 0.0 }
0x385f   :  { %v5936_v30 = vpop.permute.xlu0 %5935  ;;  %v5973_v18 = vadd.f32 %v5972_v50, %v5971_v49 }
0x3860   :  { %v5965_v46 = vmul.f32 %v8359_v5, %v5936_v30  ;;  %v8365_v5 = vld [vmem:[#allocation3 + $0x38] sm:$0xff] }
0x3861   :  { %v5974_v22 = vrot.slane %v5973_v18, 4 }
0x3862   :  { %v5980_v23 = vsel %vm202_vm0, %v5965_v46, 0.0 }
0x3863   :  { %v5941_v10 = vpop.permute.xlu0 %5940  ;;  %v5975_v47 = vadd.f32 %v5974_v22, %v5973_v18 }
0x3864   :  { %v5966_v45 = vmul.f32 %v8361_v24, %v5941_v10 }
0x3865   :  { %v5976_v10 = vrot.slane %v5975_v47, 2 }
0x3866   :  { %v5981_v7 = vsel %vm202_vm0, %v5966_v45, 0.0 }
0x3867   :  { %v5982_v6 = vadd.f32 %v5981_v7, %v5980_v23  ;;  %v5946_v54 = vpop.permute.xlu0 %5945  ;;  %v5977_v7 = vadd.f32 %v5976_v10, %v5975_v47 }
0x3868   :  { %v5967_v60 = vmul.f32 %v8362_v34, %v5946_v54 }
0x3869   :  { %v5983_v51 = vrot.slane %v5982_v6, 4  ;;  %v5978_v34 = vrot.slane %v5977_v7, 1 }
0x386a   :  { %v5989_v36 = vsel %vm202_vm0, %v5967_v60, 0.0 }
0x386b   :  { %v5951_v52 = vpop.permute.xlu0 %5950  ;;  %v5984_v12 = vadd.f32 %v5983_v51, %v5982_v6 }
0x386c   :  { %v5968_v29 = vmul.f32 %v8363_v37, %v5951_v52 }
0x386d   :  { %v5985_v30 = vrot.slane %v5984_v12, 2 }
0x386e   :  { %v5990_v42 = vsel %vm202_vm0, %v5968_v29, 0.0  ;;  %v5979_v29 = vadd.f32 %v5978_v34, %v5977_v7 }
0x386f   :  { %v5991_v48 = vadd.f32 %v5990_v42, %v5989_v36  ;;  %v5956_v44 = vpop.permute.xlu0 %5955  ;;  %v5986_v45 = vadd.f32 %v5985_v30, %v5984_v12 }
0x3870   :  { %v5969_v19 = vmul.f32 %v8364_v28, %v5956_v44  ;;  %v6974_v44 = vmul.f32 -1.442695, %v10547_v55 }
0x3871   :  { %v5992_v53 = vrot.slane %v5991_v48, 4  ;;  %v5987_v54 = vrot.slane %v5986_v45, 1 }
0x3872   :  { %v5998_v26 = vsel %vm202_vm0, %v5969_v19, 0.0  ;;  %8304 = vpow2.f32 %v6974_v44  ;;  %v11386_v44 = vld [vmem:[#allocation50_spill] sm:$0xff] }
0x3873   :  { %v5993_v1 = vadd.f32 %v5992_v53, %v5991_v48  ;;  %v5961_v57 = vpop.permute.xlu0 %5960  ;;  %v5988_v51 = vadd.f32 %v5987_v54, %v5986_v45 }
0x3874   :  { %v5970_v46 = vmul.f32 %v8365_v5, %v5961_v57 }
0x3875   :  { %v5994_v31 = vrot.slane %v5993_v1, 2  ;;  %v6011_v42 = vsel %vm512_vm2, %v5988_v51, %v5979_v29  ;;  %v11383_v51 = vld [vmem:[#allocation75_spill] sm:$0xff] }
0x3876   :  { %v5999_v24 = vsel %vm202_vm0, %v5970_v46, 0.0 }
0x3877   :  { %v6000_v50 = vadd.f32 %v5999_v24, %v5998_v26  ;;  %v5995_v23 = vadd.f32 %v5994_v31, %v5993_v1  ;;  %v8366_v1 = vld [vmem:[#allocation6 + $0x1c] sm:$0xf] }
0x3879   :  { %v6001_v6 = vrot.slane %v6000_v50, 4  ;;  %v5996_v18 = vrot.slane %v5995_v23, 1 }
0x387b   :  { %v6002_v49 = vadd.f32 %v6001_v6, %v6000_v50  ;;  %v5997_v37 = vadd.f32 %v5996_v18, %v5995_v23 }
0x387c   :  { %v8305_v47 = vpop.eup %8304 }
0x387d   :  { %v6003_v60 = vrot.slane %v6002_v49, 2  ;;  %v6012_v48 = vsel %vm514_vm3, %v5997_v37, %v6011_v42  ;;  %v5618_v53 = vadd.f32 1.0, %v8305_v47 }
0x387f   :  { %v6004_v52 = vadd.f32 %v6003_v60, %v6002_v49  ;;  %8306 = vrcp.f32 %v5618_v53  ;;  %v6972_v60 = vsel %vm4837_vm14, 1.0, %v11255_v2  ;;  %v10753_v2 = vunpack.i.h.bf16 %v10669_v38 }
0x3881   :  { %v6005_v22 = vrot.slane %v6004_v52, 1 }
0x3883   :  { %v6006_v36 = vadd.f32 %v6005_v22, %v6004_v52 }
0x3885   :  { %v6013_v12 = vsel %vm516_vm4, %v6006_v36, %v6012_v48  ;;  %v11385_v48 = vld [vmem:[#allocation77_spill] sm:$0xff] }
0x3886   :  { %6014 = vrot.lane.b32.xlu0 %v6013_v12, %s8571_s11 }
0x3889   :  { %v8307_v28 = vpop.eup %8306 }
0x38f8   :  { %v6015_v19 = vpop.permute.xlu0 %6014 }
0x38f9   :  { %v6017_v30 = vmul.f32 %v8307_v28, %v6015_v19  ;;  %v11387_v28 = vld [vmem:[#allocation97_spill] sm:$0xff] }
0x38fa   :  { %v4794_v19 = vadd.f32 %v11387_v28, %v450_v39 }
0x38fb   :  { %v6021_v57 = vsel %vm202_vm0, %v8366_v1, %v6017_v30 }
0x38fc   :  { %v6022_v5 = vsel %vm1097_vm7, %v6021_v57, %v10653_v58  ;;  %v4802_v13 = vmul.f32 %v10753_v2, %v4794_v19  ;;  %v2010_v19 = vrot.slane %v10657_v62, %v8971_v59 }
0x38fd   :  { %7700 = vmatmul.mubr.msk.f32.vlgmr.msra.gmra.mrb[20].mxu1 %vm1105_vm8, %v6022_v5  ;;  %v1293_v5 = vrot.slane %v10659_v21, %v8880_v8 }
0x39d0   :  { %v6092_v46 = vpop.f32.mrb[20].mxu1 }
0x39d1   :  { %v6093_v10 = vadd.f32 %v10490_v11, %v6092_v46  ;;  %v7701_v31 = vpop.f32.mrb[21].mxu1  ;;  %v5538_v11 = vsel %vm5536_vm15, %v10502_v15, %v10499_v41  ;;  %v8067_v41 = vpack.i.bf16 %v6978_v33, %v6972_v60  ;;  %v11382_v15 = vld [vmem:[#allocation76_spill] sm:$0xff]  ;;  %v1998_v33 = vrot.slane %v10657_v62, %v8880_v8 }
0x39d2   :  { %v11384_v52 = vpack.i.bf16 %v11382_v15, %v11383_v51  ;;  %v11389_v46 = vld [vmem:[#allocation32_spill] sm:$0xff]  ;;  %v11398_v51 = vld [vmem:[#allocation42_spill] sm:$0xff] }
0x39d3   :  { %8308 = vtanh.f32 %v6093_v10  ;;  %v6976_v26 = vmul.f32 -1.442695, %v6093_v10  ;;  %v11390_v10 = vld [vmem:[#allocation33_spill] sm:$0xff] }
0x39d4   :  { %v1311_v31 = vmul.f32 %v1293_v5, %v11390_v10 }
0x39d5   :  { %8310 = vpow2.f32 %v6976_v26  ;;  %v11391_v26 = vld [vmem:[#allocation34_spill] sm:$0xff] }
0x39dd   :  { %v8309_v55 = vpop.eup %8308 }
0x39de   :  { %6105 = vrot.lane.b32.xlu0 %v8309_v55, %s8556_s20  ;;  %v1297_v55 = vrot.slane %v10659_v21, %v8974_v4 }
0x39df   :  { %v8311_v24 = vpop.eup %8310 }
0x39e0   :  { %v6099_v45 = vadd.f32 1.0, %v8311_v24  ;;  %v1312_v24 = vmul.f32 %v1297_v55, %v11391_v26 }
0x39e2   :  { %8312 = vrcp.f32 %v6099_v45  ;;  %v11392_v45 = vld [vmem:[#allocation35_spill] sm:$0xff] }
0x39ec   :  { %v8313_v50 = vpop.eup %8312 }
0x39ed   :  { %v6103_v58 = vmul.f32 %v8313_v50, %v5538_v11 }
0x3a50   :  { %v6106_v23 = vpop.permute.xlu0 %6105 }
0x3a51   :  { %v6108_v7 = vmul.f32 %v8313_v50, %v6106_v23  ;;  %v1301_v23 = vrot.slane %v10659_v21, %v8980_v43 }
0x3a53   :  { %6110 = vrot.lane.b32.xlu0 %v6108_v7, %s8571_s11  ;;  %v11393_v7 = vld [vmem:[#allocation36_spill] sm:$0xff] }
0x3a54   :  { %v1314_v11 = vmul.f32 %v1301_v23, %v11393_v7  ;;  %v11409_v7 = vld [vmem:[#allocation65_spill] sm:$0xff] }
0x3ac5   :  { %v6111_v6 = vpop.permute.xlu0 %6110 }
0x3ac6   :  { %v6113_v54 = vadd.f32 %v6111_v6, %v6103_v58  ;;  %v11394_v58 = vld [vmem:[#allocation37_spill] sm:$0xff] }
0x3ac7   :  { %v1315_v6 = vmul.f32 %v1301_v23, %v11394_v58  ;;  %v11410_v58 = vld [vmem:[#allocation64_spill] sm:$0xff] }
0x3ac8   :  { %8314 = vtanh.f32 %v6113_v54  ;;  %v1305_v54 = vrot.slane %v10659_v21, %v8971_v59  ;;  %v11399_v21 = vld [vmem:[#allocation43_spill] sm:$0xff] }
0x3ad2   :  { %v8315_v49 = vpop.eup %8314 }
0x3ad3   :  { %6116 = vrot.lane.b32.xlu0 %v8315_v49, %s8556_s20  ;;  %v11395_v49 = vld [vmem:[#allocation38_spill] sm:$0xff] }
0x3b45   :  { %v6117_v18 = vpop.permute.xlu0 %6116 }
0x3b46   :  { %v6119_v34 = vmul.f32 %v8313_v50, %v6117_v18  ;;  %v1313_v50 = vmul.f32 %v1297_v55, %v11392_v45  ;;  %v1316_v18 = vmul.f32 %v1305_v54, %v11395_v49  ;;  %v11408_v45 = vld [vmem:[#allocation62_spill] sm:$0xff]  ;;  %v11411_v49 = vld [vmem:[#allocation59_spill] sm:$0xff] }
0x3b48   :  { %6121 = vrot.lane.b32.xlu0 %v6119_v34, %s8571_s11  ;;  %v11396_v34 = vld [vmem:[#allocation39_spill] sm:$0xff] }
0x3b49   :  { %v1317_v60 = vmul.f32 %v1305_v54, %v11396_v34  ;;  %v11412_v34 = vld [vmem:[#allocation66_spill] sm:$0xff] }
0x3b4c   :  { %8058 = vperm.xlu0 %8050, %v11384_v52   ;;  %v2016_v52 = vmul.f32 %v1998_v33, %v11398_v51  ;;  %v11414_v51 = vld [vmem:[#allocation49_spill] sm:$0xff] }
0x3b50   :  { %8068 = vperm.xlu0 %8050, %v8067_v41   ;;  %v11397_v41 = vld [vmem:[#allocation41_spill] sm:$0xff] }
0x3b51   :  { %v2015_v15 = vmul.f32 %v1998_v33, %v11397_v41  ;;  %v11413_v41 = vld [vmem:[#allocation51_spill] sm:$0xff] }
0x3bba   :  { %v6122_v37 = vpop.permute.xlu0 %6121 }
0x3bbb   :  { %v6124_v29 = vsel %vm202_vm0, %v6122_v37, %v6017_v30  ;;  %v11388_v30 = vld [vmem:[#allocation26_spill] sm:$0xff]  ;;  %v2002_v37 = vrot.slane %v10657_v62, %v8974_v4 }
0x3bbc   :  { %7719 = vmatmul.mubr.msk.f32.vlgmr.msra.gmra.mrb[38].mxu0 %vm1097_vm7, %v6124_v29  ;;  %v5496_v1 = vadd.f32 %v10544_v9, %v11388_v30  ;;  %v1310_v9 = vmul.f32 %v1293_v5, %v11389_v46 }
0x3bbd   :  { %v2017_v29 = vmul.f32 %v2002_v37, %v11399_v21 }
0x3bcb   :  { %v8059_v22 = vpop.permute.xlu0 %8058 }
0x3bcc   :  { %v10746_v36 = vunpack.i.h.bf16 %v8059_v22  ;;  %v10748_v42 = vunpack.i.l.bf16 %v8059_v22  ;;  %v11400_v22 = vld [vmem:[#allocation44_spill] sm:$0xff] }
0x3bcd   :  { %v2018_v39 = vmul.f32 %v2002_v37, %v11400_v22 }
0x3bce   :  { %v3398_v12 = vmul.f32 %v10746_v36, %v11385_v48  ;;  %v2696_v47 = vmul.f32 %v10748_v42, %v11386_v44  ;;  %v2006_v48 = vrot.slane %v10657_v62, %v8980_v43  ;;  %v2700_v46 = vrot.slane %v10748_v42, %v8880_v8  ;;  %v11407_v62 = vld [vmem:[#allocation63_spill] sm:$0xff] }
0x3bcf   :  { %v10759_v53 = vpop.permute.xlu0 %8068  ;;  %v2704_v26 = vrot.slane %v10748_v42, %v8974_v4  ;;  %v2708_v23 = vrot.slane %v10748_v42, %v8980_v43  ;;  %v2712_v54 = vrot.slane %v10748_v42, %v8971_v59  ;;  %v3402_v33 = vrot.slane %v10746_v36, %v8880_v8  ;;  %v11415_v42 = vld [vmem:[#allocation53_spill] sm:$0xff] }
0x3bd0   :  { %v10765_v57 = vunpack.i.l.bf16 %v10759_v53  ;;  %6244 = vrot.lane.b32.xlu1 %v3398_v12, %s8570_s22  ;;  %6240 = vrot.lane.b32.xlu0 %v2696_v47, %s8556_s20  ;;  %v11401_v12 = vld [vmem:[#allocation45_spill] sm:$0xff]  ;;  %v11402_v47 = vld [vmem:[#allocation46_spill] sm:$0xff]  ;;  %v3406_v37 = vrot.slane %v10746_v36, %v8974_v4 }
0x3bd1   :  { %v2019_v44 = vmul.f32 %v2006_v48, %v11401_v12  ;;  %v2020_v28 = vmul.f32 %v2006_v48, %v11402_v47  ;;  %v11417_v48 = vld [vmem:[#allocation54_spill] sm:$0xff] }
0x3bd2   :  { %v5504_v38 = vmul.f32 %v10765_v57, %v5496_v1  ;;  %v11403_v1 = vld [vmem:[#allocation47_spill] sm:$0xff]  ;;  %v3422_v21 = vmul.f32 %v3406_v37, %v11415_v42 }
0x3bd4   :  { %6252 = vrot.lane.b32.xlu1 %v5504_v38, %s8556_s20  ;;  %6248 = vrot.lane.b32.xlu0 %v4802_v13, %s8571_s11  ;;  %v2021_v38 = vmul.f32 %v2010_v19, %v11403_v1  ;;  %v11404_v13 = vld [vmem:[#allocation48_spill] sm:$0xff]  ;;  %s8572_s20 = smov [#allocation14]  }
0x3bd5   :  { %v2022_v5 = vmul.f32 %v2010_v19, %v11404_v13  ;;  %v11419_v19 = vld [vmem:[#allocation67_spill] sm:$0xff] }
0x3bd8   :  { %6279 = vperm.xlu1 %8051, %v1310_v9   ;;  %6282 = vperm.xlu0 %8050, %v1311_v31   ;;  %v11405_v9 = vld [vmem:[#allocation61_spill] sm:$0xff]  ;;  %v11406_v31 = vld [vmem:[#allocation60_spill] sm:$0xff] }
0x3bd9   :  { %v2718_v10 = vmul.f32 %v2700_v46, %v11405_v9  ;;  %v2717_v55 = vmul.f32 %v2700_v46, %v11406_v31  ;;  %v11421_v46 = vld [vmem:[#allocation80_spill] sm:$0xff] }
0x3bdc   :  { %6285 = vperm.xlu1 %8051, %v1312_v24   ;;  %6288 = vperm.xlu0 %8050, %v1313_v50   ;;  %v2720_v24 = vmul.f32 %v2704_v26, %v11407_v62  ;;  %v2719_v50 = vmul.f32 %v2704_v26, %v11408_v45  ;;  %v11424_v62 = vld [vmem:[#allocation81_spill] sm:$0xff]  ;;  %v4112_v45 = vrot.slane %v10677_v27, %v8980_v43 }
0x3be0   :  { %6291 = vperm.xlu1 %8051, %v1314_v11   ;;  %6294 = vperm.xlu0 %8050, %v1315_v6   ;;  %v2722_v11 = vmul.f32 %v2708_v23, %v11409_v7  ;;  %v2721_v6 = vmul.f32 %v2708_v23, %v11410_v58  ;;  %v11426_v7 = vld [vmem:[#allocation83_spill] sm:$0xff]  ;;  %v4116_v58 = vrot.slane %v10677_v27, %v8971_v59 }
0x3be4   :  { %6297 = vperm.xlu1 %8051, %v1316_v18   ;;  %6300 = vperm.xlu0 %8050, %v1317_v60   ;;  %v2724_v18 = vmul.f32 %v2712_v54, %v11411_v49  ;;  %v2723_v60 = vmul.f32 %v2712_v54, %v11412_v34  ;;  %v11428_v49 = vld [vmem:[#allocation85_spill] sm:$0xff]  ;;  %v4806_v34 = vrot.slane %v10753_v2, %v8880_v8 }
0x3be8   :  { %6351 = vperm.xlu1 %8051, %v2015_v15   ;;  %6354 = vperm.xlu0 %8050, %v2016_v52   ;;  %v3420_v15 = vmul.f32 %v3402_v33, %v11413_v41  ;;  %v3419_v52 = vmul.f32 %v3402_v33, %v11414_v51  ;;  %v11430_v41 = vld [vmem:[#allocation68_spill] sm:$0xff]  ;;  %v4810_v51 = vrot.slane %v10753_v2, %v8974_v4 }
0x3bec   :  { %6357 = vperm.xlu1 %8051, %v2017_v29   ;;  %6360 = vperm.xlu0 %8050, %v2018_v39   ;;  %v11416_v29 = vld [vmem:[#allocation52_spill] sm:$0xff]  ;;  %v3410_v39 = vrot.slane %v10746_v36, %v8980_v43 }
0x3bed   :  { %v3421_v22 = vmul.f32 %v3406_v37, %v11416_v29  ;;  %v11432_v37 = vld [vmem:[#allocation71_spill] sm:$0xff]  ;;  %v11433_v29 = vld [vmem:[#allocation73_spill] sm:$0xff] }
0x3bee   :  { %v3424_v12 = vmul.f32 %v3410_v39, %v11417_v48  ;;  %v4825_v42 = vmul.f32 %v4810_v51, %v11432_v37 }
0x3bf0   :  { %6363 = vperm.xlu1 %8051, %v2019_v44   ;;  %6366 = vperm.xlu0 %8050, %v2020_v28   ;;  %v11418_v44 = vld [vmem:[#allocation55_spill] sm:$0xff]  ;;  %v3414_v28 = vrot.slane %v10746_v36, %v8971_v59  ;;  %v11423_v36 = vld [vmem:[#allocation82_spill] sm:$0xff] }
0x3bf1   :  { %v3423_v47 = vmul.f32 %v3410_v39, %v11418_v44  ;;  %v11434_v39 = vld [vmem:[#allocation74_spill] sm:$0xff] }
0x3bf2   :  { %v3426_v1 = vmul.f32 %v3414_v28, %v11419_v19  ;;  %v5512_v19 = vrot.slane %v10765_v57, %v8974_v4 }
0x3bf4   :  { %6369 = vperm.xlu1 %8051, %v2021_v38   ;;  %6372 = vperm.xlu0 %8050, %v2022_v5   ;;  %v11420_v38 = vld [vmem:[#allocation24_spill] sm:$0xff]  ;;  %v4104_v5 = vrot.slane %v10677_v27, %v8880_v8 }
0x3bf5   :  { %v3425_v13 = vmul.f32 %v3414_v28, %v11420_v38 }
0x3bf6   :  { %v4122_v9 = vmul.f32 %v4104_v5, %v11421_v46  ;;  %v4818_v46 = vrot.slane %v10753_v2, %v8971_v59 }
0x3bf8   :  { %6429 = vperm.xlu0 %8050, %v2718_v10   ;;  %6426 = vperm.xlu1 %8051, %v2717_v55   ;;  %v11422_v10 = vld [vmem:[#allocation79_spill] sm:$0xff]  ;;  %v4108_v55 = vrot.slane %v10677_v27, %v8974_v4  ;;  %v11431_v27 = vld [vmem:[#allocation72_spill] sm:$0xff] }
0x3bf9   :  { %v4121_v31 = vmul.f32 %v4104_v5, %v11422_v10 }
0x3bfa   :  { %v4124_v26 = vmul.f32 %v4108_v55, %v11423_v36  ;;  %v5516_v36 = vrot.slane %v10765_v57, %v8980_v43 }
0x3bfc   :  { %6435 = vperm.xlu0 %8050, %v2720_v24   ;;  %6432 = vperm.xlu1 %8051, %v2719_v50   ;;  %v4123_v24 = vmul.f32 %v4108_v55, %v11424_v62  ;;  %v11425_v50 = vld [vmem:[#allocation84_spill] sm:$0xff]  ;;  %v11440_v62 = vld [vmem:[#allocation103_spill] sm:$0xff] }
0x3bfd   :  { %v4126_v23 = vmul.f32 %v4112_v45, %v11425_v50 }
0x3c00   :  { %6441 = vperm.xlu0 %8050, %v2722_v11   ;;  %6438 = vperm.xlu1 %8051, %v2721_v6   ;;  %v4125_v11 = vmul.f32 %v4112_v45, %v11426_v7  ;;  %v11427_v6 = vld [vmem:[#allocation78_spill] sm:$0xff] }
0x3c01   :  { %v4128_v54 = vmul.f32 %v4116_v58, %v11427_v6  ;;  %v11441_v45 = vld [vmem:[#allocation102_spill] sm:$0xff] }
0x3c02   :  { %v5529_v50 = vmul.f32 %v5516_v36, %v11441_v45 }
0x3c04   :  { %6447 = vperm.xlu0 %8050, %v2724_v18   ;;  %6444 = vperm.xlu1 %8051, %v2723_v60   ;;  %v4127_v18 = vmul.f32 %v4116_v58, %v11428_v49  ;;  %v11429_v60 = vld [vmem:[#allocation70_spill] sm:$0xff] }
0x3c05   :  { %v4824_v33 = vmul.f32 %v4806_v34, %v11429_v60  ;;  %v11442_v60 = vld [vmem:[#allocation98_spill] sm:$0xff] }
0x3c08   :  { %6504 = vperm.xlu0 %8050, %v3420_v15   ;;  %6501 = vperm.xlu1 %8051, %v3419_v52   ;;  %v4823_v15 = vmul.f32 %v4806_v34, %v11430_v41  ;;  %v4826_v52 = vmul.f32 %v4810_v51, %v11431_v27  ;;  %v11443_v41 = vld [vmem:[#allocation104_spill] sm:$0xff] }
0x3c0c   :  { %6510 = vperm.xlu0 %8050, %v3422_v21   ;;  %6507 = vperm.xlu1 %8051, %v3421_v22   ;;  %v4814_v21 = vrot.slane %v10753_v2, %v8980_v43 }
0x3c0e   :  { %v4828_v22 = vmul.f32 %v4814_v21, %v11433_v29  ;;  %v4827_v48 = vmul.f32 %v4814_v21, %v11434_v39 }
0x3c10   :  { %6516 = vperm.xlu0 %8050, %v3424_v12   ;;  %6513 = vperm.xlu1 %8051, %v3423_v47   ;;  %v5508_v12 = vrot.slane %v10765_v57, %v8880_v8  ;;  %v11435_v47 = vld [vmem:[#allocation99_spill] sm:$0xff] }
0x3c12   :  { %v5526_v44 = vmul.f32 %v5508_v12, %v10428_v25  ;;  %v5525_v28 = vmul.f32 %v5508_v12, %v11435_v47  ;;  %v11438_v25 = vld [vmem:[#allocation87_spill] sm:$0xff] }
0x3c13   :  { %v4830_v10 = vmul.f32 %v4818_v46, %v11438_v25  ;;  %v11445_v25 = vld [vmem:[#allocation28_spill] sm:$0xff] }
0x3c14   :  { %6522 = vperm.xlu0 %8050, %v3426_v1   ;;  %6519 = vperm.xlu1 %8051, %v3425_v13   ;;  %v11436_v1 = vld [vmem:[#allocation101_spill] sm:$0xff]  ;;  %v11437_v13 = vld [vmem:[#allocation100_spill] sm:$0xff] }
0x3c15   :  { %v5528_v38 = vmul.f32 %v5512_v19, %v11436_v1  ;;  %v5527_v5 = vmul.f32 %v5512_v19, %v11437_v13 }
0x3c18   :  { %6579 = vperm.xlu0 %8050, %v4122_v9   ;;  %6576 = vperm.xlu1 %8051, %v4121_v31   ;;  %v10876_v9 = vunpack.i.h.bf16 %v10759_v53  ;;  %v11439_v31 = vld [vmem:[#allocation86_spill] sm:$0xff] }
0x3c19   :  { %v4829_v55 = vmul.f32 %v4818_v46, %v11439_v31 }
0x3c1a   :  { %v6210_v2 = vrot.slane %v10876_v9, %v8880_v8  ;;  %v6214_v6 = vrot.slane %v10876_v9, %v8974_v4 }
0x3c1c   :  { %6585 = vperm.xlu0 %8050, %v4124_v26   ;;  %6582 = vperm.xlu1 %8051, %v4123_v24   ;;  %v6237_v26 = vpop.permute.xlu1 %6236  ;;  %v5530_v24 = vmul.f32 %v5516_v36, %v11440_v62  ;;  %v6227_v58 = vmul.f32 %v6210_v2, %v10667_v0  ;;  %v6229_v34 = vmul.f32 %v6214_v6, %v10682_v14 }
0x3c1d   :  { %v6259_v53 = vsel %vm202_vm0, %v10663_v3, %v6237_v26  ;;  %v6230_v3 = vmul.f32 %v6214_v6, %v10689_v35  ;;  %v6218_v35 = vrot.slane %v10876_v9, %v8980_v43 }
0x3c1f   :  { %v6232_v14 = vmul.f32 %v6218_v35, %v10698_v40 }
0x3c20   :  { %6591 = vperm.xlu0 %8050, %v4126_v23   ;;  %6588 = vperm.xlu1 %8051, %v4125_v11   ;;  %v6228_v11 = vmul.f32 %v6210_v2, %v10673_v17  ;;  %v5520_v17 = vrot.slane %v10765_v57, %v8971_v59  ;;  %v6231_v57 = vmul.f32 %v6218_v35, %v10694_v32 }
0x3c24   :  { %6597 = vperm.xlu0 %8050, %v4128_v54   ;;  %6594 = vperm.xlu1 %8051, %v4127_v18  }
0x3c28   :  { %6654 = vperm.xlu0 %8050, %v4824_v33   ;;  %6651 = vperm.xlu1 %8051, %v4823_v15   ;;  %v5532_v33 = vmul.f32 %v5520_v17, %v11442_v60  ;;  %v5531_v15 = vmul.f32 %v5520_v17, %v11443_v41 }
0x3c2c   :  { %6660 = vperm.xlu0 %8050, %v4826_v52   ;;  %6657 = vperm.xlu1 %8051, %v4825_v42  }
0x3c30   :  { %6666 = vperm.xlu0 %8050, %v4828_v22   ;;  %6663 = vperm.xlu1 %8051, %v4827_v48  }
0x3c34   :  { %6729 = vperm.xlu0 %8050, %v5526_v44   ;;  %6726 = vperm.xlu1 %8051, %v5525_v28   ;;  %v11444_v44 = vld [vmem:[#allocation30_spill] sm:$0xff] }
0x3c35   :  { %v6374_v47 = vadd.s32 4294967280, %v11444_v44  ;;  %v6379_v28 = vadd.s32 4294967272, %v11444_v44 }
0x3c37   :  { %v6382_v31 = vsub.s32 %v6379_v28, %v11445_v25 }
0x3c38   :  { %6735 = vperm.xlu0 %8050, %v5528_v38   ;;  %6732 = vperm.xlu1 %8051, %v5527_v5  }
0x3c3c   :  { %6672 = vperm.xlu0 %8050, %v4830_v10   ;;  %6669 = vperm.xlu1 %8051, %v4829_v55   ;;  %v6377_v10 = vsub.s32 %v6374_v47, %v11445_v25  ;;  %v6524_v47 = vadd.s32 4294967248, %v11444_v44 }
0x3c40   :  { %6741 = vperm.xlu0 %8050, %v5530_v24   ;;  %6738 = vperm.xlu1 %8051, %v5529_v50  }
0x3c42   :  { %v6245_v23 = vpop.permute.xlu1 %6244  ;;  %v6241_v7 = vpop.permute.xlu0 %6240 }
0x3c43   :  { %v6260_v54 = vsel %vm1097_vm7, %v6259_v53, %v6241_v7 }
0x3c44   :  { %6804 = vperm.xlu0 %8050, %v6228_v11   ;;  %6801 = vperm.xlu1 %8051, %v6227_v58   ;;  %v10894_v8 = vsel %vm1105_vm8, %v6260_v54, %v6245_v23 }
0x3c46   :  { %v6253_v49 = vpop.permute.xlu1 %6252  ;;  %v6249_v18 = vpop.permute.xlu0 %6248 }
0x3c47   :  { %v6262_v0 = vsel %vm202_vm0, %v10685_v16, %v6249_v18  ;;  %v10913_v16 = vrot.slane %v10876_v9, %v8971_v59  ;;  %v6449_v18 = vadd.s32 4294967264, %v11444_v44 }
0x3c48   :  { %6810 = vperm.xlu0 %8050, %v6230_v3   ;;  %6807 = vperm.xlu1 %8051, %v6229_v34   ;;  %v10903_v4 = vsel %vm1097_vm7, %v6262_v0, %v6253_v49  ;;  %v6454_v49 = vadd.s32 4294967256, %v11444_v44 }
0x3c49   :  { %v6233_v51 = vmul.f32 %v10913_v16, %v10703_v20 }
0x3c4a   :  { %v6457_v41 = vsub.s32 %v6454_v49, %v11445_v25 }
0x3c4c   :  { %6747 = vperm.xlu0 %8050, %v5532_v33   ;;  %6744 = vperm.xlu1 %8051, %v5531_v15   ;;  %v6452_v15 = vsub.s32 %v6449_v18, %v11445_v25 }
0x3c50   :  { %6816 = vperm.xlu0 %8050, %v6232_v14   ;;  %6813 = vperm.xlu1 %8051, %v6231_v57  }
0x3c54   :  { %6819 = vperm.xlu1 %8051, %v6233_v51  }
0x3c57   :  { %v6280_v27 = vpop.permute.xlu1 %6279  ;;  %v6283_v52 = vpop.permute.xlu0 %6282 }
0x3c58   :  { %v6305_v43 = vrot.slane %v6280_v27, %v8939_v61  ;;  %v6309_v37 = vrot.slane %v6283_v52, %v8942_v56 }
0x3c5a   :  { %v6310_v40 = vsel %vm811_vm5, %v6309_v37, %v6305_v43 }
0x3c5b   :  { %v6286_v42 = vpop.permute.xlu1 %6285  ;;  %v6289_v32 = vpop.permute.xlu0 %6288 }
0x3c5c   :  { %v6314_v21 = vrot.slane %v6286_v42, %v8939_v61  ;;  %v6318_v59 = vrot.slane %v6289_v32, %v8942_v56 }
0x3c5e   :  { %v6319_v29 = vsel %vm811_vm5, %v6318_v59, %v6314_v21 }
0x3c5f   :  { %v6338_v22 = vsel %vm512_vm2, %v6319_v29, %v6310_v40  ;;  %v6292_v20 = vpop.permute.xlu1 %6291  ;;  %v6295_v39 = vpop.permute.xlu0 %6294 }
0x3c60   :  { %v6323_v48 = vrot.slane %v6292_v20, %v8939_v61  ;;  %v6327_v12 = vrot.slane %v6295_v39, %v8942_v56 }
0x3c62   :  { %v6328_v19 = vsel %vm811_vm5, %v6327_v12, %v6323_v48  ;;  %v6529_v12 = vadd.s32 4294967240, %v11444_v44 }
0x3c63   :  { %v6339_v1 = vsel %vm514_vm3, %v6328_v19, %v6338_v22  ;;  %v6298_v38 = vpop.permute.xlu1 %6297  ;;  %v6301_v13 = vpop.permute.xlu0 %6300 }
0x3c64   :  { %v6332_v5 = vrot.slane %v6298_v38, %v8939_v61  ;;  %v6336_v46 = vrot.slane %v6301_v13, %v8942_v56 }
0x3c66   :  { %v6337_v55 = vsel %vm811_vm5, %v6336_v46, %v6332_v5  ;;  %vm6867_vm5 = vcmask 130048   ;;  %v6532_v46 = vsub.s32 %v6529_v12, %v11445_v25 }
0x3c67   :  { %v6340_v36 = vsel %vm516_vm4, %v6337_v55, %v6339_v1  ;;  %v6352_v26 = vpop.permute.xlu1 %6351  ;;  %v6355_v62 = vpop.permute.xlu0 %6354 }
0x3c68   :  { %v6378_v24 = vrot.slane %v6352_v26, %v6377_v10  ;;  %v6383_v45 = vrot.slane %v6355_v62, %v6382_v31 }
0x3c6a   :  { %v6385_v50 = vsel %vm6384_vm6, %v6383_v45, %v6378_v24 }
0x3c6b   :  { %v6358_v2 = vpop.permute.xlu1 %6357  ;;  %v6361_v53 = vpop.permute.xlu0 %6360 }
0x3c6c   :  { %v6389_v61 = vrot.slane %v6358_v2, %v6377_v10  ;;  %v6393_v23 = vrot.slane %v6361_v53, %v6382_v31 }
0x3c6e   :  { %v6394_v56 = vsel %vm6384_vm6, %v6393_v23, %v6389_v61 }
0x3c6f   :  { %v6413_v7 = vsel %vm512_vm2, %v6394_v56, %v6385_v50  ;;  %v6364_v11 = vpop.permute.xlu1 %6363  ;;  %v6367_v58 = vpop.permute.xlu0 %6366 }
0x3c70   :  { %v6398_v6 = vrot.slane %v6364_v11, %v6377_v10  ;;  %v6402_v54 = vrot.slane %v6367_v58, %v6382_v31 }
0x3c72   :  { %v6403_v3 = vsel %vm6384_vm6, %v6402_v54, %v6398_v6  ;;  %v451_v6 = vcombine.high %v11388_v30, %v11388_v30 }
0x3c73   :  { %v6414_v34 = vsel %vm514_vm3, %v6403_v3, %v6413_v7  ;;  %v6370_v17 = vpop.permute.xlu1 %6369  ;;  %v6373_v0 = vpop.permute.xlu0 %6372 }
0x3c74   :  { %v6407_v60 = vrot.slane %v6370_v17, %v6377_v10  ;;  %v6411_v33 = vrot.slane %v6373_v0, %v6382_v31  ;;  %v6527_v10 = vsub.s32 %v6524_v47, %v11445_v25  ;;  %v6604_v0 = vadd.s32 4294967224, %v11444_v44 }
0x3c76   :  { %v6412_v35 = vsel %vm6384_vm6, %v6411_v33, %v6407_v60  ;;  %v6599_v60 = vadd.s32 4294967232, %v11444_v44 }
0x3c77   :  { %v6415_v14 = vsel %vm516_vm4, %v6412_v35, %v6414_v34  ;;  %v6430_v57 = vpop.permute.xlu0 %6429  ;;  %v6427_v51 = vpop.permute.xlu1 %6426 }
0x3c78   :  { %v6868_v27 = vsel %vm6867_vm5, %v6340_v36, %v6415_v14  ;;  %v6458_v52 = vrot.slane %v6430_v57, %v6457_v41  ;;  %v6453_v43 = vrot.slane %v6427_v51, %v6452_v15  ;;  %v6607_v51 = vsub.s32 %v6604_v0, %v11445_v25 }
0x3c7a   :  { %v6460_v37 = vsel %vm6459_vm9, %v6458_v52, %v6453_v43 }
0x3c7b   :  { %v6436_v40 = vpop.permute.xlu0 %6435  ;;  %v6433_v42 = vpop.permute.xlu1 %6432 }
0x3c7c   :  { %v6468_v32 = vrot.slane %v6436_v40, %v6457_v41  ;;  %v6464_v21 = vrot.slane %v6433_v42, %v6452_v15 }
0x3c7e   :  { %v6469_v59 = vsel %vm6459_vm9, %v6468_v32, %v6464_v21 }
0x3c7f   :  { %v6488_v29 = vsel %vm512_vm2, %v6469_v59, %v6460_v37  ;;  %v6442_v22 = vpop.permute.xlu0 %6441  ;;  %v6439_v20 = vpop.permute.xlu1 %6438 }
0x3c80   :  { %v6477_v39 = vrot.slane %v6442_v22, %v6457_v41  ;;  %v6473_v48 = vrot.slane %v6439_v20, %v6452_v15 }
0x3c82   :  { %v6478_v28 = vsel %vm6459_vm9, %v6477_v39, %v6473_v48 }
0x3c83   :  { %v6489_v19 = vsel %vm514_vm3, %v6478_v28, %v6488_v29  ;;  %v6448_v1 = vpop.permute.xlu0 %6447  ;;  %v6445_v38 = vpop.permute.xlu1 %6444 }
0x3c84   :  { %v6486_v13 = vrot.slane %v6448_v1, %v6457_v41  ;;  %v6482_v5 = vrot.slane %v6445_v38, %v6452_v15 }
0x3c86   :  { %v6487_v31 = vsel %vm6459_vm9, %v6486_v13, %v6482_v5 }
0x3c87   :  { %v6490_v55 = vsel %vm516_vm4, %v6487_v31, %v6489_v19  ;;  %v6505_v36 = vpop.permute.xlu0 %6504  ;;  %v6502_v26 = vpop.permute.xlu1 %6501 }
0x3c88   :  { %v6869_v62 = vsel %vm202_vm0, %v6868_v27, %v6490_v55  ;;  %v6533_v24 = vrot.slane %v6505_v36, %v6532_v46  ;;  %v6528_v45 = vrot.slane %v6502_v26, %v6527_v10  ;;  %vm6870_vm0 = vcmask 392192  }
0x3c89   :  { %v6602_v27 = vsub.s32 %v6599_v60, %v11445_v25 }
0x3c8a   :  { %v6535_v50 = vsel %vm6534_vm10, %v6533_v24, %v6528_v45 }
0x3c8b   :  { %v6511_v2 = vpop.permute.xlu0 %6510  ;;  %v6508_v53 = vpop.permute.xlu1 %6507 }
0x3c8c   :  { %v6543_v61 = vrot.slane %v6511_v2, %v6532_v46  ;;  %v6539_v23 = vrot.slane %v6508_v53, %v6527_v10 }
0x3c8e   :  { %v6544_v56 = vsel %vm6534_vm10, %v6543_v61, %v6539_v23 }
0x3c8f   :  { %v6563_v7 = vsel %vm512_vm2, %v6544_v56, %v6535_v50  ;;  %v6517_v11 = vpop.permute.xlu0 %6516  ;;  %v6514_v58 = vpop.permute.xlu1 %6513 }
0x3c90   :  { %v6552_v54 = vrot.slane %v6517_v11, %v6532_v46  ;;  %v6548_v49 = vrot.slane %v6514_v58, %v6527_v10  ;;  %v6194_v18 = vpop.f32.mrb[38].mxu0 }
0x3c91   :  { %v6198_v3 = vadd.f32 %v6194_v18, %v451_v6  ;;  %v7720_v34 = vpop.f32.mrb[39].mxu0 }
0x3c92   :  { %v6553_v17 = vsel %vm6534_vm10, %v6552_v54, %v6548_v49  ;;  %v6679_v34 = vadd.s32 4294967208, %v11444_v44 }
0x3c93   :  { %v6564_v33 = vsel %vm514_vm3, %v6553_v17, %v6563_v7  ;;  %v6206_v41 = vmul.f32 %v10876_v9, %v6198_v3  ;;  %v6523_v15 = vpop.permute.xlu0 %6522  ;;  %v6520_v35 = vpop.permute.xlu1 %6519  ;;  %v6234_v9 = vmul.f32 %v10913_v16, %v10707_v63  ;;  %v6674_v17 = vadd.s32 4294967216, %v11444_v44 }
0x3c94   :  { %v6561_v14 = vrot.slane %v6523_v15, %v6532_v46  ;;  %v6557_v57 = vrot.slane %v6520_v35, %v6527_v10  ;;  %v6749_v15 = vadd.s32 4294967200, %v11444_v44  ;;  %v6829_v35 = vadd.s32 4294967176, %v11444_v44 }
0x3c95   :  { %6256 = vrot.lane.b32.xlu0 %v6206_v41, %s8570_s22  ;;  %s6885_s22 = sshll.u32 %s8572_s20, 4  ;;  %v6754_v41 = vadd.s32 4294967192, %v11444_v44  ;;  %s6886_s22 = int_to_ptr.vmem [resolvable:$true] %s6885_s22 }
0x3c96   :  { %v6562_v30 = vsel %vm6534_vm10, %v6561_v14, %v6557_v57  ;;  %v6824_v14 = vadd.s32 4294967184, %v11444_v44  ;;  %s8499_s11 = scalar_lea.vmem %s6886_s22, 128  ;;  %p8504_p7 = scmp.lt.s32.totalorder %s6886_s22, %s6886_s22 }
0x3c97   :  { %v6565_v52 = vsel %vm516_vm4, %v6562_v30, %v6564_v33  ;;  %v6580_v43 = vpop.permute.xlu0 %6579  ;;  %v6577_v37 = vpop.permute.xlu1 %6576  ;;  %v6682_v30 = vsub.s32 %v6679_v34, %v11445_v25  ;;  %p8500_p6 = scmp.ne.s32.totalorder %s6886_s22, %s8499_s11  ;;  %p8505_p8 = scmp.lt.s32.totalorder %s8499_s11, %s8499_s11 }
0x3c98   :  { %v6871_v40 = vsel %vm6870_vm0, %v6869_v62, %v6565_v52  ;;  %v6608_v42 = vrot.slane %v6580_v43, %v6607_v51  ;;  %v6603_v32 = vrot.slane %v6577_v37, %v6602_v27 }
0x3c99   :  { %6822 = vperm.xlu0 %8050, %v6234_v9   ;;  %p8506_p9 = por %p8505_p8, %p8504_p7 }
0x3c9a   :  { %v6610_v20 = vsel %vm6609_vm11, %v6608_v42, %v6603_v32 }
0x3c9b   :  { %v6586_v21 = vpop.permute.xlu0 %6585  ;;  %v6583_v59 = vpop.permute.xlu1 %6582  ;;  %p8507_p10 = pnand %p8506_p9, %p8500_p6 }
0x3c9c   :  { %v6618_v29 = vrot.slane %v6586_v21, %v6607_v51  ;;  %v6614_v22 = vrot.slane %v6583_v59, %v6602_v27 }
0x3c9e   :  { %v6619_v39 = vsel %vm6609_vm11, %v6618_v29, %v6614_v22 }
0x3c9f   :  { %v6638_v48 = vsel %vm512_vm2, %v6619_v39, %v6610_v20  ;;  %v6592_v12 = vpop.permute.xlu0 %6591  ;;  %v6589_v47 = vpop.permute.xlu1 %6588 }
0x3ca0   :  { %v6627_v28 = vrot.slane %v6592_v12, %v6607_v51  ;;  %v6623_v19 = vrot.slane %v6589_v47, %v6602_v27 }
0x3ca2   :  { %v6628_v63 = vsel %vm6609_vm11, %v6627_v28, %v6623_v19 }
0x3ca3   :  { %v6639_v16 = vsel %vm514_vm3, %v6628_v63, %v6638_v48  ;;  %v6598_v1 = vpop.permute.xlu0 %6597  ;;  %v6595_v38 = vpop.permute.xlu1 %6594 }
0x3ca4   :  { %v6636_v13 = vrot.slane %v6598_v1, %v6607_v51  ;;  %v6632_v5 = vrot.slane %v6595_v38, %v6602_v27  ;;  %v6677_v51 = vsub.s32 %v6674_v17, %v11445_v25 }
0x3ca6   :  { %v6637_v46 = vsel %vm6609_vm11, %v6636_v13, %v6632_v5 }
0x3ca7   :  { %v6640_v10 = vsel %vm516_vm4, %v6637_v46, %v6639_v16  ;;  %v10986_v55 = vpop.permute.xlu0 %6654  ;;  %v10992_v62 = vpop.permute.xlu1 %6651 }
0x3ca8   :  { %v10984_v31 = vsel %vm1097_vm7, %v6871_v40, %v6640_v10 }
0x3cab   :  { %v10988_v36 = vpop.permute.xlu0 %6660  ;;  %v10996_v45 = vpop.permute.xlu1 %6657 }
0x3caf   :  { %v10990_v26 = vpop.permute.xlu0 %6666  ;;  %v11000_v2 = vpop.permute.xlu1 %6663 }
0x3cb3   :  { %v10994_v24 = vpop.permute.xlu0 %6729  ;;  %v11004_v61 = vpop.permute.xlu1 %6726 }
0x3cb7   :  { %v10998_v50 = vpop.permute.xlu0 %6735  ;;  %v11008_v56 = vpop.permute.xlu1 %6732 }
0x3cbb   :  { %v11002_v53 = vpop.permute.xlu0 %6672  ;;  %v11012_v11 = vpop.permute.xlu1 %6669 }
0x3cbf   :  { %v11006_v23 = vpop.permute.xlu0 %6741  ;;  %v11016_v6 = vpop.permute.xlu1 %6738 }
0x3cc3   :  { %v11010_v7 = vpop.permute.xlu0 %6804  ;;  %v11020_v49 = vpop.permute.xlu1 %6801 }
0x3cc7   :  { %v11014_v58 = vpop.permute.xlu0 %6810  ;;  %v11024_v3 = vpop.permute.xlu1 %6807 }
0x3ccb   :  { %v11018_v54 = vpop.permute.xlu0 %6747  ;;  %v6745_v57 = vpop.permute.xlu1 %6744 }
0x3ccf   :  { %v11022_v18 = vpop.permute.xlu0 %6816 }
0x3d07   :  { %v6257_v0 = vpop.permute.xlu0 %6256 }
0x3d08   :  { %v6264_v60 = vsel %vm1105_vm8, %v10903_v4, %v6257_v0 }
0x3d09   :  { %v6267_v33 = vcombine.low %v10894_v8, %v6264_v60 }
0x3d0b   :  { %6269 = vst [vmem:[#allocation14] sm:$0xff] %v6267_v33 }
0x3d0c   :  { %8510 = shalt.err (!%p8507_p10)
}
0x3d0d   :  { %s8511_s13 = scalar_lea.hbm %s11124_s16, 128 }
0x3d0e   :  { %p8512_p11 = scmp.ne.s32.totalorder %s11124_s16, %s8511_s13  ;;  %p8515_p12 = scmp.lt.u32.totalorder %s8511_s13, %s11124_s16 }
0x3d10   :  { %p8517_p13 = pnand %p8515_p12, %p8512_p11 }
0x3d12   :  { %8520 = shalt.err (!%p8517_p13)
}
0x3d13   :  { %6888 = dma.vmem_to_hbm [thread:$0]  %s6886_s22, 128, %s11124_s16, [#allocation5]   ;;  %vm6684_vm7 = vcmask 786112   ;;  %vm6759_vm12 = vcmask 917312   ;;  %v6757_v8 = vsub.s32 %v6754_v41, %v11445_v25  ;;  %v6752_v4 = vsub.s32 %v6749_v15, %v11445_v25  ;;  %v6814_v59 = vpop.permute.xlu1 %6813 }
0x3d14   :  { %v6832_v44 = vsub.s32 %v6829_v35, %v11445_v25  ;;  %v6827_v27 = vsub.s32 %v6824_v14, %v11445_v25  ;;  %v6683_v52 = vrot.slane %v10986_v55, %v6682_v30  ;;  %v6678_v43 = vrot.slane %v10992_v62, %v6677_v51  ;;  %s8573_s16 = smov [#allocation15]  }
0x3d15   :  { %v6693_v37 = vrot.slane %v10988_v36, %v6682_v30  ;;  %v6689_v9 = vrot.slane %v10996_v45, %v6677_v51  ;;  %v6702_v40 = vrot.slane %v10990_v26, %v6682_v30  ;;  %v6698_v42 = vrot.slane %v11000_v2, %v6677_v51  ;;  %s6895_s26 = sshll.u32 %s8573_s16, 4  ;;  %s6896_s26 = int_to_ptr.vmem [resolvable:$true] %s6895_s26 }
0x3d16   :  { %v6768_v32 = vrot.slane %v10998_v50, %v6757_v8  ;;  %v6764_v21 = vrot.slane %v11008_v56, %v6752_v4  ;;  %v6711_v29 = vrot.slane %v11002_v53, %v6682_v30  ;;  %v6707_v25 = vrot.slane %v11012_v11, %v6677_v51  ;;  %s8521_s0 = scalar_lea.vmem %s6896_s26, 64  ;;  %p8526_p1 = scmp.lt.s32.totalorder %s6896_s26, %s6896_s26 }
0x3d17   :  { %v6777_v22 = vrot.slane %v11006_v23, %v6757_v8  ;;  %v6773_v20 = vrot.slane %v11016_v6, %v6752_v4  ;;  %v6758_v39 = vrot.slane %v10994_v24, %v6757_v8  ;;  %v6753_v48 = vrot.slane %v11004_v61, %v6752_v4  ;;  %v6820_v45 = vpop.permute.xlu1 %6819  ;;  %p8522_p0 = scmp.ne.s32.totalorder %s6896_s26, %s8521_s0  ;;  %p8527_p2 = scmp.lt.s32.totalorder %s8521_s0, %s8521_s0 }
0x3d18   :  { %v6786_v12 = vrot.slane %v11018_v54, %v6757_v8  ;;  %v6782_v47 = vrot.slane %v6745_v57, %v6752_v4  ;;  %v6685_v28 = vsel %vm6684_vm7, %v6683_v52, %v6678_v43  ;;  %v6694_v19 = vsel %vm6684_vm7, %v6693_v37, %v6689_v9 }
0x3d19   :  { %v6843_v63 = vrot.slane %v11014_v58, %v6832_v44  ;;  %v6839_v16 = vrot.slane %v11024_v3, %v6827_v27  ;;  %v6703_v1 = vsel %vm6684_vm7, %v6702_v40, %v6698_v42  ;;  %v6769_v38 = vsel %vm6759_vm12, %v6768_v32, %v6764_v21  ;;  %p8528_p3 = por %p8527_p2, %p8526_p1 }
0x3d1a   :  { %v6852_v13 = vrot.slane %v11022_v18, %v6832_v44  ;;  %v6848_v5 = vrot.slane %v6814_v59, %v6827_v27  ;;  %v6712_v46 = vsel %vm6684_vm7, %v6711_v29, %v6707_v25  ;;  %v6778_v10 = vsel %vm6759_vm12, %v6777_v22, %v6773_v20 }
0x3d1b   :  { %v6833_v55 = vrot.slane %v11010_v7, %v6832_v44  ;;  %v6828_v36 = vrot.slane %v11020_v49, %v6827_v27  ;;  %v6713_v26 = vsel %vm512_vm2, %v6694_v19, %v6685_v28  ;;  %v6760_v62 = vsel %vm6759_vm12, %v6758_v39, %v6753_v48  ;;  %v6823_v7 = vpop.permute.xlu0 %6822  ;;  %p8529_p4 = pnand %p8528_p3, %p8522_p0 }
0x3d1c   :  { %vm6834_vm13 = vcmask 1048512   ;;  %v6787_v24 = vsel %vm6759_vm12, %v6786_v12, %v6782_v47  ;;  %v6714_v50 = vsel %vm514_vm3, %v6703_v1, %v6713_v26  ;;  %v6788_v2 = vsel %vm512_vm2, %v6769_v38, %v6760_v62 }
0x3d1d   :  { %v6844_v53 = vsel %vm6834_vm13, %v6843_v63, %v6839_v16  ;;  %v6715_v61 = vsel %vm516_vm4, %v6712_v46, %v6714_v50  ;;  %v6789_v23 = vsel %vm514_vm3, %v6778_v10, %v6788_v2  ;;  %v6853_v56 = vsel %vm6834_vm13, %v6852_v13, %v6848_v5 }
0x3d1e   :  { %vm6873_vm14 = vcmask 654336   ;;  %v6835_v11 = vsel %vm6834_vm13, %v6833_v55, %v6828_v36  ;;  %v6857_v58 = vrot.slane %v6820_v45, %v6827_v27  ;;  %v6861_v6 = vrot.slane %v6823_v7, %v6832_v44 }
0x3d1f   :  { %v6790_v54 = vsel %vm516_vm4, %v6787_v24, %v6789_v23  ;;  %v6863_v49 = vsel %vm512_vm2, %v6844_v53, %v6835_v11  ;;  %vm6876_vm15 = vcmask 916480   ;;  %v6874_v34 = vsel %vm6873_vm14, %v10984_v31, %v6715_v61 }
0x3d20   :  { %v6862_v18 = vsel %vm6834_vm13, %v6861_v6, %v6857_v58  ;;  %v6864_v3 = vsel %vm514_vm3, %v6853_v56, %v6863_v49  ;;  %v6875_v0 = vsel %vm1105_vm8, %v6874_v34, %v6790_v54 }
0x3d21   :  { %v6865_v17 = vsel %vm516_vm4, %v6862_v18, %v6864_v3 }
0x3d22   :  { %v6877_v60 = vsel %vm6876_vm15, %v6875_v0, %v6865_v17 }
0x3d23   :  { %6878 = vst [vmem:[#allocation15] sm:$0xf] %v6877_v60 }
0x3d24   :  { %8532 = shalt.err (!%p8529_p4)
}
0x3d25   :  { %s8533_s14 = scalar_lea.hbm %s11125_s17, 64 }
0x3d26   :  { %p8534_p5 = scmp.ne.s32.totalorder %s11125_s17, %s8533_s14  ;;  %p8537_p6 = scmp.lt.u32.totalorder %s8533_s14, %s11125_s17 }
0x3d28   :  { %p8539_p7 = pnand %p8537_p6, %p8534_p5 }
0x3d2a   :  { %8542 = shalt.err (!%p8539_p7)
}
0x3d2b   :  { %6898 = dma.vmem_to_hbm [thread:$0]  %s6896_s26, 64, %s11125_s17, [#allocation16]  }
0x3d2c   :  { %8551 = dma.done.wait [#allocation5], 128  }
0x3d2d   :  { %8552 = vsyncadd [#allocation5], 4294967168 }
0x3d2e   :  { %8553 = dma.done.wait [#allocation16], 64  }
0x3d2f   :  { %8554 = vsyncadd [#allocation16], 4294967232 }
0x3d30   :  { %6905 = vsyncpa [#allocation4], 1 }
0x3d31   :  { %6906 = vsyncpa [#allocation7], 1 }
0x3d32   :  { %6907 = vsyncpa [#allocation10], 1 }
0x3d33   :  { %6908 = vsyncpa [#allocation13], 1 }
0x3d34   :  { %6909 = vsyncpa [#allocation5], 1 }
0x3d35   :  { %6910 = vsyncpa [#allocation16], 1 }

</bundles_post_ra>
